<compile_context>
chip_gen: v7x
topology: tpu7x:2x2x1
jax: 0.10.0
libtpu: 0.0.40
codegen_flags: <defaults>
</compile_context>

<pallas_src>
import functools
import numpy as np

import jax
import jax.numpy as jnp
from jax.experimental import pallas as pl
from jax.experimental.pallas import tpu as pltpu

# ---------------- configuration (small, consistent with the module) --------
INPUT_SIZE = 16       # H = W
PATCH = 8
IN_CH = 3
HIDDEN = 128
DEPTH = 2             # one (spatial, temporal) block pair
NUM_HEADS = 4
MLP_RATIO = 4.0
NUM_FRAMES = 2
NUM_CAMERAS = 2
LANG_DIM = 32
OUT_DIM = HIDDEN
NUM_PATCHES = (INPUT_SIZE // PATCH) ** 2
HEAD_DIM = HIDDEN // NUM_HEADS
MLP_HIDDEN = int(HIDDEN * MLP_RATIO)


# ---------------- sin-cos positional embeddings (verbatim port, numpy) -----
def get_1d_sincos_pos_embed_from_grid(embed_dim, pos):
    assert embed_dim % 2 == 0
    omega = np.arange(embed_dim // 2, dtype=np.float64)
    omega /= embed_dim / 2.0
    omega = 1.0 / 10000 ** omega
    pos = pos.reshape(-1)
    out = np.einsum('m,d->md', pos, omega)
    emb_sin = np.sin(out)
    emb_cos = np.cos(out)
    return np.concatenate([emb_sin, emb_cos], axis=1)


def get_2d_sincos_pos_embed_from_grid(embed_dim, grid):
    assert embed_dim % 2 == 0
    emb_h = get_1d_sincos_pos_embed_from_grid(embed_dim // 2, grid[0])
    emb_w = get_1d_sincos_pos_embed_from_grid(embed_dim // 2, grid[1])
    return np.concatenate([emb_h, emb_w], axis=1)


def get_2d_sincos_pos_embed(embed_dim, grid_size):
    grid_h = np.arange(grid_size, dtype=np.float32)
    grid_w = np.arange(grid_size, dtype=np.float32)
    grid = np.meshgrid(grid_w, grid_h)
    grid = np.stack(grid, axis=0)
    grid = grid.reshape([2, 1, grid_size, grid_size])
    return get_2d_sincos_pos_embed_from_grid(embed_dim, grid)


# ---------------- Pallas kernel ---------------------------------------------
def _adaln_block(x, c_silu, qkv_w, qkv_b, proj_w, proj_b, w1, b1, w2, b2,
                 ada_w, ada_b, attn_bias, head_masks, head_dim):
    """One AdaLN-Zero transformer block on the whole (R, D) token matrix.

    attn_bias: (R, R) static additive mask (0 for same attention group,
               -1e30 across groups) — implements the spatial / temporal
               grouping of the original module without any relayout.
    head_masks: list of (1, D) 0/1 feature masks, one per head.
    """
    D = x.shape[-1]

    # adaLN modulation: Linear(SiLU(c)) -> 6 chunks of (R, D), already per-row.
    ada = jnp.dot(c_silu, ada_w, preferred_element_type=jnp.float32) + ada_b
    shift_msa = ada[:, 0 * D:1 * D]
    scale_msa = ada[:, 1 * D:2 * D]
    gate_msa = ada[:, 2 * D:3 * D]
    shift_mlp = ada[:, 3 * D:4 * D]
    scale_mlp = ada[:, 4 * D:5 * D]
    gate_mlp = ada[:, 5 * D:6 * D]

    def layernorm(v, eps):
        mu = jnp.mean(v, axis=-1, keepdims=True)
        var = jnp.mean((v - mu) ** 2, axis=-1, keepdims=True)
        return (v - mu) * jax.lax.rsqrt(var + eps)

    # ---- attention branch ----
    xm = layernorm(x, 1e-6) * (1.0 + scale_msa) + shift_msa
    qkv = jnp.dot(xm, qkv_w, preferred_element_type=jnp.float32) + qkv_b
    q = qkv[:, 0:D]                       # 128-lane-aligned slices
    k = qkv[:, D:2 * D]
    v = qkv[:, 2 * D:3 * D]
    kT = k.T                              # single transpose, reused per head
    scale = 1.0 / float(np.sqrt(head_dim))

    attn = jnp.zeros_like(x)
    for hm in head_masks:                 # static unroll; full-width matmuls
        s = jnp.dot(q * hm, kT, preferred_element_type=jnp.float32) * scale
        s = s + attn_bias
        s = s - jnp.max(s, axis=-1, keepdims=True)
        p = jnp.exp(s)
        p = p * pl.reciprocal(jnp.sum(p, axis=-1, keepdims=True), approx=True)
        # (v * hm) zeroes other heads' columns -> accumulate, no concatenate.
        attn = attn + jnp.dot(p, v * hm, preferred_element_type=jnp.float32)

    attn = jnp.dot(attn, proj_w, preferred_element_type=jnp.float32) + proj_b
    x = x + gate_msa * attn

    # ---- MLP branch (GELU tanh approximation) ----
    xm2 = layernorm(x, 1e-6) * (1.0 + scale_mlp) + shift_mlp
    h1 = jnp.dot(xm2, w1, preferred_element_type=jnp.float32) + b1
    g = 0.5 * h1 * (1.0 + jnp.tanh(0.7978845608028654 *
                                   (h1 + 0.044715 * h1 * h1 * h1)))
    h2 = jnp.dot(g, w2, preferred_element_type=jnp.float32) + b2
    return x + gate_mlp * h2


def _vision_encoder_kernel(
        patches_ref, patch_w_ref, patch_b_ref, posrow_ref, temprow_ref,
        y_ref, lang_w_ref, lang_b_ref, hmask_ref, sp_bias_ref, tp_bias_ref,
        qkv_w_ref, qkv_b_ref, proj_w_ref, proj_b_ref,
        w1_ref, b1_ref, w2_ref, b2_ref, ada_w_ref, ada_b_ref,
        ln_w_ref, ln_b_ref, out_w_ref, out_b_ref, cam_onehot_ref,
        o_ref, *, num_heads, head_dim, depth, batch, num_cameras,
        tokens_per_sample, pool_tokens):
    D = patch_w_ref.shape[1]

    # ---- language conditioning: SiLU -> Linear, broadcast per token row ----
    yv = y_ref[...].astype(jnp.float32)
    y_silu = yv * jax.nn.sigmoid(yv)
    y_embed = (jnp.dot(y_silu, lang_w_ref[...],
                       preferred_element_type=jnp.float32) + lang_b_ref[...])
    c_rows = jnp.concatenate(
        [jnp.broadcast_to(y_embed[b:b + 1, :], (tokens_per_sample, D))
         for b in range(batch)], axis=0)                       # (R, D)
    c_silu = c_rows * jax.nn.sigmoid(c_rows)

    # ---- patch embedding + (pos + camera) additive embeddings ----
    x = jnp.dot(patches_ref[...], patch_w_ref[...],
                preferred_element_type=jnp.float32)
    x = x + patch_b_ref[...] + posrow_ref[...]

    hm_all = hmask_ref[...]
    head_masks = [hm_all[h:h + 1, :] for h in range(num_heads)]
    sp_bias = sp_bias_ref[...]
    tp_bias = tp_bias_ref[...]

    def block(xx, d, bias):
        return _adaln_block(
            xx, c_silu,
            qkv_w_ref[d], qkv_b_ref[d], proj_w_ref[d], proj_b_ref[d],
            w1_ref[d], b1_ref[d], w2_ref[d], b2_ref[d],
            ada_w_ref[d], ada_b_ref[d], bias, head_masks, head_dim)

    # (spatial, temporal) block pairs; trailing unpaired block is dropped,
    # matching the original module's `if i + 1 >= len(blocks): break`.
    for pair in range(depth // 2):
        x = block(x, 2 * pair, sp_bias)          # spatial attention groups
        if pair == 0:
            x = x + temprow_ref[...]             # temp_embed after 1st spatial block
        x = block(x, 2 * pair + 1, tp_bias)      # temporal attention groups

    # ---- per-(batch, camera) mean pool over T*P contiguous token rows ----
    feats = []
    for g in range(batch * num_cameras):
        blk = x[g * pool_tokens:(g + 1) * pool_tokens, :]
        feats.append(jnp.mean(blk, axis=0, keepdims=True))
    feat = jnp.concatenate(feats, axis=0)        # (B*Nc, D), rows = (b, cam)

    # LayerNorm (eps 1e-5) with per-camera affine, then per-camera projection.
    mu = jnp.mean(feat, axis=-1, keepdims=True)
    var = jnp.mean((feat - mu) ** 2, axis=-1, keepdims=True)
    feat_n = (feat - mu) * jax.lax.rsqrt(var + 1e-5)
    gamma = jnp.concatenate([ln_w_ref[...]] * batch, axis=0)   # (B*Nc, D)
    beta = jnp.concatenate([ln_b_ref[...]] * batch, axis=0)
    feat_ln = feat_n * gamma + beta

    cam_onehot = cam_onehot_ref[...]             # (B*Nc, Nc), static one-hot
    out = jnp.zeros((batch * num_cameras, out_w_ref.shape[-1]), jnp.float32)
    for c in range(num_cameras):
        proj = (jnp.dot(feat_ln, out_w_ref[c],
                        preferred_element_type=jnp.float32) + out_b_ref[c])
        out = out + proj * cam_onehot[:, c:c + 1]
    o_ref[...] = out.astype(o_ref.dtype)


def vision_encoder_pallas(x_img, y, params):
    """Full VisionEncoder forward in a single pallas_call.

    x_img: (B, Nc, T, C, H, W), y: (B, LANG_DIM) -> (B, Nc, OUT_DIM).
    """
    B, Nc, T, C, H, W = x_img.shape
    D = HIDDEN
    Hp, Wp = H // PATCH, W // PATCH
    P = Hp * Wp
    R = B * Nc * T * P

    # ---- patchify: PatchEmbed conv (k=s=patch) as matmul rows, canonical
    #      (b, n, t, p) row order (the natural order of the input tensor).
    xi = x_img.reshape(B * Nc * T, C, Hp, PATCH, Wp, PATCH)
    patches = xi.transpose(0, 2, 4, 1, 3, 5).reshape(R, C * PATCH * PATCH)

    # ---- static per-row index tables & attention group masks (host/numpy) --
    r = np.arange(R)
    b_idx = r // (Nc * T * P)
    n_idx = (r // (T * P)) % Nc
    t_idx = (r // P) % T
    p_idx = r % P
    gs = b_idx * T + t_idx                      # spatial groups: same (b, t)
    gt = (b_idx * Nc + n_idx) * P + p_idx       # temporal groups: same (b, n, p)
    sp_bias = jnp.asarray(
        np.where(gs[:, None] == gs[None, :], 0.0, -1e30), jnp.float32)
    tp_bias = jnp.asarray(
        np.where(gt[:, None] == gt[None, :], 0.0, -1e30), jnp.float32)
    hmask = jnp.asarray(
        np.repeat(np.eye(NUM_HEADS, dtype=np.float32), HEAD_DIM, axis=1))
    cam_onehot = jnp.asarray(np.tile(np.eye(Nc, dtype=np.float32), (B, 1)))

    posrow = params['pos_embed'][0][p_idx] + params['camera_embed'][0][n_idx]
    temprow = params['temp_embed'][0][t_idx]

    # ---- stack block / output-projection weights along a leading axis ----
    blocks = params['blocks']
    qkv_w = jnp.stack([bk[0] for bk in blocks])
    qkv_b = jnp.stack([bk[1].reshape(1, -1) for bk in blocks])
    proj_w = jnp.stack([bk[2] for bk in blocks])
    proj_b = jnp.stack([bk[3].reshape(1, -1) for bk in blocks])
    w1 = jnp.stack([bk[4] for bk in blocks])
    b1 = jnp.stack([bk[5].reshape(1, -1) for bk in blocks])
    w2 = jnp.stack([bk[6] for bk in blocks])
    b2 = jnp.stack([bk[7].reshape(1, -1) for bk in blocks])
    ada_w = jnp.stack([bk[8] for bk in blocks])
    ada_b = jnp.stack([bk[9].reshape(1, -1) for bk in blocks])

    ln_w = jnp.stack([op[0] for op in params['out_proj']])
    ln_b = jnp.stack([op[1] for op in params['out_proj']])
    out_w = jnp.stack([op[2] for op in params['out_proj']])
    out_b = jnp.stack([op[3].reshape(1, -1) for op in params['out_proj']])

    inputs = (patches, params['patch_w'], params['patch_b'].reshape(1, -1),
              posrow, temprow,
              y, params['lang_w'], params['lang_b'].reshape(1, -1),
              hmask, sp_bias, tp_bias,
              qkv_w, qkv_b, proj_w, proj_b, w1, b1, w2, b2, ada_w, ada_b,
              ln_w, ln_b, out_w, out_b, cam_onehot)

    def full_spec(a):
        nd = a.ndim
        return pl.BlockSpec(a.shape, lambda *_args, _nd=nd: (0,) * _nd)

    kernel = functools.partial(
        _vision_encoder_kernel,
        num_heads=NUM_HEADS, head_dim=HEAD_DIM, depth=len(blocks),
        batch=B, num_cameras=Nc,
        tokens_per_sample=Nc * T * P, pool_tokens=T * P)

    out = pl.pallas_call(
        kernel,
        out_shape=jax.ShapeDtypeStruct((B * Nc, OUT_DIM), jnp.float32),
        grid=(1,),
        in_specs=[full_spec(a) for a in inputs],
        out_specs=pl.BlockSpec((B * Nc, OUT_DIM), lambda i: (0, 0)),
        compiler_params=pltpu.CompilerParams(
            dimension_semantics=("arbitrary",)),
    )(*inputs)
    return out.reshape(B, Nc, OUT_DIM)


# ---------------- pure-JAX reference (for correctness check) ---------------
def ref_block(x, c, p, num_heads=NUM_HEADS):
    (qkv_w, qkv_b, proj_w, proj_b, w1, b1, w2, b2, ada_w, ada_b) = p
    Bp, N, D = x.shape
    hd = D // num_heads
    cs = c * jax.nn.sigmoid(c)
    ada = cs @ ada_w + ada_b
    sm, scm, gm, sml, scml, gml = jnp.split(ada, 6, axis=-1)

    def ln(v):
        mu = jnp.mean(v, axis=-1, keepdims=True)
        var = jnp.mean((v - mu) ** 2, axis=-1, keepdims=True)
        return (v - mu) / jnp.sqrt(var + 1e-6)

    def mod(v, sh, sc):
        return v * (1.0 + sc[:, None, :]) + sh[:, None, :]

    xm = mod(ln(x), sm, scm)
    qkv = (xm @ qkv_w + qkv_b).reshape(Bp, N, 3, num_heads, hd)
    q = qkv[:, :, 0].transpose(0, 2, 1, 3)
    k = qkv[:, :, 1].transpose(0, 2, 1, 3)
    v = qkv[:, :, 2].transpose(0, 2, 1, 3)
    s = jnp.einsum('bhnd,bhmd->bhnm', q, k) / np.sqrt(hd)
    a = jax.nn.softmax(s, axis=-1)
    o = jnp.einsum('bhnm,bhmd->bhnd', a, v).transpose(0, 2, 1, 3).reshape(Bp, N, D)
    x = x + gm[:, None, :] * (o @ proj_w + proj_b)

    xm2 = mod(ln(x), sml, scml)
    h1 = xm2 @ w1 + b1
    g = 0.5 * h1 * (1.0 + jnp.tanh(0.7978845608028654 *
                                   (h1 + 0.044715 * h1 ** 3)))
    x = x + gml[:, None, :] * (g @ w2 + b2)
    return x


def vision_encoder_ref(x_img, y, params):
    B, Nc, T, C, H, W = x_img.shape
    D = HIDDEN
    Hp, Wp = H // PATCH, W // PATCH
    P = Hp * Wp

    y_silu = y * jax.nn.sigmoid(y)
    y_embed = y_silu @ params['lang_w'] + params['lang_b']

    xi = x_img.reshape(B * Nc * T, C, Hp, PATCH, Wp, PATCH)
    patches = xi.transpose(0, 2, 4, 1, 3, 5).reshape(B * Nc * T * P,
                                                     C * PATCH * PATCH)
    x = patches @ params['patch_w'] + params['patch_b']
    x = x.reshape(B * Nc * T, P, D) + params['pos_embed']

    x = x.reshape(B, Nc, T, P, D).transpose(0, 2, 1, 3, 4).reshape(B * T, Nc, P, D)
    x = x + params['camera_embed'][:, :, None, :]
    x = x.reshape(B, T, Nc, P, D).transpose(0, 2, 1, 3, 4).reshape(B * Nc * T, P, D)

    y_spatial = jnp.repeat(y_embed, T, axis=0)       # (B*T, D)
    y_temp = jnp.repeat(y_embed, Nc * P, axis=0)     # (B*Nc*P, D)

    blocks = params['blocks']
    for i in range(0, len(blocks), 2):
        if i + 1 >= len(blocks):
            break
        xs = x.reshape(B, Nc, T, P, D).transpose(0, 2, 1, 3, 4)
        xs = xs.reshape(B * T, Nc * P, D)
        xs = ref_block(xs, y_spatial, blocks[i])
        xt = xs.reshape(B, T, Nc, P, D).transpose(0, 2, 3, 1, 4)
        xt = xt.reshape(B * Nc * P, T, D)
        if i == 0:
            xt = xt + params['temp_embed']
        xt = ref_block(xt, y_temp, blocks[i + 1])
        x = xt.reshape(B, Nc, P, T, D).transpose(0, 1, 3, 2, 4)
        x = x.reshape(B * Nc * T, P, D)

    x = x.reshape(B, Nc, T * P, D)
    outs = []
    for cam in range(Nc):
        ln_w, ln_b, lw, lb = params['out_proj'][cam]
        feat = jnp.mean(x[:, cam], axis=1)
        mu = jnp.mean(feat, axis=-1, keepdims=True)
        var = jnp.mean((feat - mu) ** 2, axis=-1, keepdims=True)
        feat = (feat - mu) / jnp.sqrt(var + 1e-5) * ln_w + ln_b
        outs.append(feat @ lw + lb)
    return jnp.stack(outs, axis=1)


# ---------------- deterministic parameter initialization -------------------
def init_params(key):
    keys = iter(jax.random.split(key, 64))

    def w(shape, scale=0.02):
        return jax.random.normal(next(keys), shape, jnp.float32) * scale

    params = {
        'patch_w': w((IN_CH * PATCH * PATCH, HIDDEN)),
        'patch_b': jnp.zeros((HIDDEN,), jnp.float32),
        'lang_w': w((LANG_DIM, HIDDEN)),
        'lang_b': jnp.zeros((HIDDEN,), jnp.float32),
        'pos_embed': jnp.asarray(
            get_2d_sincos_pos_embed(HIDDEN, int(NUM_PATCHES ** 0.5)),
            jnp.float32)[None],
        'temp_embed': jnp.asarray(
            get_1d_sincos_pos_embed_from_grid(HIDDEN, np.arange(NUM_FRAMES)),
            jnp.float32)[None],
        'camera_embed': jnp.asarray(
            get_1d_sincos_pos_embed_from_grid(HIDDEN, np.arange(NUM_CAMERAS)),
            jnp.float32)[None],
    }
    blocks = []
    for _ in range(DEPTH):
        blocks.append((
            w((HIDDEN, 3 * HIDDEN)), jnp.zeros((3 * HIDDEN,), jnp.float32),
            w((HIDDEN, HIDDEN)), jnp.zeros((HIDDEN,), jnp.float32),
            w((HIDDEN, MLP_HIDDEN)), jnp.zeros((MLP_HIDDEN,), jnp.float32),
            w((MLP_HIDDEN, HIDDEN)), jnp.zeros((HIDDEN,), jnp.float32),
            # NOTE: original module zero-inits adaLN (making blocks identity);
            # we use nonzero deterministic init so the kernel compute is exercised.
            w((HIDDEN, 6 * HIDDEN)), w((6 * HIDDEN,)),
        ))
    params['blocks'] = blocks
    params['out_proj'] = [
        (jnp.ones((HIDDEN,), jnp.float32), jnp.zeros((HIDDEN,), jnp.float32),
         w((HIDDEN, OUT_DIM)), jnp.zeros((OUT_DIM,), jnp.float32))
        for _ in range(NUM_CAMERAS)
    ]
    return params


# ---------------- main ------------------------------------------------------
if __name__ == "__main__":
    key = jax.random.PRNGKey(0)
    k_x, k_y, k_p = jax.random.split(key, 3)

    B = 2
    x_img = jax.random.normal(
        k_x, (B, NUM_CAMERAS, NUM_FRAMES, IN_CH, INPUT_SIZE, INPUT_SIZE),
        jnp.float32)
    y = jax.random.normal(k_y, (B, LANG_DIM), jnp.float32)
    params = init_params(k_p)

    out_pallas = jax.jit(vision_encoder_pallas)(x_img, y, params)
    out_pallas = jax.block_until_ready(out_pallas)

    out_ref = vision_encoder_ref(x_img, y, params)
    out_ref = jax.block_until_ready(out_ref)

    assert out_pallas.shape == (B, NUM_CAMERAS, OUT_DIM)
    np.testing.assert_allclose(np.asarray(out_pallas), np.asarray(out_ref),
                               rtol=1e-2, atol=1e-2)

    print("KERNEL_OK")
</pallas_src>

<mosaic_0001>
module attributes {stable_mosaic.version = 11 : i64} {
  func.func @_vision_encoder_kernel(%arg0: i32, %arg1: memref<32x192xf32, #tpu.memory_space<vmem>>, %arg2: memref<192x128xf32, #tpu.memory_space<vmem>>, %arg3: memref<1x128xf32, #tpu.memory_space<vmem>>, %arg4: memref<32x128xf32, #tpu.memory_space<vmem>>, %arg5: memref<32x128xf32, #tpu.memory_space<vmem>>, %arg6: memref<2x32xf32, #tpu.memory_space<vmem>>, %arg7: memref<32x128xf32, #tpu.memory_space<vmem>>, %arg8: memref<1x128xf32, #tpu.memory_space<vmem>>, %arg9: memref<4x128xf32, #tpu.memory_space<vmem>>, %arg10: memref<32x32xf32, #tpu.memory_space<vmem>>, %arg11: memref<32x32xf32, #tpu.memory_space<vmem>>, %arg12: memref<2x128x384xf32, #tpu.memory_space<vmem>>, %arg13: memref<2x1x384xf32, #tpu.memory_space<vmem>>, %arg14: memref<2x128x128xf32, #tpu.memory_space<vmem>>, %arg15: memref<2x1x128xf32, #tpu.memory_space<vmem>>, %arg16: memref<2x128x512xf32, #tpu.memory_space<vmem>>, %arg17: memref<2x1x512xf32, #tpu.memory_space<vmem>>, %arg18: memref<2x512x128xf32, #tpu.memory_space<vmem>>, %arg19: memref<2x1x128xf32, #tpu.memory_space<vmem>>, %arg20: memref<2x128x768xf32, #tpu.memory_space<vmem>>, %arg21: memref<2x1x768xf32, #tpu.memory_space<vmem>>, %arg22: memref<2x128xf32, #tpu.memory_space<vmem>>, %arg23: memref<2x128xf32, #tpu.memory_space<vmem>>, %arg24: memref<2x128x128xf32, #tpu.memory_space<vmem>>, %arg25: memref<2x1x128xf32, #tpu.memory_space<vmem>>, %arg26: memref<4x2xf32, #tpu.memory_space<vmem>>, %arg27: memref<4x128xf32, #tpu.memory_space<vmem>>) attributes {dimension_semantics = [#tpu.dimension_semantics<arbitrary>], iteration_bounds = array<i64: 1>, scalar_prefetch = 0 : i64, scratch_operands = 0 : i64, tpu.core_type = #tpu.core_type<tc>, window_params = [{pipeline_mode = #tpu.pipeline_mode<synchronous>, transform_indices = @transform_0, window_bounds = array<i64: 32, 192>}, {pipeline_mode = #tpu.pipeline_mode<synchronous>, transform_indices = @transform_1, window_bounds = array<i64: 192, 128>}, {pipeline_mode = #tpu.pipeline_mode<synchronous>, transform_indices = @transform_2, window_bounds = array<i64: 1, 128>}, {pipeline_mode = #tpu.pipeline_mode<synchronous>, transform_indices = @transform_3, window_bounds = array<i64: 32, 128>}, {pipeline_mode = #tpu.pipeline_mode<synchronous>, transform_indices = @transform_4, window_bounds = array<i64: 32, 128>}, {pipeline_mode = #tpu.pipeline_mode<synchronous>, transform_indices = @transform_5, window_bounds = array<i64: 2, 32>}, {pipeline_mode = #tpu.pipeline_mode<synchronous>, transform_indices = @transform_6, window_bounds = array<i64: 32, 128>}, {pipeline_mode = #tpu.pipeline_mode<synchronous>, transform_indices = @transform_7, window_bounds = array<i64: 1, 128>}, {pipeline_mode = #tpu.pipeline_mode<synchronous>, transform_indices = @transform_8, window_bounds = array<i64: 4, 128>}, {pipeline_mode = #tpu.pipeline_mode<synchronous>, transform_indices = @transform_9, window_bounds = array<i64: 32, 32>}, {pipeline_mode = #tpu.pipeline_mode<synchronous>, transform_indices = @transform_10, window_bounds = array<i64: 32, 32>}, {pipeline_mode = #tpu.pipeline_mode<synchronous>, transform_indices = @transform_11, window_bounds = array<i64: 2, 128, 384>}, {pipeline_mode = #tpu.pipeline_mode<synchronous>, transform_indices = @transform_12, window_bounds = array<i64: 2, 1, 384>}, {pipeline_mode = #tpu.pipeline_mode<synchronous>, transform_indices = @transform_13, window_bounds = array<i64: 2, 128, 128>}, {pipeline_mode = #tpu.pipeline_mode<synchronous>, transform_indices = @transform_14, window_bounds = array<i64: 2, 1, 128>}, {pipeline_mode = #tpu.pipeline_mode<synchronous>, transform_indices = @transform_15, window_bounds = array<i64: 2, 128, 512>}, {pipeline_mode = #tpu.pipeline_mode<synchronous>, transform_indices = @transform_16, window_bounds = array<i64: 2, 1, 512>}, {pipeline_mode = #tpu.pipeline_mode<synchronous>, transform_indices = @transform_17, window_bounds = array<i64: 2, 512, 128>}, {pipeline_mode = #tpu.pipeline_mode<synchronous>, transform_indices = @transform_18, window_bounds = array<i64: 2, 1, 128>}, {pipeline_mode = #tpu.pipeline_mode<synchronous>, transform_indices = @transform_19, window_bounds = array<i64: 2, 128, 768>}, {pipeline_mode = #tpu.pipeline_mode<synchronous>, transform_indices = @transform_20, window_bounds = array<i64: 2, 1, 768>}, {pipeline_mode = #tpu.pipeline_mode<synchronous>, transform_indices = @transform_21, window_bounds = array<i64: 2, 128>}, {pipeline_mode = #tpu.pipeline_mode<synchronous>, transform_indices = @transform_22, window_bounds = array<i64: 2, 128>}, {pipeline_mode = #tpu.pipeline_mode<synchronous>, transform_indices = @transform_23, window_bounds = array<i64: 2, 128, 128>}, {pipeline_mode = #tpu.pipeline_mode<synchronous>, transform_indices = @transform_24, window_bounds = array<i64: 2, 1, 128>}, {pipeline_mode = #tpu.pipeline_mode<synchronous>, transform_indices = @transform_25, window_bounds = array<i64: 4, 2>}, {pipeline_mode = #tpu.pipeline_mode<synchronous>, transform_indices = @transform_26, window_bounds = array<i64: 4, 128>}]} {
    %c0 = arith.constant 0 : index
    %c0_0 = arith.constant 0 : index
    %0 = vector.load %arg6[%c0, %c0_0] : memref<2x32xf32, #tpu.memory_space<vmem>>, vector<2x32xf32>
    %1 = arith.negf %0 : vector<2x32xf32>
    %2 = math.exp %1 : vector<2x32xf32>
    %cst = arith.constant 1.000000e+00 : f32
    %3 = vector.broadcast %cst : f32 to vector<2x32xf32>
    %4 = arith.addf %3, %2 : vector<2x32xf32>
    %5 = arith.divf %3, %4 : vector<2x32xf32>
    %6 = arith.mulf %0, %5 : vector<2x32xf32>
    %c0_1 = arith.constant 0 : index
    %c0_2 = arith.constant 0 : index
    %7 = vector.load %arg7[%c0_1, %c0_2] : memref<32x128xf32, #tpu.memory_space<vmem>>, vector<32x128xf32>
    %cst_3 = arith.constant dense<0.000000e+00> : vector<2x128xf32>
    %8 = tpu.matmul %6, %7, %cst_3 {dimension_numbers = #tpu.dot_dimension_numbers<[1], [0], [0], [1], [0, 0, 1, 1], [], []>} : vector<2x32xf32>, vector<32x128xf32>, vector<2x128xf32> -> vector<2x128xf32>
    %c0_4 = arith.constant 0 : index
    %c0_5 = arith.constant 0 : index
    %9 = vector.load %arg8[%c0_4, %c0_5] : memref<1x128xf32, #tpu.memory_space<vmem>>, vector<1x128xf32>
    %10 = vector.broadcast %9 : vector<1x128xf32> to vector<2x128xf32>
    %11 = arith.addf %8, %10 : vector<2x128xf32>
    %12 = vector.extract_strided_slice %11 {offsets = [0, 0], sizes = [1, 128], strides = [1, 1]} : vector<2x128xf32> to vector<1x128xf32>
    %13 = vector.shape_cast %12 : vector<1x128xf32> to vector<1x128xf32>
    %14 = vector.broadcast %13 : vector<1x128xf32> to vector<16x128xf32>
    %15 = vector.extract_strided_slice %11 {offsets = [1, 0], sizes = [1, 128], strides = [1, 1]} : vector<2x128xf32> to vector<1x128xf32>
    %16 = vector.shape_cast %15 : vector<1x128xf32> to vector<1x128xf32>
    %17 = vector.broadcast %16 : vector<1x128xf32> to vector<16x128xf32>
    %18 = tpu.concatenate %14, %17 in 0 : vector<16x128xf32>, vector<16x128xf32> -> vector<32x128xf32>
    %19 = arith.negf %18 : vector<32x128xf32>
    %20 = math.exp %19 : vector<32x128xf32>
    %cst_6 = arith.constant 1.000000e+00 : f32
    %21 = vector.broadcast %cst_6 : f32 to vector<32x128xf32>
    %22 = arith.addf %21, %20 : vector<32x128xf32>
    %23 = arith.divf %21, %22 : vector<32x128xf32>
    %24 = arith.mulf %18, %23 : vector<32x128xf32>
    %c0_7 = arith.constant 0 : index
    %c0_8 = arith.constant 0 : index
    %25 = vector.load %arg1[%c0_7, %c0_8] : memref<32x192xf32, #tpu.memory_space<vmem>>, vector<32x192xf32>
    %c0_9 = arith.constant 0 : index
    %c0_10 = arith.constant 0 : index
    %26 = vector.load %arg2[%c0_9, %c0_10] : memref<192x128xf32, #tpu.memory_space<vmem>>, vector<192x128xf32>
    %cst_11 = arith.constant dense<0.000000e+00> : vector<32x128xf32>
    %27 = tpu.matmul %25, %26, %cst_11 {dimension_numbers = #tpu.dot_dimension_numbers<[1], [0], [0], [1], [0, 0, 1, 1], [], []>} : vector<32x192xf32>, vector<192x128xf32>, vector<32x128xf32> -> vector<32x128xf32>
    %c0_12 = arith.constant 0 : index
    %c0_13 = arith.constant 0 : index
    %28 = vector.load %arg3[%c0_12, %c0_13] : memref<1x128xf32, #tpu.memory_space<vmem>>, vector<1x128xf32>
    %29 = vector.broadcast %28 : vector<1x128xf32> to vector<32x128xf32>
    %30 = arith.addf %27, %29 : vector<32x128xf32>
    %c0_14 = arith.constant 0 : index
    %c0_15 = arith.constant 0 : index
    %31 = vector.load %arg4[%c0_14, %c0_15] : memref<32x128xf32, #tpu.memory_space<vmem>>, vector<32x128xf32>
    %32 = arith.addf %30, %31 : vector<32x128xf32>
    %c0_16 = arith.constant 0 : index
    %c0_17 = arith.constant 0 : index
    %33 = vector.load %arg9[%c0_16, %c0_17] : memref<4x128xf32, #tpu.memory_space<vmem>>, vector<4x128xf32>
    %34 = vector.extract_strided_slice %33 {offsets = [0, 0], sizes = [1, 128], strides = [1, 1]} : vector<4x128xf32> to vector<1x128xf32>
    %35 = vector.extract_strided_slice %33 {offsets = [1, 0], sizes = [1, 128], strides = [1, 1]} : vector<4x128xf32> to vector<1x128xf32>
    %36 = vector.extract_strided_slice %33 {offsets = [2, 0], sizes = [1, 128], strides = [1, 1]} : vector<4x128xf32> to vector<1x128xf32>
    %37 = vector.extract_strided_slice %33 {offsets = [3, 0], sizes = [1, 128], strides = [1, 1]} : vector<4x128xf32> to vector<1x128xf32>
    %c0_18 = arith.constant 0 : index
    %c0_19 = arith.constant 0 : index
    %38 = vector.load %arg10[%c0_18, %c0_19] : memref<32x32xf32, #tpu.memory_space<vmem>>, vector<32x32xf32>
    %c0_20 = arith.constant 0 : index
    %c0_21 = arith.constant 0 : index
    %39 = vector.load %arg11[%c0_20, %c0_21] : memref<32x32xf32, #tpu.memory_space<vmem>>, vector<32x32xf32>
    %c0_22 = arith.constant 0 : index
    %c0_23 = arith.constant 0 : index
    %c0_24 = arith.constant 0 : index
    %40 = vector.load %arg12[%c0_22, %c0_23, %c0_24] : memref<2x128x384xf32, #tpu.memory_space<vmem>>, vector<1x128x384xf32>
    %41 = vector.shape_cast %40 : vector<1x128x384xf32> to vector<128x384xf32>
    %c0_25 = arith.constant 0 : index
    %c0_26 = arith.constant 0 : index
    %c0_27 = arith.constant 0 : index
    %42 = vector.load %arg13[%c0_25, %c0_26, %c0_27] : memref<2x1x384xf32, #tpu.memory_space<vmem>>, vector<1x1x384xf32>
    %43 = vector.shape_cast %42 : vector<1x1x384xf32> to vector<1x384xf32>
    %c0_28 = arith.constant 0 : index
    %c0_29 = arith.constant 0 : index
    %c0_30 = arith.constant 0 : index
    %44 = vector.load %arg14[%c0_28, %c0_29, %c0_30] : memref<2x128x128xf32, #tpu.memory_space<vmem>>, vector<1x128x128xf32>
    %45 = vector.shape_cast %44 : vector<1x128x128xf32> to vector<128x128xf32>
    %c0_31 = arith.constant 0 : index
    %c0_32 = arith.constant 0 : index
    %c0_33 = arith.constant 0 : index
    %46 = vector.load %arg15[%c0_31, %c0_32, %c0_33] : memref<2x1x128xf32, #tpu.memory_space<vmem>>, vector<1x1x128xf32>
    %47 = vector.shape_cast %46 : vector<1x1x128xf32> to vector<1x128xf32>
    %c0_34 = arith.constant 0 : index
    %c0_35 = arith.constant 0 : index
    %c0_36 = arith.constant 0 : index
    %48 = vector.load %arg16[%c0_34, %c0_35, %c0_36] : memref<2x128x512xf32, #tpu.memory_space<vmem>>, vector<1x128x512xf32>
    %49 = vector.shape_cast %48 : vector<1x128x512xf32> to vector<128x512xf32>
    %c0_37 = arith.constant 0 : index
    %c0_38 = arith.constant 0 : index
    %c0_39 = arith.constant 0 : index
    %50 = vector.load %arg17[%c0_37, %c0_38, %c0_39] : memref<2x1x512xf32, #tpu.memory_space<vmem>>, vector<1x1x512xf32>
    %51 = vector.shape_cast %50 : vector<1x1x512xf32> to vector<1x512xf32>
    %c0_40 = arith.constant 0 : index
    %c0_41 = arith.constant 0 : index
    %c0_42 = arith.constant 0 : index
    %52 = vector.load %arg18[%c0_40, %c0_41, %c0_42] : memref<2x512x128xf32, #tpu.memory_space<vmem>>, vector<1x512x128xf32>
    %53 = vector.shape_cast %52 : vector<1x512x128xf32> to vector<512x128xf32>
    %c0_43 = arith.constant 0 : index
    %c0_44 = arith.constant 0 : index
    %c0_45 = arith.constant 0 : index
    %54 = vector.load %arg19[%c0_43, %c0_44, %c0_45] : memref<2x1x128xf32, #tpu.memory_space<vmem>>, vector<1x1x128xf32>
    %55 = vector.shape_cast %54 : vector<1x1x128xf32> to vector<1x128xf32>
    %c0_46 = arith.constant 0 : index
    %c0_47 = arith.constant 0 : index
    %c0_48 = arith.constant 0 : index
    %56 = vector.load %arg20[%c0_46, %c0_47, %c0_48] : memref<2x128x768xf32, #tpu.memory_space<vmem>>, vector<1x128x768xf32>
    %57 = vector.shape_cast %56 : vector<1x128x768xf32> to vector<128x768xf32>
    %c0_49 = arith.constant 0 : index
    %c0_50 = arith.constant 0 : index
    %c0_51 = arith.constant 0 : index
    %58 = vector.load %arg21[%c0_49, %c0_50, %c0_51] : memref<2x1x768xf32, #tpu.memory_space<vmem>>, vector<1x1x768xf32>
    %59 = vector.shape_cast %58 : vector<1x1x768xf32> to vector<1x768xf32>
    %cst_52 = arith.constant dense<0.000000e+00> : vector<32x768xf32>
    %60 = tpu.matmul %24, %57, %cst_52 {dimension_numbers = #tpu.dot_dimension_numbers<[1], [0], [0], [1], [0, 0, 1, 1], [], []>} : vector<32x128xf32>, vector<128x768xf32>, vector<32x768xf32> -> vector<32x768xf32>
    %61 = vector.broadcast %59 : vector<1x768xf32> to vector<32x768xf32>
    %62 = arith.addf %60, %61 : vector<32x768xf32>
    %63 = vector.extract_strided_slice %62 {offsets = [0, 0], sizes = [32, 128], strides = [1, 1]} : vector<32x768xf32> to vector<32x128xf32>
    %64 = vector.extract_strided_slice %62 {offsets = [0, 128], sizes = [32, 128], strides = [1, 1]} : vector<32x768xf32> to vector<32x128xf32>
    %65 = vector.extract_strided_slice %62 {offsets = [0, 256], sizes = [32, 128], strides = [1, 1]} : vector<32x768xf32> to vector<32x128xf32>
    %66 = vector.extract_strided_slice %62 {offsets = [0, 384], sizes = [32, 128], strides = [1, 1]} : vector<32x768xf32> to vector<32x128xf32>
    %67 = vector.extract_strided_slice %62 {offsets = [0, 512], sizes = [32, 128], strides = [1, 1]} : vector<32x768xf32> to vector<32x128xf32>
    %68 = vector.extract_strided_slice %62 {offsets = [0, 640], sizes = [32, 128], strides = [1, 1]} : vector<32x768xf32> to vector<32x128xf32>
    %cst_53 = arith.constant dense<0.000000e+00> : vector<32xf32>
    %69 = vector.multi_reduction <add>, %32, %cst_53 [1] : vector<32x128xf32> to vector<32xf32>
    %70 = vector.shape_cast %69 : vector<32xf32> to vector<32x1xf32>
    %cst_54 = arith.constant 1.280000e+02 : f32
    %71 = vector.broadcast %cst_54 : f32 to vector<32x1xf32>
    %72 = arith.divf %70, %71 : vector<32x1xf32>
    %73 = vector.broadcast %72 : vector<32x1xf32> to vector<32x128xf32>
    %74 = arith.subf %32, %73 : vector<32x128xf32>
    %75 = arith.mulf %74, %74 : vector<32x128xf32>
    %cst_55 = arith.constant dense<0.000000e+00> : vector<32xf32>
    %76 = vector.multi_reduction <add>, %75, %cst_55 [1] : vector<32x128xf32> to vector<32xf32>
    %77 = vector.shape_cast %76 : vector<32xf32> to vector<32x1xf32>
    %cst_56 = arith.constant 1.280000e+02 : f32
    %78 = vector.broadcast %cst_56 : f32 to vector<32x1xf32>
    %79 = arith.divf %77, %78 : vector<32x1xf32>
    %80 = vector.broadcast %72 : vector<32x1xf32> to vector<32x128xf32>
    %81 = arith.subf %32, %80 : vector<32x128xf32>
    %cst_57 = arith.constant 9.99999997E-7 : f32
    %82 = vector.broadcast %cst_57 : f32 to vector<32x1xf32>
    %83 = arith.addf %79, %82 : vector<32x1xf32>
    %84 = math.rsqrt %83 : vector<32x1xf32>
    %85 = vector.broadcast %84 : vector<32x1xf32> to vector<32x128xf32>
    %86 = arith.mulf %81, %85 : vector<32x128xf32>
    %cst_58 = arith.constant 1.000000e+00 : f32
    %87 = vector.broadcast %cst_58 : f32 to vector<32x128xf32>
    %88 = arith.addf %87, %64 : vector<32x128xf32>
    %89 = arith.mulf %86, %88 : vector<32x128xf32>
    %90 = arith.addf %89, %63 : vector<32x128xf32>
    %cst_59 = arith.constant dense<0.000000e+00> : vector<32x384xf32>
    %91 = tpu.matmul %90, %41, %cst_59 {dimension_numbers = #tpu.dot_dimension_numbers<[1], [0], [0], [1], [0, 0, 1, 1], [], []>} : vector<32x128xf32>, vector<128x384xf32>, vector<32x384xf32> -> vector<32x384xf32>
    %92 = vector.broadcast %43 : vector<1x384xf32> to vector<32x384xf32>
    %93 = arith.addf %91, %92 : vector<32x384xf32>
    %94 = vector.extract_strided_slice %93 {offsets = [0, 0], sizes = [32, 128], strides = [1, 1]} : vector<32x384xf32> to vector<32x128xf32>
    %95 = vector.extract_strided_slice %93 {offsets = [0, 128], sizes = [32, 128], strides = [1, 1]} : vector<32x384xf32> to vector<32x128xf32>
    %96 = vector.extract_strided_slice %93 {offsets = [0, 256], sizes = [32, 128], strides = [1, 1]} : vector<32x384xf32> to vector<32x128xf32>
    %97 = tpu.transpose %95, [1, 0] : vector<32x128xf32> -> vector<128x32xf32>
    %cst_60 = arith.constant 0.000000e+00 : f32
    %98 = vector.broadcast %cst_60 : f32 to vector<32x128xf32>
    %99 = vector.broadcast %34 : vector<1x128xf32> to vector<32x128xf32>
    %100 = arith.mulf %94, %99 : vector<32x128xf32>
    %cst_61 = arith.constant dense<0.000000e+00> : vector<32x32xf32>
    %101 = tpu.matmul %100, %97, %cst_61 {dimension_numbers = #tpu.dot_dimension_numbers<[1], [0], [0], [1], [0, 0, 1, 1], [], []>} : vector<32x128xf32>, vector<128x32xf32>, vector<32x32xf32> -> vector<32x32xf32>
    %cst_62 = arith.constant 0.176776692 : f32
    %102 = vector.broadcast %cst_62 : f32 to vector<32x32xf32>
    %103 = arith.mulf %101, %102 : vector<32x32xf32>
    %104 = arith.addf %103, %38 : vector<32x32xf32>
    %cst_63 = arith.constant dense<0xFF800000> : vector<32xf32>
    %105 = vector.multi_reduction <maximumf>, %104, %cst_63 [1] : vector<32x32xf32> to vector<32xf32>
    %106 = vector.shape_cast %105 : vector<32xf32> to vector<32x1xf32>
    %107 = vector.broadcast %106 : vector<32x1xf32> to vector<32x32xf32>
    %108 = arith.subf %104, %107 : vector<32x32xf32>
    %109 = math.exp %108 : vector<32x32xf32>
    %cst_64 = arith.constant dense<0.000000e+00> : vector<32xf32>
    %110 = vector.multi_reduction <add>, %109, %cst_64 [1] : vector<32x32xf32> to vector<32xf32>
    %111 = vector.shape_cast %110 : vector<32xf32> to vector<32x1xf32>
    %112 = tpu.reciprocal %111 {approx = true} : vector<32x1xf32> -> vector<32x1xf32>
    %113 = vector.broadcast %112 : vector<32x1xf32> to vector<32x32xf32>
    %114 = arith.mulf %109, %113 : vector<32x32xf32>
    %115 = vector.broadcast %34 : vector<1x128xf32> to vector<32x128xf32>
    %116 = arith.mulf %96, %115 : vector<32x128xf32>
    %cst_65 = arith.constant dense<0.000000e+00> : vector<32x128xf32>
    %117 = tpu.matmul %114, %116, %cst_65 {dimension_numbers = #tpu.dot_dimension_numbers<[1], [0], [0], [1], [0, 0, 1, 1], [], []>} : vector<32x32xf32>, vector<32x128xf32>, vector<32x128xf32> -> vector<32x128xf32>
    %118 = arith.addf %98, %117 : vector<32x128xf32>
    %119 = vector.broadcast %35 : vector<1x128xf32> to vector<32x128xf32>
    %120 = arith.mulf %94, %119 : vector<32x128xf32>
    %cst_66 = arith.constant dense<0.000000e+00> : vector<32x32xf32>
    %121 = tpu.matmul %120, %97, %cst_66 {dimension_numbers = #tpu.dot_dimension_numbers<[1], [0], [0], [1], [0, 0, 1, 1], [], []>} : vector<32x128xf32>, vector<128x32xf32>, vector<32x32xf32> -> vector<32x32xf32>
    %cst_67 = arith.constant 0.176776692 : f32
    %122 = vector.broadcast %cst_67 : f32 to vector<32x32xf32>
    %123 = arith.mulf %121, %122 : vector<32x32xf32>
    %124 = arith.addf %123, %38 : vector<32x32xf32>
    %cst_68 = arith.constant dense<0xFF800000> : vector<32xf32>
    %125 = vector.multi_reduction <maximumf>, %124, %cst_68 [1] : vector<32x32xf32> to vector<32xf32>
    %126 = vector.shape_cast %125 : vector<32xf32> to vector<32x1xf32>
    %127 = vector.broadcast %126 : vector<32x1xf32> to vector<32x32xf32>
    %128 = arith.subf %124, %127 : vector<32x32xf32>
    %129 = math.exp %128 : vector<32x32xf32>
    %cst_69 = arith.constant dense<0.000000e+00> : vector<32xf32>
    %130 = vector.multi_reduction <add>, %129, %cst_69 [1] : vector<32x32xf32> to vector<32xf32>
    %131 = vector.shape_cast %130 : vector<32xf32> to vector<32x1xf32>
    %132 = tpu.reciprocal %131 {approx = true} : vector<32x1xf32> -> vector<32x1xf32>
    %133 = vector.broadcast %132 : vector<32x1xf32> to vector<32x32xf32>
    %134 = arith.mulf %129, %133 : vector<32x32xf32>
    %135 = vector.broadcast %35 : vector<1x128xf32> to vector<32x128xf32>
    %136 = arith.mulf %96, %135 : vector<32x128xf32>
    %cst_70 = arith.constant dense<0.000000e+00> : vector<32x128xf32>
    %137 = tpu.matmul %134, %136, %cst_70 {dimension_numbers = #tpu.dot_dimension_numbers<[1], [0], [0], [1], [0, 0, 1, 1], [], []>} : vector<32x32xf32>, vector<32x128xf32>, vector<32x128xf32> -> vector<32x128xf32>
    %138 = arith.addf %118, %137 : vector<32x128xf32>
    %139 = vector.broadcast %36 : vector<1x128xf32> to vector<32x128xf32>
    %140 = arith.mulf %94, %139 : vector<32x128xf32>
    %cst_71 = arith.constant dense<0.000000e+00> : vector<32x32xf32>
    %141 = tpu.matmul %140, %97, %cst_71 {dimension_numbers = #tpu.dot_dimension_numbers<[1], [0], [0], [1], [0, 0, 1, 1], [], []>} : vector<32x128xf32>, vector<128x32xf32>, vector<32x32xf32> -> vector<32x32xf32>
    %cst_72 = arith.constant 0.176776692 : f32
    %142 = vector.broadcast %cst_72 : f32 to vector<32x32xf32>
    %143 = arith.mulf %141, %142 : vector<32x32xf32>
    %144 = arith.addf %143, %38 : vector<32x32xf32>
    %cst_73 = arith.constant dense<0xFF800000> : vector<32xf32>
    %145 = vector.multi_reduction <maximumf>, %144, %cst_73 [1] : vector<32x32xf32> to vector<32xf32>
    %146 = vector.shape_cast %145 : vector<32xf32> to vector<32x1xf32>
    %147 = vector.broadcast %146 : vector<32x1xf32> to vector<32x32xf32>
    %148 = arith.subf %144, %147 : vector<32x32xf32>
    %149 = math.exp %148 : vector<32x32xf32>
    %cst_74 = arith.constant dense<0.000000e+00> : vector<32xf32>
    %150 = vector.multi_reduction <add>, %149, %cst_74 [1] : vector<32x32xf32> to vector<32xf32>
    %151 = vector.shape_cast %150 : vector<32xf32> to vector<32x1xf32>
    %152 = tpu.reciprocal %151 {approx = true} : vector<32x1xf32> -> vector<32x1xf32>
    %153 = vector.broadcast %152 : vector<32x1xf32> to vector<32x32xf32>
    %154 = arith.mulf %149, %153 : vector<32x32xf32>
    %155 = vector.broadcast %36 : vector<1x128xf32> to vector<32x128xf32>
    %156 = arith.mulf %96, %155 : vector<32x128xf32>
    %cst_75 = arith.constant dense<0.000000e+00> : vector<32x128xf32>
    %157 = tpu.matmul %154, %156, %cst_75 {dimension_numbers = #tpu.dot_dimension_numbers<[1], [0], [0], [1], [0, 0, 1, 1], [], []>} : vector<32x32xf32>, vector<32x128xf32>, vector<32x128xf32> -> vector<32x128xf32>
    %158 = arith.addf %138, %157 : vector<32x128xf32>
    %159 = vector.broadcast %37 : vector<1x128xf32> to vector<32x128xf32>
    %160 = arith.mulf %94, %159 : vector<32x128xf32>
    %cst_76 = arith.constant dense<0.000000e+00> : vector<32x32xf32>
    %161 = tpu.matmul %160, %97, %cst_76 {dimension_numbers = #tpu.dot_dimension_numbers<[1], [0], [0], [1], [0, 0, 1, 1], [], []>} : vector<32x128xf32>, vector<128x32xf32>, vector<32x32xf32> -> vector<32x32xf32>
    %cst_77 = arith.constant 0.176776692 : f32
    %162 = vector.broadcast %cst_77 : f32 to vector<32x32xf32>
    %163 = arith.mulf %161, %162 : vector<32x32xf32>
    %164 = arith.addf %163, %38 : vector<32x32xf32>
    %cst_78 = arith.constant dense<0xFF800000> : vector<32xf32>
    %165 = vector.multi_reduction <maximumf>, %164, %cst_78 [1] : vector<32x32xf32> to vector<32xf32>
    %166 = vector.shape_cast %165 : vector<32xf32> to vector<32x1xf32>
    %167 = vector.broadcast %166 : vector<32x1xf32> to vector<32x32xf32>
    %168 = arith.subf %164, %167 : vector<32x32xf32>
    %169 = math.exp %168 : vector<32x32xf32>
    %cst_79 = arith.constant dense<0.000000e+00> : vector<32xf32>
    %170 = vector.multi_reduction <add>, %169, %cst_79 [1] : vector<32x32xf32> to vector<32xf32>
    %171 = vector.shape_cast %170 : vector<32xf32> to vector<32x1xf32>
    %172 = tpu.reciprocal %171 {approx = true} : vector<32x1xf32> -> vector<32x1xf32>
    %173 = vector.broadcast %172 : vector<32x1xf32> to vector<32x32xf32>
    %174 = arith.mulf %169, %173 : vector<32x32xf32>
    %175 = vector.broadcast %37 : vector<1x128xf32> to vector<32x128xf32>
    %176 = arith.mulf %96, %175 : vector<32x128xf32>
    %cst_80 = arith.constant dense<0.000000e+00> : vector<32x128xf32>
    %177 = tpu.matmul %174, %176, %cst_80 {dimension_numbers = #tpu.dot_dimension_numbers<[1], [0], [0], [1], [0, 0, 1, 1], [], []>} : vector<32x32xf32>, vector<32x128xf32>, vector<32x128xf32> -> vector<32x128xf32>
    %178 = arith.addf %158, %177 : vector<32x128xf32>
    %cst_81 = arith.constant dense<0.000000e+00> : vector<32x128xf32>
    %179 = tpu.matmul %178, %45, %cst_81 {dimension_numbers = #tpu.dot_dimension_numbers<[1], [0], [0], [1], [0, 0, 1, 1], [], []>} : vector<32x128xf32>, vector<128x128xf32>, vector<32x128xf32> -> vector<32x128xf32>
    %180 = vector.broadcast %47 : vector<1x128xf32> to vector<32x128xf32>
    %181 = arith.addf %179, %180 : vector<32x128xf32>
    %182 = arith.mulf %65, %181 : vector<32x128xf32>
    %183 = arith.addf %32, %182 : vector<32x128xf32>
    %cst_82 = arith.constant dense<0.000000e+00> : vector<32xf32>
    %184 = vector.multi_reduction <add>, %183, %cst_82 [1] : vector<32x128xf32> to vector<32xf32>
    %185 = vector.shape_cast %184 : vector<32xf32> to vector<32x1xf32>
    %cst_83 = arith.constant 1.280000e+02 : f32
    %186 = vector.broadcast %cst_83 : f32 to vector<32x1xf32>
    %187 = arith.divf %185, %186 : vector<32x1xf32>
    %188 = vector.broadcast %187 : vector<32x1xf32> to vector<32x128xf32>
    %189 = arith.subf %183, %188 : vector<32x128xf32>
    %190 = arith.mulf %189, %189 : vector<32x128xf32>
    %cst_84 = arith.constant dense<0.000000e+00> : vector<32xf32>
    %191 = vector.multi_reduction <add>, %190, %cst_84 [1] : vector<32x128xf32> to vector<32xf32>
    %192 = vector.shape_cast %191 : vector<32xf32> to vector<32x1xf32>
    %cst_85 = arith.constant 1.280000e+02 : f32
    %193 = vector.broadcast %cst_85 : f32 to vector<32x1xf32>
    %194 = arith.divf %192, %193 : vector<32x1xf32>
    %195 = vector.broadcast %187 : vector<32x1xf32> to vector<32x128xf32>
    %196 = arith.subf %183, %195 : vector<32x128xf32>
    %cst_86 = arith.constant 9.99999997E-7 : f32
    %197 = vector.broadcast %cst_86 : f32 to vector<32x1xf32>
    %198 = arith.addf %194, %197 : vector<32x1xf32>
    %199 = math.rsqrt %198 : vector<32x1xf32>
    %200 = vector.broadcast %199 : vector<32x1xf32> to vector<32x128xf32>
    %201 = arith.mulf %196, %200 : vector<32x128xf32>
    %cst_87 = arith.constant 1.000000e+00 : f32
    %202 = vector.broadcast %cst_87 : f32 to vector<32x128xf32>
    %203 = arith.addf %202, %67 : vector<32x128xf32>
    %204 = arith.mulf %201, %203 : vector<32x128xf32>
    %205 = arith.addf %204, %66 : vector<32x128xf32>
    %cst_88 = arith.constant dense<0.000000e+00> : vector<32x512xf32>
    %206 = tpu.matmul %205, %49, %cst_88 {dimension_numbers = #tpu.dot_dimension_numbers<[1], [0], [0], [1], [0, 0, 1, 1], [], []>} : vector<32x128xf32>, vector<128x512xf32>, vector<32x512xf32> -> vector<32x512xf32>
    %207 = vector.broadcast %51 : vector<1x512xf32> to vector<32x512xf32>
    %208 = arith.addf %206, %207 : vector<32x512xf32>
    %cst_89 = arith.constant 5.000000e-01 : f32
    %209 = vector.broadcast %cst_89 : f32 to vector<32x512xf32>
    %210 = arith.mulf %209, %208 : vector<32x512xf32>
    %cst_90 = arith.constant 4.471500e-02 : f32
    %211 = vector.broadcast %cst_90 : f32 to vector<32x512xf32>
    %212 = arith.mulf %211, %208 : vector<32x512xf32>
    %213 = arith.mulf %212, %208 : vector<32x512xf32>
    %214 = arith.mulf %213, %208 : vector<32x512xf32>
    %215 = arith.addf %208, %214 : vector<32x512xf32>
    %cst_91 = arith.constant 0.797884583 : f32
    %216 = vector.broadcast %cst_91 : f32 to vector<32x512xf32>
    %217 = arith.mulf %216, %215 : vector<32x512xf32>
    %218 = math.tanh %217 : vector<32x512xf32>
    %cst_92 = arith.constant 1.000000e+00 : f32
    %219 = vector.broadcast %cst_92 : f32 to vector<32x512xf32>
    %220 = arith.addf %219, %218 : vector<32x512xf32>
    %221 = arith.mulf %210, %220 : vector<32x512xf32>
    %cst_93 = arith.constant dense<0.000000e+00> : vector<32x128xf32>
    %222 = tpu.matmul %221, %53, %cst_93 {dimension_numbers = #tpu.dot_dimension_numbers<[1], [0], [0], [1], [0, 0, 1, 1], [], []>} : vector<32x512xf32>, vector<512x128xf32>, vector<32x128xf32> -> vector<32x128xf32>
    %223 = vector.broadcast %55 : vector<1x128xf32> to vector<32x128xf32>
    %224 = arith.addf %222, %223 : vector<32x128xf32>
    %225 = arith.mulf %68, %224 : vector<32x128xf32>
    %226 = arith.addf %183, %225 : vector<32x128xf32>
    %c0_94 = arith.constant 0 : index
    %c0_95 = arith.constant 0 : index
    %227 = vector.load %arg5[%c0_94, %c0_95] : memref<32x128xf32, #tpu.memory_space<vmem>>, vector<32x128xf32>
    %228 = arith.addf %226, %227 : vector<32x128xf32>
    %c1 = arith.constant 1 : index
    %c0_96 = arith.constant 0 : index
    %c0_97 = arith.constant 0 : index
    %229 = vector.load %arg12[%c1, %c0_96, %c0_97] : memref<2x128x384xf32, #tpu.memory_space<vmem>>, vector<1x128x384xf32>
    %230 = vector.shape_cast %229 : vector<1x128x384xf32> to vector<128x384xf32>
    %c1_98 = arith.constant 1 : index
    %c0_99 = arith.constant 0 : index
    %c0_100 = arith.constant 0 : index
    %231 = vector.load %arg13[%c1_98, %c0_99, %c0_100] : memref<2x1x384xf32, #tpu.memory_space<vmem>>, vector<1x1x384xf32>
    %232 = vector.shape_cast %231 : vector<1x1x384xf32> to vector<1x384xf32>
    %c1_101 = arith.constant 1 : index
    %c0_102 = arith.constant 0 : index
    %c0_103 = arith.constant 0 : index
    %233 = vector.load %arg14[%c1_101, %c0_102, %c0_103] : memref<2x128x128xf32, #tpu.memory_space<vmem>>, vector<1x128x128xf32>
    %234 = vector.shape_cast %233 : vector<1x128x128xf32> to vector<128x128xf32>
    %c1_104 = arith.constant 1 : index
    %c0_105 = arith.constant 0 : index
    %c0_106 = arith.constant 0 : index
    %235 = vector.load %arg15[%c1_104, %c0_105, %c0_106] : memref<2x1x128xf32, #tpu.memory_space<vmem>>, vector<1x1x128xf32>
    %236 = vector.shape_cast %235 : vector<1x1x128xf32> to vector<1x128xf32>
    %c1_107 = arith.constant 1 : index
    %c0_108 = arith.constant 0 : index
    %c0_109 = arith.constant 0 : index
    %237 = vector.load %arg16[%c1_107, %c0_108, %c0_109] : memref<2x128x512xf32, #tpu.memory_space<vmem>>, vector<1x128x512xf32>
    %238 = vector.shape_cast %237 : vector<1x128x512xf32> to vector<128x512xf32>
    %c1_110 = arith.constant 1 : index
    %c0_111 = arith.constant 0 : index
    %c0_112 = arith.constant 0 : index
    %239 = vector.load %arg17[%c1_110, %c0_111, %c0_112] : memref<2x1x512xf32, #tpu.memory_space<vmem>>, vector<1x1x512xf32>
    %240 = vector.shape_cast %239 : vector<1x1x512xf32> to vector<1x512xf32>
    %c1_113 = arith.constant 1 : index
    %c0_114 = arith.constant 0 : index
    %c0_115 = arith.constant 0 : index
    %241 = vector.load %arg18[%c1_113, %c0_114, %c0_115] : memref<2x512x128xf32, #tpu.memory_space<vmem>>, vector<1x512x128xf32>
    %242 = vector.shape_cast %241 : vector<1x512x128xf32> to vector<512x128xf32>
    %c1_116 = arith.constant 1 : index
    %c0_117 = arith.constant 0 : index
    %c0_118 = arith.constant 0 : index
    %243 = vector.load %arg19[%c1_116, %c0_117, %c0_118] : memref<2x1x128xf32, #tpu.memory_space<vmem>>, vector<1x1x128xf32>
    %244 = vector.shape_cast %243 : vector<1x1x128xf32> to vector<1x128xf32>
    %c1_119 = arith.constant 1 : index
    %c0_120 = arith.constant 0 : index
    %c0_121 = arith.constant 0 : index
    %245 = vector.load %arg20[%c1_119, %c0_120, %c0_121] : memref<2x128x768xf32, #tpu.memory_space<vmem>>, vector<1x128x768xf32>
    %246 = vector.shape_cast %245 : vector<1x128x768xf32> to vector<128x768xf32>
    %c1_122 = arith.constant 1 : index
    %c0_123 = arith.constant 0 : index
    %c0_124 = arith.constant 0 : index
    %247 = vector.load %arg21[%c1_122, %c0_123, %c0_124] : memref<2x1x768xf32, #tpu.memory_space<vmem>>, vector<1x1x768xf32>
    %248 = vector.shape_cast %247 : vector<1x1x768xf32> to vector<1x768xf32>
    %cst_125 = arith.constant dense<0.000000e+00> : vector<32x768xf32>
    %249 = tpu.matmul %24, %246, %cst_125 {dimension_numbers = #tpu.dot_dimension_numbers<[1], [0], [0], [1], [0, 0, 1, 1], [], []>} : vector<32x128xf32>, vector<128x768xf32>, vector<32x768xf32> -> vector<32x768xf32>
    %250 = vector.broadcast %248 : vector<1x768xf32> to vector<32x768xf32>
    %251 = arith.addf %249, %250 : vector<32x768xf32>
    %252 = vector.extract_strided_slice %251 {offsets = [0, 0], sizes = [32, 128], strides = [1, 1]} : vector<32x768xf32> to vector<32x128xf32>
    %253 = vector.extract_strided_slice %251 {offsets = [0, 128], sizes = [32, 128], strides = [1, 1]} : vector<32x768xf32> to vector<32x128xf32>
    %254 = vector.extract_strided_slice %251 {offsets = [0, 256], sizes = [32, 128], strides = [1, 1]} : vector<32x768xf32> to vector<32x128xf32>
    %255 = vector.extract_strided_slice %251 {offsets = [0, 384], sizes = [32, 128], strides = [1, 1]} : vector<32x768xf32> to vector<32x128xf32>
    %256 = vector.extract_strided_slice %251 {offsets = [0, 512], sizes = [32, 128], strides = [1, 1]} : vector<32x768xf32> to vector<32x128xf32>
    %257 = vector.extract_strided_slice %251 {offsets = [0, 640], sizes = [32, 128], strides = [1, 1]} : vector<32x768xf32> to vector<32x128xf32>
    %cst_126 = arith.constant dense<0.000000e+00> : vector<32xf32>
    %258 = vector.multi_reduction <add>, %228, %cst_126 [1] : vector<32x128xf32> to vector<32xf32>
    %259 = vector.shape_cast %258 : vector<32xf32> to vector<32x1xf32>
    %cst_127 = arith.constant 1.280000e+02 : f32
    %260 = vector.broadcast %cst_127 : f32 to vector<32x1xf32>
    %261 = arith.divf %259, %260 : vector<32x1xf32>
    %262 = vector.broadcast %261 : vector<32x1xf32> to vector<32x128xf32>
    %263 = arith.subf %228, %262 : vector<32x128xf32>
    %264 = arith.mulf %263, %263 : vector<32x128xf32>
    %cst_128 = arith.constant dense<0.000000e+00> : vector<32xf32>
    %265 = vector.multi_reduction <add>, %264, %cst_128 [1] : vector<32x128xf32> to vector<32xf32>
    %266 = vector.shape_cast %265 : vector<32xf32> to vector<32x1xf32>
    %cst_129 = arith.constant 1.280000e+02 : f32
    %267 = vector.broadcast %cst_129 : f32 to vector<32x1xf32>
    %268 = arith.divf %266, %267 : vector<32x1xf32>
    %269 = vector.broadcast %261 : vector<32x1xf32> to vector<32x128xf32>
    %270 = arith.subf %228, %269 : vector<32x128xf32>
    %cst_130 = arith.constant 9.99999997E-7 : f32
    %271 = vector.broadcast %cst_130 : f32 to vector<32x1xf32>
    %272 = arith.addf %268, %271 : vector<32x1xf32>
    %273 = math.rsqrt %272 : vector<32x1xf32>
    %274 = vector.broadcast %273 : vector<32x1xf32> to vector<32x128xf32>
    %275 = arith.mulf %270, %274 : vector<32x128xf32>
    %cst_131 = arith.constant 1.000000e+00 : f32
    %276 = vector.broadcast %cst_131 : f32 to vector<32x128xf32>
    %277 = arith.addf %276, %253 : vector<32x128xf32>
    %278 = arith.mulf %275, %277 : vector<32x128xf32>
    %279 = arith.addf %278, %252 : vector<32x128xf32>
    %cst_132 = arith.constant dense<0.000000e+00> : vector<32x384xf32>
    %280 = tpu.matmul %279, %230, %cst_132 {dimension_numbers = #tpu.dot_dimension_numbers<[1], [0], [0], [1], [0, 0, 1, 1], [], []>} : vector<32x128xf32>, vector<128x384xf32>, vector<32x384xf32> -> vector<32x384xf32>
    %281 = vector.broadcast %232 : vector<1x384xf32> to vector<32x384xf32>
    %282 = arith.addf %280, %281 : vector<32x384xf32>
    %283 = vector.extract_strided_slice %282 {offsets = [0, 0], sizes = [32, 128], strides = [1, 1]} : vector<32x384xf32> to vector<32x128xf32>
    %284 = vector.extract_strided_slice %282 {offsets = [0, 128], sizes = [32, 128], strides = [1, 1]} : vector<32x384xf32> to vector<32x128xf32>
    %285 = vector.extract_strided_slice %282 {offsets = [0, 256], sizes = [32, 128], strides = [1, 1]} : vector<32x384xf32> to vector<32x128xf32>
    %286 = tpu.transpose %284, [1, 0] : vector<32x128xf32> -> vector<128x32xf32>
    %cst_133 = arith.constant 0.000000e+00 : f32
    %287 = vector.broadcast %cst_133 : f32 to vector<32x128xf32>
    %288 = vector.broadcast %34 : vector<1x128xf32> to vector<32x128xf32>
    %289 = arith.mulf %283, %288 : vector<32x128xf32>
    %cst_134 = arith.constant dense<0.000000e+00> : vector<32x32xf32>
    %290 = tpu.matmul %289, %286, %cst_134 {dimension_numbers = #tpu.dot_dimension_numbers<[1], [0], [0], [1], [0, 0, 1, 1], [], []>} : vector<32x128xf32>, vector<128x32xf32>, vector<32x32xf32> -> vector<32x32xf32>
    %cst_135 = arith.constant 0.176776692 : f32
    %291 = vector.broadcast %cst_135 : f32 to vector<32x32xf32>
    %292 = arith.mulf %290, %291 : vector<32x32xf32>
    %293 = arith.addf %292, %39 : vector<32x32xf32>
    %cst_136 = arith.constant dense<0xFF800000> : vector<32xf32>
    %294 = vector.multi_reduction <maximumf>, %293, %cst_136 [1] : vector<32x32xf32> to vector<32xf32>
    %295 = vector.shape_cast %294 : vector<32xf32> to vector<32x1xf32>
    %296 = vector.broadcast %295 : vector<32x1xf32> to vector<32x32xf32>
    %297 = arith.subf %293, %296 : vector<32x32xf32>
    %298 = math.exp %297 : vector<32x32xf32>
    %cst_137 = arith.constant dense<0.000000e+00> : vector<32xf32>
    %299 = vector.multi_reduction <add>, %298, %cst_137 [1] : vector<32x32xf32> to vector<32xf32>
    %300 = vector.shape_cast %299 : vector<32xf32> to vector<32x1xf32>
    %301 = tpu.reciprocal %300 {approx = true} : vector<32x1xf32> -> vector<32x1xf32>
    %302 = vector.broadcast %301 : vector<32x1xf32> to vector<32x32xf32>
    %303 = arith.mulf %298, %302 : vector<32x32xf32>
    %304 = vector.broadcast %34 : vector<1x128xf32> to vector<32x128xf32>
    %305 = arith.mulf %285, %304 : vector<32x128xf32>
    %cst_138 = arith.constant dense<0.000000e+00> : vector<32x128xf32>
    %306 = tpu.matmul %303, %305, %cst_138 {dimension_numbers = #tpu.dot_dimension_numbers<[1], [0], [0], [1], [0, 0, 1, 1], [], []>} : vector<32x32xf32>, vector<32x128xf32>, vector<32x128xf32> -> vector<32x128xf32>
    %307 = arith.addf %287, %306 : vector<32x128xf32>
    %308 = vector.broadcast %35 : vector<1x128xf32> to vector<32x128xf32>
    %309 = arith.mulf %283, %308 : vector<32x128xf32>
    %cst_139 = arith.constant dense<0.000000e+00> : vector<32x32xf32>
    %310 = tpu.matmul %309, %286, %cst_139 {dimension_numbers = #tpu.dot_dimension_numbers<[1], [0], [0], [1], [0, 0, 1, 1], [], []>} : vector<32x128xf32>, vector<128x32xf32>, vector<32x32xf32> -> vector<32x32xf32>
    %cst_140 = arith.constant 0.176776692 : f32
    %311 = vector.broadcast %cst_140 : f32 to vector<32x32xf32>
    %312 = arith.mulf %310, %311 : vector<32x32xf32>
    %313 = arith.addf %312, %39 : vector<32x32xf32>
    %cst_141 = arith.constant dense<0xFF800000> : vector<32xf32>
    %314 = vector.multi_reduction <maximumf>, %313, %cst_141 [1] : vector<32x32xf32> to vector<32xf32>
    %315 = vector.shape_cast %314 : vector<32xf32> to vector<32x1xf32>
    %316 = vector.broadcast %315 : vector<32x1xf32> to vector<32x32xf32>
    %317 = arith.subf %313, %316 : vector<32x32xf32>
    %318 = math.exp %317 : vector<32x32xf32>
    %cst_142 = arith.constant dense<0.000000e+00> : vector<32xf32>
    %319 = vector.multi_reduction <add>, %318, %cst_142 [1] : vector<32x32xf32> to vector<32xf32>
    %320 = vector.shape_cast %319 : vector<32xf32> to vector<32x1xf32>
    %321 = tpu.reciprocal %320 {approx = true} : vector<32x1xf32> -> vector<32x1xf32>
    %322 = vector.broadcast %321 : vector<32x1xf32> to vector<32x32xf32>
    %323 = arith.mulf %318, %322 : vector<32x32xf32>
    %324 = vector.broadcast %35 : vector<1x128xf32> to vector<32x128xf32>
    %325 = arith.mulf %285, %324 : vector<32x128xf32>
    %cst_143 = arith.constant dense<0.000000e+00> : vector<32x128xf32>
    %326 = tpu.matmul %323, %325, %cst_143 {dimension_numbers = #tpu.dot_dimension_numbers<[1], [0], [0], [1], [0, 0, 1, 1], [], []>} : vector<32x32xf32>, vector<32x128xf32>, vector<32x128xf32> -> vector<32x128xf32>
    %327 = arith.addf %307, %326 : vector<32x128xf32>
    %328 = vector.broadcast %36 : vector<1x128xf32> to vector<32x128xf32>
    %329 = arith.mulf %283, %328 : vector<32x128xf32>
    %cst_144 = arith.constant dense<0.000000e+00> : vector<32x32xf32>
    %330 = tpu.matmul %329, %286, %cst_144 {dimension_numbers = #tpu.dot_dimension_numbers<[1], [0], [0], [1], [0, 0, 1, 1], [], []>} : vector<32x128xf32>, vector<128x32xf32>, vector<32x32xf32> -> vector<32x32xf32>
    %cst_145 = arith.constant 0.176776692 : f32
    %331 = vector.broadcast %cst_145 : f32 to vector<32x32xf32>
    %332 = arith.mulf %330, %331 : vector<32x32xf32>
    %333 = arith.addf %332, %39 : vector<32x32xf32>
    %cst_146 = arith.constant dense<0xFF800000> : vector<32xf32>
    %334 = vector.multi_reduction <maximumf>, %333, %cst_146 [1] : vector<32x32xf32> to vector<32xf32>
    %335 = vector.shape_cast %334 : vector<32xf32> to vector<32x1xf32>
    %336 = vector.broadcast %335 : vector<32x1xf32> to vector<32x32xf32>
    %337 = arith.subf %333, %336 : vector<32x32xf32>
    %338 = math.exp %337 : vector<32x32xf32>
    %cst_147 = arith.constant dense<0.000000e+00> : vector<32xf32>
    %339 = vector.multi_reduction <add>, %338, %cst_147 [1] : vector<32x32xf32> to vector<32xf32>
    %340 = vector.shape_cast %339 : vector<32xf32> to vector<32x1xf32>
    %341 = tpu.reciprocal %340 {approx = true} : vector<32x1xf32> -> vector<32x1xf32>
    %342 = vector.broadcast %341 : vector<32x1xf32> to vector<32x32xf32>
    %343 = arith.mulf %338, %342 : vector<32x32xf32>
    %344 = vector.broadcast %36 : vector<1x128xf32> to vector<32x128xf32>
    %345 = arith.mulf %285, %344 : vector<32x128xf32>
    %cst_148 = arith.constant dense<0.000000e+00> : vector<32x128xf32>
    %346 = tpu.matmul %343, %345, %cst_148 {dimension_numbers = #tpu.dot_dimension_numbers<[1], [0], [0], [1], [0, 0, 1, 1], [], []>} : vector<32x32xf32>, vector<32x128xf32>, vector<32x128xf32> -> vector<32x128xf32>
    %347 = arith.addf %327, %346 : vector<32x128xf32>
    %348 = vector.broadcast %37 : vector<1x128xf32> to vector<32x128xf32>
    %349 = arith.mulf %283, %348 : vector<32x128xf32>
    %cst_149 = arith.constant dense<0.000000e+00> : vector<32x32xf32>
    %350 = tpu.matmul %349, %286, %cst_149 {dimension_numbers = #tpu.dot_dimension_numbers<[1], [0], [0], [1], [0, 0, 1, 1], [], []>} : vector<32x128xf32>, vector<128x32xf32>, vector<32x32xf32> -> vector<32x32xf32>
    %cst_150 = arith.constant 0.176776692 : f32
    %351 = vector.broadcast %cst_150 : f32 to vector<32x32xf32>
    %352 = arith.mulf %350, %351 : vector<32x32xf32>
    %353 = arith.addf %352, %39 : vector<32x32xf32>
    %cst_151 = arith.constant dense<0xFF800000> : vector<32xf32>
    %354 = vector.multi_reduction <maximumf>, %353, %cst_151 [1] : vector<32x32xf32> to vector<32xf32>
    %355 = vector.shape_cast %354 : vector<32xf32> to vector<32x1xf32>
    %356 = vector.broadcast %355 : vector<32x1xf32> to vector<32x32xf32>
    %357 = arith.subf %353, %356 : vector<32x32xf32>
    %358 = math.exp %357 : vector<32x32xf32>
    %cst_152 = arith.constant dense<0.000000e+00> : vector<32xf32>
    %359 = vector.multi_reduction <add>, %358, %cst_152 [1] : vector<32x32xf32> to vector<32xf32>
    %360 = vector.shape_cast %359 : vector<32xf32> to vector<32x1xf32>
    %361 = tpu.reciprocal %360 {approx = true} : vector<32x1xf32> -> vector<32x1xf32>
    %362 = vector.broadcast %361 : vector<32x1xf32> to vector<32x32xf32>
    %363 = arith.mulf %358, %362 : vector<32x32xf32>
    %364 = vector.broadcast %37 : vector<1x128xf32> to vector<32x128xf32>
    %365 = arith.mulf %285, %364 : vector<32x128xf32>
    %cst_153 = arith.constant dense<0.000000e+00> : vector<32x128xf32>
    %366 = tpu.matmul %363, %365, %cst_153 {dimension_numbers = #tpu.dot_dimension_numbers<[1], [0], [0], [1], [0, 0, 1, 1], [], []>} : vector<32x32xf32>, vector<32x128xf32>, vector<32x128xf32> -> vector<32x128xf32>
    %367 = arith.addf %347, %366 : vector<32x128xf32>
    %cst_154 = arith.constant dense<0.000000e+00> : vector<32x128xf32>
    %368 = tpu.matmul %367, %234, %cst_154 {dimension_numbers = #tpu.dot_dimension_numbers<[1], [0], [0], [1], [0, 0, 1, 1], [], []>} : vector<32x128xf32>, vector<128x128xf32>, vector<32x128xf32> -> vector<32x128xf32>
    %369 = vector.broadcast %236 : vector<1x128xf32> to vector<32x128xf32>
    %370 = arith.addf %368, %369 : vector<32x128xf32>
    %371 = arith.mulf %254, %370 : vector<32x128xf32>
    %372 = arith.addf %228, %371 : vector<32x128xf32>
    %cst_155 = arith.constant dense<0.000000e+00> : vector<32xf32>
    %373 = vector.multi_reduction <add>, %372, %cst_155 [1] : vector<32x128xf32> to vector<32xf32>
    %374 = vector.shape_cast %373 : vector<32xf32> to vector<32x1xf32>
    %cst_156 = arith.constant 1.280000e+02 : f32
    %375 = vector.broadcast %cst_156 : f32 to vector<32x1xf32>
    %376 = arith.divf %374, %375 : vector<32x1xf32>
    %377 = vector.broadcast %376 : vector<32x1xf32> to vector<32x128xf32>
    %378 = arith.subf %372, %377 : vector<32x128xf32>
    %379 = arith.mulf %378, %378 : vector<32x128xf32>
    %cst_157 = arith.constant dense<0.000000e+00> : vector<32xf32>
    %380 = vector.multi_reduction <add>, %379, %cst_157 [1] : vector<32x128xf32> to vector<32xf32>
    %381 = vector.shape_cast %380 : vector<32xf32> to vector<32x1xf32>
    %cst_158 = arith.constant 1.280000e+02 : f32
    %382 = vector.broadcast %cst_158 : f32 to vector<32x1xf32>
    %383 = arith.divf %381, %382 : vector<32x1xf32>
    %384 = vector.broadcast %376 : vector<32x1xf32> to vector<32x128xf32>
    %385 = arith.subf %372, %384 : vector<32x128xf32>
    %cst_159 = arith.constant 9.99999997E-7 : f32
    %386 = vector.broadcast %cst_159 : f32 to vector<32x1xf32>
    %387 = arith.addf %383, %386 : vector<32x1xf32>
    %388 = math.rsqrt %387 : vector<32x1xf32>
    %389 = vector.broadcast %388 : vector<32x1xf32> to vector<32x128xf32>
    %390 = arith.mulf %385, %389 : vector<32x128xf32>
    %cst_160 = arith.constant 1.000000e+00 : f32
    %391 = vector.broadcast %cst_160 : f32 to vector<32x128xf32>
    %392 = arith.addf %391, %256 : vector<32x128xf32>
    %393 = arith.mulf %390, %392 : vector<32x128xf32>
    %394 = arith.addf %393, %255 : vector<32x128xf32>
    %cst_161 = arith.constant dense<0.000000e+00> : vector<32x512xf32>
    %395 = tpu.matmul %394, %238, %cst_161 {dimension_numbers = #tpu.dot_dimension_numbers<[1], [0], [0], [1], [0, 0, 1, 1], [], []>} : vector<32x128xf32>, vector<128x512xf32>, vector<32x512xf32> -> vector<32x512xf32>
    %396 = vector.broadcast %240 : vector<1x512xf32> to vector<32x512xf32>
    %397 = arith.addf %395, %396 : vector<32x512xf32>
    %cst_162 = arith.constant 5.000000e-01 : f32
    %398 = vector.broadcast %cst_162 : f32 to vector<32x512xf32>
    %399 = arith.mulf %398, %397 : vector<32x512xf32>
    %cst_163 = arith.constant 4.471500e-02 : f32
    %400 = vector.broadcast %cst_163 : f32 to vector<32x512xf32>
    %401 = arith.mulf %400, %397 : vector<32x512xf32>
    %402 = arith.mulf %401, %397 : vector<32x512xf32>
    %403 = arith.mulf %402, %397 : vector<32x512xf32>
    %404 = arith.addf %397, %403 : vector<32x512xf32>
    %cst_164 = arith.constant 0.797884583 : f32
    %405 = vector.broadcast %cst_164 : f32 to vector<32x512xf32>
    %406 = arith.mulf %405, %404 : vector<32x512xf32>
    %407 = math.tanh %406 : vector<32x512xf32>
    %cst_165 = arith.constant 1.000000e+00 : f32
    %408 = vector.broadcast %cst_165 : f32 to vector<32x512xf32>
    %409 = arith.addf %408, %407 : vector<32x512xf32>
    %410 = arith.mulf %399, %409 : vector<32x512xf32>
    %cst_166 = arith.constant dense<0.000000e+00> : vector<32x128xf32>
    %411 = tpu.matmul %410, %242, %cst_166 {dimension_numbers = #tpu.dot_dimension_numbers<[1], [0], [0], [1], [0, 0, 1, 1], [], []>} : vector<32x512xf32>, vector<512x128xf32>, vector<32x128xf32> -> vector<32x128xf32>
    %412 = vector.broadcast %244 : vector<1x128xf32> to vector<32x128xf32>
    %413 = arith.addf %411, %412 : vector<32x128xf32>
    %414 = arith.mulf %257, %413 : vector<32x128xf32>
    %415 = arith.addf %372, %414 : vector<32x128xf32>
    %416 = vector.extract_strided_slice %415 {offsets = [0, 0], sizes = [8, 128], strides = [1, 1]} : vector<32x128xf32> to vector<8x128xf32>
    %cst_167 = arith.constant dense<0.000000e+00> : vector<128xf32>
    %417 = vector.multi_reduction <add>, %416, %cst_167 [0] : vector<8x128xf32> to vector<128xf32>
    %418 = vector.shape_cast %417 : vector<128xf32> to vector<1x128xf32>
    %cst_168 = arith.constant 8.000000e+00 : f32
    %419 = vector.broadcast %cst_168 : f32 to vector<1x128xf32>
    %420 = arith.divf %418, %419 : vector<1x128xf32>
    %421 = vector.extract_strided_slice %415 {offsets = [8, 0], sizes = [8, 128], strides = [1, 1]} : vector<32x128xf32> to vector<8x128xf32>
    %cst_169 = arith.constant dense<0.000000e+00> : vector<128xf32>
    %422 = vector.multi_reduction <add>, %421, %cst_169 [0] : vector<8x128xf32> to vector<128xf32>
    %423 = vector.shape_cast %422 : vector<128xf32> to vector<1x128xf32>
    %cst_170 = arith.constant 8.000000e+00 : f32
    %424 = vector.broadcast %cst_170 : f32 to vector<1x128xf32>
    %425 = arith.divf %423, %424 : vector<1x128xf32>
    %426 = vector.extract_strided_slice %415 {offsets = [16, 0], sizes = [8, 128], strides = [1, 1]} : vector<32x128xf32> to vector<8x128xf32>
    %cst_171 = arith.constant dense<0.000000e+00> : vector<128xf32>
    %427 = vector.multi_reduction <add>, %426, %cst_171 [0] : vector<8x128xf32> to vector<128xf32>
    %428 = vector.shape_cast %427 : vector<128xf32> to vector<1x128xf32>
    %cst_172 = arith.constant 8.000000e+00 : f32
    %429 = vector.broadcast %cst_172 : f32 to vector<1x128xf32>
    %430 = arith.divf %428, %429 : vector<1x128xf32>
    %431 = vector.extract_strided_slice %415 {offsets = [24, 0], sizes = [8, 128], strides = [1, 1]} : vector<32x128xf32> to vector<8x128xf32>
    %cst_173 = arith.constant dense<0.000000e+00> : vector<128xf32>
    %432 = vector.multi_reduction <add>, %431, %cst_173 [0] : vector<8x128xf32> to vector<128xf32>
    %433 = vector.shape_cast %432 : vector<128xf32> to vector<1x128xf32>
    %cst_174 = arith.constant 8.000000e+00 : f32
    %434 = vector.broadcast %cst_174 : f32 to vector<1x128xf32>
    %435 = arith.divf %433, %434 : vector<1x128xf32>
    %436 = tpu.concatenate %420, %425, %430, %435 in 0 : vector<1x128xf32>, vector<1x128xf32>, vector<1x128xf32>, vector<1x128xf32> -> vector<4x128xf32>
    %cst_175 = arith.constant dense<0.000000e+00> : vector<4xf32>
    %437 = vector.multi_reduction <add>, %436, %cst_175 [1] : vector<4x128xf32> to vector<4xf32>
    %438 = vector.shape_cast %437 : vector<4xf32> to vector<4x1xf32>
    %cst_176 = arith.constant 1.280000e+02 : f32
    %439 = vector.broadcast %cst_176 : f32 to vector<4x1xf32>
    %440 = arith.divf %438, %439 : vector<4x1xf32>
    %441 = vector.broadcast %440 : vector<4x1xf32> to vector<4x128xf32>
    %442 = arith.subf %436, %441 : vector<4x128xf32>
    %443 = arith.mulf %442, %442 : vector<4x128xf32>
    %cst_177 = arith.constant dense<0.000000e+00> : vector<4xf32>
    %444 = vector.multi_reduction <add>, %443, %cst_177 [1] : vector<4x128xf32> to vector<4xf32>
    %445 = vector.shape_cast %444 : vector<4xf32> to vector<4x1xf32>
    %cst_178 = arith.constant 1.280000e+02 : f32
    %446 = vector.broadcast %cst_178 : f32 to vector<4x1xf32>
    %447 = arith.divf %445, %446 : vector<4x1xf32>
    %448 = vector.broadcast %440 : vector<4x1xf32> to vector<4x128xf32>
    %449 = arith.subf %436, %448 : vector<4x128xf32>
    %cst_179 = arith.constant 9.99999974E-6 : f32
    %450 = vector.broadcast %cst_179 : f32 to vector<4x1xf32>
    %451 = arith.addf %447, %450 : vector<4x1xf32>
    %452 = math.rsqrt %451 : vector<4x1xf32>
    %453 = vector.broadcast %452 : vector<4x1xf32> to vector<4x128xf32>
    %454 = arith.mulf %449, %453 : vector<4x128xf32>
    %c0_180 = arith.constant 0 : index
    %c0_181 = arith.constant 0 : index
    %455 = vector.load %arg22[%c0_180, %c0_181] : memref<2x128xf32, #tpu.memory_space<vmem>>, vector<2x128xf32>
    %456 = tpu.concatenate %455, %455 in 0 : vector<2x128xf32>, vector<2x128xf32> -> vector<4x128xf32>
    %c0_182 = arith.constant 0 : index
    %c0_183 = arith.constant 0 : index
    %457 = vector.load %arg23[%c0_182, %c0_183] : memref<2x128xf32, #tpu.memory_space<vmem>>, vector<2x128xf32>
    %458 = tpu.concatenate %457, %457 in 0 : vector<2x128xf32>, vector<2x128xf32> -> vector<4x128xf32>
    %459 = arith.mulf %454, %456 : vector<4x128xf32>
    %460 = arith.addf %459, %458 : vector<4x128xf32>
    %c0_184 = arith.constant 0 : index
    %c0_185 = arith.constant 0 : index
    %461 = vector.load %arg26[%c0_184, %c0_185] : memref<4x2xf32, #tpu.memory_space<vmem>>, vector<4x2xf32>
    %cst_186 = arith.constant 0.000000e+00 : f32
    %462 = vector.broadcast %cst_186 : f32 to vector<4x128xf32>
    %c0_187 = arith.constant 0 : index
    %c0_188 = arith.constant 0 : index
    %c0_189 = arith.constant 0 : index
    %463 = vector.load %arg24[%c0_187, %c0_188, %c0_189] : memref<2x128x128xf32, #tpu.memory_space<vmem>>, vector<1x128x128xf32>
    %464 = vector.shape_cast %463 : vector<1x128x128xf32> to vector<128x128xf32>
    %cst_190 = arith.constant dense<0.000000e+00> : vector<4x128xf32>
    %465 = tpu.matmul %460, %464, %cst_190 {dimension_numbers = #tpu.dot_dimension_numbers<[1], [0], [0], [1], [0, 0, 1, 1], [], []>} : vector<4x128xf32>, vector<128x128xf32>, vector<4x128xf32> -> vector<4x128xf32>
    %c0_191 = arith.constant 0 : index
    %c0_192 = arith.constant 0 : index
    %c0_193 = arith.constant 0 : index
    %466 = vector.load %arg25[%c0_191, %c0_192, %c0_193] : memref<2x1x128xf32, #tpu.memory_space<vmem>>, vector<1x1x128xf32>
    %467 = vector.shape_cast %466 : vector<1x1x128xf32> to vector<1x128xf32>
    %468 = vector.broadcast %467 : vector<1x128xf32> to vector<4x128xf32>
    %469 = arith.addf %465, %468 : vector<4x128xf32>
    %470 = vector.extract_strided_slice %461 {offsets = [0, 0], sizes = [4, 1], strides = [1, 1]} : vector<4x2xf32> to vector<4x1xf32>
    %471 = vector.broadcast %470 : vector<4x1xf32> to vector<4x128xf32>
    %472 = arith.mulf %469, %471 : vector<4x128xf32>
    %473 = arith.addf %462, %472 : vector<4x128xf32>
    %c1_194 = arith.constant 1 : index
    %c0_195 = arith.constant 0 : index
    %c0_196 = arith.constant 0 : index
    %474 = vector.load %arg24[%c1_194, %c0_195, %c0_196] : memref<2x128x128xf32, #tpu.memory_space<vmem>>, vector<1x128x128xf32>
    %475 = vector.shape_cast %474 : vector<1x128x128xf32> to vector<128x128xf32>
    %cst_197 = arith.constant dense<0.000000e+00> : vector<4x128xf32>
    %476 = tpu.matmul %460, %475, %cst_197 {dimension_numbers = #tpu.dot_dimension_numbers<[1], [0], [0], [1], [0, 0, 1, 1], [], []>} : vector<4x128xf32>, vector<128x128xf32>, vector<4x128xf32> -> vector<4x128xf32>
    %c1_198 = arith.constant 1 : index
    %c0_199 = arith.constant 0 : index
    %c0_200 = arith.constant 0 : index
    %477 = vector.load %arg25[%c1_198, %c0_199, %c0_200] : memref<2x1x128xf32, #tpu.memory_space<vmem>>, vector<1x1x128xf32>
    %478 = vector.shape_cast %477 : vector<1x1x128xf32> to vector<1x128xf32>
    %479 = vector.broadcast %478 : vector<1x128xf32> to vector<4x128xf32>
    %480 = arith.addf %476, %479 : vector<4x128xf32>
    %481 = vector.extract_strided_slice %461 {offsets = [0, 1], sizes = [4, 1], strides = [1, 1]} : vector<4x2xf32> to vector<4x1xf32>
    %482 = vector.broadcast %481 : vector<4x1xf32> to vector<4x128xf32>
    %483 = arith.mulf %480, %482 : vector<4x128xf32>
    %484 = arith.addf %473, %483 : vector<4x128xf32>
    %c0_201 = arith.constant 0 : index
    %c0_202 = arith.constant 0 : index
    %485 = vector.load %arg27[%c0_201, %c0_202] : memref<4x128xf32, #tpu.memory_space<vmem>>, vector<4x128xf32>
    tpu.vector_store %arg27[%c0_201, %c0_202], %484 {strides = array<i32>} : memref<4x128xf32, #tpu.memory_space<vmem>>, vector<4x128xf32>,
    return
  }
  func.func @transform_0(%arg0: i32) -> (i32, i32) {
    %c0_i32 = arith.constant 0 : i32
    %c0_i32_0 = arith.constant 0 : i32
    %c0_i32_1 = arith.constant 0 : i32
    return %c0_i32, %c0_i32_0 : i32, i32
  }
  func.func @transform_1(%arg0: i32) -> (i32, i32) {
    %c0_i32 = arith.constant 0 : i32
    %c0_i32_0 = arith.constant 0 : i32
    %c0_i32_1 = arith.constant 0 : i32
    return %c0_i32, %c0_i32_0 : i32, i32
  }
  func.func @transform_2(%arg0: i32) -> (i32, i32) {
    %c0_i32 = arith.constant 0 : i32
    %c0_i32_0 = arith.constant 0 : i32
    %c0_i32_1 = arith.constant 0 : i32
    return %c0_i32, %c0_i32_0 : i32, i32
  }
  func.func @transform_3(%arg0: i32) -> (i32, i32) {
    %c0_i32 = arith.constant 0 : i32
    %c0_i32_0 = arith.constant 0 : i32
    %c0_i32_1 = arith.constant 0 : i32
    return %c0_i32, %c0_i32_0 : i32, i32
  }
  func.func @transform_4(%arg0: i32) -> (i32, i32) {
    %c0_i32 = arith.constant 0 : i32
    %c0_i32_0 = arith.constant 0 : i32
    %c0_i32_1 = arith.constant 0 : i32
    return %c0_i32, %c0_i32_0 : i32, i32
  }
  func.func @transform_5(%arg0: i32) -> (i32, i32) {
    %c0_i32 = arith.constant 0 : i32
    %c0_i32_0 = arith.constant 0 : i32
    %c0_i32_1 = arith.constant 0 : i32
    return %c0_i32, %c0_i32_0 : i32, i32
  }
  func.func @transform_6(%arg0: i32) -> (i32, i32) {
    %c0_i32 = arith.constant 0 : i32
    %c0_i32_0 = arith.constant 0 : i32
    %c0_i32_1 = arith.constant 0 : i32
    return %c0_i32, %c0_i32_0 : i32, i32
  }
  func.func @transform_7(%arg0: i32) -> (i32, i32) {
    %c0_i32 = arith.constant 0 : i32
    %c0_i32_0 = arith.constant 0 : i32
    %c0_i32_1 = arith.constant 0 : i32
    return %c0_i32, %c0_i32_0 : i32, i32
  }
  func.func @transform_8(%arg0: i32) -> (i32, i32) {
    %c0_i32 = arith.constant 0 : i32
    %c0_i32_0 = arith.constant 0 : i32
    %c0_i32_1 = arith.constant 0 : i32
    return %c0_i32, %c0_i32_0 : i32, i32
  }
  func.func @transform_9(%arg0: i32) -> (i32, i32) {
    %c0_i32 = arith.constant 0 : i32
    %c0_i32_0 = arith.constant 0 : i32
    %c0_i32_1 = arith.constant 0 : i32
    return %c0_i32, %c0_i32_0 : i32, i32
  }
  func.func @transform_10(%arg0: i32) -> (i32, i32) {
    %c0_i32 = arith.constant 0 : i32
    %c0_i32_0 = arith.constant 0 : i32
    %c0_i32_1 = arith.constant 0 : i32
    return %c0_i32, %c0_i32_0 : i32, i32
  }
  func.func @transform_11(%arg0: i32) -> (i32, i32, i32) {
    %c0_i32 = arith.constant 0 : i32
    %c0_i32_0 = arith.constant 0 : i32
    %c0_i32_1 = arith.constant 0 : i32
    %c0_i32_2 = arith.constant 0 : i32
    return %c0_i32, %c0_i32_0, %c0_i32_1 : i32, i32, i32
  }
  func.func @transform_12(%arg0: i32) -> (i32, i32, i32) {
    %c0_i32 = arith.constant 0 : i32
    %c0_i32_0 = arith.constant 0 : i32
    %c0_i32_1 = arith.constant 0 : i32
    %c0_i32_2 = arith.constant 0 : i32
    return %c0_i32, %c0_i32_0, %c0_i32_1 : i32, i32, i32
  }
  func.func @transform_13(%arg0: i32) -> (i32, i32, i32) {
    %c0_i32 = arith.constant 0 : i32
    %c0_i32_0 = arith.constant 0 : i32
    %c0_i32_1 = arith.constant 0 : i32
    %c0_i32_2 = arith.constant 0 : i32
    return %c0_i32, %c0_i32_0, %c0_i32_1 : i32, i32, i32
  }
  func.func @transform_14(%arg0: i32) -> (i32, i32, i32) {
    %c0_i32 = arith.constant 0 : i32
    %c0_i32_0 = arith.constant 0 : i32
    %c0_i32_1 = arith.constant 0 : i32
    %c0_i32_2 = arith.constant 0 : i32
    return %c0_i32, %c0_i32_0, %c0_i32_1 : i32, i32, i32
  }
  func.func @transform_15(%arg0: i32) -> (i32, i32, i32) {
    %c0_i32 = arith.constant 0 : i32
    %c0_i32_0 = arith.constant 0 : i32
    %c0_i32_1 = arith.constant 0 : i32
    %c0_i32_2 = arith.constant 0 : i32
    return %c0_i32, %c0_i32_0, %c0_i32_1 : i32, i32, i32
  }
  func.func @transform_16(%arg0: i32) -> (i32, i32, i32) {
    %c0_i32 = arith.constant 0 : i32
    %c0_i32_0 = arith.constant 0 : i32
    %c0_i32_1 = arith.constant 0 : i32
    %c0_i32_2 = arith.constant 0 : i32
    return %c0_i32, %c0_i32_0, %c0_i32_1 : i32, i32, i32
  }
  func.func @transform_17(%arg0: i32) -> (i32, i32, i32) {
    %c0_i32 = arith.constant 0 : i32
    %c0_i32_0 = arith.constant 0 : i32
    %c0_i32_1 = arith.constant 0 : i32
    %c0_i32_2 = arith.constant 0 : i32
    return %c0_i32, %c0_i32_0, %c0_i32_1 : i32, i32, i32
  }
  func.func @transform_18(%arg0: i32) -> (i32, i32, i32) {
    %c0_i32 = arith.constant 0 : i32
    %c0_i32_0 = arith.constant 0 : i32
    %c0_i32_1 = arith.constant 0 : i32
    %c0_i32_2 = arith.constant 0 : i32
    return %c0_i32, %c0_i32_0, %c0_i32_1 : i32, i32, i32
  }
  func.func @transform_19(%arg0: i32) -> (i32, i32, i32) {
    %c0_i32 = arith.constant 0 : i32
    %c0_i32_0 = arith.constant 0 : i32
    %c0_i32_1 = arith.constant 0 : i32
    %c0_i32_2 = arith.constant 0 : i32
    return %c0_i32, %c0_i32_0, %c0_i32_1 : i32, i32, i32
  }
  func.func @transform_20(%arg0: i32) -> (i32, i32, i32) {
    %c0_i32 = arith.constant 0 : i32
    %c0_i32_0 = arith.constant 0 : i32
    %c0_i32_1 = arith.constant 0 : i32
    %c0_i32_2 = arith.constant 0 : i32
    return %c0_i32, %c0_i32_0, %c0_i32_1 : i32, i32, i32
  }
  func.func @transform_21(%arg0: i32) -> (i32, i32) {
    %c0_i32 = arith.constant 0 : i32
    %c0_i32_0 = arith.constant 0 : i32
    %c0_i32_1 = arith.constant 0 : i32
    return %c0_i32, %c0_i32_0 : i32, i32
  }
  func.func @transform_22(%arg0: i32) -> (i32, i32) {
    %c0_i32 = arith.constant 0 : i32
    %c0_i32_0 = arith.constant 0 : i32
    %c0_i32_1 = arith.constant 0 : i32
    return %c0_i32, %c0_i32_0 : i32, i32
  }
  func.func @transform_23(%arg0: i32) -> (i32, i32, i32) {
    %c0_i32 = arith.constant 0 : i32
    %c0_i32_0 = arith.constant 0 : i32
    %c0_i32_1 = arith.constant 0 : i32
    %c0_i32_2 = arith.constant 0 : i32
    return %c0_i32, %c0_i32_0, %c0_i32_1 : i32, i32, i32
  }
  func.func @transform_24(%arg0: i32) -> (i32, i32, i32) {
    %c0_i32 = arith.constant 0 : i32
    %c0_i32_0 = arith.constant 0 : i32
    %c0_i32_1 = arith.constant 0 : i32
    %c0_i32_2 = arith.constant 0 : i32
    return %c0_i32, %c0_i32_0, %c0_i32_1 : i32, i32, i32
  }
  func.func @transform_25(%arg0: i32) -> (i32, i32) {
    %c0_i32 = arith.constant 0 : i32
    %c0_i32_0 = arith.constant 0 : i32
    %c0_i32_1 = arith.constant 0 : i32
    return %c0_i32, %c0_i32_0 : i32, i32
  }
  func.func @transform_26(%arg0: i32) -> (i32, i32) {
    %c0_i32 = arith.constant 0 : i32
    %c0_i32_0 = arith.constant 0 : i32
    %c0_i32_1 = arith.constant 0 : i32
    return %c0_i32, %c0_i32_0 : i32, i32
  }
}

</mosaic_0001>

<bundles_post_ra>
// kernel: vision_encoder_pallas.1
= control target key start
LH: loop header
LB: loop body
LE: loop exit
PB: predicated region body
PF: predicated region fallthrough
CT: control target
= control target key end

     0   :  { %s11548_s0 = inlined_call_operand.vmem [shape: f32[32,192], index: 0, kind: input, shape index: {}]   ;;  %s11549_s1 = inlined_call_operand.vmem [shape: f32[192,128], index: 1, kind: input, shape index: {}]   ;;  %s11550_s2 = inlined_call_operand.vmem [shape: f32[1,128], index: 2, kind: input, shape index: {}]   ;;  %s11551_s3 = inlined_call_operand.vmem [shape: f32[32,128], index: 3, kind: input, shape index: {}]   ;;  %s11552_s4 = inlined_call_operand.vmem [shape: f32[32,128], index: 4, kind: input, shape index: {}]   ;;  %s11553_s5 = inlined_call_operand.vmem [shape: f32[2,32], index: 5, kind: input, shape index: {}]   ;;  %s11554_s6 = inlined_call_operand.vmem [shape: f32[32,128], index: 6, kind: input, shape index: {}]   ;;  %s11555_s7 = inlined_call_operand.vmem [shape: f32[1,128], index: 7, kind: input, shape index: {}]   ;;  %s11556_s8 = inlined_call_operand.vmem [shape: f32[4,128], index: 8, kind: input, shape index: {}]   ;;  %s11557_s9 = inlined_call_operand.vmem [shape: f32[32,32], index: 9, kind: input, shape index: {}]   ;;  %s11558_s10 = inlined_call_operand.vmem [shape: f32[32,32], index: 10, kind: input, shape index: {}]   ;;  %s11559_s11 = inlined_call_operand.vmem [shape: f32[2,128,384], index: 11, kind: input, shape index: {}]   ;;  %s11560_s12 = inlined_call_operand.vmem [shape: f32[2,1,384], index: 12, kind: input, shape index: {}]   ;;  %s11561_s13 = inlined_call_operand.vmem [shape: f32[2,128,128], index: 13, kind: input, shape index: {}]   ;;  %s11562_s14 = inlined_call_operand.vmem [shape: f32[2,1,128], index: 14, kind: input, shape index: {}]   ;;  %s11563_s15 = inlined_call_operand.vmem [shape: f32[2,128,512], index: 15, kind: input, shape index: {}]   ;;  %s11564_s16 = inlined_call_operand.vmem [shape: f32[2,1,512], index: 16, kind: input, shape index: {}]   ;;  %s11565_s17 = inlined_call_operand.vmem [shape: f32[2,512,128], index: 17, kind: input, shape index: {}]   ;;  %s11566_s18 = inlined_call_operand.vmem [shape: f32[2,1,128], index: 18, kind: input, shape index: {}]   ;;  %s11567_s19 = inlined_call_operand.vmem [shape: f32[2,128,768], index: 19, kind: input, shape index: {}]   ;;  %s11568_s20 = inlined_call_operand.vmem [shape: f32[2,1,768], index: 20, kind: input, shape index: {}]   ;;  %s11569_s21 = inlined_call_operand.vmem [shape: f32[2,128], index: 21, kind: input, shape index: {}]   ;;  %s11570_s22 = inlined_call_operand.vmem [shape: f32[2,128], index: 22, kind: input, shape index: {}]   ;;  %s11571_s23 = inlined_call_operand.vmem [shape: f32[2,128,128], index: 23, kind: input, shape index: {}]   ;;  %s11572_s24 = inlined_call_operand.vmem [shape: f32[2,1,128], index: 24, kind: input, shape index: {}]   ;;  %s11573_s25 = inlined_call_operand.vmem [shape: f32[4,2], index: 25, kind: input, shape index: {}]   ;;  %s11574_s26 = inlined_call_operand.hbm [shape: f32[4,128], index: 26, kind: output, shape index: {}]  }
   0x1   :  { %11604 = sst [smem:[#allocation21_spill]] %s11548_s0 }
   0x2   :  { %11605 = sst [smem:[#allocation22_spill]] %s11549_s1 }
   0x3   :  { %11606 = sst [smem:[#allocation23_spill]] %s11550_s2 }
   0x4   :  { %11607 = sst [smem:[#allocation24_spill]] %s11551_s3 }
   0x5   :  { %11608 = sst [smem:[#allocation25_spill]] %s11552_s4 }
   0x6   :  { %11609 = sst [smem:[#allocation26_spill]] %s11553_s5 }
   0x7   :  { %11610 = sst [smem:[#allocation27_spill]] %s11554_s6 }
   0x8   :  { %11611 = sst [smem:[#allocation28_spill]] %s11555_s7 }
   0x9   :  { %11612 = sst [smem:[#allocation29_spill]] %s11556_s8 }
   0xa   :  { %11613 = sst [smem:[#allocation30_spill]] %s11557_s9 }
   0xb   :  { %11614 = sst [smem:[#allocation31_spill]] %s11558_s10 }
   0xc   :  { %s11615_s7 = sld [smem:[#allocation22_spill]]  ;;  %v11582_v3 = vmov 0.0|0.0   ;;  %vm8050_vm0 = vmmov 0   ;;  %v11584_v6 = vmov 0.0   ;;  %s11616_s27 = sld [smem:[#allocation27_spill]]  ;;  %vm238_vm1 = vcmask 523264  }
   0xd   :  { %6900 = vmatprep.subr.bf16.mxu1 %v11582_v3  ;;  %6894 = vmatprep.subr.bf16.mxu0 %v11582_v3  ;;  %s11617_s1 = sld [smem:[#allocation26_spill]]  ;;  %s11618_s28 = sld [smem:[#allocation21_spill]] }
   0xe   :  { %6445 = vmatprep.mubr.msk.f32.mxu0 %vm8050_vm0, %v11584_v6 }
  0x12   :  { %v207_v0 = vld [vmem:[%s11615_s7] sm:$0xff]  ;;  %v208_v1 = vld [vmem:[%s11615_s7 + $0x8] sm:$0xff]  ;;  %v209_v2 = vld [vmem:[%s11615_s7 + $0x10] sm:$0xff] }
  0x13   :  { %v6901_v4 = vpack.c.bf16 %v208_v1, %v207_v0  ;;  %v210_v5 = vld [vmem:[%s11615_s7 + $0x18] sm:$0xff]  ;;  %v211_v8 = vld [vmem:[%s11615_s7 + $0x20] sm:$0xff]  ;;  %v212_v9 = vld [vmem:[%s11615_s7 + $0x28] sm:$0xff] }
  0x14   :  { %v6904_v7 = vpack.c.bf16 %v210_v5, %v209_v2  ;;  %v92_v10 = vld [vmem:[%s11616_s27] sm:$0xff]  ;;  %v93_v11 = vld [vmem:[%s11616_s27 + $0x8] sm:$0xff]  ;;  %v94_v13 = vld [vmem:[%s11616_s27 + $0x10] sm:$0xff]  ;;  %v6907_v14 = vpack.c.bf16 %v212_v9, %v211_v8 }
  0x15   :  { %6902 = vmatpush1.bf16.msra.mxu1 %v6901_v4  ;;  %v6895_v12 = vpack.c.bf16 %v93_v11, %v92_v10  ;;  %v95_v15 = vld [vmem:[%s11616_s27 + $0x18] sm:$0xff]  ;;  %v213_v16 = vld [vmem:[%s11615_s7 + $0x30] sm:$0xff]  ;;  %v84_v19 = vld [vmem:[%s11617_s1] sm:$0x3] }
  0x16   :  { %6903 = vmatprep.subr.bf16.mxu1 %v11582_v3  ;;  %v214_v17 = vld [vmem:[%s11615_s7 + $0x38] sm:$0xff]  ;;  %v6898_v18 = vpack.c.bf16 %v95_v15, %v94_v13  ;;  %v5656_v20 = vmul.f32 -1.442695, %v84_v19  ;;  %v200_v21 = vld [vmem:[%s11618_s28 + $0x8] sm:$0xff]  ;;  %v215_v23 = vld [vmem:[%s11615_s7 + $0x40] sm:$0xff] }
  0x17   :  { %6896 = vmatpush3.bf16.msra.mxu0 %v6895_v12  ;;  %5662 = vmatprep.mubr.msk.f32.mxu1 %vm238_vm1, %v200_v21  ;;  %v6910_v22 = vpack.c.bf16 %v214_v17, %v213_v16  ;;  %v216_v24 = vld [vmem:[%s11615_s7 + $0x48] sm:$0xff] }
  0x18   :  { %6897 = vmatprep.subr.bf16.mxu0 %v11582_v3  ;;  %7785 = vpow2.f32 %v5656_v20 }
  0x19   :  { %6905 = vmatpush1.bf16.msra.mxu1 %v6904_v7 }
  0x1a   :  { %6906 = vmatprep.subr.bf16.mxu1 %v11582_v3 }
  0x1b   :  { %6899 = vmatpush3.bf16.msra.mxu0 %v6898_v18 }
  0x1d   :  { %6908 = vmatpush1.bf16.msra.mxu1 %v6907_v14 }
  0x1e   :  { %6909 = vmatprep.subr.bf16.mxu1 %v11582_v3 }
  0x1f   :  { %31 = vsyncpa [#allocation3], 0  ;;  %v6913_v25 = vpack.c.bf16 %v216_v24, %v215_v23  ;;  %v217_v26 = vld [vmem:[%s11615_s7 + $0x50] sm:$0xff]  ;;  %v218_v27 = vld [vmem:[%s11615_s7 + $0x58] sm:$0xff]  ;;  %vm103_vm2 = vcmask 261120   ;;  %s11619_s30 = sld [smem:[#allocation28_spill]] }
  0x20   :  { %v6916_v28 = vpack.c.bf16 %v218_v27, %v217_v26  ;;  %v219_v29 = vld [vmem:[%s11615_s7 + $0x60] sm:$0xff]  ;;  %v220_v30 = vld [vmem:[%s11615_s7 + $0x68] sm:$0xff]  ;;  %v221_v34 = vld [vmem:[%s11615_s7 + $0x70] sm:$0xff]  ;;  %s11622_s10 = sld [smem:[#allocation23_spill]]  ;;  %s11623_s27 = sld [smem:[#allocation24_spill]]  ;;  %vm5407_vm3 = vcmask 1040384  }
  0x21   :  { %6911 = vmatpush1.bf16.msra.mxu1 %v6910_v22  ;;  %v6919_v33 = vpack.c.bf16 %v220_v30, %v219_v29  ;;  %v222_v35 = vld [vmem:[%s11615_s7 + $0x78] sm:$0xff]  ;;  %v223_v37 = vld [vmem:[%s11615_s7 + $0x80] sm:$0xff]  ;;  %v224_v38 = vld [vmem:[%s11615_s7 + $0x88] sm:$0xff]  ;;  %s11633_s8 = sld [smem:[#allocation29_spill]]  ;;  %s11639_s0 = sld [smem:[#allocation30_spill]]  ;;  %vm5409_vm4 = vcmask 1041408  }
  0x22   :  { %6912 = vmatprep.subr.bf16.mxu1 %v11582_v3  ;;  %v7786_v31 = vpop.eup %7785  ;;  %v6922_v36 = vpack.c.bf16 %v222_v35, %v221_v34  ;;  %v6925_v39 = vpack.c.bf16 %v224_v38, %v223_v37  ;;  %v225_v40 = vld [vmem:[%s11615_s7 + $0x90] sm:$0xff]  ;;  %v226_v41 = vld [vmem:[%s11615_s7 + $0x98] sm:$0xff]  ;;  %v227_v45 = vld [vmem:[%s11615_s7 + $0xa0] sm:$0xff]  ;;  %s11652_s2 = sld [smem:[#allocation25_spill]]  ;;  %vm5411_vm5 = vcmask 1042432   ;;  %vm5413_vm6 = vcmask 1043456  }
  0x23   :  { %v88_v32 = vadd.f32 1.0, %v7786_v31  ;;  %v6928_v43 = vpack.c.bf16 %v226_v41, %v225_v40  ;;  %v228_v46 = vld [vmem:[%s11615_s7 + $0xa8] sm:$0xff]  ;;  %v229_v48 = vld [vmem:[%s11615_s7 + $0xb0] sm:$0xff]  ;;  %v230_v49 = vld [vmem:[%s11615_s7 + $0xb8] sm:$0xff] }
  0x24   :  { %v6931_v47 = vpack.c.bf16 %v228_v46, %v227_v45  ;;  %v6934_v50 = vpack.c.bf16 %v230_v49, %v229_v48  ;;  %v199_v51 = vld [vmem:[%s11618_s28] sm:$0xff]  ;;  %v202_v52 = vld [vmem:[%s11618_s28 + $0x18] sm:$0xff]  ;;  %v201_v53 = vld [vmem:[%s11618_s28 + $0x10] sm:$0xff] }
  0x25   :  { %6914 = vmatpush1.bf16.msra.mxu1 %v6913_v25  ;;  %7787 = vrcp.f32 %v88_v32  ;;  %v204_v54 = vld [vmem:[%s11618_s28 + $0x28] sm:$0xff]  ;;  %v203_v55 = vld [vmem:[%s11618_s28 + $0x20] sm:$0xff]  ;;  %v206_v56 = vld [vmem:[%s11618_s28 + $0x38] sm:$0xff] }
  0x26   :  { %6915 = vmatprep.subr.bf16.mxu1 %v11582_v3  ;;  %v205_v57 = vld [vmem:[%s11618_s28 + $0x30] sm:$0xff]  ;;  %v550_v58 = vld [vmem:[%s11567_s19 + $0x8] sm:$0xff]  ;;  %v556_v59 = vld [vmem:[%s11567_s19 + $0x38] sm:$0xff] }
  0x27   :  { %v6936_v60 = vpack.c.bf16 %v556_v59, %v550_v58  ;;  %v549_v61 = vld [vmem:[%s11567_s19] sm:$0xff]  ;;  %v555_v62 = vld [vmem:[%s11567_s19 + $0x30] sm:$0xff]  ;;  %v562_v0 = vld [vmem:[%s11567_s19 + $0x68] sm:$0xff] }
  0x28   :  { %v6938_v63 = vpack.c.bf16 %v555_v62, %v549_v61  ;;  %v568_v1 = vld [vmem:[%s11567_s19 + $0x98] sm:$0xff]  ;;  %v561_v4 = vld [vmem:[%s11567_s19 + $0x60] sm:$0xff]  ;;  %v567_v5 = vld [vmem:[%s11567_s19 + $0x90] sm:$0xff] }
  0x29   :  { %6917 = vmatpush1.bf16.msra.mxu1 %v6916_v28  ;;  %6937 = vmatprep.subr.bf16.mxu0 %v6936_v60  ;;  %v6940_v2 = vpack.c.bf16 %v568_v1, %v562_v0  ;;  %v6942_v7 = vpack.c.bf16 %v567_v5, %v561_v4  ;;  %v574_v8 = vld [vmem:[%s11567_s19 + $0xc8] sm:$0xff]  ;;  %v580_v9 = vld [vmem:[%s11567_s19 + $0xf8] sm:$0xff]  ;;  %v573_v11 = vld [vmem:[%s11567_s19 + $0xc0] sm:$0xff] }
  0x2a   :  { %6918 = vmatprep.subr.bf16.mxu1 %v11582_v3  ;;  %v6944_v10 = vpack.c.bf16 %v580_v9, %v574_v8  ;;  %v579_v12 = vld [vmem:[%s11567_s19 + $0xf0] sm:$0xff]  ;;  %v586_v14 = vld [vmem:[%s11567_s19 + $0x128] sm:$0xff]  ;;  %v592_v15 = vld [vmem:[%s11567_s19 + $0x158] sm:$0xff] }
  0x2b   :  { %v6946_v13 = vpack.c.bf16 %v579_v12, %v573_v11  ;;  %v6948_v16 = vpack.c.bf16 %v592_v15, %v586_v14  ;;  %v585_v17 = vld [vmem:[%s11567_s19 + $0x120] sm:$0xff]  ;;  %v591_v18 = vld [vmem:[%s11567_s19 + $0x150] sm:$0xff]  ;;  %v598_v20 = vld [vmem:[%s11567_s19 + $0x188] sm:$0xff] }
  0x2c   :  { %v604_v21 = vld [vmem:[%s11567_s19 + $0x1b8] sm:$0xff]  ;;  %v597_v23 = vld [vmem:[%s11567_s19 + $0x180] sm:$0xff]  ;;  %v603_v24 = vld [vmem:[%s11567_s19 + $0x1b0] sm:$0xff] }
  0x2d   :  { %6920 = vmatpush1.bf16.msra.mxu1 %v6919_v33  ;;  %v6952_v22 = vpack.c.bf16 %v604_v21, %v598_v20  ;;  %v6954_v25 = vpack.c.bf16 %v603_v24, %v597_v23  ;;  %v610_v26 = vld [vmem:[%s11567_s19 + $0x1e8] sm:$0xff]  ;;  %v616_v27 = vld [vmem:[%s11567_s19 + $0x218] sm:$0xff]  ;;  %v609_v29 = vld [vmem:[%s11567_s19 + $0x1e0] sm:$0xff] }
  0x2e   :  { %6921 = vmatprep.subr.bf16.mxu1 %v11582_v3  ;;  %v6956_v28 = vpack.c.bf16 %v616_v27, %v610_v26  ;;  %v615_v30 = vld [vmem:[%s11567_s19 + $0x210] sm:$0xff]  ;;  %v622_v32 = vld [vmem:[%s11567_s19 + $0x248] sm:$0xff]  ;;  %v628_v33 = vld [vmem:[%s11567_s19 + $0x278] sm:$0xff] }
  0x2f   :  { %v7788_v42 = vpop.eup %7787  ;;  %v6958_v31 = vpack.c.bf16 %v615_v30, %v609_v29  ;;  %v6960_v34 = vpack.c.bf16 %v628_v33, %v622_v32  ;;  %v621_v35 = vld [vmem:[%s11567_s19 + $0x240] sm:$0xff]  ;;  %v634_v38 = vld [vmem:[%s11567_s19 + $0x2a8] sm:$0xff]  ;;  %v560_v48 = vld [vmem:[%s11567_s19 + $0x58] sm:$0xff]  ;;  %v177_v33 = vlaneseq }
  0x30   :  { %v91_v44 = vmul.f32 %v7788_v42, %v84_v19  ;;  %v6950_v19 = vpack.c.bf16 %v591_v18, %v585_v17  ;;  %v633_v41 = vld [vmem:[%s11567_s19 + $0x2a0] sm:$0xff]  ;;  %v639_v42 = vld [vmem:[%s11567_s19 + $0x2d0] sm:$0xff]  ;;  %v558_v45 = vld [vmem:[%s11567_s19 + $0x48] sm:$0xff] }
  0x31   :  { %6923 = vmatpush1.bf16.msra.mxu1 %v6922_v36  ;;  %v627_v36 = vld [vmem:[%s11567_s19 + $0x270] sm:$0xff]  ;;  %v554_v46 = vld [vmem:[%s11567_s19 + $0x28] sm:$0xff]  ;;  %v584_v60 = vld [vmem:[%s11567_s19 + $0x118] sm:$0xff] }
  0x32   :  { %6924 = vmatprep.subr.bf16.mxu1 %v11582_v3  ;;  %6446 = vmatmul.mubr.msk.f32.vlgmr.msra.gmra.mrb[0].mxu0 %vm103_vm2, %v91_v44  ;;  %v6962_v37 = vpack.c.bf16 %v627_v36, %v621_v35  ;;  %v552_v44 = vld [vmem:[%s11567_s19 + $0x18] sm:$0xff]  ;;  %v7000_v49 = vpack.c.bf16 %v560_v48, %v554_v46  ;;  %v578_v59 = vld [vmem:[%s11567_s19 + $0xe8] sm:$0xff]  ;;  %v577_v62 = vld [vmem:[%s11567_s19 + $0xe0] sm:$0xff] }
  0x33   :  { %741 = vmatprep.mubr.f32.mxu0 %v11584_v6  ;;  %6939 = vmatpush1.bf16.msra.mxu0 %v6938_v63  ;;  %v7008_v61 = vpack.c.bf16 %v584_v60, %v578_v59  ;;  %v583_v63 = vld [vmem:[%s11567_s19 + $0x110] sm:$0xff]  ;;  %v590_v1 = vld [vmem:[%s11567_s19 + $0x148] sm:$0xff]  ;;  %v589_v5 = vld [vmem:[%s11567_s19 + $0x140] sm:$0xff] }
  0x34   :  { %6941 = vmatprep.subr.bf16.mxu0 %v6940_v2  ;;  %v7010_v0 = vpack.c.bf16 %v583_v63, %v577_v62  ;;  %v596_v2 = vld [vmem:[%s11567_s19 + $0x178] sm:$0xff]  ;;  %v602_v9 = vld [vmem:[%s11567_s19 + $0x1a8] sm:$0xff]  ;;  %v601_v12 = vld [vmem:[%s11567_s19 + $0x1a0] sm:$0xff] }
  0x35   :  { %6926 = vmatpush1.bf16.msra.mxu1 %v6925_v39  ;;  %v640_v39 = vld [vmem:[%s11567_s19 + $0x2d8] sm:$0xff]  ;;  %v7012_v4 = vpack.c.bf16 %v596_v2, %v590_v1  ;;  %v614_v15 = vld [vmem:[%s11567_s19 + $0x208] sm:$0xff]  ;;  %v613_v18 = vld [vmem:[%s11567_s19 + $0x200] sm:$0xff] }
  0x36   :  { %6927 = vmatprep.subr.bf16.mxu1 %v11582_v3  ;;  %v6964_v40 = vpack.c.bf16 %v640_v39, %v634_v38  ;;  %v626_v21 = vld [vmem:[%s11567_s19 + $0x268] sm:$0xff]  ;;  %v625_v24 = vld [vmem:[%s11567_s19 + $0x260] sm:$0xff]  ;;  %v339_v2 = vld [vmem:[%s11623_s27 + $0x18] sm:$0xff] }
  0x37   :  { %6943 = vmatpush1.bf16.msra.mxu0 %v6942_v7  ;;  %v595_v7 = vld [vmem:[%s11567_s19 + $0x170] sm:$0xff]  ;;  %v638_v27 = vld [vmem:[%s11567_s19 + $0x2c8] sm:$0xff]  ;;  %v637_v30 = vld [vmem:[%s11567_s19 + $0x2c0] sm:$0xff] }
  0x38   :  { %6945 = vmatprep.subr.bf16.mxu0 %v6944_v10  ;;  %v7014_v8 = vpack.c.bf16 %v595_v7, %v589_v5  ;;  %v608_v10 = vld [vmem:[%s11567_s19 + $0x1d8] sm:$0xff]  ;;  %v5657_v35 = vld [vmem:[%s11619_s30] ss:$0 sm:$0xff]  ;;  %v551_v7 = vld [vmem:[%s11567_s19 + $0x10] sm:$0xff] }
  0x39   :  { %6929 = vmatpush1.bf16.msra.mxu1 %v6928_v43  ;;  %v6966_v43 = vpack.c.bf16 %v639_v42, %v633_v41  ;;  %v7016_v11 = vpack.c.bf16 %v608_v10, %v602_v9  ;;  %v564_v10 = vld [vmem:[%s11567_s19 + $0x78] sm:$0xff] }
  0x3a   :  { %6930 = vmatprep.subr.bf16.mxu1 %v11582_v3 }
  0x3b   :  { %6947 = vmatpush1.bf16.msra.mxu0 %v6946_v13  ;;  %v607_v13 = vld [vmem:[%s11567_s19 + $0x1d0] sm:$0xff] }
  0x3c   :  { %6949 = vmatprep.subr.bf16.mxu0 %v6948_v16  ;;  %v7018_v14 = vpack.c.bf16 %v607_v13, %v601_v12  ;;  %v620_v16 = vld [vmem:[%s11567_s19 + $0x238] sm:$0xff] }
  0x3d   :  { %6932 = vmatpush1.bf16.msra.mxu1 %v6931_v47  ;;  %v6968_v47 = vpack.c.bf16 %v558_v45, %v552_v44  ;;  %v7020_v17 = vpack.c.bf16 %v620_v16, %v614_v15  ;;  %v5661_v45 = vld [vmem:[%s11622_s10] ss:$0 sm:$0xff]  ;;  %v563_v16 = vld [vmem:[%s11567_s19 + $0x70] sm:$0xff] }
  0x3e   :  { %6933 = vmatprep.subr.bf16.mxu1 %v11582_v3 }
  0x3f   :  { %6951 = vmatpush1.bf16.msra.mxu0 %v6950_v19  ;;  %v619_v19 = vld [vmem:[%s11567_s19 + $0x230] sm:$0xff] }
  0x40   :  { %6953 = vmatprep.subr.bf16.mxu0 %v6952_v22  ;;  %v7022_v20 = vpack.c.bf16 %v619_v19, %v613_v18  ;;  %v632_v22 = vld [vmem:[%s11567_s19 + $0x298] sm:$0xff]  ;;  %v582_v19 = vld [vmem:[%s11567_s19 + $0x108] sm:$0xff] }
  0x41   :  { %6935 = vmatpush1.bf16.msra.mxu1 %v6934_v50  ;;  %v553_v50 = vld [vmem:[%s11567_s19 + $0x20] sm:$0xff]  ;;  %v7024_v23 = vpack.c.bf16 %v632_v22, %v626_v21  ;;  %v576_v18 = vld [vmem:[%s11567_s19 + $0xd8] sm:$0xff] }
  0x42   :  { %7001 = vmatprep.subr.bf16.mxu1 %v7000_v49  ;;  %v6976_v22 = vpack.c.bf16 %v582_v19, %v576_v18  ;;  %v355_v18 = vld [vmem:[%s11559_s11 + $0x10] sm:$0xff]  ;;  %v358_v19 = vld [vmem:[%s11559_s11 + $0x28] sm:$0xff] }
  0x43   :  { %6955 = vmatpush1.bf16.msra.mxu0 %v6954_v25  ;;  %v631_v25 = vld [vmem:[%s11567_s19 + $0x290] sm:$0xff] }
  0x44   :  { %316 = vmatmul.mubr.f32.vlgmr.msra.gmra.mrb[0].mxu1 %v199_v51  ;;  %6957 = vmatprep.subr.bf16.mxu0 %v6956_v28  ;;  %v559_v51 = vld [vmem:[%s11567_s19 + $0x50] sm:$0xff]  ;;  %v7026_v26 = vpack.c.bf16 %v631_v25, %v625_v24  ;;  %v644_v28 = vld [vmem:[%s11567_s19 + $0x2f8] sm:$0xff]  ;;  %v581_v24 = vld [vmem:[%s11567_s19 + $0x100] sm:$0xff] }
  0x45   :  { %5663 = vmatprep.mubr.msk.f32.mxu1 %vm238_vm1, %v202_v52  ;;  %v7002_v52 = vpack.c.bf16 %v559_v51, %v553_v50  ;;  %v7028_v29 = vpack.c.bf16 %v644_v28, %v638_v27  ;;  %v588_v25 = vld [vmem:[%s11567_s19 + $0x138] sm:$0xff] }
  0x47   :  { %6959 = vmatpush1.bf16.msra.mxu0 %v6958_v31  ;;  %7003 = vmatpush1.bf16.msra.mxu1 %v7002_v52  ;;  %v643_v31 = vld [vmem:[%s11567_s19 + $0x2f0] sm:$0xff] }
  0x48   :  { %321 = vmatmul.mubr.f32.gmra.mrb[2].mxu1 %v201_v53  ;;  %6961 = vmatprep.subr.bf16.mxu0 %v6960_v34  ;;  %v566_v53 = vld [vmem:[%s11567_s19 + $0x88] sm:$0xff]  ;;  %v7030_v32 = vpack.c.bf16 %v643_v31, %v637_v30  ;;  %v8522_v34 = vshrl.u32 %v177_v33, 7  ;;  %v587_v30 = vld [vmem:[%s11567_s19 + $0x130] sm:$0xff]  ;;  %v593_v31 = vld [vmem:[%s11567_s19 + $0x160] sm:$0xff] }
  0x49   :  { %5664 = vmatprep.mubr.msk.f32.mxu1 %vm238_vm1, %v204_v54  ;;  %v572_v54 = vld [vmem:[%s11567_s19 + $0xb8] sm:$0xff]  ;;  %v606_v33 = vld [vmem:[%s11567_s19 + $0x1c8] sm:$0xff] }
  0x4a   :  { %v8528_v36 = vsub.s32 0, %v8522_v34 }
  0x4b   :  { %6963 = vmatpush1.bf16.msra.mxu0 %v6962_v37  ;;  %v8531_v37 = vsub.s32 1, %v8522_v34 }
  0x4c   :  { %326 = vmatmul.mubr.f32.gmra.mrb[4].mxu1 %v203_v55  ;;  %6965 = vmatprep.subr.bf16.mxu0 %v6964_v40  ;;  %v7004_v55 = vpack.c.bf16 %v572_v54, %v566_v53  ;;  %11620 = vst [vmem:[#allocation5_spill] sm:$0xff] %v8528_v36  ;;  %v337_v53 = vld [vmem:[%s11623_s27 + $0x8] sm:$0xff] }
  0x4d   :  { %5665 = vmatprep.mubr.msk.f32.mxu1 %vm238_vm1, %v206_v56  ;;  %v565_v56 = vld [vmem:[%s11567_s19 + $0x80] sm:$0xff]  ;;  %11621 = vst [vmem:[#allocation6_spill] sm:$0xff] %v8531_v37 }
  0x4e   :  { %7005 = vmatprep.subr.bf16.mxu1 %v7004_v55 }
  0x4f   :  { %6967 = vmatpush1.bf16.msra.mxu0 %v6966_v43 }
  0x50   :  { %331 = vmatmul.mubr.f32.gmra.mrb[6].mxu1 %v205_v57  ;;  %6969 = vmatprep.subr.bf16.mxu0 %v6968_v47  ;;  %v571_v57 = vld [vmem:[%s11567_s19 + $0xb0] sm:$0xff]  ;;  %v336_v47 = vld [vmem:[%s11623_s27] sm:$0xff] }
  0x51   :  { %919 = vmatprep.mubr.f32.mxu1 %v11584_v6  ;;  %v7006_v58 = vpack.c.bf16 %v571_v57, %v565_v56 }
  0x53   :  { %7007 = vmatpush1.bf16.msra.mxu1 %v7006_v58 }
  0x54   :  { %7009 = vmatprep.subr.bf16.mxu1 %v7008_v61  ;;  %v338_v61 = vld [vmem:[%s11623_s27 + $0x10] sm:$0xff]  ;;  %s11664_s27 = sld [smem:[#allocation31_spill]] }
  0x57   :  { %7011 = vmatpush1.bf16.msra.mxu1 %v7010_v0 }
  0x58   :  { %7013 = vmatprep.subr.bf16.mxu1 %v7012_v4 }
  0x5b   :  { %7015 = vmatpush1.bf16.msra.mxu1 %v7014_v8  ;;  %v557_v8 = vld [vmem:[%s11567_s19 + $0x40] sm:$0xff] }
  0x5c   :  { %7017 = vmatprep.subr.bf16.mxu1 %v7016_v11  ;;  %v570_v11 = vld [vmem:[%s11567_s19 + $0xa8] sm:$0xff]  ;;  %v6970_v13 = vpack.c.bf16 %v557_v8, %v551_v7 }
  0x5d   :  { %v6972_v15 = vpack.c.bf16 %v570_v11, %v564_v10  ;;  %v356_v10 = vld [vmem:[%s11559_s11 + $0x18] sm:$0xff] }
  0x5e   :  { %v360_v11 = vld [vmem:[%s11559_s11 + $0x38] sm:$0xff] }
  0x5f   :  { %7019 = vmatpush1.bf16.msra.mxu1 %v7018_v14 }
  0x60   :  { %7021 = vmatprep.subr.bf16.mxu1 %v7020_v17  ;;  %v569_v17 = vld [vmem:[%s11567_s19 + $0xa0] sm:$0xff] }
  0x61   :  { %v6974_v21 = vpack.c.bf16 %v569_v17, %v563_v16 }
  0x63   :  { %7023 = vmatpush1.bf16.msra.mxu1 %v7022_v20 }
  0x64   :  { %7025 = vmatprep.subr.bf16.mxu1 %v7024_v23  ;;  %v575_v23 = vld [vmem:[%s11567_s19 + $0xd0] sm:$0xff] }
  0x65   :  { %v6978_v28 = vpack.c.bf16 %v581_v24, %v575_v23  ;;  %v366_v23 = vld [vmem:[%s11559_s11 + $0x68] sm:$0xff]  ;;  %v369_v24 = vld [vmem:[%s11559_s11 + $0x80] sm:$0xff] }
  0x67   :  { %7027 = vmatpush1.bf16.msra.mxu1 %v7026_v26  ;;  %v594_v26 = vld [vmem:[%s11567_s19 + $0x168] sm:$0xff] }
  0x68   :  { %7029 = vmatprep.subr.bf16.mxu1 %v7028_v29  ;;  %v6980_v29 = vpack.c.bf16 %v594_v26, %v588_v25 }
  0x6b   :  { %7031 = vmatpush1.bf16.msra.mxu1 %v7030_v32  ;;  %v600_v32 = vld [vmem:[%s11567_s19 + $0x198] sm:$0xff] }
 0x105   :  { %v173_v38 = vpop.f32.mrb[0].mxu0 }
 0x106   :  { %v174_v39 = vadd.f32 %v5657_v35, %v173_v38  ;;  %v6447_v40 = vpop.f32.mrb[1].mxu0  ;;  %v6982_v35 = vpack.c.bf16 %v593_v31, %v587_v30  ;;  %v6984_v38 = vpack.c.bf16 %v606_v33, %v600_v32  ;;  %v7040_v31 = vpack.c.bf16 %v369_v24, %v366_v23  ;;  %v365_v33 = vld [vmem:[%s11559_s11 + $0x60] sm:$0xff]  ;;  %v392_v24 = vld [vmem:[%s11559_s11 + $0x138] sm:$0xff] }
 0x107   :  { %v605_v40 = vld [vmem:[%s11567_s19 + $0x1c0] sm:$0xff] }
 0x108   :  { %v180_v41 = vrot.slane %v174_v39, %v8528_v36  ;;  %v184_v42 = vrot.slane %v174_v39, %v8531_v37  ;;  %v599_v39 = vld [vmem:[%s11567_s19 + $0x190] sm:$0xff]  ;;  %v389_v23 = vld [vmem:[%s11559_s11 + $0x120] sm:$0xff] }
 0x10a   :  { %v5659_v43 = vmul.f32 -1.442695, %v180_v41  ;;  %v5660_v44 = vmul.f32 -1.442695, %v184_v42 }
 0x10c   :  { %7789 = vpow2.f32 %v5659_v43  ;;  %v6986_v43 = vpack.c.bf16 %v605_v40, %v599_v39 }
 0x10d   :  { %7791 = vpow2.f32 %v5660_v44 }
 0x116   :  { %v7790_v51 = vpop.eup %7789 }
 0x117   :  { %v317_v46 = vpop.f32.mrb[0].mxu1  ;;  %v7792_v54 = vpop.eup %7791  ;;  %v191_v55 = vadd.f32 1.0, %v7790_v51 }
 0x118   :  { %v318_v48 = vadd.f32 %v5661_v45, %v317_v46  ;;  %v319_v49 = vpop.f32.mrb[1].mxu1  ;;  %v192_v58 = vadd.f32 1.0, %v7792_v54  ;;  %v617_v46 = vld [vmem:[%s11567_s19 + $0x220] sm:$0xff]  ;;  %v636_v54 = vld [vmem:[%s11567_s19 + $0x2b8] sm:$0xff] }
 0x119   :  { %7793 = vrcp.f32 %v191_v55  ;;  %v642_v55 = vld [vmem:[%s11567_s19 + $0x2e8] sm:$0xff] }
 0x11a   :  { %v8541_v50 = vadd.f32 %v336_v47, %v318_v48  ;;  %7795 = vrcp.f32 %v192_v58  ;;  %v624_v47 = vld [vmem:[%s11567_s19 + $0x258] sm:$0xff]  ;;  %v630_v48 = vld [vmem:[%s11567_s19 + $0x288] sm:$0xff]  ;;  %v635_v58 = vld [vmem:[%s11567_s19 + $0x2b0] sm:$0xff] }
 0x11b   :  { %v322_v52 = vpop.f32.mrb[2].mxu1  ;;  %v6992_v51 = vpack.c.bf16 %v630_v48, %v624_v47  ;;  %v372_v47 = vld [vmem:[%s11559_s11 + $0x98] sm:$0xff]  ;;  %v375_v48 = vld [vmem:[%s11559_s11 + $0xb0] sm:$0xff] }
 0x11c   :  { %v323_v56 = vadd.f32 %v5661_v45, %v322_v52  ;;  %v324_v57 = vpop.f32.mrb[3].mxu1  ;;  %944 = vadd.xlane.f32.xlu0 %v8541_v50  ;;  %v623_v52 = vld [vmem:[%s11567_s19 + $0x250] sm:$0xff] }
 0x11d   :  { %v6996_v57 = vpack.c.bf16 %v642_v55, %v636_v54  ;;  %v374_v54 = vld [vmem:[%s11559_s11 + $0xa8] sm:$0xff] }
 0x11e   :  { %v8547_v59 = vadd.f32 %v337_v53, %v323_v56  ;;  %v629_v53 = vld [vmem:[%s11567_s19 + $0x280] sm:$0xff] }
 0x11f   :  { %v327_v60 = vpop.f32.mrb[4].mxu1  ;;  %v6994_v56 = vpack.c.bf16 %v629_v53, %v623_v52  ;;  %v370_v52 = vld [vmem:[%s11559_s11 + $0x88] sm:$0xff]  ;;  %v371_v53 = vld [vmem:[%s11559_s11 + $0x90] sm:$0xff] }
 0x120   :  { %v328_v62 = vadd.f32 %v5661_v45, %v327_v60  ;;  %v329_v63 = vpop.f32.mrb[5].mxu1  ;;  %946 = vadd.xlane.f32.xlu0 %v8547_v59  ;;  %v641_v60 = vld [vmem:[%s11567_s19 + $0x2e0] sm:$0xff] }
 0x122   :  { %v8553_v0 = vadd.f32 %v338_v61, %v328_v62  ;;  %v6998_v61 = vpack.c.bf16 %v641_v60, %v635_v58  ;;  %v381_v58 = vld [vmem:[%s11559_s11 + $0xe0] sm:$0xff] }
 0x123   :  { %v332_v1 = vpop.f32.mrb[6].mxu1  ;;  %v7794_v12 = vpop.eup %7793  ;;  %v373_v60 = vld [vmem:[%s11559_s11 + $0xa0] sm:$0xff] }
 0x124   :  { %v333_v4 = vadd.f32 %v5661_v45, %v332_v1  ;;  %v334_v5 = vpop.f32.mrb[7].mxu1  ;;  %948 = vadd.xlane.f32.xlu1 %v8553_v0  ;;  %v8574_v14 = vmul.f32 %v7794_v12, %v180_v41  ;;  %v7796_v20 = vpop.eup %7795  ;;  %v612_v41 = vld [vmem:[%s11567_s19 + $0x1f8] sm:$0xff]  ;;  %v611_v45 = vld [vmem:[%s11567_s19 + $0x1f0] sm:$0xff] }
 0x125   :  { %v8604_v27 = vmul.f32 %v7796_v20, %v184_v42  ;;  %v618_v42 = vld [vmem:[%s11567_s19 + $0x228] sm:$0xff]  ;;  %v6990_v49 = vpack.c.bf16 %v617_v46, %v611_v45  ;;  %v353_v5 = vld [vmem:[%s11559_s11] sm:$0xff]  ;;  %v363_v12 = vld [vmem:[%s11559_s11 + $0x50] sm:$0xff] }
 0x126   :  { %v8565_v9 = vadd.f32 %v339_v2, %v333_v4  ;;  %11624 = vst [vmem:[#allocation7_spill] sm:$0xff] %v8574_v14  ;;  %742 = vmatmul.mubr.f32.vlgmr.msra.gmra.mrb[2].mxu0 %v8574_v14  ;;  %920 = vmatmul.mubr.f32.vlgmr.msra.gmra.mrb[8].mxu1 %v8574_v14  ;;  %v6988_v44 = vpack.c.bf16 %v618_v42, %v612_v41  ;;  %v354_v2 = vld [vmem:[%s11559_s11 + $0x8] sm:$0xff]  ;;  %v357_v4 = vld [vmem:[%s11559_s11 + $0x20] sm:$0xff]  ;;  %v359_v20 = vld [vmem:[%s11559_s11 + $0x30] sm:$0xff] }
 0x127   :  { %6971 = vmatpush1.bf16.msra.mxu0 %v6970_v13  ;;  %747 = vmatprep.mubr.f32.mxu0 %v11584_v6  ;;  %11625 = vst [vmem:[#allocation8_spill] sm:$0xff] %v8604_v27  ;;  %v7032_v8 = vpack.c.bf16 %v357_v4, %v354_v2  ;;  %v7034_v16 = vpack.c.bf16 %v356_v10, %v353_v5  ;;  %v380_v2 = vld [vmem:[%s11559_s11 + $0xd8] sm:$0xff]  ;;  %v379_v10 = vld [vmem:[%s11559_s11 + $0xd0] sm:$0xff] }
 0x128   :  { %950 = vadd.xlane.f32.xlu1 %v8565_v9  ;;  %6973 = vmatprep.subr.bf16.mxu0 %v6972_v15  ;;  %v7036_v17 = vpack.c.bf16 %v363_v12, %v360_v11  ;;  %v382_v12 = vld [vmem:[%s11559_s11 + $0xe8] sm:$0xff] }
 0x129   :  { %925 = vmatprep.mubr.f32.mxu1 %v11584_v6 }
 0x12a   :  { %748 = vmatmul.mubr.f32.gmra.mrb[4].mxu0 %v8574_v14  ;;  %926 = vmatmul.mubr.f32.gmra.mrb[10].mxu1 %v8574_v14 }
 0x12b   :  { %6975 = vmatpush1.bf16.msra.mxu0 %v6974_v21  ;;  %753 = vmatprep.mubr.f32.mxu0 %v11584_v6  ;;  %v7064_v21 = vpack.c.bf16 %v358_v19, %v355_v18  ;;  %v390_v18 = vld [vmem:[%s11559_s11 + $0x128] sm:$0xff]  ;;  %v393_v19 = vld [vmem:[%s11559_s11 + $0x140] sm:$0xff] }
 0x12c   :  { %6977 = vmatprep.subr.bf16.mxu0 %v6976_v22  ;;  %931 = vmatprep.mubr.f32.mxu1 %v11584_v6  ;;  %v362_v22 = vld [vmem:[%s11559_s11 + $0x48] sm:$0xff] }
 0x12d   :  { %v7038_v26 = vpack.c.bf16 %v362_v22, %v359_v20  ;;  %7065 = vmatprep.subr.bf16.mxu1 %v7064_v21  ;;  %v385_v20 = vld [vmem:[%s11559_s11 + $0x100] sm:$0xff]  ;;  %v388_v22 = vld [vmem:[%s11559_s11 + $0x118] sm:$0xff] }
 0x12e   :  { %754 = vmatmul.mubr.f32.gmra.mrb[6].mxu0 %v8604_v27  ;;  %932 = vmatmul.mubr.f32.gmra.mrb[12].mxu1 %v8604_v27 }
 0x12f   :  { %6979 = vmatpush1.bf16.msra.mxu0 %v6978_v28  ;;  %759 = vmatprep.mubr.f32.mxu0 %v11584_v6  ;;  %v361_v28 = vld [vmem:[%s11559_s11 + $0x40] sm:$0xff] }
 0x130   :  { %6981 = vmatprep.subr.bf16.mxu0 %v6980_v29  ;;  %937 = vmatprep.mubr.f32.mxu1 %v11584_v6  ;;  %v364_v29 = vld [vmem:[%s11559_s11 + $0x58] sm:$0xff] }
 0x131   :  { %v7068_v32 = vpack.c.bf16 %v364_v29, %v361_v28  ;;  %7067 = vmatpush3.bf16.msra.mxu1 %v7064_v21  ;;  %v7056_v21 = vpack.c.bf16 %v393_v19, %v390_v18  ;;  %v7058_v28 = vpack.c.bf16 %v392_v24, %v389_v23  ;;  %v396_v29 = vld [vmem:[%s11559_s11 + $0x158] sm:$0xff]  ;;  %v8878_v18 = vld [vmem:[%s11568_s20] sm:$0x3f] }
 0x132   :  { %760 = vmatmul.mubr.f32.gmra.mrb[8].mxu0 %v8604_v27  ;;  %938 = vmatmul.mubr.f32.gmra.mrb[14].mxu1 %v8604_v27 }
 0x133   :  { %6983 = vmatpush1.bf16.msra.mxu0 %v6982_v35  ;;  %830 = vmatprep.mubr.f32.mxu0 %v11584_v6  ;;  %v368_v35 = vld [vmem:[%s11559_s11 + $0x78] sm:$0xff] }
 0x134   :  { %6985 = vmatprep.subr.bf16.mxu0 %v6984_v38  ;;  %7069 = vmatprep.subr.bf16.mxu1 %v7068_v32  ;;  %v7042_v41 = vpack.c.bf16 %v368_v35, %v365_v33  ;;  %v394_v33 = vld [vmem:[%s11559_s11 + $0x148] sm:$0xff]  ;;  %v395_v35 = vld [vmem:[%s11559_s11 + $0x150] sm:$0xff] }
 0x135   :  { %7071 = vmatpush3.bf16.msra.mxu1 %v7068_v32 }
 0x137   :  { %6987 = vmatpush1.bf16.msra.mxu0 %v6986_v43 }
 0x138   :  { %6989 = vmatprep.subr.bf16.mxu0 %v6988_v44 }
 0x13b   :  { %6991 = vmatpush1.bf16.msra.mxu0 %v6990_v49  ;;  %v367_v49 = vld [vmem:[%s11559_s11 + $0x70] sm:$0xff] }
 0x13c   :  { %6993 = vmatprep.subr.bf16.mxu0 %v6992_v51  ;;  %v7044_v51 = vpack.c.bf16 %v375_v48, %v372_v47  ;;  %v7072_v55 = vpack.c.bf16 %v370_v52, %v367_v49 }
 0x13e   :  { %7073 = vmatprep.subr.bf16.mxu1 %v7072_v55 }
 0x13f   :  { %6995 = vmatpush1.bf16.msra.mxu0 %v6994_v56  ;;  %v7046_v56 = vpack.c.bf16 %v374_v54, %v371_v53  ;;  %7075 = vmatpush3.bf16.msra.mxu1 %v7072_v55 }
 0x140   :  { %6997 = vmatprep.subr.bf16.mxu0 %v6996_v57  ;;  %v378_v57 = vld [vmem:[%s11559_s11 + $0xc8] sm:$0xff] }
 0x143   :  { %6999 = vmatpush1.bf16.msra.mxu0 %v6998_v61  ;;  %v7048_v61 = vpack.c.bf16 %v381_v58, %v378_v57 }
 0x144   :  { %7033 = vmatprep.subr.bf16.mxu0 %v7032_v8  ;;  %v387_v8 = vld [vmem:[%s11559_s11 + $0x110] sm:$0xff] }
 0x146   :  { %831 = vmatmul.mubr.f32.vlgmr.msra.gmra.mrb[10].mxu0 %v8574_v14 }
 0x147   :  { %836 = vmatprep.mubr.f32.mxu0 %v11584_v6  ;;  %7035 = vmatpush1.bf16.msra.mxu0 %v7034_v16  ;;  %v7080_v16 = vpack.c.bf16 %v382_v12, %v379_v10 }
 0x148   :  { %7037 = vmatprep.subr.bf16.mxu0 %v7036_v17 }
 0x14a   :  { %837 = vmatmul.mubr.f32.gmra.mrb[12].mxu0 %v8574_v14 }
 0x14b   :  { %842 = vmatprep.mubr.f32.mxu0 %v11584_v6  ;;  %7039 = vmatpush1.bf16.msra.mxu0 %v7038_v26  ;;  %v7084_v26 = vpack.c.bf16 %v388_v22, %v385_v20 }
 0x14c   :  { %7041 = vmatprep.subr.bf16.mxu0 %v7040_v31  ;;  %v391_v31 = vld [vmem:[%s11559_s11 + $0x130] sm:$0xff] }
 0x14e   :  { %843 = vmatmul.mubr.f32.gmra.mrb[14].mxu0 %v8604_v27 }
 0x14f   :  { %848 = vmatprep.mubr.f32.mxu0 %v11584_v6  ;;  %7043 = vmatpush1.bf16.msra.mxu0 %v7042_v41 }
 0x150   :  { %7045 = vmatprep.subr.bf16.mxu0 %v7044_v51 }
 0x152   :  { %849 = vmatmul.mubr.f32.gmra.mrb[16].mxu0 %v8604_v27 }
 0x153   :  { %1081 = vmatprep.mubr.f32.mxu0 %v11584_v6  ;;  %7047 = vmatpush1.bf16.msra.mxu0 %v7046_v56 }
 0x154   :  { %7049 = vmatprep.subr.bf16.mxu0 %v7048_v61 }
 0x1a9   :  { %v945_v62 = vpop.xlane.xlu0 %944 }
 0x1aa   :  { %v953_v63 = vmul.f32 0.0078125, %v945_v62  ;;  %v376_v62 = vld [vmem:[%s11559_s11 + $0xb8] sm:$0xff] }
 0x1ab   :  { %v7076_v4 = vpack.c.bf16 %v376_v62, %v373_v60 }
 0x1ac   :  { %v8680_v1 = vsub.f32 %v8541_v50, %v953_v63  ;;  %v377_v63 = vld [vmem:[%s11559_s11 + $0xc0] sm:$0xff] }
 0x1ad   :  { %v947_v7 = vpop.xlane.xlu0 %946  ;;  %v7050_v5 = vpack.c.bf16 %v380_v2, %v377_v63  ;;  %7077 = vmatprep.subr.bf16.mxu1 %v7076_v4 }
 0x1ae   :  { %v954_v13 = vmul.f32 0.0078125, %v947_v7  ;;  %v961_v15 = vmul.f32 %v8680_v1, %v8680_v1  ;;  %v384_v7 = vld [vmem:[%s11559_s11 + $0xf8] sm:$0xff]  ;;  %7079 = vmatpush3.bf16.msra.mxu1 %v7076_v4 }
 0x1af   :  { %7051 = vmatpush1.bf16.msra.mxu0 %v7050_v5  ;;  %v7052_v11 = vpack.c.bf16 %v387_v8, %v384_v7  ;;  %7081 = vmatprep.subr.bf16.mxu1 %v7080_v16 }
 0x1b0   :  { %v8721_v25 = vsub.f32 %v8547_v59, %v954_v13  ;;  %965 = vadd.xlane.f32.xlu0 %v961_v15  ;;  %v383_v13 = vld [vmem:[%s11559_s11 + $0xf0] sm:$0xff]  ;;  %v386_v15 = vld [vmem:[%s11559_s11 + $0x108] sm:$0xff] }
 0x1b1   :  { %v949_v30 = vpop.xlane.xlu1 %948  ;;  %v7054_v17 = vpack.c.bf16 %v386_v15, %v383_v13  ;;  %7053 = vmatprep.subr.bf16.mxu0 %v7052_v11 }
 0x1b2   :  { %v955_v38 = vmul.f32 0.0078125, %v949_v30  ;;  %v962_v39 = vmul.f32 %v8721_v25, %v8721_v25  ;;  %7083 = vmatpush3.bf16.msra.mxu1 %v7080_v16  ;;  %v399_v30 = vld [vmem:[%s11559_s11 + $0x170] sm:$0xff] }
 0x1b3   :  { %7055 = vmatpush1.bf16.msra.mxu0 %v7054_v17  ;;  %7085 = vmatprep.subr.bf16.mxu1 %v7084_v26  ;;  %v7060_v32 = vpack.c.bf16 %v399_v30, %v396_v29  ;;  %v650_v30 = vrot.slane %v8878_v18, %v8528_v36 }
 0x1b4   :  { %967 = vadd.xlane.f32.xlu1 %v962_v39  ;;  %v8738_v40 = vsub.f32 %v8553_v0, %v955_v38  ;;  %7057 = vmatprep.subr.bf16.mxu0 %v7056_v21  ;;  %v398_v38 = vld [vmem:[%s11559_s11 + $0x168] sm:$0xff]  ;;  %v7088_v39 = vpack.c.bf16 %v394_v33, %v391_v31  ;;  %v654_v21 = vrot.slane %v8878_v18, %v8531_v37 }
 0x1b5   :  { %v951_v42 = vpop.xlane.xlu1 %950  ;;  %v7062_v41 = vpack.c.bf16 %v398_v38, %v395_v35 }
 0x1b6   :  { %v956_v43 = vmul.f32 0.0078125, %v951_v42  ;;  %v963_v44 = vmul.f32 %v8738_v40, %v8738_v40  ;;  %7087 = vmatpush3.bf16.msra.mxu1 %v7084_v26  ;;  %v397_v42 = vld [vmem:[%s11559_s11 + $0x160] sm:$0xff] }
 0x1b7   :  { %7059 = vmatpush1.bf16.msra.mxu0 %v7058_v28  ;;  %7089 = vmatprep.subr.bf16.mxu1 %v7088_v39 }
 0x1b8   :  { %v8743_v45 = vsub.f32 %v8565_v9, %v956_v43  ;;  %969 = vadd.xlane.f32.xlu0 %v963_v44  ;;  %7061 = vmatprep.subr.bf16.mxu0 %v7060_v32  ;;  %v400_v43 = vld [vmem:[%s11559_s11 + $0x178] sm:$0xff] }
 0x1b9   :  { %v7092_v44 = vpack.c.bf16 %v400_v43, %v397_v42 }
 0x1ba   :  { %v964_v46 = vmul.f32 %v8743_v45, %v8743_v45  ;;  %7091 = vmatpush3.bf16.msra.mxu1 %v7088_v39 }
 0x1bb   :  { %7063 = vmatpush1.bf16.msra.mxu0 %v7062_v41  ;;  %7093 = vmatprep.subr.bf16.mxu1 %v7092_v44 }
 0x1bc   :  { %971 = vadd.xlane.f32.xlu1 %v964_v46 }
 0x1be   :  { %7095 = vmatpush3.bf16.msra.mxu1 %v7092_v44 }
 0x1f9   :  { %v743_v46 = vpop.f32.mrb[2].mxu0  ;;  %v8843_v47 = vpop.f32.mrb[8].mxu1 }
 0x1fa   :  { %v745_v48 = vpop.f32.mrb[3].mxu0  ;;  %v8845_v49 = vpop.f32.mrb[9].mxu1  ;;  %v744_v39 = vadd.f32 %v743_v46, %v650_v30 }
 0x1fb   :  { %11626 = vst [vmem:[#allocation9_spill] sm:$0xff] %v8845_v49  ;;  %v746_v26 = vadd.f32 %v745_v48, %v654_v21 }
 0x1fd   :  { %v749_v51 = vpop.f32.mrb[4].mxu0  ;;  %v8847_v52 = vpop.f32.mrb[10].mxu1  ;;  %v989_v33 = vadd.f32 1.0, %v746_v26 }
 0x1fe   :  { %v751_v53 = vpop.f32.mrb[5].mxu0  ;;  %v8849_v54 = vpop.f32.mrb[11].mxu1 }
 0x1ff   :  { %11627 = vst [vmem:[#allocation10_spill] sm:$0xff] %v8849_v54  ;;  %v752_v35 = vadd.f32 %v751_v53, %v654_v21 }
 0x201   :  { %v755_v55 = vpop.f32.mrb[6].mxu0  ;;  %v8851_v56 = vpop.f32.mrb[12].mxu1  ;;  %v990_v43 = vadd.f32 1.0, %v752_v35 }
 0x202   :  { %v757_v57 = vpop.f32.mrb[7].mxu0  ;;  %v8853_v58 = vpop.f32.mrb[13].mxu1  ;;  %v756_v46 = vadd.f32 %v755_v55, %v650_v30  ;;  %v344_v55 = vld [vmem:[%s11633_s8] sm:$0xf] }
 0x203   :  { %11628 = vst [vmem:[#allocation11_spill] sm:$0xff] %v8853_v58  ;;  %v758_v44 = vadd.f32 %v757_v57, %v654_v21 }
 0x205   :  { %v761_v60 = vpop.f32.mrb[8].mxu0  ;;  %v8855_v61 = vpop.f32.mrb[14].mxu1 }
 0x206   :  { %v763_v62 = vpop.f32.mrb[9].mxu0  ;;  %v8857_v63 = vpop.f32.mrb[15].mxu1 }
 0x207   :  { %11629 = vst [vmem:[#allocation12_spill] sm:$0xff] %v8857_v63  ;;  %v764_v53 = vadd.f32 %v763_v62, %v654_v21 }
 0x219   :  { %v8859_v2 = vpop.f32.mrb[10].mxu0 }
 0x21a   :  { %v8861_v4 = vpop.f32.mrb[11].mxu0 }
 0x21b   :  { %11630 = vst [vmem:[#allocation13_spill] sm:$0xff] %v8861_v4 }
 0x21d   :  { %v8863_v5 = vpop.f32.mrb[12].mxu0 }
 0x21e   :  { %v8865_v7 = vpop.f32.mrb[13].mxu0 }
 0x221   :  { %v8867_v8 = vpop.f32.mrb[14].mxu0 }
 0x222   :  { %v8869_v10 = vpop.f32.mrb[15].mxu0 }
 0x223   :  { %11631 = vst [vmem:[#allocation14_spill] sm:$0xff] %v8869_v10 }
 0x225   :  { %v8871_v11 = vpop.f32.mrb[16].mxu0 }
 0x226   :  { %v8873_v12 = vpop.f32.mrb[17].mxu0 }
 0x227   :  { %11632 = vst [vmem:[#allocation15_spill] sm:$0xff] %v8873_v12 }
 0x23d   :  { %v966_v13 = vpop.xlane.xlu0 %965 }
 0x23e   :  { %v973_v15 = vmul.f32 0.0078125, %v966_v13 }
 0x240   :  { %v977_v16 = vadd.f32 1e-06, %v973_v15  ;;  %v750_v15 = vadd.f32 %v749_v51, %v650_v30 }
 0x241   :  { %v968_v17 = vpop.xlane.xlu1 %967 }
 0x242   :  { %7797 = vrsqrt.f32 %v977_v16  ;;  %v974_v19 = vmul.f32 0.0078125, %v968_v17 }
 0x244   :  { %v978_v20 = vadd.f32 1e-06, %v974_v19  ;;  %v991_v19 = vadd.f32 1.0, %v758_v44 }
 0x245   :  { %v970_v22 = vpop.xlane.xlu0 %969 }
 0x246   :  { %7799 = vrsqrt.f32 %v978_v20  ;;  %v975_v23 = vmul.f32 0.0078125, %v970_v22 }
 0x248   :  { %v979_v24 = vadd.f32 1e-06, %v975_v23 }
 0x249   :  { %v972_v28 = vpop.xlane.xlu1 %971 }
 0x24a   :  { %7801 = vrsqrt.f32 %v979_v24  ;;  %v976_v29 = vmul.f32 0.0078125, %v972_v28  ;;  %v762_v24 = vadd.f32 %v761_v60, %v650_v30  ;;  %v8904_v60 = vrot.slane %v344_v55, %v8528_v36 }
 0x24b   :  { %v8907_v28 = vrot.slane %v344_v55, %v8531_v37 }
 0x24c   :  { %v7798_v31 = vpop.eup %7797  ;;  %v980_v32 = vadd.f32 1e-06, %v976_v29  ;;  %11635 = vst [vmem:[#allocation17_spill] sm:$0xff] %v8904_v60 }
 0x24d   :  { %v985_v38 = vmul.f32 %v7798_v31, %v8680_v1  ;;  %11636 = vst [vmem:[#allocation18_spill] sm:$0xff] %v8907_v28 }
 0x24e   :  { %7803 = vrsqrt.f32 %v980_v32 }
 0x24f   :  { %v993_v41 = vmul.f32 %v989_v33, %v985_v38 }
 0x250   :  { %v7800_v42 = vpop.eup %7799 }
 0x251   :  { %v997_v13 = vadd.f32 %v993_v41, %v744_v39  ;;  %v986_v48 = vmul.f32 %v7800_v42, %v8721_v25  ;;  %v992_v25 = vadd.f32 1.0, %v764_v53  ;;  %v8919_v42 = vsub.s32 3, %v8522_v34 }
 0x253   :  { %1082 = vmatmul.mubr.f32.vlgmr.msra.gmra.mrb[18].mxu0 %v997_v13  ;;  %6480 = vmatprep.mubr.f32.mxu1 %v997_v13  ;;  %v994_v16 = vmul.f32 %v990_v43, %v986_v48  ;;  %11637 = vst [vmem:[#allocation19_spill] sm:$0xff] %v8919_v42 }
 0x254   :  { %v7802_v17 = vpop.eup %7801  ;;  %1087 = vmatprep.mubr.f32.mxu0 %v11584_v6 }
 0x255   :  { %v998_v20 = vadd.f32 %v994_v16, %v750_v15  ;;  %v987_v1 = vmul.f32 %v7802_v17, %v8738_v40  ;;  %v401_v40 = vld [vmem:[%s11560_s12] sm:$0x7] }
 0x256   :  { %v8898_v21 = vrot.slane %v401_v40, %v8528_v36  ;;  %v1009_v33 = vrot.slane %v401_v40, %v8531_v37 }
 0x257   :  { %1088 = vmatmul.mubr.f32.gmra.mrb[20].mxu0 %v998_v20  ;;  %6481 = vmatmul.mubr.f32.vlgmr.msra.gmra.mrb[16].mxu1 %v998_v20  ;;  %v995_v22 = vmul.f32 %v991_v19, %v987_v1  ;;  %v8925_v19 = vrot.slane %v344_v55, %v8919_v42 }
 0x258   :  { %v7804_v57 = vpop.eup %7803  ;;  %1093 = vmatprep.mubr.f32.mxu0 %v11584_v6 }
 0x259   :  { %v999_v51 = vadd.f32 %v995_v22, %v756_v46  ;;  %v988_v23 = vmul.f32 %v7804_v57, %v8743_v45  ;;  %v8901_v45 = vsub.s32 2, %v8522_v34 }
 0x25b   :  { %1094 = vmatmul.mubr.f32.gmra.mrb[22].mxu0 %v999_v51  ;;  %6483 = vmatprep.mubr.f32.mxu1 %v999_v51  ;;  %v996_v26 = vmul.f32 %v992_v25, %v988_v23  ;;  %11634 = vst [vmem:[#allocation16_spill] sm:$0xff] %v8901_v45  ;;  %v1013_v32 = vrot.slane %v401_v40, %v8901_v45 }
 0x25c   :  { %1099 = vmatprep.mubr.f32.mxu0 %v11584_v6  ;;  %v8922_v17 = vrot.slane %v344_v55, %v8901_v45 }
 0x25d   :  { %v1000_v62 = vadd.f32 %v996_v26, %v762_v24 }
 0x25e   :  { %11638 = vst [vmem:[#allocation20_spill] sm:$0xff] %v8922_v17 }
 0x25f   :  { %1100 = vmatmul.mubr.f32.gmra.mrb[24].mxu0 %v1000_v62  ;;  %6484 = vmatmul.mubr.f32.gmra.mrb[18].mxu1 %v1000_v62 }
 0x326   :  { %v1083_v29 = vpop.f32.mrb[18].mxu0 }
 0x327   :  { %v8910_v30 = vadd.f32 %v1083_v29, %v8898_v21  ;;  %v1085_v31 = vpop.f32.mrb[19].mxu0 }
 0x328   :  { %v1086_v48 = vadd.f32 %v1085_v31, %v1009_v33 }
 0x329   :  { %v1195_v35 = vmul.f32 %v8904_v60, %v8910_v30  ;;  %v1344_v38 = vmul.f32 %v8907_v28, %v8910_v30 }
 0x32a   :  { %v1089_v39 = vpop.f32.mrb[20].mxu0  ;;  %v6482_v41 = vpop.f32.mrb[16].mxu1 }
 0x32b   :  { %v1178_v43 = vadd.f32 %v6482_v41, %v1013_v32  ;;  %v1091_v44 = vpop.f32.mrb[21].mxu0  ;;  %v1172_v13 = vpop.f32.mrb[17].mxu1  ;;  %6494 = vmatprep.mubr.f32.mxu0 %v1195_v35  ;;  %6508 = vmatprep.mubr.f32.mxu1 %v1344_v38 }
 0x32c   :  { %v1092_v15 = vadd.f32 %v1091_v44, %v1009_v33  ;;  %v1173_v16 = vadd.f32 %v1172_v13, %v1013_v32 }
 0x32d   :  { %v1486_v46 = vmul.f32 %v8907_v28, %v1178_v43  ;;  %v1337_v25 = vmul.f32 %v8904_v60, %v1178_v43  ;;  %v1829_v23 = vmul.f32 %v8922_v17, %v1178_v43  ;;  %v2079_v31 = vmul.f32 %v8925_v19, %v1178_v43 }
 0x32e   :  { %v8927_v53 = vpack.c.bf16 %v1092_v15, %v1086_v48  ;;  %v1095_v20 = vpop.f32.mrb[22].mxu0  ;;  %v1485_v1 = vmul.f32 %v8907_v28, %v1173_v16  ;;  %v1336_v22 = vmul.f32 %v8904_v60, %v1173_v16  ;;  %v1828_v51 = vmul.f32 %v8922_v17, %v1173_v16 }
 0x32f   :  { %v1097_v57 = vpop.f32.mrb[23].mxu0  ;;  %v2078_v26 = vmul.f32 %v8925_v19, %v1173_v16 }
 0x330   :  { %7097 = vmatprep.subr.bf16.mxu0 %v8927_v53  ;;  %7105 = vmatprep.subr.bf16.mxu1 %v8927_v53  ;;  %v7112_v24 = vpack.c.bf16 %v1486_v46, %v1485_v1  ;;  %v8940_v62 = vpack.c.bf16 %v1337_v25, %v1336_v22  ;;  %v8942_v29 = vpack.c.bf16 %v1829_v23, %v1828_v51 }
 0x331   :  { %7099 = vmatpush3.bf16.xpose.msra.mxu0 %v8927_v53  ;;  %7107 = vmatpush3.bf16.xpose.msra.mxu1 %v8927_v53  ;;  %v1098_v44 = vadd.f32 %v1097_v57, %v1009_v33  ;;  %v8945_v15 = vpack.c.bf16 %v2079_v31, %v2078_v26  ;;  %v8968_v31 = vadd.f32 %v1089_v39, %v8898_v21 }
 0x332   :  { %v1101_v40 = vpop.f32.mrb[24].mxu0  ;;  %v6485_v55 = vpop.f32.mrb[18].mxu1 }
 0x333   :  { %v1188_v35 = vadd.f32 %v6485_v55, %v1013_v32  ;;  %v1103_v38 = vpop.f32.mrb[25].mxu0  ;;  %v1182_v41 = vpop.f32.mrb[19].mxu1 }
 0x334   :  { %v1104_v13 = vadd.f32 %v1103_v38, %v1009_v33  ;;  %v1183_v48 = vadd.f32 %v1182_v41, %v1013_v32  ;;  %v1196_v38 = vmul.f32 %v8904_v60, %v8968_v31  ;;  %v1345_v41 = vmul.f32 %v8907_v28, %v8968_v31 }
 0x335   :  { %v1488_v16 = vmul.f32 %v8907_v28, %v1188_v35  ;;  %v1339_v25 = vmul.f32 %v8904_v60, %v1188_v35  ;;  %v1831_v51 = vmul.f32 %v8922_v17, %v1188_v35  ;;  %v2081_v32 = vmul.f32 %v8925_v19, %v1188_v35 }
 0x336   :  { %v8948_v1 = vpack.c.bf16 %v1104_v13, %v1098_v44  ;;  %v1487_v46 = vmul.f32 %v8907_v28, %v1183_v48  ;;  %v1338_v22 = vmul.f32 %v8904_v60, %v1183_v48  ;;  %v1830_v43 = vmul.f32 %v8922_v17, %v1183_v48 }
 0x337   :  { %v2080_v57 = vmul.f32 %v8925_v19, %v1183_v48  ;;  %v8972_v35 = vadd.f32 %v1095_v20, %v8898_v21  ;;  %v8979_v44 = vadd.f32 %v1101_v40, %v8898_v21  ;;  %v1687_v40 = vmul.f32 %v8922_v17, %v8910_v30 }
 0x338   :  { %7101 = vmatprep.subr.bf16.mxu0 %v8948_v1  ;;  %7109 = vmatprep.subr.bf16.mxu1 %v8948_v1  ;;  %v7116_v33 = vpack.c.bf16 %v1488_v16, %v1487_v46  ;;  %v8959_v23 = vpack.c.bf16 %v1339_v25, %v1338_v22  ;;  %v8963_v26 = vpack.c.bf16 %v1831_v51, %v1830_v43  ;;  %v9004_v25 = vld [vmem:[%s11639_s0 + $0x8] sm:$0xff] }
 0x339   :  { %7103 = vmatpush3.bf16.xpose.msra.mxu0 %v8948_v1  ;;  %7111 = vmatpush3.bf16.xpose.msra.mxu1 %v8948_v1  ;;  %v8965_v55 = vpack.c.bf16 %v2081_v32, %v2080_v57  ;;  %v1197_v13 = vmul.f32 %v8904_v60, %v8972_v35  ;;  %v1346_v39 = vmul.f32 %v8907_v28, %v8972_v35  ;;  %v9009_v32 = vld [vmem:[%s11639_s0] sm:$0xff] }
 0x33a   :  { %7113 = vmatprep.subr.bf16.mxu0 %v7112_v24  ;;  %7129 = vmatprep.subr.bf16.mxu1 %v8927_v53  ;;  %v1198_v20 = vmul.f32 %v8904_v60, %v8979_v44  ;;  %v1347_v21 = vmul.f32 %v8907_v28, %v8979_v44  ;;  %v1689_v48 = vmul.f32 %v8922_v17, %v8972_v35 }
 0x33b   :  { %v1690_v16 = vmul.f32 %v8922_v17, %v8979_v44 }
 0x340   :  { %6495 = vmatmul.mubr.f32.vlgmr.msra.gmra.mrb[26].mxu0 %v1196_v38  ;;  %6509 = vmatmul.mubr.f32.vlgmr.msra.gmra.mrb[20].mxu1 %v1345_v41 }
 0x341   :  { %6497 = vmatprep.mubr.f32.mxu0 %v1197_v13  ;;  %6511 = vmatprep.mubr.f32.mxu1 %v1346_v39 }
 0x342   :  { %7115 = vmatpush3.bf16.msra.mxu0 %v7112_v24  ;;  %7131 = vmatpush3.bf16.xpose.msra.mxu1 %v8927_v53  ;;  %v1688_v24 = vmul.f32 %v8922_v17, %v8968_v31 }
 0x343   :  { %7117 = vmatprep.subr.bf16.mxu0 %v7116_v33  ;;  %7133 = vmatprep.subr.bf16.mxu1 %v8948_v1 }
 0x344   :  { %6498 = vmatmul.mubr.f32.gmra.mrb[28].mxu0 %v1198_v20  ;;  %6512 = vmatmul.mubr.f32.gmra.mrb[22].mxu1 %v1347_v21  ;;  %v9016_v20 = vld [vmem:[%s11639_s0 + $0x18] sm:$0xff]  ;;  %v9021_v21 = vld [vmem:[%s11639_s0 + $0x10] sm:$0xff] }
 0x345   :  { %6550 = vmatprep.mubr.f32.mxu1 %v1687_v40 }
 0x346   :  { %7119 = vmatpush3.bf16.msra.mxu0 %v7116_v33 }
 0x347   :  { %7121 = vmatprep.subr.bf16.mxu0 %v8940_v62 }
 0x34a   :  { %7135 = vmatpush3.bf16.xpose.msra.mxu1 %v8948_v1 }
 0x351   :  { %6551 = vmatmul.mubr.f32.vlgmr.msra.gmra.mrb[24].mxu1 %v1688_v24 }
 0x352   :  { %6553 = vmatprep.mubr.f32.mxu1 %v1689_v48 }
 0x355   :  { %6554 = vmatmul.mubr.f32.gmra.mrb[26].mxu1 %v1690_v16 }
 0x413   :  { %v6496_v46 = vpop.f32.mrb[26].mxu0  ;;  %v6510_v22 = vpop.f32.mrb[20].mxu1 }
 0x414   :  { %v1434_v43 = vmul.f32 0.17677669, %v6510_v22  ;;  %v1265_v51 = vpop.f32.mrb[27].mxu0  ;;  %v1414_v57 = vpop.f32.mrb[21].mxu1  ;;  %v1285_v40 = vmul.f32 0.17677669, %v6496_v46 }
 0x415   :  { %v1433_v33 = vmul.f32 0.17677669, %v1414_v57  ;;  %v1284_v22 = vmul.f32 0.17677669, %v1265_v51 }
 0x416   :  { %v1438_v38 = vadd.f32 %v1434_v43, %v9004_v25  ;;  %v1289_v28 = vadd.f32 %v1285_v40, %v9004_v25 }
 0x417   :  { %v6499_v41 = vpop.f32.mrb[28].mxu0  ;;  %v6513_v13 = vpop.f32.mrb[22].mxu1  ;;  %v1437_v39 = vadd.f32 %v1433_v33, %v9009_v32  ;;  %v1288_v51 = vadd.f32 %v1284_v22, %v9009_v32 }
 0x418   :  { %v1436_v24 = vmul.f32 0.17677669, %v6513_v13  ;;  %v1275_v48 = vpop.f32.mrb[29].mxu0  ;;  %v1424_v16 = vpop.f32.mrb[23].mxu1  ;;  %v1444_v57 = vsel %vm103_vm2, %v1438_v38, -inf }
 0x419   :  { %v1435_v43 = vmul.f32 0.17677669, %v1424_v16  ;;  %v1441_v33 = vsel %vm103_vm2, %v1437_v39, -inf  ;;  %1445 = vmax.xlane.f32.xlu1 %v1444_v57  ;;  %v1287_v46 = vmul.f32 0.17677669, %v6499_v41  ;;  %v1295_v16 = vsel %vm103_vm2, %v1289_v28, -inf }
 0x41a   :  { %1442 = vmax.xlane.f32.xlu0 %v1441_v33  ;;  %v1440_v3 = vadd.f32 %v1436_v24, %v9016_v20  ;;  %v1286_v13 = vmul.f32 0.17677669, %v1275_v48  ;;  %v1292_v57 = vsel %vm103_vm2, %v1288_v51, -inf }
 0x41b   :  { %v1439_v6 = vadd.f32 %v1435_v43, %v9021_v21  ;;  %v1291_v24 = vadd.f32 %v1287_v46, %v9016_v20 }
 0x41c   :  { %v1450_v17 = vsel %vm103_vm2, %v1440_v3, -inf  ;;  %v1290_v43 = vadd.f32 %v1286_v13, %v9021_v21 }
 0x41d   :  { %v1447_v60 = vsel %vm103_vm2, %v1439_v6, -inf  ;;  %1451 = vmax.xlane.f32.xlu1 %v1450_v17  ;;  %v1301_v48 = vsel %vm103_vm2, %v1291_v24, -inf }
 0x41e   :  { %1448 = vmax.xlane.f32.xlu0 %v1447_v60  ;;  %v1298_v63 = vsel %vm103_vm2, %v1290_v43, -inf }
 0x421   :  { %1296 = vmax.xlane.f32.xlu1 %v1295_v16 }
 0x422   :  { %1293 = vmax.xlane.f32.xlu0 %v1292_v57 }
 0x424   :  { %v6552_v33 = vpop.f32.mrb[24].mxu1 }
 0x425   :  { %v1777_v40 = vmul.f32 0.17677669, %v6552_v33  ;;  %v1757_v41 = vpop.f32.mrb[25].mxu1  ;;  %1302 = vmax.xlane.f32.xlu1 %v1301_v48 }
 0x426   :  { %v1776_v22 = vmul.f32 0.17677669, %v1757_v41  ;;  %1299 = vmax.xlane.f32.xlu0 %v1298_v63 }
 0x427   :  { %v1781_v60 = vadd.f32 %v1777_v40, %v9004_v25 }
 0x428   :  { %v6555_v17 = vpop.f32.mrb[26].mxu1  ;;  %v1780_v58 = vadd.f32 %v1776_v22, %v9009_v32 }
 0x429   :  { %v1779_v46 = vmul.f32 0.17677669, %v6555_v17  ;;  %v1767_v54 = vpop.f32.mrb[27].mxu1  ;;  %v1787_v13 = vsel %vm103_vm2, %v1781_v60, -inf }
 0x42a   :  { %v1778_v16 = vmul.f32 0.17677669, %v1767_v54  ;;  %1788 = vmax.xlane.f32.xlu1 %v1787_v13  ;;  %v1784_v57 = vsel %vm103_vm2, %v1780_v58, -inf }
 0x42b   :  { %1785 = vmax.xlane.f32.xlu0 %v1784_v57  ;;  %v9042_v33 = vadd.f32 %v1779_v46, %v9016_v20 }
 0x42c   :  { %v9045_v41 = vadd.f32 %v1778_v16, %v9021_v21 }
 0x42d   :  { %v1793_v63 = vsel %vm103_vm2, %v9042_v33, -inf }
 0x42e   :  { %1794 = vmax.xlane.f32.xlu1 %v1793_v63  ;;  %v1790_v40 = vsel %vm103_vm2, %v9045_v41, -inf }
 0x42f   :  { %1791 = vmax.xlane.f32.xlu0 %v1790_v40 }
 0x4a6   :  { %v1446_v48 = vpop.xlane.xlu1 %1445 }
 0x4a7   :  { %v1443_v54 = vpop.xlane.xlu0 %1442  ;;  %v1454_v22 = vsub.f32 %v1438_v38, %v1446_v48 }
 0x4a8   :  { %v1453_v17 = vsub.f32 %v1437_v39, %v1443_v54 }
 0x4a9   :  { %v1459_v13 = vmul.f32 1.442695, %v1454_v22 }
 0x4aa   :  { %v1457_v57 = vmul.f32 1.442695, %v1453_v17  ;;  %v1452_v49 = vpop.xlane.xlu1 %1451 }
 0x4ab   :  { %v1449_v46 = vpop.xlane.xlu0 %1448  ;;  %7805 = vpow2.f32 %v1459_v13  ;;  %v1456_v27 = vsub.f32 %v1440_v3, %v1452_v49 }
 0x4ac   :  { %v1455_v16 = vsub.f32 %v1439_v6, %v1449_v46  ;;  %7807 = vpow2.f32 %v1457_v57 }
 0x4ad   :  { %v1463_v14 = vmul.f32 1.442695, %v1456_v27 }
 0x4ae   :  { %v1461_v37 = vmul.f32 1.442695, %v1455_v16  ;;  %v1297_v36 = vpop.xlane.xlu1 %1296 }
 0x4af   :  { %v1294_v63 = vpop.xlane.xlu0 %1293  ;;  %7809 = vpow2.f32 %v1463_v14  ;;  %v1305_v10 = vsub.f32 %v1289_v28, %v1297_v36 }
 0x4b0   :  { %v1304_v12 = vsub.f32 %v1288_v51, %v1294_v63  ;;  %7811 = vpow2.f32 %v1461_v37 }
 0x4b1   :  { %v1310_v40 = vmul.f32 1.442695, %v1305_v10 }
 0x4b2   :  { %v1308_v4 = vmul.f32 1.442695, %v1304_v12  ;;  %v1303_v38 = vpop.xlane.xlu1 %1302 }
 0x4b3   :  { %v1300_v39 = vpop.xlane.xlu0 %1299  ;;  %7813 = vpow2.f32 %v1310_v40  ;;  %v1307_v48 = vsub.f32 %v1291_v24, %v1303_v38 }
 0x4b4   :  { %v1306_v54 = vsub.f32 %v1290_v43, %v1300_v39  ;;  %7815 = vpow2.f32 %v1308_v4 }
 0x4b5   :  { %v9051_v22 = vpop.eup %7805  ;;  %v1314_v3 = vmul.f32 1.442695, %v1307_v48 }
 0x4b6   :  { %v1312_v6 = vmul.f32 1.442695, %v1306_v54  ;;  %v9053_v27 = vpop.eup %7807  ;;  %v1468_v36 = vsel %vm103_vm2, %v9051_v22, 0.0 }
 0x4b7   :  { %v1789_v49 = vpop.xlane.xlu1 %1788  ;;  %7817 = vpow2.f32 %v1314_v3  ;;  %1469 = vadd.xlane.f32.xlu1 %v1468_v36  ;;  %v1465_v10 = vsel %vm103_vm2, %v9053_v27, 0.0 }
 0x4b8   :  { %v1797_v37 = vsub.f32 %v1781_v60, %v1789_v49  ;;  %v1786_v14 = vpop.xlane.xlu0 %1785  ;;  %7819 = vpow2.f32 %v1312_v6  ;;  %1466 = vadd.xlane.f32.xlu0 %v1465_v10 }
 0x4b9   :  { %v1796_v12 = vsub.f32 %v1780_v58, %v1786_v14  ;;  %v9059_v4 = vpop.eup %7809 }
 0x4ba   :  { %v1802_v28 = vmul.f32 1.442695, %v1797_v37  ;;  %v9061_v51 = vpop.eup %7811  ;;  %v1474_v17 = vsel %vm103_vm2, %v9059_v4, 0.0 }
 0x4bb   :  { %v1800_v24 = vmul.f32 1.442695, %v1796_v12  ;;  %v1795_v43 = vpop.xlane.xlu1 %1794  ;;  %1475 = vadd.xlane.f32.xlu1 %v1474_v17  ;;  %v1471_v57 = vsel %vm103_vm2, %v9061_v51, 0.0 }
 0x4bc   :  { %7821 = vpow2.f32 %v1802_v28  ;;  %v1799_v60 = vsub.f32 %v9042_v33, %v1795_v43  ;;  %v1792_v13 = vpop.xlane.xlu0 %1791  ;;  %1472 = vadd.xlane.f32.xlu0 %v1471_v57 }
 0x4bd   :  { %7823 = vpow2.f32 %v1800_v24  ;;  %v1798_v58 = vsub.f32 %v9045_v41, %v1792_v13  ;;  %v9069_v46 = vpop.eup %7813 }
 0x4be   :  { %v1806_v16 = vmul.f32 1.442695, %v1799_v60  ;;  %v9071_v63 = vpop.eup %7815  ;;  %v1319_v38 = vsel %vm103_vm2, %v9069_v46, 0.0 }
 0x4bf   :  { %v1804_v40 = vmul.f32 1.442695, %v1798_v58  ;;  %1320 = vadd.xlane.f32.xlu1 %v1319_v38  ;;  %v1316_v33 = vsel %vm103_vm2, %v9071_v63, 0.0 }
 0x4c0   :  { %7825 = vpow2.f32 %v1806_v16  ;;  %1317 = vadd.xlane.f32.xlu0 %v1316_v33 }
 0x4c1   :  { %7827 = vpow2.f32 %v1804_v40  ;;  %v9077_v39 = vpop.eup %7817 }
 0x4c2   :  { %v9079_v41 = vpop.eup %7819  ;;  %v1325_v48 = vsel %vm103_vm2, %v9077_v39, 0.0 }
 0x4c3   :  { %1326 = vadd.xlane.f32.xlu1 %v1325_v48  ;;  %v1322_v54 = vsel %vm103_vm2, %v9079_v41, 0.0 }
 0x4c4   :  { %1323 = vadd.xlane.f32.xlu0 %v1322_v54 }
 0x4c6   :  { %v9085_v3 = vpop.eup %7821 }
 0x4c7   :  { %v9087_v6 = vpop.eup %7823  ;;  %v1811_v49 = vsel %vm103_vm2, %v9085_v3, 0.0 }
 0x4c8   :  { %1812 = vadd.xlane.f32.xlu1 %v1811_v49  ;;  %v1808_v36 = vsel %vm103_vm2, %v9087_v6, 0.0 }
 0x4c9   :  { %1809 = vadd.xlane.f32.xlu0 %v1808_v36 }
 0x4ca   :  { %v9093_v37 = vpop.eup %7825 }
 0x4cb   :  { %v9095_v14 = vpop.eup %7827  ;;  %v1817_v10 = vsel %vm103_vm2, %v9093_v37, 0.0 }
 0x4cc   :  { %1818 = vadd.xlane.f32.xlu1 %v1817_v10  ;;  %v1814_v12 = vsel %vm103_vm2, %v9095_v14, 0.0 }
 0x4cd   :  { %1815 = vadd.xlane.f32.xlu0 %v1814_v12 }
 0x544   :  { %v1470_v28 = vpop.xlane.xlu1 %1469 }
 0x545   :  { %7829 = vrcp.f32 %v1470_v28  ;;  %v1467_v24 = vpop.xlane.xlu0 %1466 }
 0x546   :  { %7831 = vrcp.f32 %v1467_v24 }
 0x548   :  { %v1476_v43 = vpop.xlane.xlu1 %1475 }
 0x549   :  { %7833 = vrcp.f32 %v1476_v43  ;;  %v1473_v17 = vpop.xlane.xlu0 %1472 }
 0x54a   :  { %7835 = vrcp.f32 %v1473_v17 }
 0x54c   :  { %v1321_v60 = vpop.xlane.xlu1 %1320 }
 0x54d   :  { %7837 = vrcp.f32 %v1321_v60  ;;  %v1318_v13 = vpop.xlane.xlu0 %1317 }
 0x54e   :  { %7839 = vrcp.f32 %v1318_v13 }
 0x54f   :  { %v7830_v57 = vpop.eup %7829 }
 0x550   :  { %v7832_v58 = vpop.eup %7831  ;;  %v1327_v16 = vpop.xlane.xlu1 %1326  ;;  %v1482_v33 = vmul.f32 %v7830_v57, %v9051_v22 }
 0x551   :  { %7841 = vrcp.f32 %v1327_v16  ;;  %v1324_v40 = vpop.xlane.xlu0 %1323  ;;  %v1481_v38 = vmul.f32 %v7832_v58, %v9053_v27 }
 0x552   :  { %7843 = vrcp.f32 %v1324_v40 }
 0x553   :  { %v7834_v48 = vpop.eup %7833  ;;  %6522 = vmatprep.mubr.msk.f32.mxu0 %vm103_vm2, %v1481_v38 }
 0x554   :  { %v7836_v54 = vpop.eup %7835  ;;  %6523 = vmatmul.mubr.msk.f32.vlgmr.msra.gmra.mrb[30].mxu0 %vm103_vm2, %v1482_v33  ;;  %v1484_v27 = vmul.f32 %v7834_v48, %v9059_v4 }
 0x555   :  { %v1813_v49 = vpop.xlane.xlu1 %1812  ;;  %7123 = vmatpush3.bf16.msra.mxu0 %v8940_v62  ;;  %v1483_v10 = vmul.f32 %v7836_v54, %v9061_v51 }
 0x556   :  { %7845 = vrcp.f32 %v1813_v49  ;;  %v1810_v36 = vpop.xlane.xlu0 %1809  ;;  %7125 = vmatprep.subr.bf16.mxu0 %v8959_v23 }
 0x557   :  { %7847 = vrcp.f32 %v1810_v36  ;;  %v7838_v22 = vpop.eup %7837  ;;  %6525 = vmatprep.mubr.msk.f32.mxu0 %vm103_vm2, %v1483_v10 }
 0x558   :  { %v7840_v12 = vpop.eup %7839  ;;  %6526 = vmatmul.mubr.msk.f32.gmra.mrb[32].mxu0 %vm103_vm2, %v1484_v27  ;;  %v1333_v51 = vmul.f32 %v7838_v22, %v9069_v46 }
 0x559   :  { %v1819_v28 = vpop.xlane.xlu1 %1818  ;;  %7127 = vmatpush3.bf16.msra.mxu0 %v8959_v23  ;;  %v1332_v62 = vmul.f32 %v7840_v12, %v9071_v63 }
 0x55a   :  { %7849 = vrcp.f32 %v1819_v28  ;;  %v1816_v24 = vpop.xlane.xlu0 %1815  ;;  %7137 = vmatprep.subr.bf16.mxu0 %v8942_v29 }
 0x55b   :  { %7851 = vrcp.f32 %v1816_v24  ;;  %v7842_v43 = vpop.eup %7841  ;;  %6536 = vmatprep.mubr.msk.f32.mxu0 %vm103_vm2, %v1332_v62 }
 0x55c   :  { %v7844_v4 = vpop.eup %7843  ;;  %6537 = vmatmul.mubr.msk.f32.vlgmr.msra.gmra.mrb[30].mxu0 %vm103_vm2, %v1333_v51  ;;  %v1335_v23 = vmul.f32 %v7842_v43, %v9077_v39 }
 0x55d   :  { %7139 = vmatpush3.bf16.msra.mxu0 %v8942_v29  ;;  %v1334_v17 = vmul.f32 %v7844_v4, %v9079_v41 }
 0x55e   :  { %7141 = vmatprep.subr.bf16.mxu0 %v8963_v26 }
 0x55f   :  { %6539 = vmatprep.mubr.msk.f32.mxu0 %vm103_vm2, %v1334_v17 }
 0x560   :  { %v7846_v63 = vpop.eup %7845  ;;  %6540 = vmatmul.mubr.msk.f32.gmra.mrb[32].mxu0 %vm103_vm2, %v1335_v23 }
 0x561   :  { %v7848_v46 = vpop.eup %7847  ;;  %7143 = vmatpush3.bf16.msra.mxu0 %v8963_v26  ;;  %v1825_v13 = vmul.f32 %v7846_v63, %v9085_v3  ;;  %v1937_v26 = vmul.f32 %v8925_v19, %v8910_v30  ;;  %v1938_v3 = vmul.f32 %v8925_v19, %v8968_v31  ;;  %v1940_v30 = vmul.f32 %v8925_v19, %v8979_v44 }
 0x562   :  { %v1824_v60 = vmul.f32 %v7848_v46, %v9087_v6  ;;  %7145 = vmatprep.subr.bf16.mxu0 %v8927_v53  ;;  %v1939_v6 = vmul.f32 %v8925_v19, %v8972_v35 }
 0x564   :  { %v7850_v29 = vpop.eup %7849  ;;  %6564 = vmatprep.mubr.msk.f32.mxu0 %vm103_vm2, %v1824_v60  ;;  %v402_v60 = vld [vmem:[%s11561_s13] sm:$0xff] }
 0x565   :  { %v7852_v41 = vpop.eup %7851  ;;  %6565 = vmatmul.mubr.msk.f32.vlgmr.msra.gmra.mrb[30].mxu0 %vm103_vm2, %v1825_v13  ;;  %v1827_v57 = vmul.f32 %v7850_v29, %v9093_v37  ;;  %v403_v13 = vld [vmem:[%s11561_s13 + $0x8] sm:$0xff]  ;;  %v404_v29 = vld [vmem:[%s11561_s13 + $0x10] sm:$0xff] }
 0x566   :  { %v1826_v39 = vmul.f32 %v7852_v41, %v9095_v14  ;;  %v7160_v41 = vpack.c.bf16 %v403_v13, %v402_v60 }
 0x568   :  { %6567 = vmatprep.mubr.msk.f32.mxu0 %vm103_vm2, %v1826_v39  ;;  %v405_v39 = vld [vmem:[%s11561_s13 + $0x18] sm:$0xff]  ;;  %7161 = vmatprep.subr.bf16.mxu1 %v7160_v41 }
 0x569   :  { %6568 = vmatmul.mubr.msk.f32.gmra.mrb[32].mxu0 %vm103_vm2, %v1827_v57  ;;  %v7164_v57 = vpack.c.bf16 %v405_v39, %v404_v29  ;;  %7163 = vmatpush3.bf16.msra.mxu1 %v7160_v41 }
 0x56a   :  { %6578 = vmatprep.mubr.f32.mxu0 %v1937_v26  ;;  %7147 = vmatpush3.bf16.xpose.msra.mxu0 %v8927_v53  ;;  %v406_v26 = vld [vmem:[%s11561_s13 + $0x20] sm:$0xff] }
 0x56b   :  { %7149 = vmatprep.subr.bf16.mxu0 %v8948_v1  ;;  %7165 = vmatprep.subr.bf16.mxu1 %v7164_v57 }
 0x56d   :  { %7167 = vmatpush3.bf16.msra.mxu1 %v7164_v57 }
 0x572   :  { %7151 = vmatpush3.bf16.xpose.msra.mxu0 %v8948_v1 }
 0x573   :  { %7153 = vmatprep.subr.bf16.mxu0 %v8945_v15 }
 0x579   :  { %6579 = vmatmul.mubr.f32.vlgmr.msra.gmra.mrb[34].mxu0 %v1938_v3  ;;  %v407_v3 = vld [vmem:[%s11561_s13 + $0x28] sm:$0xff] }
 0x57a   :  { %6581 = vmatprep.mubr.f32.mxu0 %v1939_v6  ;;  %7155 = vmatpush3.bf16.msra.mxu0 %v8945_v15  ;;  %v7168_v6 = vpack.c.bf16 %v407_v3, %v406_v26 }
 0x57b   :  { %7157 = vmatprep.subr.bf16.mxu0 %v8965_v55 }
 0x57c   :  { %7169 = vmatprep.subr.bf16.mxu1 %v7168_v6 }
 0x57d   :  { %6582 = vmatmul.mubr.f32.gmra.mrb[36].mxu0 %v1940_v30  ;;  %v408_v30 = vld [vmem:[%s11561_s13 + $0x30] sm:$0xff]  ;;  %7171 = vmatpush3.bf16.msra.mxu1 %v7168_v6 }
 0x57e   :  { %7159 = vmatpush3.bf16.msra.mxu0 %v8965_v55 }
 0x64c   :  { %v6580_v53 = vpop.f32.mrb[34].mxu0 }
 0x64d   :  { %v2027_v1 = vmul.f32 0.17677669, %v6580_v53  ;;  %v2007_v37 = vpop.f32.mrb[35].mxu0  ;;  %v409_v53 = vld [vmem:[%s11561_s13 + $0x38] sm:$0xff] }
 0x64e   :  { %v2026_v14 = vmul.f32 0.17677669, %v2007_v37  ;;  %v410_v37 = vld [vmem:[%s11561_s13 + $0x40] sm:$0xff] }
 0x64f   :  { %v2031_v31 = vadd.f32 %v2027_v1, %v9004_v25  ;;  %v7172_v1 = vpack.c.bf16 %v409_v53, %v408_v30 }
 0x650   :  { %v6583_v58 = vpop.f32.mrb[36].mxu0  ;;  %v2030_v35 = vadd.f32 %v2026_v14, %v9009_v32  ;;  %v411_v14 = vld [vmem:[%s11561_s13 + $0x48] sm:$0xff] }
 0x651   :  { %v2029_v16 = vmul.f32 0.17677669, %v6583_v58  ;;  %v2017_v40 = vpop.f32.mrb[37].mxu0  ;;  %v2037_v15 = vsel %vm103_vm2, %v2031_v31, -inf  ;;  %7173 = vmatprep.subr.bf16.mxu1 %v7172_v1  ;;  %v412_v58 = vld [vmem:[%s11561_s13 + $0x50] sm:$0xff] }
 0x652   :  { %v2028_v38 = vmul.f32 0.17677669, %v2017_v40  ;;  %2038 = vmax.xlane.f32.xlu1 %v2037_v15  ;;  %v2034_v44 = vsel %vm103_vm2, %v2030_v35, -inf  ;;  %7175 = vmatpush3.bf16.msra.mxu1 %v7172_v1  ;;  %v414_v40 = vld [vmem:[%s11561_s13 + $0x60] sm:$0xff]  ;;  %v415_v15 = vld [vmem:[%s11561_s13 + $0x68] sm:$0xff] }
 0x653   :  { %2035 = vmax.xlane.f32.xlu0 %v2034_v44  ;;  %v2033_v55 = vadd.f32 %v2029_v16, %v9016_v20  ;;  %v416_v44 = vld [vmem:[%s11561_s13 + $0x70] sm:$0xff] }
 0x654   :  { %v2032_v33 = vadd.f32 %v2028_v38, %v9021_v21  ;;  %v7184_v38 = vpack.c.bf16 %v415_v15, %v414_v40  ;;  %v425_v40 = vld [vmem:[%s11563_s15 + $0x30] sm:$0xff]  ;;  %v428_v15 = vld [vmem:[%s11563_s15 + $0x48] sm:$0xff] }
 0x655   :  { %v2043_v48 = vsel %vm103_vm2, %v2033_v55, -inf }
 0x656   :  { %2044 = vmax.xlane.f32.xlu1 %v2043_v48  ;;  %v2040_v25 = vsel %vm103_vm2, %v2032_v33, -inf }
 0x657   :  { %2041 = vmax.xlane.f32.xlu0 %v2040_v25 }
 0x6df   :  { %v2039_v32 = vpop.xlane.xlu1 %2038 }
 0x6e0   :  { %v2047_v54 = vsub.f32 %v2031_v31, %v2039_v32  ;;  %v2036_v49 = vpop.xlane.xlu0 %2035  ;;  %v7176_v31 = vpack.c.bf16 %v411_v14, %v410_v37  ;;  %v419_v14 = vld [vmem:[%s11563_s15] sm:$0xff] }
 0x6e1   :  { %v2046_v36 = vsub.f32 %v2030_v35, %v2036_v49  ;;  %v413_v35 = vld [vmem:[%s11561_s13 + $0x58] sm:$0xff] }
 0x6e2   :  { %v2052_v10 = vmul.f32 1.442695, %v2047_v54  ;;  %7177 = vmatprep.subr.bf16.mxu1 %v7176_v31  ;;  %v7180_v16 = vpack.c.bf16 %v413_v35, %v412_v58 }
 0x6e3   :  { %v2050_v27 = vmul.f32 1.442695, %v2046_v36  ;;  %v2045_v22 = vpop.xlane.xlu1 %2044  ;;  %7179 = vmatpush3.bf16.msra.mxu1 %v7176_v31  ;;  %v423_v31 = vld [vmem:[%s11563_s15 + $0x20] sm:$0xff] }
 0x6e4   :  { %7853 = vpow2.f32 %v2052_v10  ;;  %v2049_v12 = vsub.f32 %v2033_v55, %v2045_v22  ;;  %v2042_v28 = vpop.xlane.xlu0 %2041  ;;  %7181 = vmatprep.subr.bf16.mxu1 %v7180_v16  ;;  %v417_v55 = vld [vmem:[%s11561_s13 + $0x78] sm:$0xff]  ;;  %v7194_v35 = vpack.c.bf16 %v423_v31, %v419_v14 }
 0x6e5   :  { %7855 = vpow2.f32 %v2050_v27  ;;  %v2048_v20 = vsub.f32 %v2032_v33, %v2042_v28  ;;  %v7188_v33 = vpack.c.bf16 %v417_v55, %v416_v44  ;;  %v432_v44 = vld [vmem:[%s11563_s15 + $0x68] sm:$0xff]  ;;  %v430_v55 = vld [vmem:[%s11563_s15 + $0x58] sm:$0xff] }
 0x6e6   :  { %v2056_v24 = vmul.f32 1.442695, %v2049_v12  ;;  %v450_v31 = vld [vmem:[%s11563_s15 + $0xf8] sm:$0xff] }
 0x6e7   :  { %v2054_v21 = vmul.f32 1.442695, %v2048_v20  ;;  %7183 = vmatpush3.bf16.msra.mxu1 %v7180_v16  ;;  %v421_v16 = vld [vmem:[%s11563_s15 + $0x10] sm:$0xff] }
 0x6e8   :  { %7857 = vpow2.f32 %v2056_v24  ;;  %7185 = vmatprep.subr.bf16.mxu1 %v7184_v38  ;;  %v11640_v24 = vmov 0.0  }
 0x6e9   :  { %7859 = vpow2.f32 %v2054_v21 }
 0x6eb   :  { %7187 = vmatpush3.bf16.msra.mxu1 %v7184_v38  ;;  %v7226_v38 = vpack.c.bf16 %v425_v40, %v421_v16 }
 0x6ec   :  { %7189 = vmatprep.subr.bf16.mxu1 %v7188_v33 }
 0x6ee   :  { %v9156_v62 = vpop.eup %7853 }
 0x6ef   :  { %v7856_v51 = vpop.eup %7855  ;;  %v2061_v43 = vsel %vm103_vm2, %v9156_v62, 0.0  ;;  %7191 = vmatpush3.bf16.msra.mxu1 %v7188_v33  ;;  %v434_v33 = vld [vmem:[%s11563_s15 + $0x78] sm:$0xff] }
 0x6f0   :  { %2062 = vadd.xlane.f32.xlu1 %v2061_v43  ;;  %v2058_v4 = vsel %vm103_vm2, %v7856_v51, 0.0 }
 0x6f1   :  { %2059 = vadd.xlane.f32.xlu0 %v2058_v4  ;;  %v658_v4 = vrot.slane %v8878_v18, %v8901_v45 }
 0x6f2   :  { %v9161_v17 = vpop.eup %7857 }
 0x6f3   :  { %v7860_v23 = vpop.eup %7859  ;;  %v2067_v63 = vsel %vm103_vm2, %v9161_v17, 0.0  ;;  %v833_v13 = vadd.f32 %v8859_v2, %v658_v4  ;;  %v851_v26 = vadd.f32 %v8871_v11, %v658_v4  ;;  %v845_v30 = vadd.f32 %v8867_v8, %v658_v4 }
 0x6f4   :  { %2068 = vadd.xlane.f32.xlu1 %v2067_v63  ;;  %v2064_v46 = vsel %vm103_vm2, %v7860_v23, 0.0  ;;  %v839_v63 = vadd.f32 %v8863_v5, %v658_v4  ;;  %v437_v4 = vld [vmem:[%s11563_s15 + $0x90] sm:$0xff] }
 0x6f5   :  { %2065 = vadd.xlane.f32.xlu0 %v2064_v46 }
 0x77d   :  { %v2063_v48 = vpop.xlane.xlu1 %2062 }
 0x77e   :  { %7861 = vrcp.f32 %v2063_v48  ;;  %v2060_v25 = vpop.xlane.xlu0 %2059  ;;  %v7196_v48 = vpack.c.bf16 %v432_v44, %v428_v15  ;;  %v445_v15 = vld [vmem:[%s11563_s15 + $0xd0] sm:$0xff] }
 0x77f   :  { %7863 = vrcp.f32 %v2060_v25  ;;  %v7228_v25 = vpack.c.bf16 %v434_v33, %v430_v55  ;;  %v452_v55 = vld [vmem:[%s11563_s15 + $0x108] sm:$0xff] }
 0x780   :  { %v456_v33 = vld [vmem:[%s11563_s15 + $0x128] sm:$0xff] }
 0x781   :  { %v2069_v32 = vpop.xlane.xlu1 %2068 }
 0x782   :  { %7865 = vrcp.f32 %v2069_v32  ;;  %v2066_v54 = vpop.xlane.xlu0 %2065  ;;  %v427_v32 = vld [vmem:[%s11563_s15 + $0x40] sm:$0xff] }
 0x783   :  { %7867 = vrcp.f32 %v2066_v54  ;;  %v431_v54 = vld [vmem:[%s11563_s15 + $0x60] sm:$0xff] }
 0x788   :  { %v7862_v49 = vpop.eup %7861 }
 0x789   :  { %v7864_v36 = vpop.eup %7863  ;;  %v2075_v27 = vmul.f32 %v7862_v49, %v9156_v62  ;;  %v429_v49 = vld [vmem:[%s11563_s15 + $0x50] sm:$0xff] }
 0x78a   :  { %v2074_v10 = vmul.f32 %v7864_v36, %v7856_v51  ;;  %v7198_v36 = vpack.c.bf16 %v431_v54, %v427_v32  ;;  %v458_v32 = vld [vmem:[%s11563_s15 + $0x138] sm:$0xff]  ;;  %v451_v54 = vld [vmem:[%s11563_s15 + $0x100] sm:$0xff] }
 0x78c   :  { %v7866_v22 = vpop.eup %7865  ;;  %6592 = vmatprep.mubr.msk.f32.mxu0 %vm103_vm2, %v2074_v10  ;;  %v433_v10 = vld [vmem:[%s11563_s15 + $0x70] sm:$0xff] }
 0x78d   :  { %v7868_v12 = vpop.eup %7867  ;;  %6593 = vmatmul.mubr.msk.f32.vlgmr.msra.gmra.mrb[30].mxu0 %vm103_vm2, %v2075_v27  ;;  %v2077_v20 = vmul.f32 %v7866_v22, %v9161_v17  ;;  %v5682_v17 = vld [vmem:[%s11562_s14] ss:$0 sm:$0xff]  ;;  %v436_v27 = vld [vmem:[%s11563_s15 + $0x88] sm:$0xff] }
 0x78e   :  { %v2076_v28 = vmul.f32 %v7868_v12, %v7860_v23  ;;  %v440_v22 = vld [vmem:[%s11563_s15 + $0xa8] sm:$0xff]  ;;  %v7230_v12 = vpack.c.bf16 %v433_v10, %v429_v49  ;;  %v455_v49 = vld [vmem:[%s11563_s15 + $0x120] sm:$0xff] }
 0x78f   :  { %v7210_v10 = vpack.c.bf16 %v455_v49, %v451_v54  ;;  %v533_v49 = vld [vmem:[%s11565_s17 + $0x188] sm:$0xff] }
 0x790   :  { %6595 = vmatprep.mubr.msk.f32.mxu0 %vm103_vm2, %v2076_v28  ;;  %v7200_v28 = vpack.c.bf16 %v440_v22, %v436_v27  ;;  %v453_v27 = vld [vmem:[%s11563_s15 + $0x110] sm:$0xff] }
 0x791   :  { %6596 = vmatmul.mubr.msk.f32.gmra.mrb[32].mxu0 %vm103_vm2, %v2077_v20  ;;  %v438_v20 = vld [vmem:[%s11563_s15 + $0x98] sm:$0xff]  ;;  %v457_v22 = vld [vmem:[%s11563_s15 + $0x130] sm:$0xff] }
 0x792   :  { %2423 = vmatprep.mubr.f32.mxu0 %v11640_v24 }
 0x860   :  { %v6594_v21 = vpop.f32.mrb[30].mxu0 }
 0x861   :  { %v2160_v43 = vpop.f32.mrb[31].mxu0 }
 0x862   :  { %6630 = vmatprep.mubr.f32.mxu1 %v2160_v43  ;;  %v435_v43 = vld [vmem:[%s11563_s15 + $0x80] sm:$0xff] }
 0x863   :  { %6631 = vmatmul.mubr.f32.vlgmr.msra.gmra.mrb[28].mxu1 %v6594_v21  ;;  %v442_v21 = vld [vmem:[%s11563_s15 + $0xb8] sm:$0xff] }
 0x864   :  { %v6597_v62 = vpop.f32.mrb[32].mxu0 }
 0x865   :  { %v2170_v51 = vpop.f32.mrb[33].mxu0 }
 0x866   :  { %6633 = vmatprep.mubr.f32.mxu1 %v2170_v51  ;;  %v439_v51 = vld [vmem:[%s11563_s15 + $0xa0] sm:$0xff] }
 0x867   :  { %6634 = vmatmul.mubr.f32.gmra.mrb[30].mxu1 %v6597_v62  ;;  %v7232_v62 = vpack.c.bf16 %v442_v21, %v438_v20  ;;  %v464_v20 = vld [vmem:[%s11563_s15 + $0x168] sm:$0xff]  ;;  %v462_v21 = vld [vmem:[%s11563_s15 + $0x158] sm:$0xff] }
 0x868   :  { %2512 = vmatprep.mubr.f32.mxu1 %v11640_v24 }
 0x936   :  { %v6632_v23 = vpop.f32.mrb[28].mxu1 }
 0x937   :  { %v2261_v46 = vadd.f32 %v6632_v23, %v5682_v17  ;;  %v2255_v60 = vpop.f32.mrb[29].mxu1  ;;  %v7202_v23 = vpack.c.bf16 %v439_v51, %v435_v43  ;;  %v459_v51 = vld [vmem:[%s11563_s15 + $0x140] sm:$0xff] }
 0x938   :  { %v2256_v29 = vadd.f32 %v5682_v17, %v2255_v60 }
 0x939   :  { %v2275_v41 = vmul.f32 %v2261_v46, %v839_v63 }
 0x93a   :  { %v2274_v39 = vmul.f32 %v2256_v29, %v833_v13  ;;  %v6635_v57 = vpop.f32.mrb[30].mxu1 }
 0x93b   :  { %v2271_v3 = vadd.f32 %v6635_v57, %v5682_v17  ;;  %v2265_v6 = vpop.f32.mrb[31].mxu1  ;;  %v9231_v18 = vadd.f32 %v2275_v41, %v8547_v59  ;;  %v424_v59 = vld [vmem:[%s11563_s15 + $0x28] sm:$0xff] }
 0x93c   :  { %v2266_v53 = vadd.f32 %v5682_v17, %v2265_v6  ;;  %v9235_v5 = vadd.f32 %v2274_v39, %v8541_v50  ;;  %v420_v50 = vld [vmem:[%s11563_s15 + $0x8] sm:$0xff]  ;;  %v441_v17 = vld [vmem:[%s11563_s15 + $0xb0] sm:$0xff] }
 0x93d   :  { %v2277_v1 = vmul.f32 %v2271_v3, %v851_v26  ;;  %2284 = vadd.xlane.f32.xlu1 %v9231_v18  ;;  %v7192_v8 = vpack.c.bf16 %v424_v59, %v420_v50  ;;  %v7234_v63 = vpack.c.bf16 %v441_v17, %v437_v4  ;;  %v463_v4 = vld [vmem:[%s11563_s15 + $0x160] sm:$0xff] }
 0x93e   :  { %v2276_v2 = vmul.f32 %v2266_v53, %v845_v30  ;;  %2282 = vadd.xlane.f32.xlu0 %v9235_v5 }
 0x93f   :  { %v9240_v37 = vadd.f32 %v2277_v1, %v8565_v9  ;;  %v422_v9 = vld [vmem:[%s11563_s15 + $0x18] sm:$0xff]  ;;  %7193 = vmatprep.subr.bf16.mxu0 %v7192_v8  ;;  %v448_v8 = vld [vmem:[%s11563_s15 + $0xe8] sm:$0xff] }
 0x940   :  { %v9243_v11 = vadd.f32 %v2276_v2, %v8553_v0  ;;  %v426_v0 = vld [vmem:[%s11563_s15 + $0x38] sm:$0xff]  ;;  %7195 = vmatpush1.bf16.msra.mxu0 %v7194_v35  ;;  %v447_v35 = vld [vmem:[%s11563_s15 + $0xe0] sm:$0xff] }
 0x941   :  { %2288 = vadd.xlane.f32.xlu1 %v9240_v37  ;;  %v7224_v58 = vpack.c.bf16 %v426_v0, %v422_v9  ;;  %7197 = vmatprep.subr.bf16.mxu0 %v7196_v48  ;;  %v444_v9 = vld [vmem:[%s11563_s15 + $0xc8] sm:$0xff]  ;;  %v446_v0 = vld [vmem:[%s11563_s15 + $0xd8] sm:$0xff] }
 0x942   :  { %2286 = vadd.xlane.f32.xlu0 %v9243_v11  ;;  %v7204_v14 = vpack.c.bf16 %v448_v8, %v444_v9  ;;  %v7236_v16 = vpack.c.bf16 %v450_v31, %v446_v0  ;;  %v454_v48 = vld [vmem:[%s11563_s15 + $0x118] sm:$0xff]  ;;  %v473_v9 = vld [vmem:[%s11563_s15 + $0x1b0] sm:$0xff]  ;;  %v476_v8 = vld [vmem:[%s11563_s15 + $0x1c8] sm:$0xff] }
 0x943   :  { %7225 = vmatprep.subr.bf16.mxu1 %v7224_v58  ;;  %v443_v58 = vld [vmem:[%s11563_s15 + $0xc0] sm:$0xff]  ;;  %v478_v31 = vld [vmem:[%s11563_s15 + $0x1d8] sm:$0xff] }
 0x944   :  { %7227 = vmatpush1.bf16.msra.mxu1 %v7226_v38  ;;  %7199 = vmatpush1.bf16.msra.mxu0 %v7198_v36  ;;  %v7206_v40 = vpack.c.bf16 %v447_v35, %v443_v58  ;;  %v449_v38 = vld [vmem:[%s11563_s15 + $0xf0] sm:$0xff]  ;;  %v7240_v36 = vpack.c.bf16 %v458_v32, %v454_v48  ;;  %v482_v58 = vld [vmem:[%s11563_s15 + $0x1f8] sm:$0xff]  ;;  %v500_v48 = vld [vmem:[%s11565_s17 + $0x80] sm:$0xff] }
 0x945   :  { %7229 = vmatprep.subr.bf16.mxu1 %v7228_v25  ;;  %7201 = vmatprep.subr.bf16.mxu0 %v7200_v28  ;;  %v7238_v44 = vpack.c.bf16 %v449_v38, %v445_v15  ;;  %v7208_v25 = vpack.c.bf16 %v456_v33, %v452_v55  ;;  %v460_v28 = vld [vmem:[%s11563_s15 + $0x148] sm:$0xff]  ;;  %v479_v15 = vld [vmem:[%s11563_s15 + $0x1e0] sm:$0xff]  ;;  %v477_v38 = vld [vmem:[%s11563_s15 + $0x1d0] sm:$0xff] }
 0x946   :  { %v7212_v43 = vpack.c.bf16 %v464_v20, %v460_v28  ;;  %v481_v55 = vld [vmem:[%s11563_s15 + $0x1f0] sm:$0xff]  ;;  %v532_v32 = vld [vmem:[%s11565_s17 + $0x180] sm:$0xff]  ;;  %v11600_v20 = vsub.s32 4, %v8522_v34 }
 0x947   :  { %v7254_v33 = vpack.c.bf16 %v481_v55, %v477_v38  ;;  %v11642_v55 = vld [vmem:[#allocation15_spill] sm:$0xff] }
 0x948   :  { %7231 = vmatpush1.bf16.msra.mxu1 %v7230_v12  ;;  %7203 = vmatpush1.bf16.msra.mxu0 %v7202_v23  ;;  %v7242_v12 = vpack.c.bf16 %v457_v22, %v453_v27  ;;  %v7214_v23 = vpack.c.bf16 %v463_v4, %v459_v51 }
 0x949   :  { %7233 = vmatprep.subr.bf16.mxu1 %v7232_v62  ;;  %7205 = vmatprep.subr.bf16.mxu0 %v7204_v14  ;;  %v466_v62 = vld [vmem:[%s11563_s15 + $0x178] sm:$0xff]  ;;  %v480_v14 = vld [vmem:[%s11563_s15 + $0x1e8] sm:$0xff] }
 0x94a   :  { %v7244_v17 = vpack.c.bf16 %v466_v62, %v462_v21  ;;  %v7220_v35 = vpack.c.bf16 %v480_v14, %v476_v8  ;;  %v485_v8 = vld [vmem:[%s11565_s17 + $0x8] sm:$0xff] }
 0x94c   :  { %7235 = vmatpush1.bf16.msra.mxu1 %v7234_v63  ;;  %7207 = vmatpush1.bf16.msra.mxu0 %v7206_v40  ;;  %v461_v63 = vld [vmem:[%s11563_s15 + $0x150] sm:$0xff]  ;;  %v475_v40 = vld [vmem:[%s11563_s15 + $0x1c0] sm:$0xff] }
 0x94d   :  { %7237 = vmatprep.subr.bf16.mxu1 %v7236_v16  ;;  %7209 = vmatprep.subr.bf16.mxu0 %v7208_v25  ;;  %v7252_v16 = vpack.c.bf16 %v482_v58, %v478_v31  ;;  %v501_v25 = vld [vmem:[%s11565_s17 + $0x88] sm:$0xff] }
 0x94e   :  { %v7256_v54 = vpack.c.bf16 %v501_v25, %v500_v48  ;;  %v11643_v25 = vld [vmem:[#allocation14_spill] sm:$0xff] }
 0x950   :  { %7239 = vmatpush1.bf16.msra.mxu1 %v7238_v44  ;;  %7211 = vmatpush1.bf16.msra.mxu0 %v7210_v10  ;;  %v7222_v44 = vpack.c.bf16 %v479_v15, %v475_v40 }
 0x951   :  { %7241 = vmatprep.subr.bf16.mxu1 %v7240_v36  ;;  %7213 = vmatprep.subr.bf16.mxu0 %v7212_v43  ;;  %v7288_v36 = vpack.c.bf16 %v533_v49, %v532_v32 }
 0x954   :  { %7243 = vmatpush1.bf16.msra.mxu1 %v7242_v12  ;;  %7215 = vmatpush1.bf16.msra.mxu0 %v7214_v23  ;;  %v8023_v23 = vld [vmem:[%s11568_s20] sm:$0x3f] }
 0x955   :  { %7245 = vmatprep.subr.bf16.mxu1 %v7244_v17 }
 0x9ca   :  { %v2285_v46 = vpop.xlane.xlu1 %2284 }
 0x9cb   :  { %v2291_v60 = vmul.f32 0.0078125, %v2285_v46  ;;  %v2283_v13 = vpop.xlane.xlu0 %2282  ;;  %v465_v46 = vld [vmem:[%s11563_s15 + $0x170] sm:$0xff] }
 0x9cc   :  { %v2290_v29 = vmul.f32 0.0078125, %v2283_v13  ;;  %v468_v13 = vld [vmem:[%s11563_s15 + $0x188] sm:$0xff] }
 0x9cd   :  { %v9320_v41 = vsub.f32 %v9231_v18, %v2291_v60  ;;  %v7246_v60 = vpack.c.bf16 %v465_v46, %v461_v63  ;;  %v666_v63 = vrot.slane %v8023_v23, %v11600_v20 }
 0x9ce   :  { %v9323_v39 = vsub.f32 %v9235_v5, %v2290_v29  ;;  %v2289_v57 = vpop.xlane.xlu1 %2288  ;;  %v472_v29 = vld [vmem:[%s11563_s15 + $0x1a8] sm:$0xff] }
 0x9cf   :  { %v2293_v26 = vmul.f32 0.0078125, %v2289_v57  ;;  %v2287_v3 = vpop.xlane.xlu0 %2286  ;;  %v2299_v6 = vmul.f32 %v9320_v41, %v9320_v41  ;;  %v470_v57 = vld [vmem:[%s11563_s15 + $0x198] sm:$0xff]  ;;  %7247 = vmatpush1.bf16.msra.mxu1 %v7246_v60  ;;  %v928_v60 = vadd.f32 %v8847_v52, %v666_v63  ;;  %v484_v52 = vld [vmem:[%s11565_s17] sm:$0xff] }
 0x9d0   :  { %v2292_v30 = vmul.f32 0.0078125, %v2287_v3  ;;  %v2298_v53 = vmul.f32 %v9323_v39, %v9323_v39  ;;  %v474_v3 = vld [vmem:[%s11563_s15 + $0x1b8] sm:$0xff]  ;;  %v7258_v38 = vpack.c.bf16 %v485_v8, %v484_v52 }
 0x9d1   :  { %v9330_v1 = vsub.f32 %v9240_v37, %v2293_v26  ;;  %2304 = vadd.xlane.f32.xlu1 %v2299_v6  ;;  %v7216_v26 = vpack.c.bf16 %v472_v29, %v468_v13  ;;  %v467_v6 = vld [vmem:[%s11563_s15 + $0x180] sm:$0xff]  ;;  %v922_v13 = vadd.f32 %v8843_v47, %v666_v63  ;;  %v662_v29 = vrot.slane %v8023_v23, %v8919_v42  ;;  %v505_v23 = vld [vmem:[%s11565_s17 + $0xa8] sm:$0xff]  ;;  %v491_v8 = vld [vmem:[%s11565_s17 + $0x38] sm:$0xff] }
 0x9d2   :  { %v9333_v2 = vsub.f32 %v9243_v11, %v2292_v30  ;;  %2302 = vadd.xlane.f32.xlu0 %v2298_v53  ;;  %v471_v30 = vld [vmem:[%s11563_s15 + $0x1a0] sm:$0xff]  ;;  %v7248_v53 = vpack.c.bf16 %v474_v3, %v470_v57  ;;  %v2327_v3 = vadd.f32 1.0, %v928_v60  ;;  %v537_v60 = vld [vmem:[%s11565_s17 + $0x1a8] sm:$0xff] }
 0x9d3   :  { %v2301_v50 = vmul.f32 %v9330_v1, %v9330_v1  ;;  %7217 = vmatprep.subr.bf16.mxu0 %v7216_v26  ;;  %v841_v47 = vadd.f32 %v8865_v7, %v662_v29  ;;  %v847_v32 = vadd.f32 %v11643_v25, %v662_v29  ;;  %v511_v25 = vld [vmem:[%s11565_s17 + $0xd8] sm:$0xff] }
 0x9d4   :  { %v2300_v59 = vmul.f32 %v9333_v2, %v9333_v2  ;;  %7249 = vmatprep.subr.bf16.mxu1 %v7248_v53 }
 0x9d5   :  { %2308 = vadd.xlane.f32.xlu1 %v2301_v50  ;;  %v7218_v50 = vpack.c.bf16 %v471_v30, %v467_v6  ;;  %v934_v6 = vadd.f32 %v8851_v56, %v666_v63  ;;  %v940_v30 = vadd.f32 %v8855_v61, %v666_v63  ;;  %v516_v56 = vld [vmem:[%s11565_s17 + $0x100] sm:$0xff]  ;;  %v517_v61 = vld [vmem:[%s11565_s17 + $0x108] sm:$0xff] }
 0x9d6   :  { %2306 = vadd.xlane.f32.xlu0 %v2300_v59  ;;  %v469_v59 = vld [vmem:[%s11563_s15 + $0x190] sm:$0xff]  ;;  %v536_v63 = vld [vmem:[%s11565_s17 + $0x1a0] sm:$0xff] }
 0x9d7   :  { %v7250_v0 = vpack.c.bf16 %v473_v9, %v469_v59  ;;  %7219 = vmatpush1.bf16.msra.mxu0 %v7218_v50  ;;  %v2326_v50 = vadd.f32 1.0, %v922_v13  ;;  %v2328_v58 = vadd.f32 1.0, %v934_v6  ;;  %v2329_v7 = vadd.f32 1.0, %v940_v30  ;;  %v488_v13 = vld [vmem:[%s11565_s17 + $0x20] sm:$0xff]  ;;  %v521_v6 = vld [vmem:[%s11565_s17 + $0x128] sm:$0xff] }
 0x9d8   :  { %7221 = vmatprep.subr.bf16.mxu0 %v7220_v35 }
 0x9d9   :  { %7251 = vmatpush1.bf16.msra.mxu1 %v7250_v0 }
 0x9da   :  { %7253 = vmatprep.subr.bf16.mxu1 %v7252_v16 }
 0x9db   :  { %7223 = vmatpush1.bf16.msra.mxu0 %v7222_v44  ;;  %v7290_v44 = vpack.c.bf16 %v517_v61, %v516_v56 }
 0x9dc   :  { %7257 = vmatprep.subr.bf16.mxu0 %v7256_v54 }
 0x9dd   :  { %7255 = vmatpush1.bf16.msra.mxu1 %v7254_v33  ;;  %v853_v33 = vadd.f32 %v11642_v55, %v662_v29  ;;  %v525_v55 = vld [vmem:[%s11565_s17 + $0x148] sm:$0xff] }
 0x9de   :  { %7289 = vmatprep.subr.bf16.mxu1 %v7288_v36 }
 0xa5e   :  { %v2305_v10 = vpop.xlane.xlu1 %2304 }
 0xa5f   :  { %v2311_v27 = vmul.f32 0.0078125, %v2305_v10  ;;  %v2303_v22 = vpop.xlane.xlu0 %2302  ;;  %v534_v10 = vld [vmem:[%s11565_s17 + $0x190] sm:$0xff] }
 0xa60   :  { %v2310_v12 = vmul.f32 0.0078125, %v2303_v22  ;;  %v535_v22 = vld [vmem:[%s11565_s17 + $0x198] sm:$0xff] }
 0xa61   :  { %v2315_v28 = vadd.f32 1e-06, %v2311_v27 }
 0xa62   :  { %v2314_v21 = vadd.f32 1e-06, %v2310_v12  ;;  %v2309_v43 = vpop.xlane.xlu1 %2308  ;;  %v486_v12 = vld [vmem:[%s11565_s17 + $0x10] sm:$0xff] }
 0xa63   :  { %7869 = vrsqrt.f32 %v2315_v28  ;;  %v2313_v62 = vmul.f32 0.0078125, %v2309_v43  ;;  %v2307_v51 = vpop.xlane.xlu0 %2306  ;;  %v487_v28 = vld [vmem:[%s11565_s17 + $0x18] sm:$0xff] }
 0xa64   :  { %7871 = vrsqrt.f32 %v2314_v21  ;;  %v2312_v4 = vmul.f32 0.0078125, %v2307_v51  ;;  %v7292_v21 = vpack.c.bf16 %v535_v22, %v534_v10  ;;  %v7262_v43 = vpack.c.bf16 %v487_v28, %v486_v12  ;;  %v519_v51 = vld [vmem:[%s11565_s17 + $0x118] sm:$0xff]  ;;  %v512_v28 = vld [vmem:[%s11565_s17 + $0xe0] sm:$0xff] }
 0xa65   :  { %v2317_v17 = vadd.f32 1e-06, %v2313_v62  ;;  %v518_v62 = vld [vmem:[%s11565_s17 + $0x110] sm:$0xff]  ;;  %v527_v22 = vld [vmem:[%s11565_s17 + $0x158] sm:$0xff] }
 0xa66   :  { %v2316_v46 = vadd.f32 1e-06, %v2312_v4  ;;  %v7294_v4 = vpack.c.bf16 %v519_v51, %v518_v62  ;;  %v545_v51 = vld [vmem:[%s11565_s17 + $0x1e8] sm:$0xff] }
 0xa67   :  { %7873 = vrsqrt.f32 %v2317_v17  ;;  %v504_v17 = vld [vmem:[%s11565_s17 + $0xa0] sm:$0xff] }
 0xa68   :  { %7875 = vrsqrt.f32 %v2316_v46  ;;  %v7264_v46 = vpack.c.bf16 %v505_v23, %v504_v17  ;;  %v497_v17 = vld [vmem:[%s11565_s17 + $0x68] sm:$0xff] }
 0xa6d   :  { %v7870_v57 = vpop.eup %7869 }
 0xa6e   :  { %v7872_v26 = vpop.eup %7871  ;;  %v2323_v53 = vmul.f32 %v7870_v57, %v9320_v41  ;;  %v7296_v57 = vpack.c.bf16 %v537_v60, %v536_v63  ;;  %v529_v60 = vld [vmem:[%s11565_s17 + $0x168] sm:$0xff] }
 0xa6f   :  { %v2322_v59 = vmul.f32 %v7872_v26, %v9323_v39  ;;  %v11641_v39 = vld [vmem:[#allocation13_spill] sm:$0xff] }
 0xa70   :  { %v2331_v9 = vmul.f32 %v2327_v3, %v2323_v53  ;;  %v835_v0 = vadd.f32 %v11641_v39, %v662_v29  ;;  %v489_v29 = vld [vmem:[%s11565_s17 + $0x28] sm:$0xff]  ;;  %v520_v3 = vld [vmem:[%s11565_s17 + $0x120] sm:$0xff]  ;;  %v506_v53 = vld [vmem:[%s11565_s17 + $0xb0] sm:$0xff] }
 0xa71   :  { %v7874_v41 = vpop.eup %7873  ;;  %v2330_v14 = vmul.f32 %v2326_v50, %v2322_v59  ;;  %v7266_v26 = vpack.c.bf16 %v489_v29, %v488_v13  ;;  %v7298_v30 = vpack.c.bf16 %v521_v6, %v520_v3  ;;  %v507_v50 = vld [vmem:[%s11565_s17 + $0xb8] sm:$0xff]  ;;  %v538_v59 = vld [vmem:[%s11565_s17 + $0x1b0] sm:$0xff] }
 0xa72   :  { %v7876_v31 = vpop.eup %7875  ;;  %v2335_v35 = vadd.f32 %v2331_v9, %v841_v47  ;;  %v2325_v16 = vmul.f32 %v7874_v41, %v9330_v1  ;;  %v502_v1 = vld [vmem:[%s11565_s17 + $0x90] sm:$0xff]  ;;  %v7268_v52 = vpack.c.bf16 %v507_v50, %v506_v53  ;;  %v539_v47 = vld [vmem:[%s11565_s17 + $0x1b8] sm:$0xff] }
 0xa73   :  { %v2334_v40 = vadd.f32 %v2330_v14, %v835_v0  ;;  %v2324_v15 = vmul.f32 %v7876_v31, %v9333_v2  ;;  %v503_v2 = vld [vmem:[%s11565_s17 + $0x98] sm:$0xff]  ;;  %v490_v9 = vld [vmem:[%s11565_s17 + $0x30] sm:$0xff]  ;;  %v7300_v56 = vpack.c.bf16 %v539_v47, %v538_v59  ;;  %v508_v14 = vld [vmem:[%s11565_s17 + $0xc0] sm:$0xff] }
 0xa74   :  { %v2333_v48 = vmul.f32 %v2329_v7, %v2325_v16  ;;  %v7260_v27 = vpack.c.bf16 %v503_v2, %v502_v1  ;;  %v7270_v61 = vpack.c.bf16 %v491_v8, %v490_v9  ;;  %v522_v41 = vld [vmem:[%s11565_s17 + $0x130] sm:$0xff]  ;;  %v523_v39 = vld [vmem:[%s11565_s17 + $0x138] sm:$0xff]  ;;  %v509_v31 = vld [vmem:[%s11565_s17 + $0xc8] sm:$0xff] }
 0xa75   :  { %2424 = vmatmul.mubr.f32.vlgmr.msra.gmra.mrb[38].mxu0 %v2334_v40  ;;  %2513 = vmatmul.mubr.f32.vlgmr.msra.gmra.mrb[32].mxu1 %v2334_v40  ;;  %v2332_v54 = vmul.f32 %v2328_v58, %v2324_v15  ;;  %v7302_v0 = vpack.c.bf16 %v523_v39, %v522_v41  ;;  %v540_v58 = vld [vmem:[%s11565_s17 + $0x1c0] sm:$0xff]  ;;  %v7272_v7 = vpack.c.bf16 %v509_v31, %v508_v14  ;;  %v493_v40 = vld [vmem:[%s11565_s17 + $0x48] sm:$0xff]  ;;  %v495_v1 = vld [vmem:[%s11565_s17 + $0x58] sm:$0xff] }
 0xa76   :  { %2429 = vmatprep.mubr.f32.mxu0 %v11640_v24  ;;  %2518 = vmatprep.mubr.f32.mxu1 %v11640_v24  ;;  %v2337_v49 = vadd.f32 %v2333_v48, %v853_v33  ;;  %v492_v16 = vld [vmem:[%s11565_s17 + $0x40] sm:$0xff]  ;;  %v510_v48 = vld [vmem:[%s11565_s17 + $0xd0] sm:$0xff]  ;;  %v547_v3 = vld [vmem:[%s11565_s17 + $0x1f8] sm:$0xff] }
 0xa77   :  { %v2336_v36 = vadd.f32 %v2332_v54, %v847_v32  ;;  %7259 = vmatpush3.bf16.msra.mxu0 %v7258_v38  ;;  %7291 = vmatpush3.bf16.msra.mxu1 %v7290_v44  ;;  %v7274_v38 = vpack.c.bf16 %v493_v40, %v492_v16  ;;  %v524_v44 = vld [vmem:[%s11565_s17 + $0x140] sm:$0xff]  ;;  %v542_v32 = vld [vmem:[%s11565_s17 + $0x1d0] sm:$0xff]  ;;  %v7276_v54 = vpack.c.bf16 %v511_v25, %v510_v48  ;;  %v499_v50 = vld [vmem:[%s11565_s17 + $0x78] sm:$0xff] }
 0xa78   :  { %7261 = vmatprep.subr.bf16.mxu0 %v7260_v27  ;;  %7293 = vmatprep.subr.bf16.mxu1 %v7292_v21  ;;  %v7306_v33 = vpack.c.bf16 %v525_v55, %v524_v44  ;;  %v526_v27 = vld [vmem:[%s11565_s17 + $0x150] sm:$0xff]  ;;  %v513_v21 = vld [vmem:[%s11565_s17 + $0xe8] sm:$0xff]  ;;  %v531_v47 = vld [vmem:[%s11565_s17 + $0x178] sm:$0xff] }
 0xa79   :  { %2430 = vmatmul.mubr.f32.gmra.mrb[40].mxu0 %v2335_v35  ;;  %2519 = vmatmul.mubr.f32.gmra.mrb[34].mxu1 %v2335_v35  ;;  %v541_v35 = vld [vmem:[%s11565_s17 + $0x1c8] sm:$0xff]  ;;  %v7310_v12 = vpack.c.bf16 %v527_v22, %v526_v27  ;;  %v7280_v62 = vpack.c.bf16 %v513_v21, %v512_v28  ;;  %v514_v13 = vld [vmem:[%s11565_s17 + $0xf0] sm:$0xff]  ;;  %v483_v14 = vld [vmem:[%s11564_s16] sm:$0xf] }
 0xa7a   :  { %2435 = vmatprep.mubr.f32.mxu0 %v11640_v24  ;;  %2524 = vmatprep.mubr.f32.mxu1 %v11640_v24  ;;  %v7304_v15 = vpack.c.bf16 %v541_v35, %v540_v58  ;;  %v498_v53 = vld [vmem:[%s11565_s17 + $0x70] sm:$0xff]  ;;  %v5881_v8 = vld [vmem:[%s11567_s19 + $0x308] sm:$0xff]  ;;  %v9701_v40 = vrot.slane %v483_v14, %v8919_v42  ;;  %v9724_v21 = vld [vmem:[%s11567_s19 + $0x300] sm:$0xff] }
 0xa7b   :  { %7263 = vmatpush3.bf16.msra.mxu0 %v7262_v43  ;;  %7295 = vmatpush3.bf16.msra.mxu1 %v7294_v4  ;;  %v544_v43 = vld [vmem:[%s11565_s17 + $0x1e0] sm:$0xff]  ;;  %v530_v59 = vld [vmem:[%s11565_s17 + $0x170] sm:$0xff]  ;;  %v5889_v39 = vld [vmem:[%s11567_s19 + $0x348] sm:$0xff] }
 0xa7c   :  { %7265 = vmatprep.subr.bf16.mxu0 %v7264_v46  ;;  %7297 = vmatprep.subr.bf16.mxu1 %v7296_v57  ;;  %v496_v4 = vld [vmem:[%s11565_s17 + $0x60] sm:$0xff]  ;;  %v7312_v23 = vpack.c.bf16 %v545_v51, %v544_v43  ;;  %v515_v57 = vld [vmem:[%s11565_s17 + $0xf8] sm:$0xff]  ;;  %v7318_v9 = vpack.c.bf16 %v531_v47, %v530_v59  ;;  %v11645_v35 = vld [vmem:[#allocation6_spill] sm:$0xff] }
 0xa7d   :  { %2436 = vmatmul.mubr.f32.gmra.mrb[42].mxu0 %v2336_v36  ;;  %2525 = vmatmul.mubr.f32.gmra.mrb[36].mxu1 %v2336_v36  ;;  %v494_v36 = vld [vmem:[%s11565_s17 + $0x50] sm:$0xff]  ;;  %v7282_v63 = vpack.c.bf16 %v497_v17, %v496_v4  ;;  %v528_v46 = vld [vmem:[%s11565_s17 + $0x160] sm:$0xff]  ;;  %v7284_v6 = vpack.c.bf16 %v515_v57, %v514_v13  ;;  %v9698_v16 = vrot.slane %v483_v14, %v11645_v35 }
 0xa7e   :  { %2441 = vmatprep.mubr.f32.mxu0 %v11640_v24  ;;  %2530 = vmatprep.mubr.f32.mxu1 %v11640_v24  ;;  %v7278_v10 = vpack.c.bf16 %v495_v1, %v494_v36  ;;  %v7314_v29 = vpack.c.bf16 %v529_v60, %v528_v46  ;;  %v11644_v31 = vld [vmem:[#allocation5_spill] sm:$0xff]  ;;  %v9729_v43 = vld [vmem:[%s11567_s19 + $0x330] sm:$0xff] }
 0xa7f   :  { %7267 = vmatpush3.bf16.msra.mxu0 %v7266_v26  ;;  %7299 = vmatpush3.bf16.msra.mxu1 %v7298_v30  ;;  %v546_v26 = vld [vmem:[%s11565_s17 + $0x1f0] sm:$0xff]  ;;  %v9692_v58 = vrot.slane %v483_v14, %v11644_v31  ;;  %v9752_v13 = vld [vmem:[%s11567_s19 + $0x340] sm:$0xff] }
 0xa80   :  { %7269 = vmatprep.subr.bf16.mxu0 %v7268_v52  ;;  %7301 = vmatprep.subr.bf16.mxu1 %v7300_v56  ;;  %v7316_v30 = vpack.c.bf16 %v547_v3, %v546_v26  ;;  %v7286_v52 = vpack.c.bf16 %v499_v50, %v498_v53  ;;  %v5887_v56 = vld [vmem:[%s11567_s19 + $0x338] sm:$0xff]  ;;  %v9747_v60 = vld [vmem:[%s11567_s19 + $0x310] sm:$0xff]  ;;  %v7322_v3 = vpack.c.bf16 %v9729_v43, %v9724_v21 }
 0xa81   :  { %2442 = vmatmul.mubr.f32.gmra.mrb[44].mxu0 %v2337_v49  ;;  %2531 = vmatmul.mubr.f32.gmra.mrb[38].mxu1 %v2337_v49  ;;  %v543_v49 = vld [vmem:[%s11565_s17 + $0x1d8] sm:$0xff]  ;;  %v7320_v41 = vpack.c.bf16 %v5887_v56, %v5881_v8  ;;  %v9781_v56 = vld [vmem:[%s11567_s19 + $0x3a8] sm:$0xff] }
 0xa82   :  { %v7308_v2 = vpack.c.bf16 %v543_v49, %v542_v32  ;;  %v9776_v8 = vld [vmem:[%s11567_s19 + $0x378] sm:$0xff] }
 0xa83   :  { %7271 = vmatpush3.bf16.msra.mxu0 %v7270_v61  ;;  %7303 = vmatpush3.bf16.msra.mxu1 %v7302_v0  ;;  %v5883_v61 = vld [vmem:[%s11567_s19 + $0x318] sm:$0xff] }
 0xa84   :  { %7273 = vmatprep.subr.bf16.mxu0 %v7272_v7  ;;  %7305 = vmatprep.subr.bf16.mxu1 %v7304_v15  ;;  %v7352_v0 = vpack.c.bf16 %v5889_v39, %v5883_v61  ;;  %v9695_v7 = vrot.slane %v483_v14, %v8901_v45  ;;  %v9793_v14 = vld [vmem:[%s11567_s19 + $0x360] sm:$0xff] }
 0xa87   :  { %7275 = vmatpush3.bf16.msra.mxu0 %v7274_v38  ;;  %7307 = vmatpush3.bf16.msra.mxu1 %v7306_v33 }
 0xa88   :  { %7277 = vmatprep.subr.bf16.mxu0 %v7276_v54  ;;  %7309 = vmatprep.subr.bf16.mxu1 %v7308_v2 }
 0xa8b   :  { %7279 = vmatpush3.bf16.msra.mxu0 %v7278_v10  ;;  %7311 = vmatpush3.bf16.msra.mxu1 %v7310_v12 }
 0xa8c   :  { %7281 = vmatprep.subr.bf16.mxu0 %v7280_v62  ;;  %7313 = vmatprep.subr.bf16.mxu1 %v7312_v23 }
 0xa8f   :  { %7283 = vmatpush3.bf16.msra.mxu0 %v7282_v63  ;;  %7315 = vmatpush3.bf16.msra.mxu1 %v7314_v29 }
 0xa90   :  { %7285 = vmatprep.subr.bf16.mxu0 %v7284_v6  ;;  %7317 = vmatprep.subr.bf16.mxu1 %v7316_v30  ;;  %v9760_v6 = vld [vmem:[%s11567_s19 + $0x368] sm:$0xff] }
 0xa93   :  { %7287 = vmatpush3.bf16.msra.mxu0 %v7286_v52  ;;  %7319 = vmatpush3.bf16.msra.mxu1 %v7318_v9  ;;  %v9771_v9 = vld [vmem:[%s11567_s19 + $0x398] sm:$0xff] }
 0xa94   :  { %7321 = vmatprep.subr.bf16.mxu0 %v7320_v41  ;;  %7353 = vmatprep.subr.bf16.mxu1 %v7352_v0  ;;  %v7354_v0 = vpack.c.bf16 %v9752_v13, %v9747_v60  ;;  %v5912_v60 = vld [vmem:[%s11567_s19 + $0x400] sm:$0xff] }
 0xb48   :  { %v2425_v15 = vpop.f32.mrb[38].mxu0  ;;  %v2514_v38 = vpop.f32.mrb[32].mxu1 }
 0xb49   :  { %v9704_v44 = vadd.f32 %v2425_v15, %v9692_v58  ;;  %v9707_v55 = vadd.f32 %v2514_v38, %v9695_v7  ;;  %v2427_v33 = vpop.f32.mrb[39].mxu0  ;;  %v2516_v48 = vpop.f32.mrb[33].mxu1  ;;  %v9798_v15 = vld [vmem:[%s11567_s19 + $0x390] sm:$0xff] }
 0xb4a   :  { %v9710_v25 = vadd.f32 %v2427_v33, %v9698_v16  ;;  %v9713_v32 = vadd.f32 %v2516_v48, %v9701_v40 }
 0xb4b   :  { %v2553_v54 = vmul.f32 0.044715, %v9704_v44  ;;  %v2555_v49 = vmul.f32 0.044715, %v9707_v55 }
 0xb4c   :  { %v2554_v36 = vmul.f32 0.044715, %v9710_v25  ;;  %v2556_v1 = vmul.f32 0.044715, %v9713_v32  ;;  %v2431_v2 = vpop.f32.mrb[40].mxu0  ;;  %v2520_v10 = vpop.f32.mrb[34].mxu1 }
 0xb4d   :  { %v2569_v27 = vmul.f32 %v2553_v54, %v9704_v44  ;;  %v2571_v22 = vmul.f32 %v2555_v49, %v9707_v55  ;;  %v2433_v12 = vpop.f32.mrb[41].mxu0  ;;  %v2522_v28 = vpop.f32.mrb[35].mxu1  ;;  %v9734_v4 = vadd.f32 %v2431_v2, %v9692_v58  ;;  %v9765_v50 = vadd.f32 %v2520_v10, %v9695_v7 }
 0xb4e   :  { %v2570_v62 = vmul.f32 %v2554_v36, %v9710_v25  ;;  %v2572_v51 = vmul.f32 %v2556_v1, %v9713_v32  ;;  %v9737_v17 = vadd.f32 %v2433_v12, %v9698_v16  ;;  %v9742_v46 = vadd.f32 %v2522_v28, %v9701_v40 }
 0xb4f   :  { %v2585_v23 = vmul.f32 %v2569_v27, %v9704_v44  ;;  %v2587_v63 = vmul.f32 %v2571_v22, %v9707_v55  ;;  %v2557_v61 = vmul.f32 0.044715, %v9734_v4  ;;  %v2559_v22 = vmul.f32 0.044715, %v9765_v50 }
 0xb50   :  { %v2437_v29 = vpop.f32.mrb[42].mxu0  ;;  %v2526_v57 = vpop.f32.mrb[36].mxu1  ;;  %v2586_v26 = vmul.f32 %v2570_v62, %v9710_v25  ;;  %v2588_v47 = vmul.f32 %v2572_v51, %v9713_v32  ;;  %v2558_v41 = vmul.f32 0.044715, %v9737_v17  ;;  %v2560_v33 = vmul.f32 0.044715, %v9742_v46 }
 0xb51   :  { %v2601_v30 = vadd.f32 %v2585_v23, %v9704_v44  ;;  %v2603_v53 = vadd.f32 %v2587_v63, %v9707_v55  ;;  %v2439_v59 = vpop.f32.mrb[43].mxu0  ;;  %v2528_v52 = vpop.f32.mrb[37].mxu1  ;;  %v9786_v39 = vadd.f32 %v2437_v29, %v9692_v58  ;;  %v9808_v36 = vadd.f32 %v2526_v57, %v9695_v7 }
 0xb52   :  { %v9802_v48 = vadd.f32 %v2439_v59, %v9698_v16  ;;  %v9805_v54 = vadd.f32 %v2528_v52, %v9701_v40  ;;  %v2602_v10 = vadd.f32 %v2586_v26, %v9710_v25  ;;  %v2604_v62 = vadd.f32 %v2588_v47, %v9713_v32 }
 0xb53   :  { %v2617_v38 = vmul.f32 0.7978846, %v2601_v30  ;;  %v2619_v49 = vmul.f32 0.7978846, %v2603_v53  ;;  %v9820_v63 = vmul.f32 0.5, %v9704_v44  ;;  %v2573_v26 = vmul.f32 %v2557_v61, %v9734_v4 }
 0xb54   :  { %v2443_v1 = vpop.f32.mrb[44].mxu0  ;;  %v2532_v2 = vpop.f32.mrb[38].mxu1  ;;  %v2561_v29 = vmul.f32 0.044715, %v9786_v39  ;;  %v2562_v57 = vmul.f32 0.044715, %v9802_v48  ;;  %v2574_v30 = vmul.f32 %v2558_v41, %v9737_v17  ;;  %v2576_v53 = vmul.f32 %v2560_v33, %v9742_v46 }
 0xb55   :  { %v2445_v12 = vpop.f32.mrb[45].mxu0  ;;  %v2534_v28 = vpop.f32.mrb[39].mxu1  ;;  %7877 = vtanh.f32 %v2617_v38  ;;  %v2564_v59 = vmul.f32 0.044715, %v9805_v54  ;;  %v2563_v52 = vmul.f32 0.044715, %v9808_v36  ;;  %v9830_v47 = vadd.f32 %v2443_v1, %v9692_v58 }
 0xb56   :  { %7879 = vtanh.f32 %v2619_v49  ;;  %v2618_v44 = vmul.f32 0.7978846, %v2602_v10  ;;  %v2575_v38 = vmul.f32 %v2559_v22, %v9765_v50  ;;  %v9834_v20 = vadd.f32 %v2532_v2, %v9695_v7 }
 0xb57   :  { %v9837_v61 = vadd.f32 %v2445_v12, %v9698_v16  ;;  %v2620_v41 = vmul.f32 0.7978846, %v2604_v62  ;;  %v9840_v33 = vmul.f32 0.5, %v9707_v55  ;;  %v2577_v49 = vmul.f32 %v2561_v29, %v9786_v39 }
 0xb58   :  { %v2578_v23 = vmul.f32 %v2562_v57, %v9802_v48  ;;  %7881 = vtanh.f32 %v2618_v44  ;;  %v2580_v58 = vmul.f32 %v2564_v59, %v9805_v54  ;;  %v9846_v1 = vadd.f32 %v2534_v28, %v9701_v40 }
 0xb59   :  { %7883 = vtanh.f32 %v2620_v41  ;;  %v2590_v7 = vmul.f32 %v2574_v30, %v9737_v17  ;;  %v2579_v16 = vmul.f32 %v2563_v52, %v9808_v36  ;;  %v2565_v2 = vmul.f32 0.044715, %v9830_v47 }
 0xb5a   :  { %v2592_v55 = vmul.f32 %v2576_v53, %v9742_v46  ;;  %v2589_v10 = vmul.f32 %v2573_v26, %v9734_v4  ;;  %v2567_v22 = vmul.f32 0.044715, %v9834_v20  ;;  %v2566_v12 = vmul.f32 0.044715, %v9837_v61 }
 0xb5b   :  { %v2606_v62 = vadd.f32 %v2590_v7, %v9737_v17  ;;  %v2591_v40 = vmul.f32 %v2575_v38, %v9765_v50  ;;  %v2538_v28 = vmul.f32 0.5, %v9710_v25  ;;  %v2594_v30 = vmul.f32 %v2578_v23, %v9802_v48 }
 0xb5c   :  { %v2608_v29 = vadd.f32 %v2592_v55, %v9742_v46  ;;  %v2605_v57 = vadd.f32 %v2589_v10, %v9734_v4  ;;  %v2568_v53 = vmul.f32 0.044715, %v9846_v1  ;;  %v2596_v52 = vmul.f32 %v2580_v58, %v9805_v54 }
 0xb5d   :  { %v2622_v59 = vmul.f32 0.7978846, %v2606_v62  ;;  %v2607_v26 = vadd.f32 %v2591_v40, %v9765_v50  ;;  %v2581_v41 = vmul.f32 %v2565_v2, %v9830_v47  ;;  %v2610_v25 = vadd.f32 %v2594_v30, %v9802_v48 }
 0xb5e   :  { %v2624_v7 = vmul.f32 0.7978846, %v2608_v29  ;;  %v2621_v38 = vmul.f32 0.7978846, %v2605_v57  ;;  %v2582_v55 = vmul.f32 %v2566_v12, %v9837_v61  ;;  %v2612_v23 = vadd.f32 %v2596_v52, %v9805_v54 }
 0xb5f   :  { %v7878_v44 = vpop.eup %7877  ;;  %7885 = vtanh.f32 %v2622_v59  ;;  %v2623_v10 = vmul.f32 0.7978846, %v2607_v26  ;;  %v2540_v62 = vmul.f32 0.5, %v9713_v32  ;;  %v2626_v40 = vmul.f32 0.7978846, %v2610_v25 }
 0xb60   :  { %v7880_v51 = vpop.eup %7879  ;;  %7887 = vtanh.f32 %v2624_v7  ;;  %v2593_v58 = vmul.f32 %v2577_v49, %v9786_v39  ;;  %v2584_v27 = vmul.f32 %v2568_v53, %v9846_v1  ;;  %v2649_v2 = vadd.f32 1.0, %v7878_v44  ;;  %v9878_v53 = vld [vmem:[%s11567_s19 + $0x370] sm:$0xff] }
 0xb61   :  { %7889 = vtanh.f32 %v2621_v38  ;;  %v2628_v29 = vmul.f32 0.7978846, %v2612_v23  ;;  %v2583_v30 = vmul.f32 %v2567_v22, %v9834_v20  ;;  %v2595_v59 = vmul.f32 %v2579_v16, %v9808_v36  ;;  %v9890_v16 = vld [vmem:[%s11567_s19 + $0x3c8] sm:$0xff]  ;;  %v9902_v23 = vld [vmem:[%s11567_s19 + $0x3d8] sm:$0xff] }
 0xb62   :  { %v7882_v57 = vpop.eup %7881  ;;  %7891 = vtanh.f32 %v2623_v10  ;;  %v2609_v12 = vadd.f32 %v2593_v58, %v9786_v39  ;;  %v2651_v32 = vadd.f32 1.0, %v7880_v51  ;;  %v2598_v7 = vmul.f32 %v2582_v55, %v9837_v61  ;;  %v9885_v51 = vld [vmem:[%s11567_s19 + $0x3a0] sm:$0xff]  ;;  %v9895_v55 = vld [vmem:[%s11567_s19 + $0x3f8] sm:$0xff] }
 0xb63   :  { %v7884_v26 = vpop.eup %7883  ;;  %v2650_v52 = vadd.f32 1.0, %v7882_v57  ;;  %7893 = vtanh.f32 %v2626_v40  ;;  %v2611_v22 = vadd.f32 %v2595_v59, %v9808_v36  ;;  %v2665_v25 = vmul.f32 %v2649_v2, %v9820_v63  ;;  %v9907_v40 = vld [vmem:[%s11567_s19 + $0x408] sm:$0xff] }
 0xb64   :  { %v2652_v49 = vadd.f32 1.0, %v7884_v26  ;;  %7895 = vtanh.f32 %v2628_v29  ;;  %v2625_v44 = vmul.f32 0.7978846, %v2609_v12  ;;  %v2614_v10 = vadd.f32 %v2598_v7, %v9837_v61 }
 0xb65   :  { %v2666_v38 = vmul.f32 %v2650_v52, %v2538_v28  ;;  %v2600_v28 = vmul.f32 %v2584_v27, %v9846_v1  ;;  %v2627_v58 = vmul.f32 0.7978846, %v2611_v22  ;;  %v2597_v2 = vmul.f32 %v2581_v41, %v9830_v47  ;;  %v9914_v27 = vld [vmem:[%s11567_s19 + $0x3c0] sm:$0xff] }
 0xb66   :  { %v2668_v63 = vmul.f32 %v2652_v49, %v2540_v62  ;;  %7897 = vtanh.f32 %v2625_v44  ;;  %v2667_v29 = vmul.f32 %v2651_v32, %v9840_v33  ;;  %v9919_v62 = vld [vmem:[%s11567_s19 + $0x3f0] sm:$0xff]  ;;  %v2630_v57 = vmul.f32 0.7978846, %v2614_v10 }
 0xb67   :  { %2751 = vmatprep.mubr.f32.mxu0 %v2666_v38  ;;  %v2616_v12 = vadd.f32 %v2600_v28, %v9846_v1  ;;  %v2599_v59 = vmul.f32 %v2583_v30, %v9834_v20  ;;  %v7358_v33 = vpack.c.bf16 %v9885_v51, %v9878_v53  ;;  %v7328_v41 = vpack.c.bf16 %v9895_v55, %v9890_v16 }
 0xb68   :  { %2836 = vmatprep.mubr.f32.mxu1 %v2668_v63  ;;  %2752 = vmatmul.mubr.f32.vlgmr.msra.gmra.mrb[46].mxu0 %v2665_v25  ;;  %7899 = vtanh.f32 %v2627_v58  ;;  %v2613_v26 = vadd.f32 %v2597_v2, %v9830_v47  ;;  %v7360_v30 = vpack.c.bf16 %v9907_v40, %v9902_v23  ;;  %v2542_v53 = vmul.f32 0.5, %v9737_v17  ;;  %v5906_v17 = vld [vmem:[%s11567_s19 + $0x3d0] sm:$0xff]  ;;  %v5925_v23 = vld [vmem:[%s11567_s19 + $0x468] sm:$0xff] }
 0xb69   :  { %v7886_v52 = vpop.eup %7885  ;;  %2837 = vmatmul.mubr.f32.vlgmr.msra.gmra.mrb[40].mxu1 %v2667_v29  ;;  %7323 = vmatpush1.bf16.msra.mxu0 %v7322_v3  ;;  %7901 = vtanh.f32 %v2630_v57  ;;  %v2632_v32 = vmul.f32 0.7978846, %v2616_v12  ;;  %v2615_v7 = vadd.f32 %v2599_v59, %v9834_v20  ;;  %v11646_v22 = vpack.c.bf16 %v9771_v9, %v9760_v6  ;;  %v5922_v12 = vld [vmem:[%s11567_s19 + $0x450] sm:$0xff]  ;;  %v5924_v59 = vld [vmem:[%s11567_s19 + $0x460] sm:$0xff] }
 0xb6a   :  { %v7888_v49 = vpop.eup %7887  ;;  %7355 = vmatpush1.bf16.msra.mxu1 %v7354_v0  ;;  %v2654_v44 = vadd.f32 1.0, %v7886_v52  ;;  %v7330_v21 = vpack.c.bf16 %v9919_v62, %v9914_v27  ;;  %v2629_v43 = vmul.f32 0.7978846, %v2613_v26  ;;  %v2544_v38 = vmul.f32 0.5, %v9742_v46  ;;  %v5935_v52 = vld [vmem:[%s11567_s19 + $0x4b8] sm:$0xff] }
 0xb6b   :  { %7325 = vmatprep.subr.bf16.mxu0 %v11646_v22  ;;  %v7890_v3 = vpop.eup %7889  ;;  %v2656_v25 = vadd.f32 1.0, %v7888_v49  ;;  %v11647_v51 = vpack.c.bf16 %v9781_v56, %v9776_v8  ;;  %7903 = vtanh.f32 %v2632_v32  ;;  %v2631_v13 = vmul.f32 0.7978846, %v2615_v7  ;;  %v5917_v8 = vld [vmem:[%s11567_s19 + $0x428] sm:$0xff]  ;;  %v5923_v56 = vld [vmem:[%s11567_s19 + $0x458] sm:$0xff] }
 0xb6c   :  { %v7892_v6 = vpop.eup %7891  ;;  %v2670_v9 = vmul.f32 %v2654_v44, %v2542_v53  ;;  %v2541_v0 = vmul.f32 0.5, %v9734_v4  ;;  %v2653_v46 = vadd.f32 1.0, %v7890_v3  ;;  %7905 = vtanh.f32 %v2629_v43  ;;  %v5919_v4 = vld [vmem:[%s11567_s19 + $0x438] sm:$0xff] }
 0xb6d   :  { %7357 = vmatprep.subr.bf16.mxu1 %v11647_v51  ;;  %v7894_v16 = vpop.eup %7893  ;;  %v2672_v55 = vmul.f32 %v2656_v25, %v2544_v38  ;;  %v2543_v10 = vmul.f32 0.5, %v9765_v50  ;;  %v2655_v28 = vadd.f32 1.0, %v7892_v6  ;;  %v11648_v63 = vpack.c.bf16 %v9798_v15, %v9793_v14  ;;  %v5916_v14 = vld [vmem:[%s11567_s19 + $0x420] sm:$0xff]  ;;  %v5931_v53 = vld [vmem:[%s11567_s19 + $0x498] sm:$0xff] }
 0xb6e   :  { %7907 = vtanh.f32 %v2631_v13  ;;  %v7896_v40 = vpop.eup %7895  ;;  %2756 = vmatprep.mubr.f32.mxu0 %v2670_v9  ;;  %v2669_v58 = vmul.f32 %v2653_v46, %v2541_v0  ;;  %7359 = vmatpush1.bf16.msra.mxu1 %v7358_v33  ;;  %v2546_v50 = vmul.f32 0.5, %v9802_v48  ;;  %v2658_v2 = vadd.f32 1.0, %v7894_v16  ;;  %v5918_v48 = vld [vmem:[%s11567_s19 + $0x430] sm:$0xff]  ;;  %v5928_v51 = vld [vmem:[%s11567_s19 + $0x480] sm:$0xff] }
 0xb6f   :  { %7327 = vmatpush1.bf16.msra.mxu0 %v11648_v63  ;;  %v7362_v29 = vpack.c.bf16 %v5912_v60, %v5906_v17  ;;  %2841 = vmatprep.mubr.f32.mxu1 %v2672_v55  ;;  %v2671_v15 = vmul.f32 %v2655_v28, %v2543_v10  ;;  %v2548_v27 = vmul.f32 0.5, %v9805_v54  ;;  %v2660_v62 = vadd.f32 1.0, %v7896_v40  ;;  %v5934_v17 = vld [vmem:[%s11567_s19 + $0x4b0] sm:$0xff]  ;;  %v5936_v9 = vld [vmem:[%s11567_s19 + $0x4c0] sm:$0xff]  ;;  %v5943_v63 = vld [vmem:[%s11567_s19 + $0x4f8] sm:$0xff] }
 0xb70   :  { %7329 = vmatprep.subr.bf16.mxu0 %v7328_v41  ;;  %v7332_v57 = vpack.c.bf16 %v5923_v56, %v5917_v8  ;;  %v7898_v33 = vpop.eup %7897  ;;  %2757 = vmatmul.mubr.f32.gmra.mrb[48].mxu0 %v2669_v58  ;;  %v2674_v26 = vmul.f32 %v2658_v2, %v2546_v50  ;;  %v7364_v54 = vpack.c.bf16 %v5925_v23, %v5919_v4  ;;  %v5929_v41 = vld [vmem:[%s11567_s19 + $0x488] sm:$0xff]  ;;  %v2545_v7 = vmul.f32 0.5, %v9786_v39  ;;  %v5946_v2 = vld [vmem:[%s11567_s19 + $0x510] sm:$0xff] }
 0xb71   :  { %7361 = vmatprep.subr.bf16.mxu1 %v7360_v30  ;;  %2842 = vmatmul.mubr.f32.gmra.mrb[42].mxu1 %v2671_v15  ;;  %v2676_v32 = vmul.f32 %v2660_v62, %v2548_v27  ;;  %v2657_v49 = vadd.f32 1.0, %v7898_v33  ;;  %v5937_v30 = vld [vmem:[%s11567_s19 + $0x4c8] sm:$0xff]  ;;  %v7334_v22 = vpack.c.bf16 %v5922_v12, %v5916_v14  ;;  %v7366_v43 = vpack.c.bf16 %v5924_v59, %v5918_v48  ;;  %v5948_v62 = vld [vmem:[%s11567_s19 + $0x520] sm:$0xff]  ;;  %v5959_v12 = vld [vmem:[%s11567_s19 + $0x578] sm:$0xff] }
 0xb72   :  { %v7900_v44 = vpop.eup %7899  ;;  %2761 = vmatprep.mubr.f32.mxu0 %v2674_v26  ;;  %7363 = vmatpush1.bf16.msra.mxu1 %v7362_v29  ;;  %v2547_v39 = vmul.f32 0.5, %v9808_v36  ;;  %v2550_v60 = vmul.f32 0.5, %v9837_v61  ;;  %v7368_v6 = vpack.c.bf16 %v5937_v30, %v5931_v53  ;;  %v5930_v36 = vld [vmem:[%s11567_s19 + $0x490] sm:$0xff]  ;;  %v5941_v8 = vld [vmem:[%s11567_s19 + $0x4e8] sm:$0xff]  ;;  %v5947_v61 = vld [vmem:[%s11567_s19 + $0x518] sm:$0xff]  ;;  %v2552_v55 = vmul.f32 0.5, %v9846_v1 }
 0xb73   :  { %7331 = vmatpush1.bf16.msra.mxu0 %v7330_v21  ;;  %v7902_v3 = vpop.eup %7901  ;;  %2846 = vmatprep.mubr.f32.mxu1 %v2676_v32  ;;  %v2673_v38 = vmul.f32 %v2657_v49, %v2545_v7  ;;  %v2659_v25 = vadd.f32 1.0, %v7900_v44  ;;  %v7336_v21 = vpack.c.bf16 %v5935_v52, %v5929_v41  ;;  %v7338_v28 = vpack.c.bf16 %v5934_v17, %v5928_v51  ;;  %v5949_v4 = vld [vmem:[%s11567_s19 + $0x528] sm:$0xff]  ;;  %v5940_v1 = vld [vmem:[%s11567_s19 + $0x4e0] sm:$0xff]  ;;  %v5942_v29 = vld [vmem:[%s11567_s19 + $0x4f0] sm:$0xff] }
 0xb74   :  { %7333 = vmatprep.subr.bf16.mxu0 %v7332_v57  ;;  %v2662_v13 = vadd.f32 1.0, %v7902_v3  ;;  %7365 = vmatprep.subr.bf16.mxu1 %v7364_v54  ;;  %v2549_v40 = vmul.f32 0.5, %v9830_v47  ;;  %v7370_v50 = vpack.c.bf16 %v5936_v9, %v5930_v36  ;;  %v2551_v15 = vmul.f32 0.5, %v9834_v20  ;;  %v5953_v57 = vld [vmem:[%s11567_s19 + $0x548] sm:$0xff]  ;;  %v5955_v20 = vld [vmem:[%s11567_s19 + $0x558] sm:$0xff]  ;;  %v5952_v32 = vld [vmem:[%s11567_s19 + $0x540] sm:$0xff] }
 0xb75   :  { %v7904_v0 = vpop.eup %7903  ;;  %2762 = vmatmul.mubr.f32.gmra.mrb[50].mxu0 %v2673_v38  ;;  %v2675_v46 = vmul.f32 %v2659_v25, %v2547_v39  ;;  %v7340_v27 = vpack.c.bf16 %v5947_v61, %v5941_v8  ;;  %v7372_v59 = vpack.c.bf16 %v5949_v4, %v5943_v63  ;;  %v5961_v33 = vld [vmem:[%s11567_s19 + $0x588] sm:$0xff]  ;;  %v7342_v54 = vpack.c.bf16 %v5946_v2, %v5940_v1  ;;  %v5958_v7 = vld [vmem:[%s11567_s19 + $0x570] sm:$0xff]  ;;  %v5960_v30 = vld [vmem:[%s11567_s19 + $0x580] sm:$0xff] }
 0xb76   :  { %v7906_v56 = vpop.eup %7905  ;;  %v2678_v16 = vmul.f32 %v2662_v13, %v2550_v60  ;;  %v2664_v10 = vadd.f32 1.0, %v7904_v0  ;;  %7367 = vmatpush1.bf16.msra.mxu1 %v7366_v43  ;;  %v7374_v41 = vpack.c.bf16 %v5948_v62, %v5942_v29  ;;  %v7344_v52 = vpack.c.bf16 %v5959_v12, %v5953_v57  ;;  %v5954_v49 = vld [vmem:[%s11567_s19 + $0x550] sm:$0xff]  ;;  %v5965_v44 = vld [vmem:[%s11567_s19 + $0x5a8] sm:$0xff]  ;;  %v5967_v43 = vld [vmem:[%s11567_s19 + $0x5b8] sm:$0xff] }
 0xb77   :  { %7335 = vmatpush1.bf16.msra.mxu0 %v7334_v22  ;;  %2847 = vmatmul.mubr.f32.gmra.mrb[44].mxu1 %v2675_v46  ;;  %v2661_v58 = vadd.f32 1.0, %v7906_v56  ;;  %v7376_v53 = vpack.c.bf16 %v5961_v33, %v5955_v20  ;;  %v5971_v22 = vld [vmem:[%s11567_s19 + $0x5d8] sm:$0xff]  ;;  %v5973_v3 = vld [vmem:[%s11567_s19 + $0x5e8] sm:$0xff]  ;;  %v7346_v38 = vpack.c.bf16 %v5958_v7, %v5952_v32  ;;  %v7378_v39 = vpack.c.bf16 %v5960_v30, %v5954_v49  ;;  %v5970_v51 = vld [vmem:[%s11567_s19 + $0x5d0] sm:$0xff] }
 0xb78   :  { %v7908_v23 = vpop.eup %7907  ;;  %7337 = vmatprep.subr.bf16.mxu0 %v7336_v21  ;;  %2766 = vmatprep.mubr.f32.mxu0 %v2678_v16  ;;  %v2680_v14 = vmul.f32 %v2664_v10, %v2552_v55  ;;  %v7348_v25 = vpack.c.bf16 %v5971_v22, %v5965_v44  ;;  %v5964_v21 = vld [vmem:[%s11567_s19 + $0x5a0] sm:$0xff]  ;;  %v5966_v17 = vld [vmem:[%s11567_s19 + $0x5b0] sm:$0xff]  ;;  %v7380_v60 = vpack.c.bf16 %v5973_v3, %v5967_v43  ;;  %v5891_v36 = vld [vmem:[%s11567_s19 + $0x358] sm:$0xff] }
 0xb79   :  { %v2663_v47 = vadd.f32 1.0, %v7908_v23  ;;  %7369 = vmatprep.subr.bf16.mxu1 %v7368_v6  ;;  %v2677_v48 = vmul.f32 %v2661_v58, %v2549_v40  ;;  %v5972_v13 = vld [vmem:[%s11567_s19 + $0x5e0] sm:$0xff]  ;;  %v5885_v6 = vld [vmem:[%s11567_s19 + $0x328] sm:$0xff]  ;;  %v7350_v9 = vpack.c.bf16 %v5970_v51, %v5964_v21  ;;  %v5890_v61 = vld [vmem:[%s11567_s19 + $0x350] sm:$0xff] }
 0xb7a   :  { %2851 = vmatprep.mubr.f32.mxu1 %v2680_v14  ;;  %7371 = vmatpush1.bf16.msra.mxu1 %v7370_v50  ;;  %v7382_v0 = vpack.c.bf16 %v5972_v13, %v5966_v17  ;;  %v7384_v46 = vpack.c.bf16 %v5891_v36, %v5885_v6  ;;  %v5884_v8 = vld [vmem:[%s11567_s19 + $0x320] sm:$0xff]  ;;  %v5897_v56 = vld [vmem:[%s11567_s19 + $0x388] sm:$0xff]  ;;  %v5903_v16 = vld [vmem:[%s11567_s19 + $0x3b8] sm:$0xff]  ;;  %v669_v13 = vsub.s32 5, %v8522_v34 }
 0xb7b   :  { %v2679_v26 = vmul.f32 %v2663_v47, %v2551_v15  ;;  %7339 = vmatpush1.bf16.msra.mxu0 %v7338_v28  ;;  %7373 = vmatprep.subr.bf16.mxu1 %v7372_v59  ;;  %v7386_v55 = vpack.c.bf16 %v5890_v61, %v5884_v8  ;;  %v5896_v10 = vld [vmem:[%s11567_s19 + $0x380] sm:$0xff]  ;;  %v5902_v28 = vld [vmem:[%s11567_s19 + $0x3b0] sm:$0xff]  ;;  %v7388_v63 = vpack.c.bf16 %v5903_v16, %v5897_v56  ;;  %v5909_v23 = vld [vmem:[%s11567_s19 + $0x3e8] sm:$0xff] }
 0xb7c   :  { %2767 = vmatmul.mubr.f32.gmra.mrb[52].mxu0 %v2677_v48  ;;  %7341 = vmatprep.subr.bf16.mxu0 %v7340_v27  ;;  %v11649_v4 = vld [vmem:[#allocation7_spill] sm:$0xff]  ;;  %v7390_v58 = vpack.c.bf16 %v5902_v28, %v5896_v10  ;;  %v5908_v50 = vld [vmem:[%s11567_s19 + $0x3e0] sm:$0xff]  ;;  %v5921_v29 = vld [vmem:[%s11567_s19 + $0x448] sm:$0xff] }
 0xb7d   :  { %2852 = vmatmul.mubr.f32.gmra.mrb[46].mxu1 %v2679_v26  ;;  %3271 = vmatprep.mubr.f32.mxu0 %v11640_v24  ;;  %v5915_v40 = vld [vmem:[%s11567_s19 + $0x418] sm:$0xff]  ;;  %v5914_v1 = vld [vmem:[%s11567_s19 + $0x410] sm:$0xff]  ;;  %v5920_v47 = vld [vmem:[%s11567_s19 + $0x440] sm:$0xff] }
 0xb7e   :  { %3360 = vmatprep.mubr.f32.mxu1 %v11640_v24  ;;  %7375 = vmatpush1.bf16.msra.mxu1 %v7374_v41  ;;  %v7392_v2 = vpack.c.bf16 %v5915_v40, %v5909_v23  ;;  %v5927_v14 = vld [vmem:[%s11567_s19 + $0x478] sm:$0xff]  ;;  %v7394_v15 = vpack.c.bf16 %v5914_v1, %v5908_v50  ;;  %v5926_v27 = vld [vmem:[%s11567_s19 + $0x470] sm:$0xff]  ;;  %v5933_v57 = vld [vmem:[%s11567_s19 + $0x4a8] sm:$0xff] }
 0xb7f   :  { %7343 = vmatpush1.bf16.msra.mxu0 %v7342_v54  ;;  %7377 = vmatprep.subr.bf16.mxu1 %v7376_v53  ;;  %v7396_v62 = vpack.c.bf16 %v5927_v14, %v5921_v29  ;;  %v5939_v12 = vld [vmem:[%s11567_s19 + $0x4d8] sm:$0xff]  ;;  %v7398_v59 = vpack.c.bf16 %v5926_v27, %v5920_v47  ;;  %v5932_v33 = vld [vmem:[%s11567_s19 + $0x4a0] sm:$0xff]  ;;  %v5938_v26 = vld [vmem:[%s11567_s19 + $0x4d0] sm:$0xff] }
 0xb80   :  { %7345 = vmatprep.subr.bf16.mxu0 %v7344_v52  ;;  %v11650_v48 = vld [vmem:[#allocation8_spill] sm:$0xff]  ;;  %v7400_v20 = vpack.c.bf16 %v5939_v12, %v5933_v57  ;;  %v5945_v54 = vld [vmem:[%s11567_s19 + $0x508] sm:$0xff]  ;;  %v7402_v52 = vpack.c.bf16 %v5938_v26, %v5932_v33  ;;  %v5950_v49 = vld [vmem:[%s11567_s19 + $0x530] sm:$0xff] }
 0xb81   :  { %v5951_v41 = vld [vmem:[%s11567_s19 + $0x538] sm:$0xff]  ;;  %v5944_v7 = vld [vmem:[%s11567_s19 + $0x500] sm:$0xff]  ;;  %v5957_v53 = vld [vmem:[%s11567_s19 + $0x568] sm:$0xff] }
 0xb82   :  { %7379 = vmatpush1.bf16.msra.mxu1 %v7378_v39  ;;  %v7404_v32 = vpack.c.bf16 %v5951_v41, %v5945_v54  ;;  %v5963_v30 = vld [vmem:[%s11567_s19 + $0x598] sm:$0xff]  ;;  %v7406_v44 = vpack.c.bf16 %v5950_v49, %v5944_v7  ;;  %v5956_v43 = vld [vmem:[%s11567_s19 + $0x560] sm:$0xff]  ;;  %v5962_v3 = vld [vmem:[%s11567_s19 + $0x590] sm:$0xff] }
 0xb83   :  { %7347 = vmatpush1.bf16.msra.mxu0 %v7346_v38  ;;  %7381 = vmatprep.subr.bf16.mxu1 %v7380_v60  ;;  %v7408_v22 = vpack.c.bf16 %v5963_v30, %v5957_v53  ;;  %v5969_v38 = vld [vmem:[%s11567_s19 + $0x5c8] sm:$0xff]  ;;  %v5975_v39 = vld [vmem:[%s11567_s19 + $0x5f8] sm:$0xff]  ;;  %v5968_v51 = vld [vmem:[%s11567_s19 + $0x5c0] sm:$0xff] }
 0xb84   :  { %7349 = vmatprep.subr.bf16.mxu0 %v7348_v25  ;;  %v7410_v25 = vpack.c.bf16 %v5962_v3, %v5956_v43  ;;  %v7412_v21 = vpack.c.bf16 %v5975_v39, %v5969_v38  ;;  %v5974_v17 = vld [vmem:[%s11567_s19 + $0x5f0] sm:$0xff]  ;;  %v11651_v10 = vld [vmem:[#allocation9_spill] sm:$0xff] }
 0xb85   :  { %v7414_v60 = vpack.c.bf16 %v5974_v17, %v5968_v51  ;;  %v2865_v50 = vld [vmem:[%s11652_s2] sm:$0xff] }
 0xb86   :  { %7383 = vmatpush1.bf16.msra.mxu1 %v7382_v0  ;;  %v11655_v51 = vld [vmem:[#allocation12_spill] sm:$0xff] }
 0xb87   :  { %7351 = vmatpush1.bf16.msra.mxu0 %v7350_v9  ;;  %v5683_v9 = vld [vmem:[%s11566_s18] ss:$0 sm:$0xff] }
 0xb88   :  { %7385 = vmatprep.subr.bf16.mxu0 %v7384_v46  ;;  %v8024_v46 = vld [vmem:[%s11568_s20] sm:$0x3f] }
 0xb89   :  { %3361 = vmatmul.mubr.f32.vlgmr.msra.gmra.mrb[48].mxu1 %v11649_v4  ;;  %v670_v8 = vrot.slane %v8024_v46, %v669_v13  ;;  %v10247_v46 = vld [vmem:[%s11568_s20 + $0x6] sm:$0x3f] }
 0xb8a   :  { %3272 = vmatmul.mubr.f32.vlgmr.msra.gmra.mrb[54].mxu0 %v11649_v4  ;;  %3366 = vmatprep.mubr.f32.mxu1 %v11640_v24 }
 0xb8b   :  { %7387 = vmatpush1.bf16.msra.mxu0 %v7386_v55  ;;  %3277 = vmatprep.mubr.f32.mxu0 %v11640_v24  ;;  %v924_v28 = vadd.f32 %v11651_v10, %v670_v8  ;;  %v942_v17 = vadd.f32 %v11655_v51, %v670_v8 }
 0xb8c   :  { %7389 = vmatprep.subr.bf16.mxu0 %v7388_v63 }
 0xb8d   :  { %3367 = vmatmul.mubr.f32.gmra.mrb[50].mxu1 %v11649_v4 }
 0xb8e   :  { %3278 = vmatmul.mubr.f32.gmra.mrb[56].mxu0 %v11649_v4  ;;  %3372 = vmatprep.mubr.f32.mxu1 %v11640_v24 }
 0xb8f   :  { %7391 = vmatpush1.bf16.msra.mxu0 %v7390_v58  ;;  %3283 = vmatprep.mubr.f32.mxu0 %v11640_v24 }
 0xb90   :  { %7393 = vmatprep.subr.bf16.mxu0 %v7392_v2 }
 0xb91   :  { %3373 = vmatmul.mubr.f32.gmra.mrb[52].mxu1 %v11650_v48 }
 0xb92   :  { %3284 = vmatmul.mubr.f32.gmra.mrb[58].mxu0 %v11650_v48  ;;  %3378 = vmatprep.mubr.f32.mxu1 %v11640_v24 }
 0xb93   :  { %7395 = vmatpush1.bf16.msra.mxu0 %v7394_v15  ;;  %3289 = vmatprep.mubr.f32.mxu0 %v11640_v24 }
 0xb94   :  { %7397 = vmatprep.subr.bf16.mxu0 %v7396_v62  ;;  %v11653_v62 = vld [vmem:[#allocation10_spill] sm:$0xff] }
 0xb95   :  { %3379 = vmatmul.mubr.f32.gmra.mrb[54].mxu1 %v11650_v48  ;;  %v930_v57 = vadd.f32 %v11653_v62, %v670_v8 }
 0xb96   :  { %3290 = vmatmul.mubr.f32.gmra.mrb[60].mxu0 %v11650_v48  ;;  %3610 = vmatprep.mubr.f32.mxu1 %v11640_v24 }
 0xb97   :  { %7399 = vmatpush1.bf16.msra.mxu0 %v7398_v59  ;;  %3449 = vmatprep.mubr.f32.mxu0 %v11640_v24 }
 0xb98   :  { %7401 = vmatprep.subr.bf16.mxu0 %v7400_v20 }
 0xb9b   :  { %7403 = vmatpush1.bf16.msra.mxu0 %v7402_v52 }
 0xb9c   :  { %7405 = vmatprep.subr.bf16.mxu0 %v7404_v32  ;;  %v11654_v32 = vld [vmem:[#allocation11_spill] sm:$0xff] }
 0xb9d   :  { %v936_v7 = vadd.f32 %v11654_v32, %v670_v8  ;;  %v3188_v8 = vrot.slane %v10247_v46, %v8901_v45  ;;  %v5694_v32 = vld [vmem:[%s11559_s11 + $0x1d0] sm:$0xff] }
 0xb9f   :  { %7407 = vmatpush1.bf16.msra.mxu0 %v7406_v44 }
 0xba0   :  { %7409 = vmatprep.subr.bf16.mxu0 %v7408_v22 }
 0xba3   :  { %7411 = vmatpush1.bf16.msra.mxu0 %v7410_v25  ;;  %v2867_v25 = vld [vmem:[%s11652_s2 + $0x10] sm:$0xff] }
 0xba4   :  { %7413 = vmatprep.subr.bf16.mxu0 %v7412_v21 }
 0xba7   :  { %7415 = vmatpush1.bf16.msra.mxu0 %v7414_v60 }
 0xbaa   :  { %3450 = vmatmul.mubr.f32.vlgmr.msra.gmra.mrb[62].mxu0 %v11649_v4 }
 0xbab   :  { %3455 = vmatprep.mubr.f32.mxu0 %v11640_v24 }
 0xbae   :  { %3456 = vmatmul.mubr.f32.gmra.mrb[64].mxu0 %v11649_v4 }
 0xbaf   :  { %3461 = vmatprep.mubr.f32.mxu0 %v11640_v24 }
 0xbb2   :  { %3462 = vmatmul.mubr.f32.gmra.mrb[66].mxu0 %v11650_v48 }
 0xbb3   :  { %3467 = vmatprep.mubr.f32.mxu0 %v11640_v24 }
 0xbb6   :  { %3468 = vmatmul.mubr.f32.gmra.mrb[68].mxu0 %v11650_v48 }
 0xc3b   :  { %v6155_v6 = vpop.f32.mrb[46].mxu0 }
 0xc3c   :  { %v6199_v36 = vpop.f32.mrb[40].mxu1  ;;  %v6156_v0 = vpop.f32.mrb[47].mxu0 }
 0xc3d   :  { %v6157_v61 = vadd.f32 %v6156_v0, %v6155_v6  ;;  %v6200_v56 = vpop.f32.mrb[41].mxu1  ;;  %v2868_v0 = vld [vmem:[%s11652_s2 + $0x18] sm:$0xff] }
 0xc3e   :  { %v6201_v16 = vadd.f32 %v6200_v56, %v6199_v36 }
 0xc3f   :  { %v2754_v55 = vadd.f32 %v6157_v61, %v5683_v9  ;;  %v3192_v61 = vrot.slane %v10247_v46, %v8919_v42 }
 0xc41   :  { %v2839_v63 = vadd.f32 %v6201_v16, %v2754_v55 }
 0xc43   :  { %v2857_v4 = vmul.f32 %v2839_v63, %v924_v28  ;;  %v6158_v23 = vpop.f32.mrb[48].mxu0 }
 0xc44   :  { %v6202_v40 = vpop.f32.mrb[42].mxu1  ;;  %v6159_v58 = vpop.f32.mrb[49].mxu0 }
 0xc45   :  { %v6160_v1 = vadd.f32 %v6159_v58, %v6158_v23  ;;  %v6203_v2 = vpop.f32.mrb[43].mxu1  ;;  %v2861_v29 = vadd.f32 %v2857_v4, %v9235_v5  ;;  %v2866_v5 = vld [vmem:[%s11652_s2 + $0x8] sm:$0xff] }
 0xc46   :  { %v6204_v14 = vadd.f32 %v6203_v2, %v6202_v40 }
 0xc47   :  { %v2759_v15 = vadd.f32 %v6160_v1, %v5683_v9  ;;  %v10221_v47 = vadd.f32 %v2865_v50, %v2861_v29 }
 0xc48   :  { %v6161_v27 = vpop.f32.mrb[50].mxu0 }
 0xc49   :  { %v2844_v12 = vadd.f32 %v6204_v14, %v2759_v15  ;;  %v6162_v48 = vpop.f32.mrb[51].mxu0  ;;  %3474 = vadd.xlane.f32.xlu0 %v10221_v47 }
 0xc4a   :  { %v6205_v59 = vpop.f32.mrb[44].mxu1  ;;  %v6163_v20 = vadd.f32 %v6162_v48, %v6161_v27 }
 0xc4b   :  { %v2858_v33 = vmul.f32 %v2844_v12, %v930_v57  ;;  %v6206_v26 = vpop.f32.mrb[45].mxu1 }
 0xc4c   :  { %v2764_v54 = vadd.f32 %v6163_v20, %v5683_v9  ;;  %v6207_v41 = vadd.f32 %v6206_v26, %v6205_v59  ;;  %v5688_v26 = vld [vmem:[%s11559_s11 + $0x1a0] sm:$0xff] }
 0xc4d   :  { %v2862_v52 = vadd.f32 %v2858_v33, %v9231_v18  ;;  %v5685_v33 = vld [vmem:[%s11559_s11 + $0x188] sm:$0xff] }
 0xc4e   :  { %v2849_v49 = vadd.f32 %v6207_v41, %v2764_v54  ;;  %v5684_v54 = vld [vmem:[%s11559_s11 + $0x180] sm:$0xff]  ;;  %v7416_v41 = vpack.c.bf16 %v5688_v26, %v5685_v33 }
 0xc4f   :  { %v6164_v53 = vpop.f32.mrb[52].mxu0  ;;  %v10230_v22 = vadd.f32 %v2866_v5, %v2862_v52  ;;  %v5687_v5 = vld [vmem:[%s11559_s11 + $0x198] sm:$0xff] }
 0xc50   :  { %v6208_v30 = vpop.f32.mrb[46].mxu1  ;;  %v6165_v44 = vpop.f32.mrb[53].mxu0  ;;  %v2859_v43 = vmul.f32 %v2849_v49, %v936_v7  ;;  %v5691_v52 = vld [vmem:[%s11559_s11 + $0x1b8] sm:$0xff]  ;;  %v7418_v7 = vpack.c.bf16 %v5687_v5, %v5684_v54  ;;  %7417 = vmatprep.subr.bf16.mxu1 %v7416_v41 }
 0xc51   :  { %v6166_v3 = vadd.f32 %v6165_v44, %v6164_v53  ;;  %v6209_v38 = vpop.f32.mrb[47].mxu1  ;;  %3476 = vadd.xlane.f32.xlu1 %v10230_v22  ;;  %v7420_v49 = vpack.c.bf16 %v5694_v32, %v5691_v52  ;;  %v5686_v53 = vld [vmem:[%s11559_s11 + $0x190] sm:$0xff] }
 0xc52   :  { %v6210_v39 = vadd.f32 %v6209_v38, %v6208_v30  ;;  %v2863_v18 = vadd.f32 %v2859_v43, %v9243_v11  ;;  %v5689_v30 = vld [vmem:[%s11559_s11 + $0x1a8] sm:$0xff]  ;;  %v5690_v44 = vld [vmem:[%s11559_s11 + $0x1b0] sm:$0xff]  ;;  %7419 = vmatpush1.bf16.msra.mxu1 %v7418_v7 }
 0xc53   :  { %v2769_v21 = vadd.f32 %v6166_v3, %v5683_v9  ;;  %v7448_v43 = vpack.c.bf16 %v5689_v30, %v5686_v53  ;;  %v5693_v3 = vld [vmem:[%s11559_s11 + $0x1c8] sm:$0xff]  ;;  %7421 = vmatprep.subr.bf16.mxu1 %v7420_v49 }
 0xc54   :  { %v10238_v6 = vadd.f32 %v2867_v25, %v2863_v18  ;;  %v5697_v38 = vld [vmem:[%s11559_s11 + $0x1e8] sm:$0xff]  ;;  %v7422_v25 = vpack.c.bf16 %v5693_v3, %v5690_v44  ;;  %v5695_v18 = vld [vmem:[%s11559_s11 + $0x1d8] sm:$0xff] }
 0xc55   :  { %v2854_v60 = vadd.f32 %v6210_v39, %v2769_v21  ;;  %v5700_v39 = vld [vmem:[%s11559_s11 + $0x200] sm:$0xff]  ;;  %7449 = vmatprep.subr.bf16.mxu0 %v7448_v43 }
 0xc56   :  { %3478 = vadd.xlane.f32.xlu0 %v10238_v6  ;;  %v5692_v21 = vld [vmem:[%s11559_s11 + $0x1c0] sm:$0xff]  ;;  %v7424_v51 = vpack.c.bf16 %v5700_v39, %v5697_v38  ;;  %7451 = vmatpush3.bf16.msra.mxu0 %v7448_v43 }
 0xc57   :  { %v2860_v36 = vmul.f32 %v2854_v60, %v942_v17  ;;  %v7452_v17 = vpack.c.bf16 %v5695_v18, %v5692_v21  ;;  %v5696_v60 = vld [vmem:[%s11559_s11 + $0x1e0] sm:$0xff]  ;;  %7423 = vmatpush1.bf16.msra.mxu1 %v7422_v25 }
 0xc58   :  { %7425 = vmatprep.subr.bf16.mxu1 %v7424_v51 }
 0xc59   :  { %v2864_v9 = vadd.f32 %v2860_v36, %v9240_v37  ;;  %v5699_v36 = vld [vmem:[%s11559_s11 + $0x1f8] sm:$0xff]  ;;  %7453 = vmatprep.subr.bf16.mxu0 %v7452_v17 }
 0xc5a   :  { %7455 = vmatpush3.bf16.msra.mxu0 %v7452_v17 }
 0xc5b   :  { %v10250_v11 = vadd.f32 %v2868_v0, %v2864_v9  ;;  %v7426_v0 = vpack.c.bf16 %v5699_v36, %v5696_v60  ;;  %v11656_v9 = vsub.s32 4, %v8522_v34  ;;  %v5703_v36 = vld [vmem:[%s11559_s11 + $0x218] sm:$0xff] }
 0xc5c   :  { %v3362_v16 = vpop.f32.mrb[48].mxu1 }
 0xc5d   :  { %3480 = vadd.xlane.f32.xlu1 %v10250_v11  ;;  %v10257_v56 = vpop.f32.mrb[54].mxu0  ;;  %v10261_v10 = vadd.f32 %v3362_v16, %v3188_v8  ;;  %v3364_v28 = vpop.f32.mrb[49].mxu1  ;;  %7427 = vmatpush1.bf16.msra.mxu1 %v7426_v0  ;;  %v5706_v0 = vld [vmem:[%s11559_s11 + $0x230] sm:$0xff] }
 0xc5e   :  { %v10259_v55 = vpop.f32.mrb[55].mxu0  ;;  %v10263_v63 = vadd.f32 %v3364_v28, %v3192_v61 }
 0xc60   :  { %v3368_v4 = vpop.f32.mrb[50].mxu1 }
 0xc61   :  { %v10265_v37 = vpop.f32.mrb[56].mxu0  ;;  %v10269_v40 = vadd.f32 %v3368_v4, %v3188_v8  ;;  %v3370_v58 = vpop.f32.mrb[51].mxu1 }
 0xc62   :  { %v10267_v23 = vpop.f32.mrb[57].mxu0  ;;  %v10271_v50 = vadd.f32 %v3370_v58, %v3192_v61 }
 0xc64   :  { %v3374_v2 = vpop.f32.mrb[52].mxu1 }
 0xc65   :  { %v10273_v1 = vpop.f32.mrb[58].mxu0  ;;  %v10277_v14 = vadd.f32 %v3374_v2, %v3188_v8  ;;  %v3376_v15 = vpop.f32.mrb[53].mxu1 }
 0xc66   :  { %v10275_v29 = vpop.f32.mrb[59].mxu0  ;;  %v10279_v27 = vadd.f32 %v3376_v15, %v3192_v61 }
 0xc68   :  { %v3380_v57 = vpop.f32.mrb[54].mxu1 }
 0xc69   :  { %v10281_v62 = vpop.f32.mrb[60].mxu0  ;;  %v10285_v48 = vadd.f32 %v3380_v57, %v3188_v8  ;;  %v3382_v59 = vpop.f32.mrb[55].mxu1  ;;  %v3196_v8 = vrot.slane %v10247_v46, %v11656_v9  ;;  %v5698_v9 = vld [vmem:[%s11559_s11 + $0x1f0] sm:$0xff] }
 0xc6a   :  { %v10283_v12 = vpop.f32.mrb[61].mxu0  ;;  %v10287_v20 = vadd.f32 %v3382_v59, %v3192_v61  ;;  %v3200_v61 = vrot.slane %v10247_v46, %v669_v13 }
 0xc7d   :  { %v3451_v16 = vpop.f32.mrb[62].mxu0 }
 0xc7e   :  { %v10343_v28 = vadd.f32 %v3451_v16, %v3196_v8  ;;  %v3453_v4 = vpop.f32.mrb[63].mxu0  ;;  %v5702_v16 = vld [vmem:[%s11559_s11 + $0x210] sm:$0xff] }
 0xc7f   :  { %v10345_v58 = vadd.f32 %v3453_v4, %v3200_v61  ;;  %v5705_v4 = vld [vmem:[%s11559_s11 + $0x228] sm:$0xff] }
 0xc81   :  { %11657 = vst [vmem:[#allocation13_spill] sm:$0xff] %v10345_v58  ;;  %v3457_v2 = vpop.f32.mrb[64].mxu0 }
 0xc82   :  { %v10347_v15 = vadd.f32 %v3457_v2, %v3196_v8  ;;  %v3459_v57 = vpop.f32.mrb[65].mxu0 }
 0xc83   :  { %v10349_v59 = vadd.f32 %v3459_v57, %v3200_v61  ;;  %v7430_v57 = vpack.c.bf16 %v5705_v4, %v5702_v16  ;;  %v5719_v4 = vld [vmem:[%s11559_s11 + $0x298] sm:$0xff] }
 0xc85   :  { %11658 = vst [vmem:[#allocation15_spill] sm:$0xff] %v10349_v59  ;;  %v3463_v33 = vpop.f32.mrb[66].mxu0 }
 0xc86   :  { %v10351_v26 = vadd.f32 %v3463_v33, %v3196_v8  ;;  %v3465_v34 = vpop.f32.mrb[67].mxu0  ;;  %v5709_v33 = vld [vmem:[%s11559_s11 + $0x248] sm:$0xff] }
 0xc87   :  { %v10353_v54 = vadd.f32 %v3465_v34, %v3200_v61  ;;  %v5712_v34 = vld [vmem:[%s11559_s11 + $0x260] sm:$0xff] }
 0xc89   :  { %11659 = vst [vmem:[#allocation14_spill] sm:$0xff] %v10353_v54  ;;  %v3469_v13 = vpop.f32.mrb[68].mxu0 }
 0xc8a   :  { %v10355_v41 = vadd.f32 %v3469_v13, %v3196_v8  ;;  %v3471_v5 = vpop.f32.mrb[69].mxu0  ;;  %v7428_v8 = vpack.c.bf16 %v5706_v0, %v5703_v36  ;;  %v5704_v13 = vld [vmem:[%s11559_s11 + $0x220] sm:$0xff] }
 0xc8b   :  { %v10357_v52 = vadd.f32 %v3471_v5, %v3200_v61  ;;  %v5701_v61 = vld [vmem:[%s11559_s11 + $0x208] sm:$0xff]  ;;  %v7432_v5 = vpack.c.bf16 %v5712_v34, %v5709_v33 }
 0xc8c   :  { %v7456_v2 = vpack.c.bf16 %v5701_v61, %v5698_v9  ;;  %7429 = vmatprep.subr.bf16.mxu1 %v7428_v8  ;;  %v5721_v9 = vld [vmem:[%s11559_s11 + $0x2a8] sm:$0xff]  ;;  %v5724_v8 = vld [vmem:[%s11559_s11 + $0x2c0] sm:$0xff] }
 0xc8d   :  { %11660 = vst [vmem:[#allocation5_spill] sm:$0xff] %v10357_v52  ;;  %7431 = vmatpush1.bf16.msra.mxu1 %v7430_v57  ;;  %v5716_v61 = vld [vmem:[%s11559_s11 + $0x280] sm:$0xff]  ;;  %v7440_v16 = vpack.c.bf16 %v5724_v8, %v5721_v9  ;;  %v5723_v57 = vld [vmem:[%s11559_s11 + $0x2b8] sm:$0xff] }
 0xc8e   :  { %7457 = vmatprep.subr.bf16.mxu0 %v7456_v2  ;;  %7433 = vmatprep.subr.bf16.mxu1 %v7432_v5  ;;  %v7468_v33 = vpack.c.bf16 %v5719_v4, %v5716_v61  ;;  %v5730_v5 = vld [vmem:[%s11559_s11 + $0x2f0] sm:$0xff] }
 0xc8f   :  { %7459 = vmatpush3.bf16.msra.mxu0 %v7456_v2  ;;  %v5720_v2 = vld [vmem:[%s11559_s11 + $0x2a0] sm:$0xff] }
 0xc90   :  { %v7442_v34 = vpack.c.bf16 %v5723_v57, %v5720_v2  ;;  %v3180_v2 = vrot.slane %v10247_v46, %v11644_v31 }
 0xcd6   :  { %v3475_v32 = vpop.xlane.xlu0 %3474 }
 0xcd7   :  { %v3482_v7 = vmul.f32 0.0078125, %v3475_v32  ;;  %v5707_v32 = vld [vmem:[%s11559_s11 + $0x238] sm:$0xff] }
 0xcd9   :  { %v10360_v49 = vsub.f32 %v10221_v47, %v3482_v7  ;;  %v5708_v7 = vld [vmem:[%s11559_s11 + $0x240] sm:$0xff] }
 0xcdb   :  { %v3490_v53 = vmul.f32 %v10360_v49, %v10360_v49 }
 0xcdd   :  { %3494 = vadd.xlane.f32.xlu0 %v3490_v53  ;;  %v5711_v53 = vld [vmem:[%s11559_s11 + $0x258] sm:$0xff] }
 0xcde   :  { %v3477_v30 = vpop.xlane.xlu1 %3476 }
 0xcdf   :  { %v3483_v44 = vmul.f32 0.0078125, %v3477_v30  ;;  %v7460_v30 = vpack.c.bf16 %v5707_v32, %v5704_v13  ;;  %v5727_v13 = vld [vmem:[%s11559_s11 + $0x2d8] sm:$0xff]  ;;  %v5722_v32 = vld [vmem:[%s11559_s11 + $0x2b0] sm:$0xff] }
 0xce1   :  { %v10365_v43 = vsub.f32 %v10230_v22, %v3483_v44  ;;  %v7434_v44 = vpack.c.bf16 %v5711_v53, %v5708_v7  ;;  %7461 = vmatprep.subr.bf16.mxu0 %v7460_v30  ;;  %v7444_v7 = vpack.c.bf16 %v5730_v5, %v5727_v13  ;;  %v5725_v53 = vld [vmem:[%s11559_s11 + $0x2c8] sm:$0xff] }
 0xce2   :  { %7463 = vmatpush3.bf16.msra.mxu0 %v7460_v30  ;;  %v5726_v30 = vld [vmem:[%s11559_s11 + $0x2d0] sm:$0xff] }
 0xce3   :  { %v3479_v3 = vpop.xlane.xlu0 %3478  ;;  %v3491_v38 = vmul.f32 %v10365_v43, %v10365_v43  ;;  %7435 = vmatpush1.bf16.msra.mxu1 %v7434_v44  ;;  %v5729_v44 = vld [vmem:[%s11559_s11 + $0x2e8] sm:$0xff] }
 0xce4   :  { %v3484_v39 = vmul.f32 0.0078125, %v3479_v3  ;;  %v5715_v3 = vld [vmem:[%s11559_s11 + $0x278] sm:$0xff] }
 0xce5   :  { %3496 = vadd.xlane.f32.xlu1 %v3491_v38  ;;  %v5718_v38 = vld [vmem:[%s11559_s11 + $0x290] sm:$0xff] }
 0xce6   :  { %v10370_v25 = vsub.f32 %v10238_v6, %v3484_v39  ;;  %v5710_v39 = vld [vmem:[%s11559_s11 + $0x250] sm:$0xff] }
 0xce8   :  { %v3492_v21 = vmul.f32 %v10370_v25, %v10370_v25 }
 0xcea   :  { %v3481_v18 = vpop.xlane.xlu1 %3480  ;;  %3498 = vadd.xlane.f32.xlu0 %v3492_v21  ;;  %v7436_v21 = vpack.c.bf16 %v5718_v38, %v5715_v3  ;;  %v7472_v3 = vpack.c.bf16 %v5725_v53, %v5722_v32  ;;  %v5728_v38 = vld [vmem:[%s11559_s11 + $0x2e0] sm:$0xff]  ;;  %v3274_v32 = vadd.f32 %v10257_v56, %v3180_v2  ;;  %v3280_v56 = vadd.f32 %v10265_v37, %v3180_v2 }
 0xceb   :  { %v3485_v51 = vmul.f32 0.0078125, %v3481_v18  ;;  %v5713_v18 = vld [vmem:[%s11559_s11 + $0x268] sm:$0xff] }
 0xcec   :  { %v7464_v36 = vpack.c.bf16 %v5713_v18, %v5710_v39  ;;  %7437 = vmatprep.subr.bf16.mxu1 %v7436_v21  ;;  %v5731_v39 = vld [vmem:[%s11559_s11 + $0x2f8] sm:$0xff]  ;;  %v7446_v21 = vpack.c.bf16 %v5729_v44, %v5726_v30 }
 0xced   :  { %v10375_v17 = vsub.f32 %v10250_v11, %v3485_v51  ;;  %v5714_v51 = vld [vmem:[%s11559_s11 + $0x270] sm:$0xff]  ;;  %v7476_v18 = vpack.c.bf16 %v5731_v39, %v5728_v38 }
 0xcee   :  { %7465 = vmatprep.subr.bf16.mxu0 %v7464_v36 }
 0xcef   :  { %v3493_v60 = vmul.f32 %v10375_v17, %v10375_v17  ;;  %7467 = vmatpush3.bf16.msra.mxu0 %v7464_v36 }
 0xcf0   :  { %7469 = vmatprep.subr.bf16.mxu0 %v7468_v33 }
 0xcf1   :  { %3500 = vadd.xlane.f32.xlu1 %v3493_v60  ;;  %v5717_v60 = vld [vmem:[%s11559_s11 + $0x288] sm:$0xff] }
 0xcf2   :  { %v7438_v0 = vpack.c.bf16 %v5717_v60, %v5714_v51 }
 0xcf3   :  { %7471 = vmatpush3.bf16.msra.mxu0 %v7468_v33 }
 0xcf4   :  { %7439 = vmatpush1.bf16.msra.mxu1 %v7438_v0  ;;  %7473 = vmatprep.subr.bf16.mxu0 %v7472_v3  ;;  %v3184_v0 = vrot.slane %v10247_v46, %v11645_v35 }
 0xcf5   :  { %7441 = vmatprep.subr.bf16.mxu1 %v7440_v16 }
 0xcf6   :  { %v3276_v16 = vadd.f32 %v10259_v55, %v3184_v0  ;;  %v3282_v30 = vadd.f32 %v10267_v23, %v3184_v0  ;;  %v3288_v39 = vadd.f32 %v10275_v29, %v3184_v0 }
 0xcf7   :  { %7475 = vmatpush3.bf16.msra.mxu0 %v7472_v3 }
 0xcf8   :  { %7443 = vmatpush1.bf16.msra.mxu1 %v7442_v34  ;;  %7477 = vmatprep.subr.bf16.mxu0 %v7476_v18  ;;  %v3518_v34 = vadd.f32 1.0, %v3276_v16  ;;  %v3519_v46 = vadd.f32 1.0, %v3282_v30  ;;  %v3520_v23 = vadd.f32 1.0, %v3288_v39 }
 0xcf9   :  { %7445 = vmatprep.subr.bf16.mxu1 %v7444_v7 }
 0xcfb   :  { %7479 = vmatpush3.bf16.msra.mxu0 %v7476_v18 }
 0xcfc   :  { %7447 = vmatpush1.bf16.msra.mxu1 %v7446_v21 }
 0xd6a   :  { %v3495_v51 = vpop.xlane.xlu0 %3494 }
 0xd6b   :  { %v3502_v60 = vmul.f32 0.0078125, %v3495_v51 }
 0xd6d   :  { %v3506_v36 = vadd.f32 1e-06, %v3502_v60 }
 0xd6f   :  { %7909 = vrsqrt.f32 %v3506_v36  ;;  %v3286_v36 = vadd.f32 %v10273_v1, %v3180_v2  ;;  %v5732_v1 = vld [vmem:[%s11560_s12 + $0x3] sm:$0x7] }
 0xd72   :  { %v3497_v9 = vpop.xlane.xlu1 %3496 }
 0xd73   :  { %v3503_v8 = vmul.f32 0.0078125, %v3497_v9  ;;  %v3294_v9 = vadd.f32 %v10283_v12, %v3184_v0  ;;  %v10498_v12 = vrot.slane %v5732_v1, %v11644_v31 }
 0xd75   :  { %v3507_v61 = vadd.f32 1e-06, %v3503_v8  ;;  %v3521_v29 = vadd.f32 1.0, %v3294_v9 }
 0xd77   :  { %7911 = vrsqrt.f32 %v3507_v61  ;;  %v3499_v4 = vpop.xlane.xlu0 %3498 }
 0xd78   :  { %v3504_v57 = vmul.f32 0.0078125, %v3499_v4 }
 0xd79   :  { %v7910_v33 = vpop.eup %7909 }
 0xd7a   :  { %v3514_v13 = vmul.f32 %v7910_v33, %v10360_v49  ;;  %v3508_v5 = vadd.f32 1e-06, %v3504_v57  ;;  %v11661_v33 = vld [vmem:[#allocation17_spill] sm:$0xff] }
 0xd7c   :  { %7913 = vrsqrt.f32 %v3508_v5  ;;  %v3522_v7 = vmul.f32 %v3518_v34, %v3514_v13 }
 0xd7e   :  { %v3501_v53 = vpop.xlane.xlu1 %3500  ;;  %v3526_v55 = vadd.f32 %v3522_v7, %v3274_v32 }
 0xd7f   :  { %v3505_v44 = vmul.f32 0.0078125, %v3501_v53 }
 0xd80   :  { %3611 = vmatmul.mubr.f32.vlgmr.msra.gmra.mrb[56].mxu1 %v3526_v55  ;;  %6668 = vmatprep.mubr.f32.mxu0 %v3526_v55 }
 0xd81   :  { %v3509_v3 = vadd.f32 1e-06, %v3505_v44  ;;  %v7912_v38 = vpop.eup %7911  ;;  %3616 = vmatprep.mubr.f32.mxu1 %v11640_v24 }
 0xd82   :  { %v3515_v49 = vmul.f32 %v7912_v38, %v10365_v43  ;;  %v11662_v38 = vld [vmem:[#allocation18_spill] sm:$0xff] }
 0xd83   :  { %7915 = vrsqrt.f32 %v3509_v3 }
 0xd84   :  { %v3523_v21 = vmul.f32 %v3519_v46, %v3515_v49 }
 0xd86   :  { %v7914_v18 = vpop.eup %7913  ;;  %v3527_v51 = vadd.f32 %v3523_v21, %v3280_v56 }
 0xd87   :  { %v3516_v60 = vmul.f32 %v7914_v18, %v10370_v25  ;;  %v3292_v25 = vadd.f32 %v10281_v62, %v3180_v2  ;;  %v3542_v62 = vrot.slane %v5732_v1, %v8901_v45  ;;  %v3538_v2 = vrot.slane %v5732_v1, %v11645_v35  ;;  %v11663_v18 = vld [vmem:[#allocation20_spill] sm:$0xff] }
 0xd88   :  { %3617 = vmatmul.mubr.f32.gmra.mrb[58].mxu1 %v3527_v51  ;;  %6669 = vmatmul.mubr.f32.vlgmr.msra.gmra.mrb[70].mxu0 %v3527_v51 }
 0xd89   :  { %3622 = vmatprep.mubr.f32.mxu1 %v11640_v24  ;;  %v3524_v8 = vmul.f32 %v3520_v23, %v3516_v60 }
 0xd8b   :  { %v3528_v43 = vadd.f32 %v3524_v8, %v3286_v36 }
 0xd8d   :  { %v7916_v61 = vpop.eup %7915  ;;  %3623 = vmatmul.mubr.f32.gmra.mrb[60].mxu1 %v3528_v43  ;;  %6671 = vmatprep.mubr.f32.mxu0 %v3528_v43 }
 0xd8e   :  { %v3517_v37 = vmul.f32 %v7916_v61, %v10375_v17  ;;  %3628 = vmatprep.mubr.f32.mxu1 %v11640_v24 }
 0xd90   :  { %v3525_v16 = vmul.f32 %v3521_v29, %v3517_v37 }
 0xd92   :  { %v3529_v4 = vadd.f32 %v3525_v16, %v3292_v25 }
 0xd94   :  { %3629 = vmatmul.mubr.f32.gmra.mrb[62].mxu1 %v3529_v4  ;;  %6672 = vmatmul.mubr.f32.gmra.mrb[72].mxu0 %v3529_v4 }
 0xe53   :  { %v3612_v0 = vpop.f32.mrb[56].mxu1 }
 0xe54   :  { %v10501_v57 = vadd.f32 %v3612_v0, %v10498_v12  ;;  %v3614_v17 = vpop.f32.mrb[57].mxu1 }
 0xe55   :  { %v3615_v30 = vadd.f32 %v3614_v17, %v3538_v2 }
 0xe56   :  { %v3720_v34 = vmul.f32 %v10501_v57, %v11661_v33 }
 0xe58   :  { %6682 = vmatprep.mubr.f32.mxu1 %v3720_v34 }
 0xe5b   :  { %v3618_v13 = vpop.f32.mrb[58].mxu1  ;;  %v6670_v5 = vpop.f32.mrb[70].mxu0 }
 0xe5c   :  { %v3707_v32 = vadd.f32 %v6670_v5, %v3542_v62  ;;  %v3620_v7 = vpop.f32.mrb[59].mxu1  ;;  %v3701_v53 = vpop.f32.mrb[71].mxu0 }
 0xe5d   :  { %v3621_v44 = vadd.f32 %v3620_v7, %v3538_v2  ;;  %v3702_v55 = vadd.f32 %v3701_v53, %v3542_v62 }
 0xe5e   :  { %v4007_v49 = vmul.f32 %v3707_v32, %v11662_v38  ;;  %v3862_v21 = vmul.f32 %v3707_v32, %v11661_v33  ;;  %v4346_v23 = vmul.f32 %v3707_v32, %v11663_v18  ;;  %v4592_v8 = vmul.f32 %v3707_v32, %v8925_v19 }
 0xe5f   :  { %v10507_v3 = vpack.c.bf16 %v3621_v44, %v3615_v30  ;;  %v4006_v46 = vmul.f32 %v3702_v55, %v11662_v38  ;;  %v3861_v39 = vmul.f32 %v3702_v55, %v11661_v33  ;;  %v4345_v51 = vmul.f32 %v3702_v55, %v11663_v18 }
 0xe60   :  { %v3624_v56 = vpop.f32.mrb[60].mxu1  ;;  %v4591_v60 = vmul.f32 %v3702_v55, %v8925_v19 }
 0xe61   :  { %v3626_v36 = vpop.f32.mrb[61].mxu1  ;;  %7481 = vmatprep.subr.bf16.mxu1 %v10507_v3  ;;  %v7496_v9 = vpack.c.bf16 %v4007_v49, %v4006_v46  ;;  %v10519_v43 = vpack.c.bf16 %v3862_v21, %v3861_v39  ;;  %v10521_v61 = vpack.c.bf16 %v4346_v23, %v4345_v51  ;;  %v10544_v51 = vadd.f32 %v3618_v13, %v10498_v12 }
 0xe62   :  { %7483 = vmatpush3.bf16.xpose.msra.mxu1 %v10507_v3  ;;  %v10523_v29 = vpack.c.bf16 %v4592_v8, %v4591_v60  ;;  %v3627_v0 = vadd.f32 %v3626_v36, %v3538_v2  ;;  %v10548_v23 = vadd.f32 %v3624_v56, %v10498_v12  ;;  %v3865_v56 = vmul.f32 %v10501_v57, %v11662_v38 }
 0xe63   :  { %7497 = vmatprep.subr.bf16.mxu0 %v7496_v9  ;;  %v3721_v60 = vmul.f32 %v10544_v51, %v11661_v33 }
 0xe64   :  { %7499 = vmatpush3.bf16.msra.mxu0 %v7496_v9  ;;  %v3722_v9 = vmul.f32 %v10548_v23, %v11661_v33  ;;  %v3867_v8 = vmul.f32 %v10548_v23, %v11662_v38 }
 0xe67   :  { %v3630_v37 = vpop.f32.mrb[62].mxu1  ;;  %v6673_v25 = vpop.f32.mrb[72].mxu0 }
 0xe68   :  { %v3717_v16 = vadd.f32 %v6673_v25, %v3542_v62  ;;  %v3632_v4 = vpop.f32.mrb[63].mxu1  ;;  %v3711_v1 = vpop.f32.mrb[73].mxu0  ;;  %v10554_v36 = vadd.f32 %v3630_v37, %v10498_v12  ;;  %v3866_v12 = vmul.f32 %v10544_v51, %v11662_v38  ;;  %v4204_v37 = vmul.f32 %v10501_v57, %v11663_v18 }
 0xe69   :  { %v3633_v17 = vadd.f32 %v3632_v4, %v3538_v2  ;;  %v3712_v34 = vadd.f32 %v3711_v1, %v3542_v62  ;;  %v4205_v25 = vmul.f32 %v10544_v51, %v11663_v18 }
 0xe6a   :  { %v4009_v5 = vmul.f32 %v3717_v16, %v11662_v38  ;;  %v3864_v30 = vmul.f32 %v3717_v16, %v11661_v33  ;;  %v4348_v55 = vmul.f32 %v3717_v16, %v11663_v18  ;;  %v4594_v49 = vmul.f32 %v3717_v16, %v8925_v19 }
 0xe6b   :  { %v10526_v32 = vpack.c.bf16 %v3633_v17, %v3627_v0  ;;  %v4008_v7 = vmul.f32 %v3712_v34, %v11662_v38  ;;  %v3863_v53 = vmul.f32 %v3712_v34, %v11661_v33  ;;  %v4347_v44 = vmul.f32 %v3712_v34, %v11663_v18 }
 0xe6c   :  { %v4593_v46 = vmul.f32 %v3712_v34, %v8925_v19  ;;  %v3723_v13 = vmul.f32 %v10554_v36, %v11661_v33  ;;  %v3868_v33 = vmul.f32 %v10554_v36, %v11662_v38  ;;  %v4206_v16 = vmul.f32 %v10548_v23, %v11663_v18 }
 0xe6d   :  { %7485 = vmatprep.subr.bf16.mxu1 %v10526_v32  ;;  %v7500_v62 = vpack.c.bf16 %v4009_v5, %v4008_v7  ;;  %v10536_v2 = vpack.c.bf16 %v3864_v30, %v3863_v53  ;;  %v10539_v39 = vpack.c.bf16 %v4348_v55, %v4347_v44  ;;  %v4207_v4 = vmul.f32 %v10554_v36, %v11663_v18  ;;  %v10586_v30 = vld [vmem:[%s11664_s27 + $0x8] sm:$0xff]  ;;  %v10592_v18 = vld [vmem:[%s11664_s27] sm:$0xff] }
 0xe6e   :  { %7487 = vmatpush3.bf16.xpose.msra.mxu1 %v10526_v32  ;;  %v10541_v21 = vpack.c.bf16 %v4594_v49, %v4593_v46 }
 0xe6f   :  { %7489 = vmatprep.subr.bf16.mxu1 %v10507_v3  ;;  %7501 = vmatprep.subr.bf16.mxu0 %v7500_v62 }
 0xe70   :  { %7503 = vmatpush3.bf16.msra.mxu0 %v7500_v62 }
 0xe71   :  { %7505 = vmatprep.subr.bf16.mxu0 %v10519_v43 }
 0xe75   :  { %6683 = vmatmul.mubr.f32.vlgmr.msra.gmra.mrb[64].mxu1 %v3721_v60 }
 0xe76   :  { %6685 = vmatprep.mubr.f32.mxu1 %v3722_v9  ;;  %7491 = vmatpush3.bf16.xpose.msra.mxu1 %v10507_v3 }
 0xe77   :  { %7493 = vmatprep.subr.bf16.mxu1 %v10526_v32 }
 0xe79   :  { %6686 = vmatmul.mubr.f32.gmra.mrb[66].mxu1 %v3723_v13 }
 0xe7a   :  { %6696 = vmatprep.mubr.f32.mxu1 %v3865_v56 }
 0xe7e   :  { %7495 = vmatpush3.bf16.xpose.msra.mxu1 %v10526_v32 }
 0xe7f   :  { %7513 = vmatprep.subr.bf16.mxu1 %v10507_v3 }
 0xe85   :  { %6697 = vmatmul.mubr.f32.vlgmr.msra.gmra.mrb[68].mxu1 %v3866_v12 }
 0xe86   :  { %6699 = vmatprep.mubr.f32.mxu1 %v3867_v8  ;;  %7515 = vmatpush3.bf16.xpose.msra.mxu1 %v10507_v3  ;;  %v10600_v8 = vld [vmem:[%s11664_s27 + $0x18] sm:$0xff] }
 0xe87   :  { %7517 = vmatprep.subr.bf16.mxu1 %v10526_v32 }
 0xe89   :  { %6700 = vmatmul.mubr.f32.gmra.mrb[70].mxu1 %v3868_v33 }
 0xe8a   :  { %6738 = vmatprep.mubr.f32.mxu1 %v4204_v37  ;;  %v10606_v37 = vld [vmem:[%s11664_s27 + $0x10] sm:$0xff] }
 0xe8e   :  { %7519 = vmatpush3.bf16.xpose.msra.mxu1 %v10526_v32 }
 0xe95   :  { %6739 = vmatmul.mubr.f32.vlgmr.msra.gmra.mrb[72].mxu1 %v4205_v25 }
 0xe96   :  { %6741 = vmatprep.mubr.f32.mxu1 %v4206_v16 }
 0xe99   :  { %6742 = vmatmul.mubr.f32.gmra.mrb[74].mxu1 %v4207_v4 }
 0xf48   :  { %v6684_v38 = vpop.f32.mrb[64].mxu1 }
 0xf49   :  { %v3790_v1 = vpop.f32.mrb[65].mxu1  ;;  %v3810_v49 = vmul.f32 0.17677669, %v6684_v38 }
 0xf4a   :  { %v3809_v13 = vmul.f32 0.17677669, %v3790_v1 }
 0xf4b   :  { %v3814_v38 = vadd.f32 %v3810_v49, %v10586_v30 }
 0xf4c   :  { %v6687_v0 = vpop.f32.mrb[66].mxu1 }
 0xf4d   :  { %v3800_v17 = vpop.f32.mrb[67].mxu1  ;;  %v3812_v16 = vmul.f32 0.17677669, %v6687_v0 }
 0xf4e   :  { %v3811_v1 = vmul.f32 0.17677669, %v3800_v17 }
 0xf50   :  { %v3815_v0 = vadd.f32 %v3811_v1, %v10606_v37 }
 0xf58   :  { %v6698_v34 = vpop.f32.mrb[68].mxu1 }
 0xf59   :  { %v3955_v5 = vmul.f32 0.17677669, %v6698_v34  ;;  %v3935_v7 = vpop.f32.mrb[69].mxu1 }
 0xf5a   :  { %v3954_v53 = vmul.f32 0.17677669, %v3935_v7  ;;  %v3820_v7 = vsel %vm103_vm2, %v3814_v38, -inf }
 0xf5b   :  { %v3959_v44 = vadd.f32 %v3955_v5, %v10586_v30  ;;  %v3813_v5 = vadd.f32 %v3809_v13, %v10592_v18  ;;  %v3823_v13 = vsel %vm103_vm2, %v3815_v0, -inf }
 0xf5c   :  { %v6701_v55 = vpop.f32.mrb[70].mxu1  ;;  %v3958_v46 = vadd.f32 %v3954_v53, %v10592_v18  ;;  %v3816_v53 = vadd.f32 %v3812_v16, %v10600_v8 }
 0xf5d   :  { %v3957_v62 = vmul.f32 0.17677669, %v6701_v55  ;;  %v3945_v60 = vpop.f32.mrb[71].mxu1  ;;  %v3965_v9 = vsel %vm103_vm2, %v3959_v44, -inf  ;;  %v3817_v55 = vsel %vm103_vm2, %v3813_v5, -inf }
 0xf5e   :  { %v3956_v56 = vmul.f32 0.17677669, %v3945_v60  ;;  %3966 = vmax.xlane.f32.xlu1 %v3965_v9  ;;  %v3962_v12 = vsel %vm103_vm2, %v3958_v46, -inf  ;;  %v3826_v17 = vsel %vm103_vm2, %v3816_v53, -inf }
 0xf5f   :  { %3963 = vmax.xlane.f32.xlu0 %v3962_v12  ;;  %v3961_v33 = vadd.f32 %v3957_v62, %v10600_v8 }
 0xf60   :  { %v3960_v25 = vadd.f32 %v3956_v56, %v10606_v37 }
 0xf61   :  { %v3971_v4 = vsel %vm103_vm2, %v3961_v33, -inf }
 0xf62   :  { %3972 = vmax.xlane.f32.xlu1 %v3971_v4  ;;  %v3968_v34 = vsel %vm103_vm2, %v3960_v25, -inf }
 0xf63   :  { %3969 = vmax.xlane.f32.xlu0 %v3968_v34 }
 0xf66   :  { %3821 = vmax.xlane.f32.xlu1 %v3820_v7 }
 0xf67   :  { %3818 = vmax.xlane.f32.xlu0 %v3817_v55 }
 0xf68   :  { %v6740_v62 = vpop.f32.mrb[72].mxu1 }
 0xf69   :  { %v4294_v60 = vmul.f32 0.17677669, %v6740_v62  ;;  %v4274_v49 = vpop.f32.mrb[73].mxu1 }
 0xf6a   :  { %v4293_v9 = vmul.f32 0.17677669, %v4274_v49  ;;  %3827 = vmax.xlane.f32.xlu1 %v3826_v17 }
 0xf6b   :  { %3824 = vmax.xlane.f32.xlu0 %v3823_v13  ;;  %v4298_v56 = vadd.f32 %v4294_v60, %v10586_v30 }
 0xf6c   :  { %v6743_v12 = vpop.f32.mrb[74].mxu1  ;;  %v4297_v16 = vadd.f32 %v4293_v9, %v10592_v18 }
 0xf6d   :  { %v4296_v4 = vmul.f32 0.17677669, %v6743_v12  ;;  %v4284_v34 = vpop.f32.mrb[75].mxu1  ;;  %v4304_v1 = vsel %vm103_vm2, %v4298_v56, -inf }
 0xf6e   :  { %v4295_v7 = vmul.f32 0.17677669, %v4284_v34  ;;  %4305 = vmax.xlane.f32.xlu1 %v4304_v1  ;;  %v4301_v55 = vsel %vm103_vm2, %v4297_v16, -inf }
 0xf6f   :  { %4302 = vmax.xlane.f32.xlu0 %v4301_v55  ;;  %v10624_v62 = vadd.f32 %v4296_v4, %v10600_v8 }
 0xf70   :  { %v10627_v49 = vadd.f32 %v4295_v7, %v10606_v37 }
 0xf71   :  { %v4310_v60 = vsel %vm103_vm2, %v10624_v62, -inf }
 0xf72   :  { %4311 = vmax.xlane.f32.xlu1 %v4310_v60  ;;  %v4307_v17 = vsel %vm103_vm2, %v10627_v49, -inf }
 0xf73   :  { %4308 = vmax.xlane.f32.xlu0 %v4307_v17 }
 0xfeb   :  { %v3967_v9 = vpop.xlane.xlu1 %3966 }
 0xfec   :  { %v3975_v13 = vsub.f32 %v3959_v44, %v3967_v9  ;;  %v3964_v12 = vpop.xlane.xlu0 %3963 }
 0xfed   :  { %v3974_v34 = vsub.f32 %v3958_v46, %v3964_v12 }
 0xfee   :  { %v3980_v1 = vmul.f32 1.442695, %v3975_v13 }
 0xfef   :  { %v3978_v55 = vmul.f32 1.442695, %v3974_v34  ;;  %v3973_v52 = vpop.xlane.xlu1 %3972 }
 0xff0   :  { %7917 = vpow2.f32 %v3980_v1  ;;  %v3977_v4 = vsub.f32 %v3961_v33, %v3973_v52  ;;  %v3970_v54 = vpop.xlane.xlu0 %3969 }
 0xff1   :  { %7919 = vpow2.f32 %v3978_v55  ;;  %v3976_v7 = vsub.f32 %v3960_v25, %v3970_v54 }
 0xff2   :  { %v3984_v59 = vmul.f32 1.442695, %v3977_v4 }
 0xff3   :  { %v3982_v58 = vmul.f32 1.442695, %v3976_v7  ;;  %v3822_v42 = vpop.xlane.xlu1 %3821 }
 0xff4   :  { %7921 = vpow2.f32 %v3984_v59  ;;  %v3830_v60 = vsub.f32 %v3814_v38, %v3822_v42  ;;  %v3819_v35 = vpop.xlane.xlu0 %3818 }
 0xff5   :  { %7923 = vpow2.f32 %v3982_v58  ;;  %v3829_v17 = vsub.f32 %v3813_v5, %v3819_v35 }
 0xff6   :  { %v3835_v45 = vmul.f32 1.442695, %v3830_v60 }
 0xff7   :  { %v3833_v44 = vmul.f32 1.442695, %v3829_v17  ;;  %v3828_v9 = vpop.xlane.xlu1 %3827 }
 0xff8   :  { %7925 = vpow2.f32 %v3835_v45  ;;  %v3832_v46 = vsub.f32 %v3816_v53, %v3828_v9  ;;  %v3825_v13 = vpop.xlane.xlu0 %3824 }
 0xff9   :  { %7927 = vpow2.f32 %v3833_v44  ;;  %v3831_v12 = vsub.f32 %v3815_v0, %v3825_v13 }
 0xffa   :  { %v10633_v52 = vpop.eup %7917  ;;  %v3839_v33 = vmul.f32 1.442695, %v3832_v46 }
 0xffb   :  { %v10635_v54 = vpop.eup %7919  ;;  %v3837_v25 = vmul.f32 1.442695, %v3831_v12  ;;  %v4306_v34 = vpop.xlane.xlu1 %4305  ;;  %v3989_v42 = vsel %vm103_vm2, %v10633_v52, 0.0 }
 0xffc   :  { %7929 = vpow2.f32 %v3839_v33  ;;  %v4314_v35 = vsub.f32 %v4298_v56, %v4306_v34  ;;  %3990 = vadd.xlane.f32.xlu1 %v3989_v42  ;;  %v4303_v58 = vpop.xlane.xlu0 %4302  ;;  %v3986_v45 = vsel %vm103_vm2, %v10635_v54, 0.0 }
 0xffd   :  { %7931 = vpow2.f32 %v3837_v25  ;;  %v4313_v59 = vsub.f32 %v4297_v16, %v4303_v58  ;;  %3987 = vadd.xlane.f32.xlu0 %v3986_v45 }
 0xffe   :  { %v10641_v38 = vpop.eup %7921  ;;  %v4319_v5 = vmul.f32 1.442695, %v4314_v35 }
 0xfff   :  { %v10643_v53 = vpop.eup %7923  ;;  %v4317_v0 = vmul.f32 1.442695, %v4313_v59  ;;  %v4312_v1 = vpop.xlane.xlu1 %4311  ;;  %v3995_v55 = vsel %vm103_vm2, %v10641_v38, 0.0 }
0x1000   :  { %7933 = vpow2.f32 %v4319_v5  ;;  %v4316_v56 = vsub.f32 %v10624_v62, %v4312_v1  ;;  %3996 = vadd.xlane.f32.xlu1 %v3995_v55  ;;  %v4309_v4 = vpop.xlane.xlu0 %4308  ;;  %v3992_v7 = vsel %vm103_vm2, %v10643_v53, 0.0 }
0x1001   :  { %7935 = vpow2.f32 %v4317_v0  ;;  %v4315_v16 = vsub.f32 %v10627_v49, %v4309_v4  ;;  %3993 = vadd.xlane.f32.xlu0 %v3992_v7 }
0x1002   :  { %v10651_v60 = vpop.eup %7925  ;;  %v4323_v17 = vmul.f32 1.442695, %v4316_v56 }
0x1003   :  { %v10653_v44 = vpop.eup %7927  ;;  %v4321_v9 = vmul.f32 1.442695, %v4315_v16  ;;  %v3844_v46 = vsel %vm103_vm2, %v10651_v60, 0.0 }
0x1004   :  { %7937 = vpow2.f32 %v4323_v17  ;;  %3845 = vadd.xlane.f32.xlu1 %v3844_v46  ;;  %v3841_v62 = vsel %vm103_vm2, %v10653_v44, 0.0 }
0x1005   :  { %7939 = vpow2.f32 %v4321_v9  ;;  %3842 = vadd.xlane.f32.xlu0 %v3841_v62 }
0x1006   :  { %v10659_v13 = vpop.eup %7929 }
0x1007   :  { %v10661_v49 = vpop.eup %7931  ;;  %v3850_v12 = vsel %vm103_vm2, %v10659_v13, 0.0 }
0x1008   :  { %3851 = vadd.xlane.f32.xlu1 %v3850_v12  ;;  %v3847_v33 = vsel %vm103_vm2, %v10661_v49, 0.0 }
0x1009   :  { %3848 = vadd.xlane.f32.xlu0 %v3847_v33 }
0x100a   :  { %v10667_v25 = vpop.eup %7933 }
0x100b   :  { %v10669_v34 = vpop.eup %7935  ;;  %v4328_v42 = vsel %vm103_vm2, %v10667_v25, 0.0 }
0x100c   :  { %4329 = vadd.xlane.f32.xlu1 %v4328_v42  ;;  %v4325_v35 = vsel %vm103_vm2, %v10669_v34, 0.0 }
0x100d   :  { %4326 = vadd.xlane.f32.xlu0 %v4325_v35 }
0x100e   :  { %v10675_v58 = vpop.eup %7937 }
0x100f   :  { %v10677_v45 = vpop.eup %7939  ;;  %v4334_v59 = vsel %vm103_vm2, %v10675_v58, 0.0 }
0x1010   :  { %4335 = vadd.xlane.f32.xlu1 %v4334_v59  ;;  %v4331_v5 = vsel %vm103_vm2, %v10677_v45, 0.0 }
0x1011   :  { %4332 = vadd.xlane.f32.xlu0 %v4331_v5 }
0x1089   :  { %v3991_v0 = vpop.xlane.xlu1 %3990 }
0x108a   :  { %7941 = vrcp.f32 %v3991_v0  ;;  %v3988_v1 = vpop.xlane.xlu0 %3987 }
0x108b   :  { %7943 = vrcp.f32 %v3988_v1 }
0x108d   :  { %v3997_v55 = vpop.xlane.xlu1 %3996 }
0x108e   :  { %7945 = vrcp.f32 %v3997_v55  ;;  %v3994_v56 = vpop.xlane.xlu0 %3993 }
0x108f   :  { %7947 = vrcp.f32 %v3994_v56 }
0x1091   :  { %v3846_v4 = vpop.xlane.xlu1 %3845 }
0x1092   :  { %7949 = vrcp.f32 %v3846_v4  ;;  %v3843_v7 = vpop.xlane.xlu0 %3842 }
0x1093   :  { %7951 = vrcp.f32 %v3843_v7 }
0x1094   :  { %v7942_v16 = vpop.eup %7941 }
0x1095   :  { %v7944_v17 = vpop.eup %7943  ;;  %v3852_v9 = vpop.xlane.xlu1 %3851  ;;  %v4003_v12 = vmul.f32 %v7942_v16, %v10633_v52 }
0x1096   :  { %7953 = vrcp.f32 %v3852_v9  ;;  %v3849_v46 = vpop.xlane.xlu0 %3848  ;;  %v4002_v62 = vmul.f32 %v7944_v17, %v10635_v54 }
0x1097   :  { %7955 = vrcp.f32 %v3849_v46 }
0x1098   :  { %v7946_v33 = vpop.eup %7945  ;;  %6710 = vmatprep.mubr.msk.f32.mxu0 %vm103_vm2, %v4002_v62 }
0x1099   :  { %v7948_v42 = vpop.eup %7947  ;;  %v4330_v35 = vpop.xlane.xlu1 %4329  ;;  %6711 = vmatmul.mubr.msk.f32.vlgmr.msra.gmra.mrb[74].mxu0 %vm103_vm2, %v4003_v12  ;;  %v4005_v54 = vmul.f32 %v7946_v33, %v10641_v38 }
0x109a   :  { %7957 = vrcp.f32 %v4330_v35  ;;  %7507 = vmatpush3.bf16.msra.mxu0 %v10519_v43  ;;  %v4327_v59 = vpop.xlane.xlu0 %4326  ;;  %v4004_v5 = vmul.f32 %v7948_v42, %v10643_v53 }
0x109b   :  { %7509 = vmatprep.subr.bf16.mxu0 %v10536_v2  ;;  %7959 = vrcp.f32 %v4327_v59 }
0x109c   :  { %v7950_v52 = vpop.eup %7949  ;;  %6713 = vmatprep.mubr.msk.f32.mxu0 %vm103_vm2, %v4004_v5 }
0x109d   :  { %v7952_v0 = vpop.eup %7951  ;;  %v4336_v1 = vpop.xlane.xlu1 %4335  ;;  %6714 = vmatmul.mubr.msk.f32.gmra.mrb[76].mxu0 %vm103_vm2, %v4005_v54  ;;  %v3858_v53 = vmul.f32 %v7950_v52, %v10651_v60 }
0x109e   :  { %7961 = vrcp.f32 %v4336_v1  ;;  %7511 = vmatpush3.bf16.msra.mxu0 %v10536_v2  ;;  %v4333_v55 = vpop.xlane.xlu0 %4332  ;;  %v3857_v43 = vmul.f32 %v7952_v0, %v10653_v44 }
0x109f   :  { %7521 = vmatprep.subr.bf16.mxu0 %v10521_v61  ;;  %7963 = vrcp.f32 %v4333_v55 }
0x10a0   :  { %v7954_v56 = vpop.eup %7953  ;;  %6724 = vmatprep.mubr.msk.f32.mxu0 %vm103_vm2, %v3857_v43 }
0x10a1   :  { %v7956_v38 = vpop.eup %7955  ;;  %6725 = vmatmul.mubr.msk.f32.vlgmr.msra.gmra.mrb[74].mxu0 %vm103_vm2, %v3858_v53  ;;  %v3860_v2 = vmul.f32 %v7954_v56, %v10659_v13 }
0x10a2   :  { %7523 = vmatpush3.bf16.msra.mxu0 %v10521_v61  ;;  %v3859_v4 = vmul.f32 %v7956_v38, %v10661_v49 }
0x10a3   :  { %7525 = vmatprep.subr.bf16.mxu0 %v10539_v39 }
0x10a4   :  { %v7958_v44 = vpop.eup %7957  ;;  %6727 = vmatprep.mubr.msk.f32.mxu0 %vm103_vm2, %v3859_v4 }
0x10a5   :  { %v7960_v60 = vpop.eup %7959  ;;  %6728 = vmatmul.mubr.msk.f32.gmra.mrb[76].mxu0 %vm103_vm2, %v3860_v2  ;;  %v4342_v16 = vmul.f32 %v7958_v44, %v10667_v25  ;;  %v4451_v25 = vmul.f32 %v10544_v51, %v8925_v19 }
0x10a6   :  { %7527 = vmatpush3.bf16.msra.mxu0 %v10539_v39  ;;  %v4341_v7 = vmul.f32 %v7960_v60, %v10669_v34  ;;  %v4450_v39 = vmul.f32 %v10501_v57, %v8925_v19  ;;  %v4452_v34 = vmul.f32 %v10548_v23, %v8925_v19  ;;  %v4453_v57 = vmul.f32 %v10554_v36, %v8925_v19 }
0x10a7   :  { %7529 = vmatprep.subr.bf16.mxu0 %v10507_v3 }
0x10a8   :  { %v7962_v61 = vpop.eup %7961  ;;  %6752 = vmatprep.mubr.msk.f32.mxu0 %vm103_vm2, %v4341_v7  ;;  %v5733_v7 = vld [vmem:[%s11561_s13 + $0x80] sm:$0xff] }
0x10a9   :  { %v7964_v49 = vpop.eup %7963  ;;  %6753 = vmatmul.mubr.msk.f32.vlgmr.msra.gmra.mrb[74].mxu0 %vm103_vm2, %v4342_v16  ;;  %v4344_v17 = vmul.f32 %v7962_v61, %v10675_v58  ;;  %v5734_v16 = vld [vmem:[%s11561_s13 + $0x88] sm:$0xff]  ;;  %v5735_v61 = vld [vmem:[%s11561_s13 + $0x90] sm:$0xff] }
0x10aa   :  { %v4343_v13 = vmul.f32 %v7964_v49, %v10677_v45  ;;  %v7544_v49 = vpack.c.bf16 %v5734_v16, %v5733_v7 }
0x10ac   :  { %6755 = vmatprep.mubr.msk.f32.mxu0 %vm103_vm2, %v4343_v13  ;;  %v5736_v13 = vld [vmem:[%s11561_s13 + $0x98] sm:$0xff]  ;;  %7545 = vmatprep.subr.bf16.mxu1 %v7544_v49 }
0x10ad   :  { %6756 = vmatmul.mubr.msk.f32.gmra.mrb[76].mxu0 %vm103_vm2, %v4344_v17  ;;  %v7548_v17 = vpack.c.bf16 %v5736_v13, %v5735_v61  ;;  %7547 = vmatpush3.bf16.msra.mxu1 %v7544_v49 }
0x10ae   :  { %6766 = vmatprep.mubr.f32.mxu0 %v4450_v39  ;;  %v5737_v39 = vld [vmem:[%s11561_s13 + $0xa0] sm:$0xff] }
0x10af   :  { %7531 = vmatpush3.bf16.xpose.msra.mxu0 %v10507_v3  ;;  %7549 = vmatprep.subr.bf16.mxu1 %v7548_v17 }
0x10b0   :  { %7533 = vmatprep.subr.bf16.mxu0 %v10526_v32 }
0x10b1   :  { %7551 = vmatpush3.bf16.msra.mxu1 %v7548_v17 }
0x10b7   :  { %7535 = vmatpush3.bf16.xpose.msra.mxu0 %v10526_v32 }
0x10b8   :  { %7537 = vmatprep.subr.bf16.mxu0 %v10523_v29 }
0x10be   :  { %6767 = vmatmul.mubr.f32.vlgmr.msra.gmra.mrb[78].mxu0 %v4451_v25  ;;  %v5738_v25 = vld [vmem:[%s11561_s13 + $0xa8] sm:$0xff] }
0x10bf   :  { %6769 = vmatprep.mubr.f32.mxu0 %v4452_v34  ;;  %7539 = vmatpush3.bf16.msra.mxu0 %v10523_v29  ;;  %v7552_v34 = vpack.c.bf16 %v5738_v25, %v5737_v39 }
0x10c0   :  { %7541 = vmatprep.subr.bf16.mxu0 %v10541_v21 }
0x10c1   :  { %7553 = vmatprep.subr.bf16.mxu1 %v7552_v34 }
0x10c2   :  { %6770 = vmatmul.mubr.f32.gmra.mrb[80].mxu0 %v4453_v57  ;;  %v5739_v57 = vld [vmem:[%s11561_s13 + $0xb0] sm:$0xff]  ;;  %7555 = vmatpush3.bf16.msra.mxu1 %v7552_v34 }
0x10c3   :  { %7543 = vmatpush3.bf16.msra.mxu0 %v10541_v21 }
0x1191   :  { %v6768_v3 = vpop.f32.mrb[78].mxu0 }
0x1192   :  { %v4540_v32 = vmul.f32 0.17677669, %v6768_v3  ;;  %v4520_v58 = vpop.f32.mrb[79].mxu0  ;;  %v5740_v3 = vld [vmem:[%s11561_s13 + $0xb8] sm:$0xff] }
0x1193   :  { %v4539_v45 = vmul.f32 0.17677669, %v4520_v58  ;;  %v5741_v58 = vld [vmem:[%s11561_s13 + $0xc0] sm:$0xff] }
0x1194   :  { %v4544_v51 = vadd.f32 %v4540_v32, %v10586_v30  ;;  %v7556_v32 = vpack.c.bf16 %v5740_v3, %v5739_v57  ;;  %v5754_v57 = vld [vmem:[%s11563_s15 + $0x220] sm:$0xff] }
0x1195   :  { %v6771_v9 = vpop.f32.mrb[80].mxu0  ;;  %v4543_v23 = vadd.f32 %v4539_v45, %v10592_v18  ;;  %v5742_v45 = vld [vmem:[%s11561_s13 + $0xc8] sm:$0xff] }
0x1196   :  { %v4542_v46 = vmul.f32 0.17677669, %v6771_v9  ;;  %v4530_v62 = vpop.f32.mrb[81].mxu0  ;;  %v4550_v29 = vsel %vm103_vm2, %v4544_v51, -inf  ;;  %7557 = vmatprep.subr.bf16.mxu1 %v7556_v32  ;;  %v5743_v9 = vld [vmem:[%s11561_s13 + $0xd0] sm:$0xff] }
0x1197   :  { %v4541_v12 = vmul.f32 0.17677669, %v4530_v62  ;;  %4551 = vmax.xlane.f32.xlu1 %v4550_v29  ;;  %v4547_v19 = vsel %vm103_vm2, %v4543_v23, -inf  ;;  %7559 = vmatpush3.bf16.msra.mxu1 %v7556_v32  ;;  %v5745_v62 = vld [vmem:[%s11561_s13 + $0xe0] sm:$0xff]  ;;  %v5746_v29 = vld [vmem:[%s11561_s13 + $0xe8] sm:$0xff] }
0x1198   :  { %4548 = vmax.xlane.f32.xlu0 %v4547_v19  ;;  %v4546_v21 = vadd.f32 %v4542_v46, %v10600_v8  ;;  %v5747_v19 = vld [vmem:[%s11561_s13 + $0xf0] sm:$0xff] }
0x1199   :  { %v4545_v36 = vadd.f32 %v4541_v12, %v10606_v37  ;;  %v7568_v12 = vpack.c.bf16 %v5746_v29, %v5745_v62  ;;  %v5765_v62 = vld [vmem:[%s11563_s15 + $0x278] sm:$0xff] }
0x119a   :  { %v4556_v33 = vsel %vm103_vm2, %v4546_v21, -inf }
0x119b   :  { %4557 = vmax.xlane.f32.xlu1 %v4556_v33  ;;  %v4553_v30 = vsel %vm103_vm2, %v4545_v36, -inf }
0x119c   :  { %4554 = vmax.xlane.f32.xlu0 %v4553_v30 }
0x1224   :  { %v4552_v18 = vpop.xlane.xlu1 %4551 }
0x1225   :  { %v4560_v42 = vsub.f32 %v4544_v51, %v4552_v18  ;;  %v4549_v35 = vpop.xlane.xlu0 %4548  ;;  %v7560_v51 = vpack.c.bf16 %v5742_v45, %v5741_v58  ;;  %v5752_v58 = vld [vmem:[%s11563_s15 + $0x210] sm:$0xff] }
0x1226   :  { %v4559_v59 = vsub.f32 %v4543_v23, %v4549_v35  ;;  %v5744_v23 = vld [vmem:[%s11561_s13 + $0xd8] sm:$0xff]  ;;  %v5756_v45 = vld [vmem:[%s11563_s15 + $0x230] sm:$0xff] }
0x1227   :  { %v4565_v5 = vmul.f32 1.442695, %v4560_v42  ;;  %7561 = vmatprep.subr.bf16.mxu1 %v7560_v51  ;;  %v7564_v46 = vpack.c.bf16 %v5744_v23, %v5743_v9  ;;  %v7610_v9 = vpack.c.bf16 %v5756_v45, %v5752_v58  ;;  %v5763_v23 = vld [vmem:[%s11563_s15 + $0x268] sm:$0xff] }
0x1228   :  { %v4563_v54 = vmul.f32 1.442695, %v4559_v59  ;;  %v4558_v52 = vpop.xlane.xlu1 %4557  ;;  %7563 = vmatpush3.bf16.msra.mxu1 %v7560_v51  ;;  %v5759_v51 = vld [vmem:[%s11563_s15 + $0x248] sm:$0xff] }
0x1229   :  { %7965 = vpow2.f32 %v4565_v5  ;;  %v4562_v0 = vsub.f32 %v4546_v21, %v4558_v52  ;;  %v4555_v1 = vpop.xlane.xlu0 %4554  ;;  %7565 = vmatprep.subr.bf16.mxu1 %v7564_v46  ;;  %v5748_v21 = vld [vmem:[%s11561_s13 + $0xf8] sm:$0xff]  ;;  %v7580_v29 = vpack.c.bf16 %v5763_v23, %v5759_v51  ;;  %v5776_v51 = vld [vmem:[%s11563_s15 + $0x2d0] sm:$0xff] }
0x122a   :  { %7967 = vpow2.f32 %v4563_v54  ;;  %v4561_v8 = vsub.f32 %v4545_v36, %v4555_v1  ;;  %v7572_v36 = vpack.c.bf16 %v5748_v21, %v5747_v19  ;;  %v5758_v19 = vld [vmem:[%s11563_s15 + $0x240] sm:$0xff] }
0x122b   :  { %v4569_v55 = vmul.f32 1.442695, %v4562_v0  ;;  %v5762_v21 = vld [vmem:[%s11563_s15 + $0x260] sm:$0xff] }
0x122c   :  { %v4567_v37 = vmul.f32 1.442695, %v4561_v8  ;;  %7567 = vmatpush3.bf16.msra.mxu1 %v7564_v46  ;;  %v5761_v46 = vld [vmem:[%s11563_s15 + $0x258] sm:$0xff] }
0x122d   :  { %7969 = vpow2.f32 %v4569_v55  ;;  %7569 = vmatprep.subr.bf16.mxu1 %v7568_v12 }
0x122e   :  { %7971 = vpow2.f32 %v4567_v37 }
0x1230   :  { %7571 = vmatpush3.bf16.msra.mxu1 %v7568_v12  ;;  %v7612_v12 = vpack.c.bf16 %v5765_v62, %v5761_v46  ;;  %v5783_v46 = vld [vmem:[%s11563_s15 + $0x308] sm:$0xff] }
0x1231   :  { %7573 = vmatprep.subr.bf16.mxu1 %v7572_v36  ;;  %v5787_v62 = vld [vmem:[%s11563_s15 + $0x328] sm:$0xff] }
0x1233   :  { %v10738_v43 = vpop.eup %7965 }
0x1234   :  { %v7968_v53 = vpop.eup %7967  ;;  %v4574_v56 = vsel %vm103_vm2, %v10738_v43, 0.0  ;;  %7575 = vmatpush3.bf16.msra.mxu1 %v7572_v36  ;;  %v5760_v36 = vld [vmem:[%s11563_s15 + $0x250] sm:$0xff] }
0x1235   :  { %4575 = vadd.xlane.f32.xlu1 %v4574_v56  ;;  %v4571_v38 = vsel %vm103_vm2, %v7968_v53, 0.0  ;;  %v5993_v56 = vld [vmem:[%s11562_s14 + $0x1] ss:$0 sm:$0xff] }
0x1236   :  { %4572 = vadd.xlane.f32.xlu0 %v4571_v38 }
0x1237   :  { %v10743_v4 = vpop.eup %7969 }
0x1238   :  { %v7972_v2 = vpop.eup %7971  ;;  %v4580_v44 = vsel %vm103_vm2, %v10743_v4, 0.0 }
0x1239   :  { %4581 = vadd.xlane.f32.xlu1 %v4580_v44  ;;  %v4577_v60 = vsel %vm103_vm2, %v7972_v2, 0.0 }
0x123a   :  { %4578 = vadd.xlane.f32.xlu0 %v4577_v60 }
0x12c2   :  { %v4576_v33 = vpop.xlane.xlu1 %4575 }
0x12c3   :  { %7973 = vrcp.f32 %v4576_v33  ;;  %v4573_v30 = vpop.xlane.xlu0 %4572  ;;  %v7582_v33 = vpack.c.bf16 %v5762_v21, %v5758_v19  ;;  %v5789_v19 = vld [vmem:[%s11563_s15 + $0x338] sm:$0xff]  ;;  %v5782_v21 = vld [vmem:[%s11563_s15 + $0x300] sm:$0xff] }
0x12c4   :  { %7975 = vrcp.f32 %v4573_v30  ;;  %v5764_v30 = vld [vmem:[%s11563_s15 + $0x270] sm:$0xff] }
0x12c6   :  { %v4582_v18 = vpop.xlane.xlu1 %4581 }
0x12c7   :  { %7977 = vrcp.f32 %v4582_v18  ;;  %v4579_v42 = vpop.xlane.xlu0 %4578  ;;  %v5767_v18 = vld [vmem:[%s11563_s15 + $0x288] sm:$0xff] }
0x12c8   :  { %7979 = vrcp.f32 %v4579_v42  ;;  %v5771_v42 = vld [vmem:[%s11563_s15 + $0x2a8] sm:$0xff] }
0x12cd   :  { %v7974_v35 = vpop.eup %7973 }
0x12ce   :  { %v7976_v59 = vpop.eup %7975  ;;  %v4588_v54 = vmul.f32 %v7974_v35, %v10738_v43  ;;  %v7614_v35 = vpack.c.bf16 %v5764_v30, %v5760_v36  ;;  %v5786_v36 = vld [vmem:[%s11563_s15 + $0x320] sm:$0xff] }
0x12cf   :  { %v4587_v5 = vmul.f32 %v7976_v59, %v7968_v53  ;;  %v7584_v59 = vpack.c.bf16 %v5771_v42, %v5767_v18  ;;  %v7594_v30 = vpack.c.bf16 %v5786_v36, %v5782_v21  ;;  %v5784_v18 = vld [vmem:[%s11563_s15 + $0x310] sm:$0xff]  ;;  %v5864_v36 = vld [vmem:[%s11565_s17 + $0x388] sm:$0xff] }
0x12d0   :  { %v5788_v42 = vld [vmem:[%s11563_s15 + $0x330] sm:$0xff] }
0x12d1   :  { %v7978_v52 = vpop.eup %7977  ;;  %6780 = vmatprep.mubr.msk.f32.mxu0 %vm103_vm2, %v4587_v5  ;;  %v5769_v5 = vld [vmem:[%s11563_s15 + $0x298] sm:$0xff] }
0x12d2   :  { %v7980_v0 = vpop.eup %7979  ;;  %6781 = vmatmul.mubr.msk.f32.vlgmr.msra.gmra.mrb[74].mxu0 %vm103_vm2, %v4588_v54  ;;  %v4590_v8 = vmul.f32 %v7978_v52, %v10743_v4  ;;  %v5773_v54 = vld [vmem:[%s11563_s15 + $0x2b8] sm:$0xff]  ;;  %v5766_v52 = vld [vmem:[%s11563_s15 + $0x280] sm:$0xff] }
0x12d3   :  { %v4589_v1 = vmul.f32 %v7980_v0, %v7972_v2  ;;  %v7616_v0 = vpack.c.bf16 %v5773_v54, %v5769_v5  ;;  %v5795_v5 = vld [vmem:[%s11563_s15 + $0x368] sm:$0xff]  ;;  %v5793_v54 = vld [vmem:[%s11563_s15 + $0x358] sm:$0xff] }
0x12d5   :  { %6783 = vmatprep.mubr.msk.f32.mxu0 %vm103_vm2, %v4589_v1  ;;  %v5770_v1 = vld [vmem:[%s11563_s15 + $0x2a0] sm:$0xff] }
0x12d6   :  { %6784 = vmatmul.mubr.msk.f32.gmra.mrb[76].mxu0 %vm103_vm2, %v4590_v8  ;;  %v5768_v8 = vld [vmem:[%s11563_s15 + $0x290] sm:$0xff] }
0x12d7   :  { %4936 = vmatprep.mubr.f32.mxu0 %v11640_v24 }
0x13a5   :  { %v6782_v55 = vpop.f32.mrb[74].mxu0 }
0x13a6   :  { %v4673_v37 = vpop.f32.mrb[75].mxu0 }
0x13a7   :  { %6818 = vmatprep.mubr.f32.mxu1 %v4673_v37  ;;  %v7586_v37 = vpack.c.bf16 %v5770_v1, %v5766_v52  ;;  %v5790_v1 = vld [vmem:[%s11563_s15 + $0x340] sm:$0xff] }
0x13a8   :  { %6819 = vmatmul.mubr.f32.vlgmr.msra.gmra.mrb[76].mxu1 %v6782_v55  ;;  %v5772_v55 = vld [vmem:[%s11563_s15 + $0x2b0] sm:$0xff] }
0x13a9   :  { %v6785_v43 = vpop.f32.mrb[76].mxu0 }
0x13aa   :  { %v4683_v53 = vpop.f32.mrb[77].mxu0 }
0x13ab   :  { %6821 = vmatprep.mubr.f32.mxu1 %v4683_v53 }
0x13ac   :  { %6822 = vmatmul.mubr.f32.gmra.mrb[78].mxu1 %v6785_v43  ;;  %v7618_v43 = vpack.c.bf16 %v5772_v55, %v5768_v8  ;;  %v5794_v8 = vld [vmem:[%s11563_s15 + $0x360] sm:$0xff] }
0x13ad   :  { %5025 = vmatprep.mubr.f32.mxu1 %v11640_v24 }
0x147b   :  { %v6820_v38 = vpop.f32.mrb[76].mxu1 }
0x147c   :  { %v4774_v4 = vadd.f32 %v6820_v38, %v5993_v56  ;;  %v4768_v2 = vpop.f32.mrb[77].mxu1 }
0x147d   :  { %v4769_v44 = vadd.f32 %v5993_v56, %v4768_v2 }
0x147e   :  { %v4788_v60 = vmul.f32 %v4774_v4, %v10269_v40 }
0x147f   :  { %v4787_v7 = vmul.f32 %v4769_v44, %v10261_v10  ;;  %v6823_v16 = vpop.f32.mrb[78].mxu1 }
0x1480   :  { %v4784_v61 = vadd.f32 %v6823_v16, %v5993_v56  ;;  %v4778_v49 = vpop.f32.mrb[79].mxu1  ;;  %v10810_v13 = vadd.f32 %v4788_v60, %v10230_v22  ;;  %v5755_v22 = vld [vmem:[%s11563_s15 + $0x228] sm:$0xff] }
0x1481   :  { %v4779_v17 = vadd.f32 %v5993_v56, %v4778_v49  ;;  %v10813_v39 = vadd.f32 %v4787_v7, %v10221_v47  ;;  %v5751_v47 = vld [vmem:[%s11563_s15 + $0x208] sm:$0xff] }
0x1482   :  { %v4790_v25 = vmul.f32 %v4784_v61, %v10285_v48  ;;  %4797 = vadd.xlane.f32.xlu1 %v10810_v13  ;;  %v5750_v48 = vld [vmem:[%s11563_s15 + $0x200] sm:$0xff] }
0x1483   :  { %v4789_v34 = vmul.f32 %v4779_v17, %v10277_v14  ;;  %4795 = vadd.xlane.f32.xlu0 %v10813_v39  ;;  %v7576_v14 = vpack.c.bf16 %v5755_v22, %v5751_v47  ;;  %v7578_v32 = vpack.c.bf16 %v5754_v57, %v5750_v48  ;;  %v5781_v57 = vld [vmem:[%s11563_s15 + $0x2f8] sm:$0xff] }
0x1484   :  { %v10820_v10 = vadd.f32 %v4790_v25, %v10250_v11  ;;  %v5753_v11 = vld [vmem:[%s11563_s15 + $0x218] sm:$0xff] }
0x1485   :  { %v10823_v40 = vadd.f32 %v4789_v34, %v10238_v6  ;;  %v5757_v6 = vld [vmem:[%s11563_s15 + $0x238] sm:$0xff]  ;;  %7577 = vmatprep.subr.bf16.mxu0 %v7576_v14  ;;  %v5779_v14 = vld [vmem:[%s11563_s15 + $0x2e8] sm:$0xff] }
0x1486   :  { %4801 = vadd.xlane.f32.xlu1 %v10820_v10  ;;  %v7608_v3 = vpack.c.bf16 %v5757_v6, %v5753_v11  ;;  %7579 = vmatpush1.bf16.msra.mxu0 %v7578_v32  ;;  %v5775_v11 = vld [vmem:[%s11563_s15 + $0x2c8] sm:$0xff]  ;;  %v5777_v6 = vld [vmem:[%s11563_s15 + $0x2d8] sm:$0xff]  ;;  %v5778_v32 = vld [vmem:[%s11563_s15 + $0x2e0] sm:$0xff] }
0x1487   :  { %4799 = vadd.xlane.f32.xlu0 %v10823_v40  ;;  %7581 = vmatprep.subr.bf16.mxu0 %v7580_v29  ;;  %v7588_v48 = vpack.c.bf16 %v5779_v14, %v5775_v11  ;;  %v7620_v58 = vpack.c.bf16 %v5781_v57, %v5777_v6  ;;  %v5785_v29 = vld [vmem:[%s11563_s15 + $0x318] sm:$0xff]  ;;  %v5804_v11 = vld [vmem:[%s11563_s15 + $0x3b0] sm:$0xff]  ;;  %v5807_v14 = vld [vmem:[%s11563_s15 + $0x3c8] sm:$0xff] }
0x1488   :  { %7609 = vmatprep.subr.bf16.mxu1 %v7608_v3  ;;  %v5774_v3 = vld [vmem:[%s11563_s15 + $0x2c0] sm:$0xff]  ;;  %v5809_v57 = vld [vmem:[%s11563_s15 + $0x3d8] sm:$0xff] }
0x1489   :  { %7611 = vmatpush1.bf16.msra.mxu1 %v7610_v9  ;;  %v7590_v45 = vpack.c.bf16 %v5778_v32, %v5774_v3  ;;  %v5780_v9 = vld [vmem:[%s11563_s15 + $0x2f0] sm:$0xff]  ;;  %v5813_v3 = vld [vmem:[%s11563_s15 + $0x3f8] sm:$0xff] }
0x148a   :  { %7613 = vmatprep.subr.bf16.mxu1 %v7612_v12  ;;  %7583 = vmatpush1.bf16.msra.mxu0 %v7582_v33  ;;  %v7622_v23 = vpack.c.bf16 %v5780_v9, %v5776_v51  ;;  %v7592_v12 = vpack.c.bf16 %v5787_v62, %v5783_v46  ;;  %v7624_v33 = vpack.c.bf16 %v5789_v19, %v5785_v29  ;;  %v5810_v51 = vld [vmem:[%s11563_s15 + $0x3e0] sm:$0xff]  ;;  %v5808_v9 = vld [vmem:[%s11563_s15 + $0x3d0] sm:$0xff] }
0x148b   :  { %7585 = vmatprep.subr.bf16.mxu0 %v7584_v59  ;;  %v5791_v59 = vld [vmem:[%s11563_s15 + $0x348] sm:$0xff]  ;;  %v5812_v46 = vld [vmem:[%s11563_s15 + $0x3f0] sm:$0xff]  ;;  %v5831_v29 = vld [vmem:[%s11565_s17 + $0x280] sm:$0xff] }
0x148c   :  { %v7596_v52 = vpack.c.bf16 %v5795_v5, %v5791_v59  ;;  %v7638_v62 = vpack.c.bf16 %v5812_v46, %v5808_v9  ;;  %v5863_v19 = vld [vmem:[%s11565_s17 + $0x380] sm:$0xff]  ;;  %v5850_v9 = vld [vmem:[%s11565_s17 + $0x318] sm:$0xff] }
0x148d   :  { %7615 = vmatpush1.bf16.msra.mxu1 %v7614_v35  ;;  %v7626_v35 = vpack.c.bf16 %v5788_v42, %v5784_v18  ;;  %v5835_v46 = vld [vmem:[%s11565_s17 + $0x2a0] sm:$0xff] }
0x148e   :  { %7617 = vmatprep.subr.bf16.mxu1 %v7616_v0  ;;  %7587 = vmatpush1.bf16.msra.mxu0 %v7586_v37  ;;  %v5797_v0 = vld [vmem:[%s11563_s15 + $0x378] sm:$0xff]  ;;  %v7598_v37 = vpack.c.bf16 %v5794_v8, %v5790_v1 }
0x148f   :  { %7589 = vmatprep.subr.bf16.mxu0 %v7588_v48  ;;  %v7628_v55 = vpack.c.bf16 %v5797_v0, %v5793_v54  ;;  %v5811_v48 = vld [vmem:[%s11563_s15 + $0x3e8] sm:$0xff] }
0x1490   :  { %v7604_v32 = vpack.c.bf16 %v5811_v48, %v5807_v14 }
0x1491   :  { %7619 = vmatpush1.bf16.msra.mxu1 %v7618_v43  ;;  %v5792_v43 = vld [vmem:[%s11563_s15 + $0x350] sm:$0xff] }
0x1492   :  { %7621 = vmatprep.subr.bf16.mxu1 %v7620_v58  ;;  %7591 = vmatpush1.bf16.msra.mxu0 %v7590_v45  ;;  %v7636_v58 = vpack.c.bf16 %v5813_v3, %v5809_v57  ;;  %v5806_v45 = vld [vmem:[%s11563_s15 + $0x3c0] sm:$0xff] }
0x1493   :  { %7593 = vmatprep.subr.bf16.mxu0 %v7592_v12  ;;  %v5832_v12 = vld [vmem:[%s11565_s17 + $0x288] sm:$0xff] }
0x1494   :  { %v7640_v21 = vpack.c.bf16 %v5832_v12, %v5831_v29  ;;  %v5867_v29 = vld [vmem:[%s11565_s17 + $0x3a0] sm:$0xff] }
0x1495   :  { %7623 = vmatpush1.bf16.msra.mxu1 %v7622_v23  ;;  %v7606_v23 = vpack.c.bf16 %v5810_v51, %v5806_v45  ;;  %v5849_v51 = vld [vmem:[%s11565_s17 + $0x310] sm:$0xff] }
0x1496   :  { %7625 = vmatprep.subr.bf16.mxu1 %v7624_v33  ;;  %7595 = vmatpush1.bf16.msra.mxu0 %v7594_v30  ;;  %v7672_v33 = vpack.c.bf16 %v5864_v36, %v5863_v19  ;;  %v5868_v19 = vld [vmem:[%s11565_s17 + $0x3a8] sm:$0xff] }
0x1497   :  { %7597 = vmatprep.subr.bf16.mxu0 %v7596_v52  ;;  %v5820_v36 = vld [vmem:[%s11565_s17 + $0x228] sm:$0xff] }
0x1499   :  { %7627 = vmatpush1.bf16.msra.mxu1 %v7626_v35 }
0x149a   :  { %7629 = vmatprep.subr.bf16.mxu1 %v7628_v55  ;;  %7599 = vmatpush1.bf16.msra.mxu0 %v7598_v37 }
0x150f   :  { %v4798_v53 = vpop.xlane.xlu1 %4797 }
0x1510   :  { %v4804_v56 = vmul.f32 0.0078125, %v4798_v53  ;;  %v4796_v38 = vpop.xlane.xlu0 %4795  ;;  %v5796_v53 = vld [vmem:[%s11563_s15 + $0x370] sm:$0xff] }
0x1511   :  { %v4803_v4 = vmul.f32 0.0078125, %v4796_v38  ;;  %v5799_v38 = vld [vmem:[%s11563_s15 + $0x388] sm:$0xff] }
0x1512   :  { %v10900_v2 = vsub.f32 %v10810_v13, %v4804_v56  ;;  %v7630_v56 = vpack.c.bf16 %v5796_v53, %v5792_v43  ;;  %v4840_v53 = vadd.f32 1.0, %v10347_v15  ;;  %v5848_v15 = vld [vmem:[%s11565_s17 + $0x308] sm:$0xff] }
0x1513   :  { %v10903_v44 = vsub.f32 %v10813_v39, %v4803_v4  ;;  %v4802_v60 = vpop.xlane.xlu1 %4801  ;;  %v5803_v4 = vld [vmem:[%s11563_s15 + $0x3a8] sm:$0xff] }
0x1514   :  { %v4806_v7 = vmul.f32 0.0078125, %v4802_v60  ;;  %v4800_v16 = vpop.xlane.xlu0 %4799  ;;  %v4812_v61 = vmul.f32 %v10900_v2, %v10900_v2  ;;  %v5801_v60 = vld [vmem:[%s11563_s15 + $0x398] sm:$0xff]  ;;  %7631 = vmatpush1.bf16.msra.mxu1 %v7630_v56 }
0x1515   :  { %v4805_v49 = vmul.f32 0.0078125, %v4800_v16  ;;  %v4811_v17 = vmul.f32 %v10903_v44, %v10903_v44  ;;  %v5805_v16 = vld [vmem:[%s11563_s15 + $0x3b8] sm:$0xff] }
0x1516   :  { %v10910_v25 = vsub.f32 %v10820_v10, %v4806_v7  ;;  %4817 = vadd.xlane.f32.xlu1 %v4812_v61  ;;  %v7600_v7 = vpack.c.bf16 %v5803_v4, %v5799_v38  ;;  %v5798_v61 = vld [vmem:[%s11563_s15 + $0x380] sm:$0xff]  ;;  %v4839_v38 = vadd.f32 1.0, %v10343_v28 }
0x1517   :  { %v10913_v34 = vsub.f32 %v10823_v40, %v4805_v49  ;;  %4815 = vadd.xlane.f32.xlu0 %v4811_v17  ;;  %v5802_v49 = vld [vmem:[%s11563_s15 + $0x3a0] sm:$0xff]  ;;  %v7632_v17 = vpack.c.bf16 %v5805_v16, %v5801_v60  ;;  %v5816_v16 = vld [vmem:[%s11565_s17 + $0x208] sm:$0xff] }
0x1518   :  { %v4814_v47 = vmul.f32 %v10910_v25, %v10910_v25  ;;  %7601 = vmatprep.subr.bf16.mxu0 %v7600_v7  ;;  %v5815_v60 = vld [vmem:[%s11565_s17 + $0x200] sm:$0xff] }
0x1519   :  { %v4813_v22 = vmul.f32 %v10913_v34, %v10913_v34  ;;  %7633 = vmatprep.subr.bf16.mxu1 %v7632_v17  ;;  %v4842_v17 = vadd.f32 1.0, %v10355_v41 }
0x151a   :  { %4821 = vadd.xlane.f32.xlu1 %v4814_v47  ;;  %v7602_v47 = vpack.c.bf16 %v5802_v49, %v5798_v61  ;;  %v5847_v61 = vld [vmem:[%s11565_s17 + $0x300] sm:$0xff]  ;;  %v4841_v49 = vadd.f32 1.0, %v10351_v26 }
0x151b   :  { %4819 = vadd.xlane.f32.xlu0 %v4813_v22  ;;  %v5800_v22 = vld [vmem:[%s11563_s15 + $0x390] sm:$0xff]  ;;  %v7674_v48 = vpack.c.bf16 %v5848_v15, %v5847_v61  ;;  %v5823_v61 = vld [vmem:[%s11565_s17 + $0x240] sm:$0xff]  ;;  %v5824_v15 = vld [vmem:[%s11565_s17 + $0x248] sm:$0xff] }
0x151c   :  { %v7634_v6 = vpack.c.bf16 %v5804_v11, %v5800_v22  ;;  %7603 = vmatpush1.bf16.msra.mxu0 %v7602_v47 }
0x151d   :  { %7605 = vmatprep.subr.bf16.mxu0 %v7604_v32  ;;  %v5818_v32 = vld [vmem:[%s11565_s17 + $0x218] sm:$0xff] }
0x151e   :  { %7635 = vmatpush1.bf16.msra.mxu1 %v7634_v6  ;;  %v7642_v6 = vpack.c.bf16 %v5816_v16, %v5815_v60  ;;  %v5871_v60 = vld [vmem:[%s11565_s17 + $0x3c0] sm:$0xff]  ;;  %v5872_v16 = vld [vmem:[%s11565_s17 + $0x3c8] sm:$0xff] }
0x151f   :  { %7637 = vmatprep.subr.bf16.mxu1 %v7636_v58 }
0x1520   :  { %7607 = vmatpush1.bf16.msra.mxu0 %v7606_v23  ;;  %v7678_v23 = vpack.c.bf16 %v5850_v9, %v5849_v51  ;;  %v5828_v51 = vld [vmem:[%s11565_s17 + $0x268] sm:$0xff]  ;;  %v5859_v9 = vld [vmem:[%s11565_s17 + $0x360] sm:$0xff] }
0x1521   :  { %7641 = vmatprep.subr.bf16.mxu0 %v7640_v21  ;;  %v5819_v21 = vld [vmem:[%s11565_s17 + $0x220] sm:$0xff] }
0x1522   :  { %7639 = vmatpush1.bf16.msra.mxu1 %v7638_v62  ;;  %v5836_v62 = vld [vmem:[%s11565_s17 + $0x2a8] sm:$0xff] }
0x1523   :  { %7673 = vmatprep.subr.bf16.mxu1 %v7672_v33  ;;  %v7648_v12 = vpack.c.bf16 %v5836_v62, %v5835_v46  ;;  %v7680_v33 = vpack.c.bf16 %v5868_v19, %v5867_v29  ;;  %v5860_v46 = vld [vmem:[%s11565_s17 + $0x368] sm:$0xff]  ;;  %v5845_v62 = vld [vmem:[%s11565_s17 + $0x2f0] sm:$0xff]  ;;  %v5846_v29 = vld [vmem:[%s11565_s17 + $0x2f8] sm:$0xff] }
0x1524   :  { %v7668_v19 = vpack.c.bf16 %v5846_v29, %v5845_v62 }
0x15a3   :  { %v4818_v30 = vpop.xlane.xlu1 %4817 }
0x15a4   :  { %v4824_v18 = vmul.f32 0.0078125, %v4818_v30  ;;  %v4816_v42 = vpop.xlane.xlu0 %4815  ;;  %v7650_v30 = vpack.c.bf16 %v5820_v36, %v5819_v21  ;;  %v5877_v21 = vld [vmem:[%s11565_s17 + $0x3f0] sm:$0xff]  ;;  %v5878_v36 = vld [vmem:[%s11565_s17 + $0x3f8] sm:$0xff] }
0x15a5   :  { %v4823_v35 = vmul.f32 0.0078125, %v4816_v42  ;;  %v5852_v42 = vld [vmem:[%s11565_s17 + $0x328] sm:$0xff] }
0x15a6   :  { %v4828_v59 = vadd.f32 1e-06, %v4824_v18  ;;  %v5851_v18 = vld [vmem:[%s11565_s17 + $0x320] sm:$0xff] }
0x15a7   :  { %v4827_v5 = vadd.f32 1e-06, %v4823_v35  ;;  %v4822_v54 = vpop.xlane.xlu1 %4821  ;;  %v7682_v35 = vpack.c.bf16 %v5852_v42, %v5851_v18  ;;  %v5830_v18 = vld [vmem:[%s11565_s17 + $0x278] sm:$0xff]  ;;  %v5861_v42 = vld [vmem:[%s11565_s17 + $0x370] sm:$0xff] }
0x15a8   :  { %7981 = vrsqrt.f32 %v4828_v59  ;;  %v4826_v52 = vmul.f32 0.0078125, %v4822_v54  ;;  %v4820_v0 = vpop.xlane.xlu0 %4819  ;;  %v5837_v59 = vld [vmem:[%s11565_s17 + $0x2b0] sm:$0xff] }
0x15a9   :  { %7983 = vrsqrt.f32 %v4827_v5  ;;  %v4825_v1 = vmul.f32 0.0078125, %v4820_v0  ;;  %v5838_v5 = vld [vmem:[%s11565_s17 + $0x2b8] sm:$0xff]  ;;  %v5869_v54 = vld [vmem:[%s11565_s17 + $0x3b0] sm:$0xff] }
0x15aa   :  { %v4830_v8 = vadd.f32 1e-06, %v4826_v52  ;;  %v7652_v52 = vpack.c.bf16 %v5838_v5, %v5837_v59  ;;  %v5870_v0 = vld [vmem:[%s11565_s17 + $0x3b8] sm:$0xff] }
0x15ab   :  { %v4829_v55 = vadd.f32 1e-06, %v4825_v1  ;;  %v5821_v1 = vld [vmem:[%s11565_s17 + $0x230] sm:$0xff] }
0x15ac   :  { %7985 = vrsqrt.f32 %v4830_v8  ;;  %v5822_v8 = vld [vmem:[%s11565_s17 + $0x238] sm:$0xff] }
0x15ad   :  { %7987 = vrsqrt.f32 %v4829_v55  ;;  %v7684_v55 = vpack.c.bf16 %v5870_v0, %v5869_v54  ;;  %v11665_v54 = vmov 0.0|0.0  }
0x15b2   :  { %v7982_v37 = vpop.eup %7981 }
0x15b3   :  { %v7984_v43 = vpop.eup %7983  ;;  %v4836_v56 = vmul.f32 %v7982_v37, %v10900_v2  ;;  %v7654_v37 = vpack.c.bf16 %v5822_v8, %v5821_v1  ;;  %v11666_v1 = vld [vmem:[#allocation16_spill] sm:$0xff] }
0x15b4   :  { %v4835_v4 = vmul.f32 %v7984_v43, %v10903_v44  ;;  %v5853_v43 = vld [vmem:[%s11565_s17 + $0x330] sm:$0xff] }
0x15b5   :  { %v4844_v7 = vmul.f32 %v4840_v53, %v4836_v56  ;;  %v5854_v53 = vld [vmem:[%s11565_s17 + $0x338] sm:$0xff] }
0x15b6   :  { %v7986_v28 = vpop.eup %7985  ;;  %v4843_v2 = vmul.f32 %v4839_v38, %v4835_v4  ;;  %v7686_v56 = vpack.c.bf16 %v5854_v53, %v5853_v43  ;;  %v5839_v38 = vld [vmem:[%s11565_s17 + $0x2c0] sm:$0xff]  ;;  %v5840_v4 = vld [vmem:[%s11565_s17 + $0x2c8] sm:$0xff]  ;;  %v11668_v43 = vld [vmem:[#allocation19_spill] sm:$0xff] }
0x15b7   :  { %v7988_v44 = vpop.eup %7987  ;;  %v4848_v47 = vadd.f32 %v4844_v7, %v10271_v50  ;;  %v4838_v22 = vmul.f32 %v7986_v28, %v10910_v25  ;;  %v5866_v25 = vld [vmem:[%s11565_s17 + $0x398] sm:$0xff]  ;;  %v7656_v7 = vpack.c.bf16 %v5840_v4, %v5839_v38  ;;  %v7688_v28 = vpack.c.bf16 %v5872_v16, %v5871_v60 }
0x15b8   :  { %v4847_v11 = vadd.f32 %v4843_v2, %v10263_v63  ;;  %v4837_v14 = vmul.f32 %v7988_v44, %v10913_v34  ;;  %v5833_v63 = vld [vmem:[%s11565_s17 + $0x290] sm:$0xff]  ;;  %v7658_v2 = vpack.c.bf16 %v5824_v15, %v5823_v61  ;;  %v5855_v44 = vld [vmem:[%s11565_s17 + $0x340] sm:$0xff] }
0x15b9   :  { %v4846_v57 = vmul.f32 %v4842_v17, %v4838_v22  ;;  %v5817_v34 = vld [vmem:[%s11565_s17 + $0x210] sm:$0xff]  ;;  %v5842_v22 = vld [vmem:[%s11565_s17 + $0x2d8] sm:$0xff] }
0x15ba   :  { %4937 = vmatmul.mubr.f32.vlgmr.msra.gmra.mrb[82].mxu0 %v4847_v11  ;;  %5026 = vmatmul.mubr.f32.vlgmr.msra.gmra.mrb[80].mxu1 %v4847_v11  ;;  %v4845_v3 = vmul.f32 %v4841_v49, %v4837_v14  ;;  %v7646_v45 = vpack.c.bf16 %v5818_v32, %v5817_v34  ;;  %v5856_v49 = vld [vmem:[%s11565_s17 + $0x348] sm:$0xff]  ;;  %v5873_v11 = vld [vmem:[%s11565_s17 + $0x3d0] sm:$0xff] }
0x15bb   :  { %4942 = vmatprep.mubr.f32.mxu0 %v11640_v24  ;;  %5031 = vmatprep.mubr.f32.mxu1 %v11640_v24  ;;  %v4850_v26 = vadd.f32 %v4846_v57, %v10287_v20  ;;  %v5865_v20 = vld [vmem:[%s11565_s17 + $0x390] sm:$0xff]  ;;  %v7690_v17 = vpack.c.bf16 %v5856_v49, %v5855_v44  ;;  %v5826_v57 = vld [vmem:[%s11565_s17 + $0x258] sm:$0xff]  ;;  %v5876_v34 = vld [vmem:[%s11565_s17 + $0x3e8] sm:$0xff] }
0x15bc   :  { %v4849_v50 = vadd.f32 %v4845_v3, %v10279_v27  ;;  %7643 = vmatpush3.bf16.msra.mxu0 %v7642_v6  ;;  %7675 = vmatpush3.bf16.msra.mxu1 %v7674_v48  ;;  %v5834_v27 = vld [vmem:[%s11565_s17 + $0x298] sm:$0xff]  ;;  %v7676_v58 = vpack.c.bf16 %v5866_v25, %v5865_v20  ;;  %v5825_v48 = vld [vmem:[%s11565_s17 + $0x250] sm:$0xff]  ;;  %v5875_v25 = vld [vmem:[%s11565_s17 + $0x3e0] sm:$0xff] }
0x15bd   :  { %v7644_v41 = vpack.c.bf16 %v5834_v27, %v5833_v63  ;;  %v5874_v6 = vld [vmem:[%s11565_s17 + $0x3d8] sm:$0xff]  ;;  %v5843_v27 = vld [vmem:[%s11565_s17 + $0x2e0] sm:$0xff] }
0x15be   :  { %4943 = vmatmul.mubr.f32.gmra.mrb[84].mxu0 %v4848_v47  ;;  %5032 = vmatmul.mubr.f32.gmra.mrb[82].mxu1 %v4848_v47  ;;  %v5841_v47 = vld [vmem:[%s11565_s17 + $0x2d0] sm:$0xff]  ;;  %v7692_v3 = vpack.c.bf16 %v5874_v6, %v5873_v11  ;;  %v5858_v63 = vld [vmem:[%s11565_s17 + $0x358] sm:$0xff] }
0x15bf   :  { %4948 = vmatprep.mubr.f32.mxu0 %v11640_v24  ;;  %5037 = vmatprep.mubr.f32.mxu1 %v11640_v24  ;;  %v7660_v14 = vpack.c.bf16 %v5842_v22, %v5841_v47 }
0x15c0   :  { %7645 = vmatprep.subr.bf16.mxu0 %v7644_v41  ;;  %7677 = vmatprep.subr.bf16.mxu1 %v7676_v58  ;;  %v5844_v41 = vld [vmem:[%s11565_s17 + $0x2e8] sm:$0xff]  ;;  %v7696_v58 = vpack.c.bf16 %v5876_v34, %v5875_v25 }
0x15c1   :  { %7647 = vmatpush3.bf16.msra.mxu0 %v7646_v45  ;;  %7679 = vmatpush3.bf16.msra.mxu1 %v7678_v23  ;;  %v7664_v32 = vpack.c.bf16 %v5844_v41, %v5843_v27  ;;  %v5827_v45 = vld [vmem:[%s11565_s17 + $0x260] sm:$0xff] }
0x15c2   :  { %4949 = vmatmul.mubr.f32.gmra.mrb[86].mxu0 %v4849_v50  ;;  %5038 = vmatmul.mubr.f32.gmra.mrb[84].mxu1 %v4849_v50  ;;  %v5857_v50 = vld [vmem:[%s11565_s17 + $0x350] sm:$0xff]  ;;  %v7666_v23 = vpack.c.bf16 %v5828_v51, %v5827_v45 }
0x15c3   :  { %4954 = vmatprep.mubr.f32.mxu0 %v11640_v24  ;;  %5043 = vmatprep.mubr.f32.mxu1 %v11640_v24  ;;  %v7694_v20 = vpack.c.bf16 %v5858_v63, %v5857_v50 }
0x15c4   :  { %7649 = vmatprep.subr.bf16.mxu0 %v7648_v12  ;;  %7681 = vmatprep.subr.bf16.mxu1 %v7680_v33  ;;  %v7698_v12 = vpack.c.bf16 %v5860_v46, %v5859_v9  ;;  %v5829_v33 = vld [vmem:[%s11565_s17 + $0x270] sm:$0xff] }
0x15c5   :  { %7651 = vmatpush3.bf16.msra.mxu0 %v7650_v30  ;;  %7683 = vmatpush3.bf16.msra.mxu1 %v7682_v35  ;;  %v7700_v30 = vpack.c.bf16 %v5878_v36, %v5877_v21  ;;  %v5862_v35 = vld [vmem:[%s11565_s17 + $0x378] sm:$0xff]  ;;  %v7670_v59 = vpack.c.bf16 %v5830_v18, %v5829_v33 }
0x15c6   :  { %4955 = vmatmul.mubr.f32.gmra.mrb[88].mxu0 %v4850_v26  ;;  %5044 = vmatmul.mubr.f32.gmra.mrb[86].mxu1 %v4850_v26  ;;  %v7662_v26 = vpack.c.bf16 %v5826_v57, %v5825_v48  ;;  %v7702_v5 = vpack.c.bf16 %v5862_v35, %v5861_v42 }
0x15c7   :  { %7653 = vmatprep.subr.bf16.mxu0 %v7652_v52  ;;  %7685 = vmatprep.subr.bf16.mxu1 %v7684_v55  ;;  %v5814_v52 = vld [vmem:[%s11564_s16 + $0x4] sm:$0xf]  ;;  %v11667_v55 = vld [vmem:[#allocation6_spill] sm:$0xff] }
0x15c8   :  { %v11255_v0 = vrot.slane %v5814_v52, %v11644_v31  ;;  %v11258_v8 = vrot.slane %v5814_v52, %v11666_v1  ;;  %v11264_v53 = vrot.slane %v5814_v52, %v11668_v43 }
0x15c9   :  { %7655 = vmatpush3.bf16.msra.mxu0 %v7654_v37  ;;  %7687 = vmatpush3.bf16.msra.mxu1 %v7686_v56  ;;  %v11261_v37 = vrot.slane %v5814_v52, %v11667_v55 }
0x15ca   :  { %7657 = vmatprep.subr.bf16.mxu0 %v7656_v7  ;;  %7689 = vmatprep.subr.bf16.mxu1 %v7688_v28 }
0x15cd   :  { %7659 = vmatpush3.bf16.msra.mxu0 %v7658_v2  ;;  %7691 = vmatpush3.bf16.msra.mxu1 %v7690_v17 }
0x15ce   :  { %7661 = vmatprep.subr.bf16.mxu0 %v7660_v14  ;;  %7693 = vmatprep.subr.bf16.mxu1 %v7692_v3 }
0x15d1   :  { %7663 = vmatpush3.bf16.msra.mxu0 %v7662_v26  ;;  %7695 = vmatpush3.bf16.msra.mxu1 %v7694_v20 }
0x15d2   :  { %7665 = vmatprep.subr.bf16.mxu0 %v7664_v32  ;;  %7697 = vmatprep.subr.bf16.mxu1 %v7696_v58 }
0x15d5   :  { %7667 = vmatpush3.bf16.msra.mxu0 %v7666_v23  ;;  %7699 = vmatpush3.bf16.msra.mxu1 %v7698_v12 }
0x15d6   :  { %7669 = vmatprep.subr.bf16.mxu0 %v7668_v19  ;;  %7701 = vmatprep.subr.bf16.mxu1 %v7700_v30 }
0x15d9   :  { %7671 = vmatpush3.bf16.msra.mxu0 %v7670_v59  ;;  %7703 = vmatpush3.bf16.msra.mxu1 %v7702_v5 }
0x15da   :  { %7704 = vmatprep.subr.bf16.mxu0 %v11665_v54  ;;  %7728 = vmatprep.subr.bf16.mxu1 %v11665_v54 }
0x168d   :  { %v4938_v56 = vpop.f32.mrb[82].mxu0  ;;  %v5027_v38 = vpop.f32.mrb[80].mxu1 }
0x168e   :  { %v4939_v4 = vadd.f32 %v4938_v56, %v11255_v0  ;;  %v5028_v60 = vadd.f32 %v5027_v38, %v11258_v8  ;;  %v4940_v7 = vpop.f32.mrb[83].mxu0  ;;  %v5029_v16 = vpop.f32.mrb[81].mxu1 }
0x168f   :  { %v11269_v31 = vadd.f32 %v4940_v7, %v11261_v37  ;;  %v11272_v61 = vadd.f32 %v5029_v16, %v11264_v53 }
0x1690   :  { %v5066_v15 = vmul.f32 0.044715, %v4939_v4  ;;  %v5068_v28 = vmul.f32 0.044715, %v5028_v60  ;;  %v11310_v52 = vmul.f32 0.5, %v4939_v4 }
0x1691   :  { %v5067_v2 = vmul.f32 0.044715, %v11269_v31  ;;  %v5069_v44 = vmul.f32 0.044715, %v11272_v61  ;;  %v4944_v49 = vpop.f32.mrb[84].mxu0  ;;  %v5033_v17 = vpop.f32.mrb[82].mxu1 }
0x1692   :  { %v5082_v47 = vmul.f32 %v5066_v15, %v4939_v4  ;;  %v5084_v22 = vmul.f32 %v5068_v28, %v5028_v60  ;;  %v4946_v11 = vpop.f32.mrb[85].mxu0  ;;  %v5035_v14 = vpop.f32.mrb[83].mxu1  ;;  %v11279_v57 = vadd.f32 %v4944_v49, %v11255_v0  ;;  %v11289_v32 = vadd.f32 %v5033_v17, %v11258_v8 }
0x1693   :  { %v5083_v6 = vmul.f32 %v5067_v2, %v11269_v31  ;;  %v5085_v48 = vmul.f32 %v5069_v44, %v11272_v61  ;;  %v11282_v3 = vadd.f32 %v4946_v11, %v11261_v37  ;;  %v11285_v63 = vadd.f32 %v5035_v14, %v11264_v53 }
0x1694   :  { %v5098_v26 = vmul.f32 %v5082_v47, %v4939_v4  ;;  %v5100_v50 = vmul.f32 %v5084_v22, %v5028_v60  ;;  %v5070_v9 = vmul.f32 0.044715, %v11279_v57  ;;  %v5072_v42 = vmul.f32 0.044715, %v11289_v32 }
0x1695   :  { %v4950_v27 = vpop.f32.mrb[86].mxu0  ;;  %v5039_v20 = vpop.f32.mrb[84].mxu1  ;;  %v5099_v41 = vmul.f32 %v5083_v6, %v11269_v31  ;;  %v5101_v51 = vmul.f32 %v5085_v48, %v11272_v61  ;;  %v5071_v23 = vmul.f32 0.044715, %v11282_v3  ;;  %v5073_v29 = vmul.f32 0.044715, %v11285_v63 }
0x1696   :  { %v5114_v25 = vadd.f32 %v5098_v26, %v4939_v4  ;;  %v5116_v34 = vadd.f32 %v5100_v50, %v5028_v60  ;;  %v4952_v58 = vpop.f32.mrb[87].mxu0  ;;  %v5041_v45 = vpop.f32.mrb[85].mxu1  ;;  %v11295_v46 = vadd.f32 %v4950_v27, %v11255_v0  ;;  %v11305_v36 = vadd.f32 %v5039_v20, %v11258_v8 }
0x1697   :  { %v11299_v12 = vadd.f32 %v4952_v58, %v11261_v37  ;;  %v11302_v19 = vadd.f32 %v5041_v45, %v11264_v53  ;;  %v5115_v18 = vadd.f32 %v5099_v41, %v11269_v31  ;;  %v5117_v5 = vadd.f32 %v5101_v51, %v11272_v61 }
0x1698   :  { %v5130_v62 = vmul.f32 0.7978846, %v5114_v25  ;;  %v5132_v21 = vmul.f32 0.7978846, %v5116_v34  ;;  %v5074_v1 = vmul.f32 0.044715, %v11295_v46  ;;  %v5086_v43 = vmul.f32 %v5070_v9, %v11279_v57 }
0x1699   :  { %v4956_v33 = vpop.f32.mrb[88].mxu0  ;;  %v5045_v30 = vpop.f32.mrb[86].mxu1  ;;  %v5075_v55 = vmul.f32 0.044715, %v11299_v12  ;;  %v5087_v56 = vmul.f32 %v5071_v23, %v11282_v3  ;;  %v5089_v38 = vmul.f32 %v5073_v29, %v11285_v63  ;;  %v5077_v7 = vmul.f32 0.044715, %v11302_v19 }
0x169a   :  { %v4958_v35 = vpop.f32.mrb[89].mxu0  ;;  %v5047_v59 = vpop.f32.mrb[87].mxu1  ;;  %7989 = vtanh.f32 %v5130_v62  ;;  %v5076_v16 = vmul.f32 0.044715, %v11305_v36  ;;  %v11320_v15 = vadd.f32 %v4956_v33, %v11255_v0  ;;  %v5131_v4 = vmul.f32 0.7978846, %v5115_v18 }
0x169b   :  { %7991 = vtanh.f32 %v5132_v21  ;;  %v5088_v28 = vmul.f32 %v5072_v42, %v11289_v32  ;;  %v11324_v2 = vadd.f32 %v5045_v30, %v11258_v8  ;;  %v11327_v44 = vadd.f32 %v4958_v35, %v11261_v37 }
0x169c   :  { %v5133_v49 = vmul.f32 0.7978846, %v5117_v5  ;;  %v11329_v17 = vmul.f32 0.5, %v5028_v60  ;;  %v5090_v47 = vmul.f32 %v5074_v1, %v11295_v46  ;;  %v5091_v22 = vmul.f32 %v5075_v55, %v11299_v12 }
0x169d   :  { %7993 = vtanh.f32 %v5131_v4  ;;  %v5093_v0 = vmul.f32 %v5077_v7, %v11302_v19  ;;  %v11335_v11 = vadd.f32 %v5047_v59, %v11264_v53  ;;  %v5103_v8 = vmul.f32 %v5087_v56, %v11282_v3 }
0x169e   :  { %7995 = vtanh.f32 %v5133_v49  ;;  %v5092_v14 = vmul.f32 %v5076_v16, %v11305_v36  ;;  %v5078_v37 = vmul.f32 0.044715, %v11320_v15  ;;  %v5105_v60 = vmul.f32 %v5089_v38, %v11285_v63 }
0x169f   :  { %v5102_v6 = vmul.f32 %v5086_v43, %v11279_v57  ;;  %v5080_v48 = vmul.f32 0.044715, %v11324_v2  ;;  %v5079_v26 = vmul.f32 0.044715, %v11327_v44  ;;  %v5119_v50 = vadd.f32 %v5103_v8, %v11282_v3 }
0x16a0   :  { %v5104_v53 = vmul.f32 %v5088_v28, %v11289_v32  ;;  %v5051_v27 = vmul.f32 0.5, %v11269_v31  ;;  %v5121_v20 = vadd.f32 %v5105_v60, %v11285_v63  ;;  %v5107_v25 = vmul.f32 %v5091_v22, %v11299_v12 }
0x16a1   :  { %v5118_v41 = vadd.f32 %v5102_v6, %v11279_v57  ;;  %v5081_v34 = vmul.f32 0.044715, %v11335_v11  ;;  %v5135_v58 = vmul.f32 0.7978846, %v5119_v50  ;;  %v5109_v51 = vmul.f32 %v5093_v0, %v11302_v19 }
0x16a2   :  { %v5120_v45 = vadd.f32 %v5104_v53, %v11289_v32  ;;  %v5094_v23 = vmul.f32 %v5078_v37, %v11320_v15  ;;  %v5137_v62 = vmul.f32 0.7978846, %v5121_v20  ;;  %v5123_v31 = vadd.f32 %v5107_v25, %v11299_v12 }
0x16a3   :  { %v5134_v29 = vmul.f32 0.7978846, %v5118_v41  ;;  %v5095_v21 = vmul.f32 %v5079_v26, %v11327_v44  ;;  %7997 = vtanh.f32 %v5135_v58  ;;  %v5125_v30 = vadd.f32 %v5109_v51, %v11302_v19 }
0x16a4   :  { %v7990_v9 = vpop.eup %7989  ;;  %v5136_v33 = vmul.f32 0.7978846, %v5120_v45  ;;  %v5053_v42 = vmul.f32 0.5, %v11272_v61  ;;  %7999 = vtanh.f32 %v5137_v62  ;;  %v5139_v35 = vmul.f32 0.7978846, %v5123_v31 }
0x16a5   :  { %v7992_v18 = vpop.eup %7991  ;;  %v5106_v59 = vmul.f32 %v5090_v47, %v11295_v46  ;;  %v5097_v5 = vmul.f32 %v5081_v34, %v11335_v11  ;;  %v5162_v1 = vadd.f32 1.0, %v7990_v9  ;;  %8001 = vtanh.f32 %v5134_v29 }
0x16a6   :  { %v5141_v55 = vmul.f32 0.7978846, %v5125_v30  ;;  %v5096_v56 = vmul.f32 %v5080_v48, %v11324_v2  ;;  %8003 = vtanh.f32 %v5136_v33  ;;  %v5108_v7 = vmul.f32 %v5092_v14, %v11305_v36 }
0x16a7   :  { %v7994_v43 = vpop.eup %7993  ;;  %v5122_v38 = vadd.f32 %v5106_v59, %v11295_v46  ;;  %v5164_v61 = vadd.f32 1.0, %v7992_v18  ;;  %8005 = vtanh.f32 %v5139_v35  ;;  %v5111_v28 = vmul.f32 %v5095_v21, %v11327_v44 }
0x16a8   :  { %v7996_v16 = vpop.eup %7995  ;;  %v5163_v4 = vadd.f32 1.0, %v7994_v43  ;;  %8007 = vtanh.f32 %v5141_v55  ;;  %v5124_v22 = vadd.f32 %v5108_v7, %v11305_v36  ;;  %v5178_v8 = vmul.f32 %v5162_v1, %v11310_v52 }
0x16a9   :  { %v5165_v49 = vadd.f32 1.0, %v7996_v16  ;;  %v5138_v47 = vmul.f32 0.7978846, %v5122_v38  ;;  %v5127_v37 = vadd.f32 %v5111_v28, %v11327_v44  ;;  %v5113_v60 = vmul.f32 %v5097_v5, %v11335_v11 }
0x16aa   :  { %v5179_v0 = vmul.f32 %v5163_v4, %v5051_v27  ;;  %v5140_v14 = vmul.f32 0.7978846, %v5124_v22  ;;  %v5110_v48 = vmul.f32 %v5094_v23, %v11320_v15  ;;  %v5180_v26 = vmul.f32 %v5164_v61, %v11329_v17 }
0x16ab   :  { %v5181_v6 = vmul.f32 %v5165_v49, %v5053_v42  ;;  %8009 = vtanh.f32 %v5138_v47  ;;  %v5143_v50 = vmul.f32 0.7978846, %v5127_v37  ;;  %v5129_v53 = vadd.f32 %v5113_v60, %v11335_v11 }
0x16ac   :  { %5264 = vmatprep.mubr.f32.mxu0 %v5179_v0  ;;  %v5112_v20 = vmul.f32 %v5096_v56, %v11324_v2  ;;  %8011 = vtanh.f32 %v5140_v14  ;;  %v5126_v52 = vadd.f32 %v5110_v48, %v11320_v15  ;;  %v5055_v58 = vmul.f32 0.5, %v11282_v3 }
0x16ad   :  { %5349 = vmatprep.mubr.f32.mxu1 %v5181_v6  ;;  %5265 = vmatmul.mubr.f32.vlgmr.msra.gmra.mrb[90].mxu0 %v5178_v8  ;;  %v7998_v27 = vpop.eup %7997  ;;  %8013 = vtanh.f32 %v5143_v50  ;;  %v5145_v41 = vmul.f32 0.7978846, %v5129_v53  ;;  %v5057_v9 = vmul.f32 0.5, %v11285_v63  ;;  %v5054_v21 = vmul.f32 0.5, %v11279_v57 }
0x16ae   :  { %5350 = vmatmul.mubr.f32.vlgmr.msra.gmra.mrb[88].mxu1 %v5180_v26  ;;  %v5128_v25 = vadd.f32 %v5112_v20, %v11324_v2  ;;  %v8000_v34 = vpop.eup %7999  ;;  %v5167_v17 = vadd.f32 1.0, %v7998_v27  ;;  %v5142_v45 = vmul.f32 0.7978846, %v5126_v52  ;;  %v5056_v42 = vmul.f32 0.5, %v11289_v32 }
0x16af   :  { %v8002_v51 = vpop.eup %8001  ;;  %v5169_v23 = vadd.f32 1.0, %v8000_v34  ;;  %8015 = vtanh.f32 %v5145_v41  ;;  %v5059_v63 = vmul.f32 0.5, %v11299_v12  ;;  %v5061_v55 = vmul.f32 0.5, %v11302_v19  ;;  %v11669_v34 = vld [vmem:[#allocation13_spill] sm:$0xff] }
0x16b0   :  { %v5144_v62 = vmul.f32 0.7978846, %v5128_v25  ;;  %v8004_v29 = vpop.eup %8003  ;;  %v5183_v31 = vmul.f32 %v5167_v17, %v5055_v58  ;;  %v5166_v33 = vadd.f32 1.0, %v8002_v51  ;;  %8017 = vtanh.f32 %v5142_v45 }
0x16b1   :  { %v8006_v30 = vpop.eup %8005  ;;  %v5185_v18 = vmul.f32 %v5169_v23, %v5057_v9  ;;  %v5168_v35 = vadd.f32 1.0, %v8004_v29  ;;  %v5058_v32 = vmul.f32 0.5, %v11295_v46  ;;  %v5060_v12 = vmul.f32 0.5, %v11305_v36 }
0x16b2   :  { %8019 = vtanh.f32 %v5144_v62  ;;  %v8008_v3 = vpop.eup %8007  ;;  %5269 = vmatprep.mubr.f32.mxu0 %v5183_v31  ;;  %v5182_v59 = vmul.f32 %v5166_v33, %v5054_v21  ;;  %v5171_v5 = vadd.f32 1.0, %v8006_v30  ;;  %v5063_v49 = vmul.f32 0.5, %v11327_v44 }
0x16b3   :  { %5354 = vmatprep.mubr.f32.mxu1 %v5185_v18  ;;  %v5184_v1 = vmul.f32 %v5168_v35, %v5056_v42  ;;  %v5173_v43 = vadd.f32 1.0, %v8008_v3  ;;  %v5065_v37 = vmul.f32 0.5, %v11335_v11  ;;  %v5062_v6 = vmul.f32 0.5, %v11320_v15  ;;  %v5994_v15 = vld [vmem:[%s11566_s18 + $0x1] ss:$0 sm:$0xff] }
0x16b4   :  { %5270 = vmatmul.mubr.f32.gmra.mrb[92].mxu0 %v5182_v59  ;;  %v5187_v56 = vmul.f32 %v5171_v5, %v5059_v63  ;;  %v5064_v36 = vmul.f32 0.5, %v11324_v2  ;;  %v11670_v59 = vld [vmem:[#allocation15_spill] sm:$0xff] }
0x16b5   :  { %v8010_v57 = vpop.eup %8009  ;;  %5355 = vmatmul.mubr.f32.gmra.mrb[90].mxu1 %v5184_v1  ;;  %v5189_v38 = vmul.f32 %v5173_v43, %v5061_v55 }
0x16b6   :  { %v5170_v7 = vadd.f32 1.0, %v8010_v57  ;;  %v8012_v16 = vpop.eup %8011  ;;  %5274 = vmatprep.mubr.f32.mxu0 %v5187_v56 }
0x16b7   :  { %v8014_v4 = vpop.eup %8013  ;;  %5359 = vmatprep.mubr.f32.mxu1 %v5189_v38  ;;  %v5172_v28 = vadd.f32 1.0, %v8012_v16  ;;  %v11671_v16 = vld [vmem:[#allocation14_spill] sm:$0xff] }
0x16b8   :  { %v5186_v61 = vmul.f32 %v5170_v7, %v5058_v32  ;;  %v5175_v19 = vadd.f32 1.0, %v8014_v4 }
0x16b9   :  { %v8016_v47 = vpop.eup %8015  ;;  %v5188_v22 = vmul.f32 %v5172_v28, %v5060_v12 }
0x16ba   :  { %5275 = vmatmul.mubr.f32.gmra.mrb[94].mxu0 %v5186_v61  ;;  %v8018_v0 = vpop.eup %8017  ;;  %v5191_v8 = vmul.f32 %v5175_v19, %v5063_v49  ;;  %v5177_v46 = vadd.f32 1.0, %v8016_v47 }
0x16bb   :  { %5360 = vmatmul.mubr.f32.gmra.mrb[92].mxu1 %v5188_v22  ;;  %v5174_v14 = vadd.f32 1.0, %v8018_v0 }
0x16bc   :  { %v8020_v60 = vpop.eup %8019  ;;  %5279 = vmatprep.mubr.f32.mxu0 %v5191_v8  ;;  %v5193_v48 = vmul.f32 %v5177_v46, %v5065_v37 }
0x16bd   :  { %v5176_v26 = vadd.f32 1.0, %v8020_v60  ;;  %v5190_v44 = vmul.f32 %v5174_v14, %v5062_v6  ;;  %v11672_v60 = vld [vmem:[#allocation5_spill] sm:$0xff] }
0x16be   :  { %5364 = vmatprep.mubr.f32.mxu1 %v5193_v48 }
0x16bf   :  { %v5192_v50 = vmul.f32 %v5176_v26, %v5064_v36  ;;  %5280 = vmatmul.mubr.f32.gmra.mrb[96].mxu0 %v5190_v44 }
0x16c0   :  { %6856 = vmatprep.mubr.msk.f32.mxu0 %vm8050_vm0, %v11640_v24 }
0x16c1   :  { %5365 = vmatmul.mubr.f32.gmra.mrb[94].mxu1 %v5192_v50 }
0x16c2   :  { %6891 = vmatprep.mubr.msk.f32.mxu1 %vm8050_vm0, %v11640_v24 }
0x1780   :  { %v6347_v11 = vpop.f32.mrb[90].mxu0 }
0x1781   :  { %v6391_v53 = vpop.f32.mrb[88].mxu1  ;;  %v6348_v20 = vpop.f32.mrb[91].mxu0 }
0x1782   :  { %v6349_v2 = vadd.f32 %v6348_v20, %v6347_v11  ;;  %v6392_v52 = vpop.f32.mrb[89].mxu1 }
0x1783   :  { %v6393_v27 = vadd.f32 %v6392_v52, %v6391_v53 }
0x1784   :  { %v5267_v41 = vadd.f32 %v6349_v2, %v5994_v15 }
0x1786   :  { %v5352_v25 = vadd.f32 %v6393_v27, %v5267_v41 }
0x1787   :  { %v6350_v17 = vpop.f32.mrb[92].mxu0 }
0x1788   :  { %v5370_v58 = vmul.f32 %v5352_v25, %v11669_v34  ;;  %v6394_v45 = vpop.f32.mrb[90].mxu1  ;;  %v6351_v51 = vpop.f32.mrb[93].mxu0 }
0x1789   :  { %v6352_v24 = vadd.f32 %v6351_v51, %v6350_v17  ;;  %v6395_v23 = vpop.f32.mrb[91].mxu1 }
0x178a   :  { %v5374_v9 = vadd.f32 %v5370_v58, %v10813_v39  ;;  %v6396_v62 = vadd.f32 %v6395_v23, %v6394_v45  ;;  %v5996_v23 = vld [vmem:[%s11571_s23 + $0x80] sm:$0xff] }
0x178b   :  { %v5272_v31 = vadd.f32 %v6352_v24, %v5994_v15  ;;  %v5441_v24 = vld [vmem:[%s11571_s23 + $0x8] sm:$0xff] }
0x178c   :  { %v5378_v29 = vrot.slane %v5374_v9, 4 }
0x178d   :  { %v6353_v21 = vpop.f32.mrb[94].mxu0  ;;  %v5357_v30 = vadd.f32 %v6396_v62, %v5272_v31  ;;  %v5442_v31 = vld [vmem:[%s11571_s23 + $0x10] sm:$0xff] }
0x178e   :  { %v5379_v33 = vadd.f32 %v5378_v29, %v5374_v9  ;;  %v6354_v18 = vpop.f32.mrb[95].mxu0  ;;  %v6397_v42 = vpop.f32.mrb[92].mxu1  ;;  %v5440_v9 = vld [vmem:[%s11571_s23] sm:$0xff]  ;;  %v5997_v29 = vld [vmem:[%s11571_s23 + $0x88] sm:$0xff] }
0x178f   :  { %v6355_v35 = vadd.f32 %v6354_v18, %v6353_v21  ;;  %v5371_v63 = vmul.f32 %v5357_v30, %v11670_v59  ;;  %v6398_v5 = vpop.f32.mrb[93].mxu1  ;;  %v7705_v62 = vpack.c.bf16 %v5441_v24, %v5440_v9  ;;  %v5443_v21 = vld [vmem:[%s11571_s23 + $0x18] sm:$0xff]  ;;  %v5998_v30 = vld [vmem:[%s11571_s23 + $0x90] sm:$0xff]  ;;  %v5445_v59 = vld [vmem:[%s11571_s23 + $0x28] sm:$0xff] }
0x1790   :  { %v5380_v3 = vrot.slane %v5379_v33, 2  ;;  %v6399_v55 = vadd.f32 %v6398_v5, %v6397_v42  ;;  %v5999_v18 = vld [vmem:[%s11571_s23 + $0x98] sm:$0xff]  ;;  %v7708_v42 = vpack.c.bf16 %v5443_v21, %v5442_v31  ;;  %v6001_v5 = vld [vmem:[%s11571_s23 + $0xa8] sm:$0xff]  ;;  %v5995_v31 = vld [vmem:[%s11572_s24] ss:$0 sm:$0xff] }
0x1791   :  { %v5277_v1 = vadd.f32 %v6355_v35, %v5994_v15  ;;  %v5375_v43 = vadd.f32 %v5371_v63, %v10810_v13  ;;  %7706 = vmatpush3.bf16.msra.mxu0 %v7705_v62  ;;  %v7732_v35 = vpack.c.bf16 %v5999_v18, %v5998_v30  ;;  %v6000_v63 = vld [vmem:[%s11571_s23 + $0xa0] sm:$0xff] }
0x1792   :  { %v6356_v57 = vpop.f32.mrb[96].mxu0  ;;  %v5381_v56 = vadd.f32 %v5380_v3, %v5379_v33  ;;  %v7729_v33 = vpack.c.bf16 %v5997_v29, %v5996_v23  ;;  %7707 = vmatprep.subr.bf16.mxu0 %v11665_v54  ;;  %v5444_v3 = vld [vmem:[%s11571_s23 + $0x20] sm:$0xff] }
0x1793   :  { %v5362_v39 = vadd.f32 %v6399_v55, %v5277_v1  ;;  %v5386_v38 = vrot.slane %v5375_v43, 4  ;;  %v6357_v7 = vpop.f32.mrb[97].mxu0  ;;  %v7711_v1 = vpack.c.bf16 %v5445_v59, %v5444_v3  ;;  %v7735_v55 = vpack.c.bf16 %v6001_v5, %v6000_v63  ;;  %v6013_v21 = vld [vmem:[%s11572_s24 + $0x1] ss:$0 sm:$0xff] }
0x1794   :  { %v6400_v32 = vpop.f32.mrb[94].mxu1  ;;  %v6358_v61 = vadd.f32 %v6357_v7, %v6356_v57  ;;  %v5382_v22 = vrot.slane %v5381_v56, 1  ;;  %7730 = vmatpush3.bf16.msra.mxu1 %v7729_v33  ;;  %v5447_v7 = vld [vmem:[%s11571_s23 + $0x38] sm:$0xff] }
0x1795   :  { %v5372_v4 = vmul.f32 %v5362_v39, %v11671_v16  ;;  %v6401_v12 = vpop.f32.mrb[95].mxu1  ;;  %v5387_v28 = vadd.f32 %v5386_v38, %v5375_v43  ;;  %7731 = vmatprep.subr.bf16.mxu1 %v11665_v54  ;;  %7709 = vmatpush3.bf16.msra.mxu0 %v7708_v42  ;;  %v6002_v16 = vld [vmem:[%s11571_s23 + $0xb0] sm:$0xff] }
0x1796   :  { %v6402_v49 = vadd.f32 %v6401_v12, %v6400_v32  ;;  %v5282_v47 = vadd.f32 %v6358_v61, %v5994_v15  ;;  %v5383_v48 = vadd.f32 %v5382_v22, %v5381_v56  ;;  %7710 = vmatprep.subr.bf16.mxu0 %v11665_v54  ;;  %v5446_v32 = vld [vmem:[%s11571_s23 + $0x30] sm:$0xff]  ;;  %v6003_v61 = vld [vmem:[%s11571_s23 + $0xb8] sm:$0xff]  ;;  %v6005_v22 = vld [vmem:[%s11571_s23 + $0xc8] sm:$0xff] }
0x1797   :  { %v5376_v19 = vadd.f32 %v5372_v4, %v10823_v40  ;;  %v5388_v0 = vrot.slane %v5387_v28, 2  ;;  %v7714_v4 = vpack.c.bf16 %v5447_v7, %v5446_v32  ;;  %v7738_v12 = vpack.c.bf16 %v6003_v61, %v6002_v16 }
0x1798   :  { %v5367_v37 = vadd.f32 %v6402_v49, %v5282_v47  ;;  %v5385_v53 = vmul.f32 0.125, %v5383_v48  ;;  %7733 = vmatpush3.bf16.msra.mxu1 %v7732_v35  ;;  %v5449_v49 = vld [vmem:[%s11571_s23 + $0x48] sm:$0xff] }
0x1799   :  { %v5393_v8 = vrot.slane %v5376_v19, 4  ;;  %v5389_v13 = vadd.f32 %v5388_v0, %v5387_v28  ;;  %7734 = vmatprep.subr.bf16.mxu1 %v11665_v54  ;;  %7712 = vmatpush3.bf16.msra.mxu0 %v7711_v1  ;;  %v5448_v28 = vld [vmem:[%s11571_s23 + $0x40] sm:$0xff] }
0x179a   :  { %v5373_v6 = vmul.f32 %v5367_v37, %v11672_v60  ;;  %7713 = vmatprep.subr.bf16.mxu0 %v11665_v54  ;;  %v7717_v47 = vpack.c.bf16 %v5449_v49, %v5448_v28  ;;  %v5451_v37 = vld [vmem:[%s11571_s23 + $0x58] sm:$0xff] }
0x179b   :  { %v5394_v46 = vadd.f32 %v5393_v8, %v5376_v19  ;;  %v5390_v14 = vrot.slane %v5389_v13, 1  ;;  %v6004_v19 = vld [vmem:[%s11571_s23 + $0xc0] sm:$0xff]  ;;  %v5450_v8 = vld [vmem:[%s11571_s23 + $0x50] sm:$0xff]  ;;  %v6007_v60 = vld [vmem:[%s11571_s23 + $0xd8] sm:$0xff] }
0x179c   :  { %v5377_v26 = vadd.f32 %v5373_v6, %v10820_v10  ;;  %7736 = vmatpush3.bf16.msra.mxu1 %v7735_v55  ;;  %v7741_v0 = vpack.c.bf16 %v6005_v22, %v6004_v19  ;;  %v5452_v6 = vld [vmem:[%s11571_s23 + $0x60] sm:$0xff] }
0x179d   :  { %v5395_v36 = vrot.slane %v5394_v46, 2  ;;  %v5391_v44 = vadd.f32 %v5390_v14, %v5389_v13  ;;  %7737 = vmatprep.subr.bf16.mxu1 %v11665_v54  ;;  %7715 = vmatpush3.bf16.msra.mxu0 %v7714_v4  ;;  %v6006_v13 = vld [vmem:[%s11571_s23 + $0xd0] sm:$0xff]  ;;  %v5453_v14 = vld [vmem:[%s11571_s23 + $0x68] sm:$0xff] }
0x179e   :  { %v5400_v11 = vrot.slane %v5377_v26, 4  ;;  %7716 = vmatprep.subr.bf16.mxu0 %v11665_v54  ;;  %v7744_v48 = vpack.c.bf16 %v6007_v60, %v6006_v13 }
0x179f   :  { %v5396_v50 = vadd.f32 %v5395_v36, %v5394_v46  ;;  %v5392_v40 = vmul.f32 0.125, %v5391_v44  ;;  %v7720_v46 = vpack.c.bf16 %v5451_v37, %v5450_v8  ;;  %v6008_v36 = vld [vmem:[%s11571_s23 + $0xe0] sm:$0xff]  ;;  %v7723_v44 = vpack.c.bf16 %v5453_v14, %v5452_v6 }
0x17a0   :  { %v5401_v15 = vadd.f32 %v5400_v11, %v5377_v26  ;;  %7739 = vmatpush3.bf16.msra.mxu1 %v7738_v12  ;;  %v6009_v26 = vld [vmem:[%s11571_s23 + $0xe8] sm:$0xff]  ;;  %v5454_v11 = vld [vmem:[%s11571_s23 + $0x70] sm:$0xff] }
0x17a1   :  { %v5397_v20 = vrot.slane %v5396_v50, 1  ;;  %v5408_v2 = vsel %vm5407_vm3, %v5385_v53, %v5392_v40  ;;  %7740 = vmatprep.subr.bf16.mxu1 %v11665_v54  ;;  %7718 = vmatpush3.bf16.msra.mxu0 %v7717_v47  ;;  %v5455_v53 = vld [vmem:[%s11571_s23 + $0x78] sm:$0xff]  ;;  %v6010_v40 = vld [vmem:[%s11571_s23 + $0xf0] sm:$0xff] }
0x17a2   :  { %v5402_v27 = vrot.slane %v5401_v15, 2  ;;  %7719 = vmatprep.subr.bf16.mxu0 %v11665_v54 }
0x17a3   :  { %v5398_v52 = vadd.f32 %v5397_v20, %v5396_v50  ;;  %v7747_v50 = vpack.c.bf16 %v6009_v26, %v6008_v36  ;;  %v7726_v20 = vpack.c.bf16 %v5455_v53, %v5454_v11 }
0x17a4   :  { %v5403_v25 = vadd.f32 %v5402_v27, %v5401_v15  ;;  %7742 = vmatpush3.bf16.msra.mxu1 %v7741_v0  ;;  %v6011_v15 = vld [vmem:[%s11571_s23 + $0xf8] sm:$0xff]  ;;  %v8052_v27 = vmov 1  }
0x17a5   :  { %v5399_v41 = vmul.f32 0.125, %v5398_v52  ;;  %7743 = vmatprep.subr.bf16.mxu1 %v11665_v54  ;;  %7721 = vmatpush3.bf16.msra.mxu0 %v7720_v46  ;;  %v7750_v52 = vpack.c.bf16 %v6011_v15, %v6010_v40 }
0x17a6   :  { %v5404_v34 = vrot.slane %v5403_v25, 1  ;;  %7722 = vmatprep.subr.bf16.mxu0 %v11665_v54  ;;  %7783 = vset.pattern.permute.xlu1 %v8052_v27 }
0x17a7   :  { %v5410_v58 = vsel %vm5409_vm4, %v5408_v2, %v5399_v41  ;;  %v5439_v2 = vld [vmem:[%s11573_s25] sm:$0xf]  ;;  %v8053_v41 = vmov 0  }
0x17a8   :  { %v5405_v17 = vadd.f32 %v5404_v34, %v5403_v25  ;;  %7745 = vmatpush3.bf16.msra.mxu1 %v7744_v48  ;;  %7782 = vset.pattern.permute.xlu0 %v8053_v41 }
0x17a9   :  { %7746 = vmatprep.subr.bf16.mxu1 %v11665_v54  ;;  %7724 = vmatpush3.bf16.msra.mxu0 %v7723_v44 }
0x17aa   :  { %v5406_v10 = vmul.f32 0.125, %v5405_v17  ;;  %7725 = vmatprep.subr.bf16.mxu0 %v11665_v54  ;;  %v5427_v17 = vld [vmem:[%s11569_s21] sm:$0x3] }
0x17ac   :  { %v5412_v45 = vsel %vm5411_vm5, %v5410_v58, %v5406_v10  ;;  %7748 = vmatpush3.bf16.msra.mxu1 %v7747_v50  ;;  %v5429_v10 = vrot.slane %v5427_v17, 6 }
0x17ad   :  { %v5414_v51 = vsel %vm5413_vm6, %v5412_v45, 0.0  ;;  %7749 = vmatprep.subr.bf16.mxu1 %v11665_v54  ;;  %7727 = vmatpush3.bf16.msra.mxu0 %v7726_v20  ;;  %v5432_v54 = vld [vmem:[%s11570_s22] sm:$0x3]  ;;  %s8054_s22 = smov [#allocation2]  }
0x17ae   :  { %5415 = vadd.xlane.f32.xlu0 %v5414_v51  ;;  %v5431_v9 = vsel %vm5409_vm4, %v5427_v17, %v5429_v10  ;;  %s5648_s13 = sshll.u32 %s8054_s22, 4  ;;  %s5649_s13 = int_to_ptr.vmem [resolvable:$true] %s5648_s13 }
0x17af   :  { %s8025_s7 = scalar_lea.vmem %s5649_s13, 64  ;;  %p8030_p1 = scmp.lt.s32.totalorder %s5649_s13, %s5649_s13 }
0x17b0   :  { %7751 = vmatpush3.bf16.msra.mxu1 %v7750_v52  ;;  %p8026_p0 = scmp.ne.s32.totalorder %s5649_s13, %s8025_s7  ;;  %p8031_p2 = scmp.lt.s32.totalorder %s8025_s7, %s8025_s7 }
0x17b2   :  { %p8032_p3 = por %p8031_p2, %p8030_p1 }
0x17b4   :  { %p8033_p4 = pnand %p8032_p3, %p8026_p0 }
0x17c4   :  { %5535 = vperm.xlu0 %7782, %v5439_v2  }
0x17c8   :  { %7784 = vset.pattern.permute.xlu0 %v8052_v27 }
0x183b   :  { %v5416_v43 = vpop.xlane.xlu0 %5415 }
0x183c   :  { %v5417_v39 = vmul.f32 0.0078125, %v5416_v43 }
0x183e   :  { %v11445_v57 = vsub.f32 %v5412_v45, %v5417_v39  ;;  %v5434_v45 = vrot.slane %v5432_v54, 6 }
0x1840   :  { %v5419_v56 = vmul.f32 %v11445_v57, %v11445_v57  ;;  %v5436_v23 = vsel %vm5409_vm4, %v5432_v54, %v5434_v45 }
0x1842   :  { %v5420_v38 = vsel %vm5413_vm6, %v5419_v56, 0.0 }
0x1843   :  { %5421 = vadd.xlane.f32.xlu1 %v5420_v38  ;;  %v5536_v30 = vpop.permute.xlu0 %5535 }
0x1854   :  { %5636 = vperm.xlu1 %7783, %v5439_v2  }
0x18d0   :  { %v5422_v25 = vpop.xlane.xlu1 %5421 }
0x18d1   :  { %v5423_v34 = vmul.f32 0.0078125, %v5422_v25 }
0x18d3   :  { %v5424_v58 = vadd.f32 1e-05, %v5423_v34 }
0x18d4   :  { %v5637_v33 = vpop.permute.xlu1 %5636 }
0x18d5   :  { %8021 = vrsqrt.f32 %v5424_v58 }
0x18df   :  { %v8022_v51 = vpop.eup %8021 }
0x18e0   :  { %v5426_v24 = vmul.f32 %v8022_v51, %v11445_v57 }
0x18e2   :  { %v5437_v62 = vmul.f32 %v5431_v9, %v5426_v24 }
0x18e4   :  { %v5438_v29 = vadd.f32 %v5437_v62, %v5436_v23 }
0x18e6   :  { %6857 = vmatmul.mubr.f32.vlgmr.msra.gmra.mrb[98].mxu0 %v5438_v29  ;;  %6892 = vmatmul.mubr.f32.vlgmr.msra.gmra.mrb[96].mxu1 %v5438_v29 }
0x19b9   :  { %v5529_v18 = vpop.f32.mrb[98].mxu0  ;;  %v5631_v42 = vpop.f32.mrb[96].mxu1 }
0x19ba   :  { %v5530_v35 = vadd.f32 %v5995_v31, %v5529_v18  ;;  %v5632_v3 = vadd.f32 %v6013_v21, %v5631_v42  ;;  %v6858_v59 = vpop.f32.mrb[99].mxu0  ;;  %v6893_v63 = vpop.f32.mrb[97].mxu1 }
0x19bc   :  { %v5639_v5 = vmul.f32 %v5637_v33, %v5632_v3  ;;  %v5538_v1 = vmul.f32 %v5536_v30, %v5530_v35 }
0x19be   :  { %v5640_v55 = vadd.f32 %v5639_v5, %v5538_v1 }
0x19c0   :  { %5641 = vst [vmem:[#allocation2] sm:$0xf] %v5640_v55 }
0x19c1   :  { %8036 = shalt.err (!%p8033_p4)
}
0x19c2   :  { %s8037_s17 = scalar_lea.hbm %s11574_s26, 64 }
0x19c3   :  { %p8038_p5 = scmp.ne.s32.totalorder %s11574_s26, %s8037_s17  ;;  %p8041_p6 = scmp.lt.u32.totalorder %s8037_s17, %s11574_s26 }
0x19c5   :  { %p8043_p7 = pnand %p8041_p6, %p8038_p5 }
0x19c7   :  { %8046 = shalt.err (!%p8043_p7)
}
0x19c8   :  { %5651 = dma.vmem_to_hbm [thread:$0]  %s5649_s13, 64, %s11574_s26, [#allocation3]  }
0x19c9   :  { %8047 = dma.done.wait [#allocation3], 64  }
0x19ca   :  { %8048 = vsyncadd [#allocation3], 4294967232 }
0x19cb   :  { %5655 = vsyncpa [#allocation3], 1 }

</bundles_post_ra>
